<compile_context>
chip_gen: v6e
topology: v6e:2x2x1
jax: 0.10.0
libtpu: 0.0.40
codegen_flags: <defaults>
</compile_context>

<pallas_src>
import functools

import jax
import jax.numpy as jnp
from jax.experimental import pallas as pl
from jax.experimental.pallas import tpu as pltpu


# ----------------------------- hardware helpers -----------------------------


def _num_tensorcores():
    """Best-effort count of TensorCores one pallas_call grid can span.

    Wrong answers only change tiling (always correct): 1 -> single full block,
    2 -> balanced 'parallel' tiles for megacore sharding.
    """
    try:
        kind = jax.devices()[0].device_kind.lower()
    except Exception:
        return 1
    for s in ("v5e", "v5 lite", "v5lite", "v6e", "v6 lite", "v6lite"):
        if s in kind:
            return 1                      # single TensorCore per chip
    for s in ("v7", "v4", "v3", "v2"):
        if s in kind:
            return 2                      # dual-TC / megacore
    return 1


def _round_up(x, m):
    return ((x + m - 1) // m) * m


# ----------------------------- Pallas kernels ------------------------------


def _conv_bias_act_kernel(p_ref, w_ref, b_ref, o_ref, *, apply_bias, apply_relu):
    """One im2col GEMM tile: (tm, K) @ (K, tn), f32 accumulate, fused bias+ReLU."""
    y = jnp.dot(p_ref[...], w_ref[...], preferred_element_type=jnp.float32)
    if apply_bias:
        y = y + b_ref[...]
    if apply_relu:
        y = jnp.maximum(y, 0.0)
    o_ref[...] = y.astype(o_ref.dtype)


def conv_gemm_pallas(patches, w_mat, bias, *, apply_bias, apply_relu, out_dtype):
    """patches: (M, K) bf16; w_mat: (K, Cout) bf16 (scale pre-folded);
    bias: (1, Cout) f32. Returns (M, Cout) out_dtype."""
    M, K = patches.shape
    Cout = w_mat.shape[-1]
    n_tc = _num_tensorcores()

    # M tiling: full-M block on single-TC chips (no grid-step / masked partial
    # tile); balanced multiple-of-8 tiles on megacore chips (e.g. 488+480).
    if M <= 512 or n_tc == 1:
        tm = M
    else:
        tm = _round_up(pl.cdiv(M, n_tc), 8)
    m_blocks = pl.cdiv(M, tm)

    # Cout tiling: when M has a single block, split Cout so the second
    # TensorCore gets a lane-dense 128-wide GEMM of its own (v7x).  On
    # single-TC chips keep one block (extra grid steps are pure overhead).
    if n_tc > 1 and m_blocks == 1 and Cout >= 256 and Cout % (128 * n_tc) == 0:
        tn = Cout // n_tc
    else:
        tn = Cout
    n_blocks = pl.cdiv(Cout, tn)

    # NOTE: full-K single blocks are far under scoped VMEM on all generations
    # at these sizes; if K/Cin ever grow, add an innermost 'arbitrary' K axis
    # with an f32 accumulator rather than shrinking tm or tn.
    kernel = functools.partial(_conv_bias_act_kernel, apply_bias=apply_bias,
                               apply_relu=apply_relu)
    return pl.pallas_call(
        kernel,
        out_shape=jax.ShapeDtypeStruct((M, Cout), out_dtype),
        grid_spec=pltpu.PrefetchScalarGridSpec(
            num_scalar_prefetch=0,
            grid=(m_blocks, n_blocks),
            in_specs=[
                pl.BlockSpec((tm, K), lambda i, j: (i, 0)),
                pl.BlockSpec((K, tn), lambda i, j: (0, j)),
                pl.BlockSpec((1, tn), lambda i, j: (0, j)),
            ],
            out_specs=pl.BlockSpec((tm, tn), lambda i, j: (i, j)),
        ),
        compiler_params=pltpu.CompilerParams(
            dimension_semantics=("parallel", "parallel")),
    )(patches, w_mat, bias)


def _maxpool_kernel(x_ref, o_ref, *, k, s):
    """MaxPool over a fully VMEM-resident NHWC block.

    Static unroll over the (tiny) pooled output grid; each tap is an int-indexed
    (N, C) ref load and the window max is a chain of elementwise maxima --
    maximally simple lowering for a kernel that is pure overhead at this size.
    """
    _, Oh, Ow, _ = o_ref.shape
    for oh in range(Oh):
        for ow in range(Ow):
            m = None
            for a in range(k):
                for b in range(k):
                    tap = x_ref[:, oh * s + a, ow * s + b, :]   # (N, C)
                    m = tap if m is None else jnp.maximum(m, tap)
            o_ref[:, oh, ow, :] = m


def maxpool2d_pallas(x_nhwc, *, k=3, s=2):
    """x_nhwc: (N, H, W, C) f32 -> (N, Oh, Ow, C) f32, VALID 3x3/stride-2."""
    N, H, W, C = x_nhwc.shape
    Oh, Ow = (H - k) // s + 1, (W - k) // s + 1
    return pl.pallas_call(
        functools.partial(_maxpool_kernel, k=k, s=s),
        out_shape=jax.ShapeDtypeStruct((N, Oh, Ow, C), x_nhwc.dtype),
    )(x_nhwc)


# ------------------------------ JAX glue -----------------------------------


def _conv_out_size(h, k, stride, padding, dilation):
    return (h + 2 * padding - dilation * (k - 1) - 1) // stride + 1


def _im2col(x, k, stride, padding, dilation):
    """x: (N,H,W,C) NHWC (bf16) -> (M=N*Ho*Wo, K=k*k*C), tap-major/channel-minor."""
    N, H, W, C = x.shape
    Ho = _conv_out_size(H, k, stride, padding, dilation)
    Wo = _conv_out_size(W, k, stride, padding, dilation)
    if padding:
        x = jnp.pad(x, ((0, 0), (padding, padding), (padding, padding), (0, 0)))
    taps = []
    for ky in range(k):
        for kx in range(k):
            y0, x0 = ky * dilation, kx * dilation
            taps.append(x[:, y0:y0 + (Ho - 1) * stride + 1:stride,
                          x0:x0 + (Wo - 1) * stride + 1:stride, :])
    # (N, Ho, Wo, T, C) -> (M, T*C); ordering matches w.reshape(k*k*C, Cout).
    patches = jnp.stack(taps, axis=3).reshape(N * Ho * Wo, k * k * C)
    return patches, (N, Ho, Wo)


def conv_layer(x, w, scale, bias, *, stride, padding, dilation, is_bn, is_relu,
               out_dtype):
    """x: NHWC bf16; w: (k,k,Cin,Cout) f32. Returns NHWC in out_dtype."""
    k, _, cin, cout = w.shape
    patches, (N, Ho, Wo) = _im2col(x, k, stride, padding, dilation)
    w_mat = w.reshape(k * k * cin, cout)
    if is_bn:
        # Fold the BN scale into the weight in f32, BEFORE the bf16 cast
        # (jit constant -> folded by XLA at compile time).
        w_mat = w_mat * scale.reshape(1, cout)
        b = bias.reshape(1, cout).astype(jnp.float32)
    else:
        b = jnp.zeros((1, cout), jnp.float32)
    out = conv_gemm_pallas(patches, w_mat.astype(jnp.bfloat16), b,
                           apply_bias=is_bn, apply_relu=is_relu,
                           out_dtype=out_dtype)
    return out.reshape(N, Ho, Wo, cout)


def dilated_conv_block_forward(x_nchw, params):
    # NCHW -> NHWC (C on the lane axis); activations flow in bf16 so im2col and
    # inter-layer HBM traffic are half width. conv5 emits f32 for the result.
    x = jnp.transpose(x_nchw, (0, 2, 3, 1)).astype(jnp.bfloat16)
    convs = params["convs"]
    for li, p in enumerate(convs):
        out_dtype = jnp.float32 if li == len(convs) - 1 else jnp.bfloat16
        x = conv_layer(x, p["w"], p["scale"], p["bias"], stride=p["stride"],
                       padding=p["padding"], dilation=p["dilation"],
                       is_bn=p["is_bn"], is_relu=p["is_relu"],
                       out_dtype=out_dtype)
    out = maxpool2d_pallas(x)                  # MaxPool2d(3, stride=2, pad=0)
    return jnp.transpose(out, (0, 3, 1, 2))    # NHWC -> NCHW


# --------------------------- parameter creation -----------------------------


def make_params(key, cin, *, opt_is_relu=True, opt_is_bn=True):
    cfgs = [
        dict(cin=cin, cout=64, k=7, stride=3, padding=0, dilation=1,
             is_bn=opt_is_bn, is_relu=opt_is_relu),
        dict(cin=64, cout=128, k=5, stride=1, padding=0, dilation=2,
             is_bn=True, is_relu=True),
        dict(cin=128, cout=256, k=3, stride=1, padding=1, dilation=5,
             is_bn=True, is_relu=True),
        dict(cin=256, cout=256, k=3, stride=1, padding=1, dilation=1,
             is_bn=True, is_relu=True),
        dict(cin=256, cout=256, k=3, stride=1, padding=1, dilation=1,
             is_bn=True, is_relu=False),
    ]
    convs = []
    for cfg in cfgs:
        key, kw, kg, kb, km, kv = jax.random.split(key, 6)
        fan_in = cfg["cin"] * cfg["k"] ** 2
        w = jax.random.normal(
            kw, (cfg["k"], cfg["k"], cfg["cin"], cfg["cout"]),
            jnp.float32) * (2.0 / fan_in) ** 0.5
        gamma = 1.0 + 0.1 * jax.random.normal(kg, (cfg["cout"],), jnp.float32)
        beta = 0.1 * jax.random.normal(kb, (cfg["cout"],), jnp.float32)
        rmean = 0.1 * jax.random.normal(km, (cfg["cout"],), jnp.float32)
        rvar = 1.0 + 0.1 * jax.random.uniform(kv, (cfg["cout"],), jnp.float32)
        scale = gamma / jnp.sqrt(rvar + 1e-5)
        bias = beta - rmean * scale
        convs.append(dict(w=w, scale=scale, bias=bias, stride=cfg["stride"],
                          padding=cfg["padding"], dilation=cfg["dilation"],
                          is_bn=cfg["is_bn"], is_relu=cfg["is_relu"]))
    return dict(convs=convs)


# ------------------------- pure-JAX reference (check) -----------------------


def reference_forward(x_nchw, params):
    x = jnp.transpose(x_nchw, (0, 2, 3, 1))
    for p in params["convs"]:
        y = jax.lax.conv_general_dilated(
            x, p["w"],
            window_strides=(p["stride"],) * 2,
            padding=[(p["padding"],) * 2] * 2,
            rhs_dilation=(p["dilation"],) * 2,
            dimension_numbers=("NHWC", "HWIO", "NHWC"),
            precision=jax.lax.Precision.HIGHEST)
        if p["is_bn"]:
            y = y * p["scale"] + p["bias"]
        if p["is_relu"]:
            y = jnp.maximum(y, 0.0)
        x = y
    x = jax.lax.reduce_window(x, -jnp.inf, jax.lax.max,
                              (1, 3, 3, 1), (1, 2, 2, 1), "VALID")
    return jnp.transpose(x, (0, 3, 1, 2))


# --------------------------------- main --------------------------------------


if __name__ == "__main__":
    key = jax.random.PRNGKey(0)
    key, kx = jax.random.split(key)
    # Input must be large enough for the 7/stride-3 conv and dilated 5x5/3x3:
    # 70 -> 22 -> 14 -> 6 -> 6 -> 6 -> pool -> 2.
    N, C, S = 2, 4, 70
    x = jax.random.normal(kx, (N, C, S, S), jnp.float32)   # NCHW like PyTorch
    params = make_params(key, C, opt_is_relu=True, opt_is_bn=True)

    fwd = jax.jit(lambda inp: dilated_conv_block_forward(inp, params))
    ref_fn = jax.jit(lambda inp: reference_forward(inp, params))

    out = jax.block_until_ready(fwd(x))
    assert out.shape == (2, 256, 2, 2), out.shape

    ref = jax.block_until_ready(ref_fn(x))
    err = float(jnp.max(jnp.abs(out - ref)))
    denom = float(jnp.max(jnp.abs(ref))) + 1e-6
    assert err / denom < 3e-2, (err, denom)

    print("KERNEL_OK")
</pallas_src>

<mosaic_0001>
module attributes {stable_mosaic.version = 11 : i64} {
  func.func @_conv_bias_act_kernel(%arg0: i32, %arg1: i32, %arg2: memref<968x196xbf16, #tpu.memory_space<vmem>>, %arg3: memref<196x64xbf16, #tpu.memory_space<vmem>>, %arg4: memref<1x64xf32, #tpu.memory_space<vmem>>, %arg5: memref<968x64xbf16, #tpu.memory_space<vmem>>) attributes {dimension_semantics = [#tpu.dimension_semantics<parallel>, #tpu.dimension_semantics<parallel>], iteration_bounds = array<i64: 1, 1>, scalar_prefetch = 0 : i64, scratch_operands = 0 : i64, tpu.core_type = #tpu.core_type<tc>, window_params = [{transform_indices = @transform_0, window_bounds = array<i64: 968, 196>}, {transform_indices = @transform_1, window_bounds = array<i64: 196, 64>}, {transform_indices = @transform_2, window_bounds = array<i64: 1, 64>}, {transform_indices = @transform_3, window_bounds = array<i64: 968, 64>}]} {
    %c0 = arith.constant 0 : index
    %c0_0 = arith.constant 0 : index
    %0 = vector.load %arg2[%c0, %c0_0] : memref<968x196xbf16, #tpu.memory_space<vmem>>, vector<968x196xbf16>
    %c0_1 = arith.constant 0 : index
    %c0_2 = arith.constant 0 : index
    %1 = vector.load %arg3[%c0_1, %c0_2] : memref<196x64xbf16, #tpu.memory_space<vmem>>, vector<196x64xbf16>
    %cst = arith.constant dense<0.000000e+00> : vector<968x64xf32>
    %2 = tpu.matmul %0, %1, %cst {dimension_numbers = #tpu.dot_dimension_numbers<[1], [0], [0], [1], [0, 0, 1, 1], [], []>} : vector<968x196xbf16>, vector<196x64xbf16>, vector<968x64xf32> -> vector<968x64xf32>
    %c0_3 = arith.constant 0 : index
    %c0_4 = arith.constant 0 : index
    %3 = vector.load %arg4[%c0_3, %c0_4] : memref<1x64xf32, #tpu.memory_space<vmem>>, vector<1x64xf32>
    %4 = vector.broadcast %3 : vector<1x64xf32> to vector<968x64xf32>
    %5 = arith.addf %2, %4 : vector<968x64xf32>
    %cst_5 = arith.constant 0.000000e+00 : f32
    %6 = vector.broadcast %cst_5 : f32 to vector<968x64xf32>
    %7 = arith.maximumf %5, %6 : vector<968x64xf32>
    %8 = arith.truncf %7 : vector<968x64xf32> to vector<968x64xbf16>
    %c0_6 = arith.constant 0 : index
    %c0_7 = arith.constant 0 : index
    %9 = vector.load %arg5[%c0_6, %c0_7] : memref<968x64xbf16, #tpu.memory_space<vmem>>, vector<968x64xbf16>
    tpu.vector_store %arg5[%c0_6, %c0_7], %8 {strides = array<i32>} : memref<968x64xbf16, #tpu.memory_space<vmem>>, vector<968x64xbf16>,
    return
  }
  func.func @transform_0(%arg0: i32, %arg1: i32) -> (i32, i32) {
    %c0_i32 = arith.constant 0 : i32
    %c0_i32_0 = arith.constant 0 : i32
    return %arg0, %c0_i32 : i32, i32
  }
  func.func @transform_1(%arg0: i32, %arg1: i32) -> (i32, i32) {
    %c0_i32 = arith.constant 0 : i32
    %c0_i32_0 = arith.constant 0 : i32
    return %c0_i32, %arg1 : i32, i32
  }
  func.func @transform_2(%arg0: i32, %arg1: i32) -> (i32, i32) {
    %c0_i32 = arith.constant 0 : i32
    %c0_i32_0 = arith.constant 0 : i32
    return %c0_i32, %arg1 : i32, i32
  }
  func.func @transform_3(%arg0: i32, %arg1: i32) -> (i32, i32) {
    %c0_i32 = arith.constant 0 : i32
    return %arg0, %arg1 : i32, i32
  }
}

module attributes {stable_mosaic.version = 11 : i64} {
  func.func @_conv_bias_act_kernel(%arg0: i32, %arg1: i32, %arg2: memref<392x1600xbf16, #tpu.memory_space<vmem>>, %arg3: memref<1600x128xbf16, #tpu.memory_space<vmem>>, %arg4: memref<1x128xf32, #tpu.memory_space<vmem>>, %arg5: memref<392x128xbf16, #tpu.memory_space<vmem>>) attributes {dimension_semantics = [#tpu.dimension_semantics<parallel>, #tpu.dimension_semantics<parallel>], iteration_bounds = array<i64: 1, 1>, scalar_prefetch = 0 : i64, scratch_operands = 0 : i64, tpu.core_type = #tpu.core_type<tc>, window_params = [{transform_indices = @transform_0, window_bounds = array<i64: 392, 1600>}, {transform_indices = @transform_1, window_bounds = array<i64: 1600, 128>}, {transform_indices = @transform_2, window_bounds = array<i64: 1, 128>}, {transform_indices = @transform_3, window_bounds = array<i64: 392, 128>}]} {
    %c0 = arith.constant 0 : index
    %c0_0 = arith.constant 0 : index
    %0 = vector.load %arg2[%c0, %c0_0] : memref<392x1600xbf16, #tpu.memory_space<vmem>>, vector<392x1600xbf16>
    %c0_1 = arith.constant 0 : index
    %c0_2 = arith.constant 0 : index
    %1 = vector.load %arg3[%c0_1, %c0_2] : memref<1600x128xbf16, #tpu.memory_space<vmem>>, vector<1600x128xbf16>
    %cst = arith.constant dense<0.000000e+00> : vector<392x128xf32>
    %2 = tpu.matmul %0, %1, %cst {dimension_numbers = #tpu.dot_dimension_numbers<[1], [0], [0], [1], [0, 0, 1, 1], [], []>} : vector<392x1600xbf16>, vector<1600x128xbf16>, vector<392x128xf32> -> vector<392x128xf32>
    %c0_3 = arith.constant 0 : index
    %c0_4 = arith.constant 0 : index
    %3 = vector.load %arg4[%c0_3, %c0_4] : memref<1x128xf32, #tpu.memory_space<vmem>>, vector<1x128xf32>
    %4 = vector.broadcast %3 : vector<1x128xf32> to vector<392x128xf32>
    %5 = arith.addf %2, %4 : vector<392x128xf32>
    %cst_5 = arith.constant 0.000000e+00 : f32
    %6 = vector.broadcast %cst_5 : f32 to vector<392x128xf32>
    %7 = arith.maximumf %5, %6 : vector<392x128xf32>
    %8 = arith.truncf %7 : vector<392x128xf32> to vector<392x128xbf16>
    %c0_6 = arith.constant 0 : index
    %c0_7 = arith.constant 0 : index
    %9 = vector.load %arg5[%c0_6, %c0_7] : memref<392x128xbf16, #tpu.memory_space<vmem>>, vector<392x128xbf16>
    tpu.vector_store %arg5[%c0_6, %c0_7], %8 {strides = array<i32>} : memref<392x128xbf16, #tpu.memory_space<vmem>>, vector<392x128xbf16>,
    return
  }
  func.func @transform_0(%arg0: i32, %arg1: i32) -> (i32, i32) {
    %c0_i32 = arith.constant 0 : i32
    %c0_i32_0 = arith.constant 0 : i32
    return %arg0, %c0_i32 : i32, i32
  }
  func.func @transform_1(%arg0: i32, %arg1: i32) -> (i32, i32) {
    %c0_i32 = arith.constant 0 : i32
    %c0_i32_0 = arith.constant 0 : i32
    return %c0_i32, %arg1 : i32, i32
  }
  func.func @transform_2(%arg0: i32, %arg1: i32) -> (i32, i32) {
    %c0_i32 = arith.constant 0 : i32
    %c0_i32_0 = arith.constant 0 : i32
    return %c0_i32, %arg1 : i32, i32
  }
  func.func @transform_3(%arg0: i32, %arg1: i32) -> (i32, i32) {
    %c0_i32 = arith.constant 0 : i32
    return %arg0, %arg1 : i32, i32
  }
}

module attributes {stable_mosaic.version = 11 : i64} {
  func.func @_conv_bias_act_kernel(%arg0: i32, %arg1: i32, %arg2: memref<72x1152xbf16, #tpu.memory_space<vmem>>, %arg3: memref<1152x256xbf16, #tpu.memory_space<vmem>>, %arg4: memref<1x256xf32, #tpu.memory_space<vmem>>, %arg5: memref<72x256xbf16, #tpu.memory_space<vmem>>) attributes {dimension_semantics = [#tpu.dimension_semantics<parallel>, #tpu.dimension_semantics<parallel>], iteration_bounds = array<i64: 1, 1>, scalar_prefetch = 0 : i64, scratch_operands = 0 : i64, tpu.core_type = #tpu.core_type<tc>, window_params = [{transform_indices = @transform_0, window_bounds = array<i64: 72, 1152>}, {transform_indices = @transform_1, window_bounds = array<i64: 1152, 256>}, {transform_indices = @transform_2, window_bounds = array<i64: 1, 256>}, {transform_indices = @transform_3, window_bounds = array<i64: 72, 256>}]} {
    %c0 = arith.constant 0 : index
    %c0_0 = arith.constant 0 : index
    %0 = vector.load %arg2[%c0, %c0_0] : memref<72x1152xbf16, #tpu.memory_space<vmem>>, vector<72x1152xbf16>
    %c0_1 = arith.constant 0 : index
    %c0_2 = arith.constant 0 : index
    %1 = vector.load %arg3[%c0_1, %c0_2] : memref<1152x256xbf16, #tpu.memory_space<vmem>>, vector<1152x256xbf16>
    %cst = arith.constant dense<0.000000e+00> : vector<72x256xf32>
    %2 = tpu.matmul %0, %1, %cst {dimension_numbers = #tpu.dot_dimension_numbers<[1], [0], [0], [1], [0, 0, 1, 1], [], []>} : vector<72x1152xbf16>, vector<1152x256xbf16>, vector<72x256xf32> -> vector<72x256xf32>
    %c0_3 = arith.constant 0 : index
    %c0_4 = arith.constant 0 : index
    %3 = vector.load %arg4[%c0_3, %c0_4] : memref<1x256xf32, #tpu.memory_space<vmem>>, vector<1x256xf32>
    %4 = vector.broadcast %3 : vector<1x256xf32> to vector<72x256xf32>
    %5 = arith.addf %2, %4 : vector<72x256xf32>
    %cst_5 = arith.constant 0.000000e+00 : f32
    %6 = vector.broadcast %cst_5 : f32 to vector<72x256xf32>
    %7 = arith.maximumf %5, %6 : vector<72x256xf32>
    %8 = arith.truncf %7 : vector<72x256xf32> to vector<72x256xbf16>
    %c0_6 = arith.constant 0 : index
    %c0_7 = arith.constant 0 : index
    %9 = vector.load %arg5[%c0_6, %c0_7] : memref<72x256xbf16, #tpu.memory_space<vmem>>, vector<72x256xbf16>
    tpu.vector_store %arg5[%c0_6, %c0_7], %8 {strides = array<i32>} : memref<72x256xbf16, #tpu.memory_space<vmem>>, vector<72x256xbf16>,
    return
  }
  func.func @transform_0(%arg0: i32, %arg1: i32) -> (i32, i32) {
    %c0_i32 = arith.constant 0 : i32
    %c0_i32_0 = arith.constant 0 : i32
    return %arg0, %c0_i32 : i32, i32
  }
  func.func @transform_1(%arg0: i32, %arg1: i32) -> (i32, i32) {
    %c0_i32 = arith.constant 0 : i32
    %c0_i32_0 = arith.constant 0 : i32
    return %c0_i32, %arg1 : i32, i32
  }
  func.func @transform_2(%arg0: i32, %arg1: i32) -> (i32, i32) {
    %c0_i32 = arith.constant 0 : i32
    %c0_i32_0 = arith.constant 0 : i32
    return %c0_i32, %arg1 : i32, i32
  }
  func.func @transform_3(%arg0: i32, %arg1: i32) -> (i32, i32) {
    %c0_i32 = arith.constant 0 : i32
    return %arg0, %arg1 : i32, i32
  }
}

module attributes {stable_mosaic.version = 11 : i64} {
  func.func @_conv_bias_act_kernel(%arg0: i32, %arg1: i32, %arg2: memref<72x2304xbf16, #tpu.memory_space<vmem>>, %arg3: memref<2304x256xbf16, #tpu.memory_space<vmem>>, %arg4: memref<1x256xf32, #tpu.memory_space<vmem>>, %arg5: memref<72x256xbf16, #tpu.memory_space<vmem>>) attributes {dimension_semantics = [#tpu.dimension_semantics<parallel>, #tpu.dimension_semantics<parallel>], iteration_bounds = array<i64: 1, 1>, scalar_prefetch = 0 : i64, scratch_operands = 0 : i64, tpu.core_type = #tpu.core_type<tc>, window_params = [{transform_indices = @transform_0, window_bounds = array<i64: 72, 2304>}, {transform_indices = @transform_1, window_bounds = array<i64: 2304, 256>}, {transform_indices = @transform_2, window_bounds = array<i64: 1, 256>}, {transform_indices = @transform_3, window_bounds = array<i64: 72, 256>}]} {
    %c0 = arith.constant 0 : index
    %c0_0 = arith.constant 0 : index
    %0 = vector.load %arg2[%c0, %c0_0] : memref<72x2304xbf16, #tpu.memory_space<vmem>>, vector<72x2304xbf16>
    %c0_1 = arith.constant 0 : index
    %c0_2 = arith.constant 0 : index
    %1 = vector.load %arg3[%c0_1, %c0_2] : memref<2304x256xbf16, #tpu.memory_space<vmem>>, vector<2304x256xbf16>
    %cst = arith.constant dense<0.000000e+00> : vector<72x256xf32>
    %2 = tpu.matmul %0, %1, %cst {dimension_numbers = #tpu.dot_dimension_numbers<[1], [0], [0], [1], [0, 0, 1, 1], [], []>} : vector<72x2304xbf16>, vector<2304x256xbf16>, vector<72x256xf32> -> vector<72x256xf32>
    %c0_3 = arith.constant 0 : index
    %c0_4 = arith.constant 0 : index
    %3 = vector.load %arg4[%c0_3, %c0_4] : memref<1x256xf32, #tpu.memory_space<vmem>>, vector<1x256xf32>
    %4 = vector.broadcast %3 : vector<1x256xf32> to vector<72x256xf32>
    %5 = arith.addf %2, %4 : vector<72x256xf32>
    %cst_5 = arith.constant 0.000000e+00 : f32
    %6 = vector.broadcast %cst_5 : f32 to vector<72x256xf32>
    %7 = arith.maximumf %5, %6 : vector<72x256xf32>
    %8 = arith.truncf %7 : vector<72x256xf32> to vector<72x256xbf16>
    %c0_6 = arith.constant 0 : index
    %c0_7 = arith.constant 0 : index
    %9 = vector.load %arg5[%c0_6, %c0_7] : memref<72x256xbf16, #tpu.memory_space<vmem>>, vector<72x256xbf16>
    tpu.vector_store %arg5[%c0_6, %c0_7], %8 {strides = array<i32>} : memref<72x256xbf16, #tpu.memory_space<vmem>>, vector<72x256xbf16>,
    return
  }
  func.func @transform_0(%arg0: i32, %arg1: i32) -> (i32, i32) {
    %c0_i32 = arith.constant 0 : i32
    %c0_i32_0 = arith.constant 0 : i32
    return %arg0, %c0_i32 : i32, i32
  }
  func.func @transform_1(%arg0: i32, %arg1: i32) -> (i32, i32) {
    %c0_i32 = arith.constant 0 : i32
    %c0_i32_0 = arith.constant 0 : i32
    return %c0_i32, %arg1 : i32, i32
  }
  func.func @transform_2(%arg0: i32, %arg1: i32) -> (i32, i32) {
    %c0_i32 = arith.constant 0 : i32
    %c0_i32_0 = arith.constant 0 : i32
    return %c0_i32, %arg1 : i32, i32
  }
  func.func @transform_3(%arg0: i32, %arg1: i32) -> (i32, i32) {
    %c0_i32 = arith.constant 0 : i32
    return %arg0, %arg1 : i32, i32
  }
}

module attributes {stable_mosaic.version = 11 : i64} {
  func.func @_conv_bias_act_kernel(%arg0: i32, %arg1: i32, %arg2: memref<72x2304xbf16, #tpu.memory_space<vmem>>, %arg3: memref<2304x256xbf16, #tpu.memory_space<vmem>>, %arg4: memref<1x256xf32, #tpu.memory_space<vmem>>, %arg5: memref<72x256xf32, #tpu.memory_space<vmem>>) attributes {dimension_semantics = [#tpu.dimension_semantics<parallel>, #tpu.dimension_semantics<parallel>], iteration_bounds = array<i64: 1, 1>, scalar_prefetch = 0 : i64, scratch_operands = 0 : i64, tpu.core_type = #tpu.core_type<tc>, window_params = [{transform_indices = @transform_0, window_bounds = array<i64: 72, 2304>}, {transform_indices = @transform_1, window_bounds = array<i64: 2304, 256>}, {transform_indices = @transform_2, window_bounds = array<i64: 1, 256>}, {transform_indices = @transform_3, window_bounds = array<i64: 72, 256>}]} {
    %c0 = arith.constant 0 : index
    %c0_0 = arith.constant 0 : index
    %0 = vector.load %arg2[%c0, %c0_0] : memref<72x2304xbf16, #tpu.memory_space<vmem>>, vector<72x2304xbf16>
    %c0_1 = arith.constant 0 : index
    %c0_2 = arith.constant 0 : index
    %1 = vector.load %arg3[%c0_1, %c0_2] : memref<2304x256xbf16, #tpu.memory_space<vmem>>, vector<2304x256xbf16>
    %cst = arith.constant dense<0.000000e+00> : vector<72x256xf32>
    %2 = tpu.matmul %0, %1, %cst {dimension_numbers = #tpu.dot_dimension_numbers<[1], [0], [0], [1], [0, 0, 1, 1], [], []>} : vector<72x2304xbf16>, vector<2304x256xbf16>, vector<72x256xf32> -> vector<72x256xf32>
    %c0_3 = arith.constant 0 : index
    %c0_4 = arith.constant 0 : index
    %3 = vector.load %arg4[%c0_3, %c0_4] : memref<1x256xf32, #tpu.memory_space<vmem>>, vector<1x256xf32>
    %4 = vector.broadcast %3 : vector<1x256xf32> to vector<72x256xf32>
    %5 = arith.addf %2, %4 : vector<72x256xf32>
    %c0_5 = arith.constant 0 : index
    %c0_6 = arith.constant 0 : index
    %6 = vector.load %arg5[%c0_5, %c0_6] : memref<72x256xf32, #tpu.memory_space<vmem>>, vector<72x256xf32>
    tpu.vector_store %arg5[%c0_5, %c0_6], %5 {strides = array<i32>} : memref<72x256xf32, #tpu.memory_space<vmem>>, vector<72x256xf32>,
    return
  }
  func.func @transform_0(%arg0: i32, %arg1: i32) -> (i32, i32) {
    %c0_i32 = arith.constant 0 : i32
    %c0_i32_0 = arith.constant 0 : i32
    return %arg0, %c0_i32 : i32, i32
  }
  func.func @transform_1(%arg0: i32, %arg1: i32) -> (i32, i32) {
    %c0_i32 = arith.constant 0 : i32
    %c0_i32_0 = arith.constant 0 : i32
    return %c0_i32, %arg1 : i32, i32
  }
  func.func @transform_2(%arg0: i32, %arg1: i32) -> (i32, i32) {
    %c0_i32 = arith.constant 0 : i32
    %c0_i32_0 = arith.constant 0 : i32
    return %c0_i32, %arg1 : i32, i32
  }
  func.func @transform_3(%arg0: i32, %arg1: i32) -> (i32, i32) {
    %c0_i32 = arith.constant 0 : i32
    return %arg0, %arg1 : i32, i32
  }
}

module attributes {stable_mosaic.version = 11 : i64} {
  func.func @_maxpool_kernel(%arg0: memref<2x6x6x256xf32, #tpu.memory_space<vmem>>, %arg1: memref<2x2x2x256xf32, #tpu.memory_space<vmem>>) attributes {dimension_semantics = [], scalar_prefetch = 0 : i64, scratch_operands = 0 : i64, tpu.core_type = #tpu.core_type<tc>} {
    %c0 = arith.constant 0 : index
    %c0_0 = arith.constant 0 : index
    %c0_1 = arith.constant 0 : index
    %c0_2 = arith.constant 0 : index
    %0 = vector.load %arg0[%c0, %c0_0, %c0_1, %c0_2] : memref<2x6x6x256xf32, #tpu.memory_space<vmem>>, vector<2x1x1x256xf32>
    %1 = vector.shape_cast %0 : vector<2x1x1x256xf32> to vector<2x256xf32>
    %c0_3 = arith.constant 0 : index
    %c0_4 = arith.constant 0 : index
    %c1 = arith.constant 1 : index
    %c0_5 = arith.constant 0 : index
    %2 = vector.load %arg0[%c0_3, %c0_4, %c1, %c0_5] : memref<2x6x6x256xf32, #tpu.memory_space<vmem>>, vector<2x1x1x256xf32>
    %3 = vector.shape_cast %2 : vector<2x1x1x256xf32> to vector<2x256xf32>
    %4 = arith.maximumf %1, %3 : vector<2x256xf32>
    %c0_6 = arith.constant 0 : index
    %c0_7 = arith.constant 0 : index
    %c2 = arith.constant 2 : index
    %c0_8 = arith.constant 0 : index
    %5 = vector.load %arg0[%c0_6, %c0_7, %c2, %c0_8] : memref<2x6x6x256xf32, #tpu.memory_space<vmem>>, vector<2x1x1x256xf32>
    %6 = vector.shape_cast %5 : vector<2x1x1x256xf32> to vector<2x256xf32>
    %7 = arith.maximumf %4, %6 : vector<2x256xf32>
    %c0_9 = arith.constant 0 : index
    %c1_10 = arith.constant 1 : index
    %c0_11 = arith.constant 0 : index
    %c0_12 = arith.constant 0 : index
    %8 = vector.load %arg0[%c0_9, %c1_10, %c0_11, %c0_12] : memref<2x6x6x256xf32, #tpu.memory_space<vmem>>, vector<2x1x1x256xf32>
    %9 = vector.shape_cast %8 : vector<2x1x1x256xf32> to vector<2x256xf32>
    %10 = arith.maximumf %7, %9 : vector<2x256xf32>
    %c0_13 = arith.constant 0 : index
    %c1_14 = arith.constant 1 : index
    %c1_15 = arith.constant 1 : index
    %c0_16 = arith.constant 0 : index
    %11 = vector.load %arg0[%c0_13, %c1_14, %c1_15, %c0_16] : memref<2x6x6x256xf32, #tpu.memory_space<vmem>>, vector<2x1x1x256xf32>
    %12 = vector.shape_cast %11 : vector<2x1x1x256xf32> to vector<2x256xf32>
    %13 = arith.maximumf %10, %12 : vector<2x256xf32>
    %c0_17 = arith.constant 0 : index
    %c1_18 = arith.constant 1 : index
    %c2_19 = arith.constant 2 : index
    %c0_20 = arith.constant 0 : index
    %14 = vector.load %arg0[%c0_17, %c1_18, %c2_19, %c0_20] : memref<2x6x6x256xf32, #tpu.memory_space<vmem>>, vector<2x1x1x256xf32>
    %15 = vector.shape_cast %14 : vector<2x1x1x256xf32> to vector<2x256xf32>
    %16 = arith.maximumf %13, %15 : vector<2x256xf32>
    %c0_21 = arith.constant 0 : index
    %c2_22 = arith.constant 2 : index
    %c0_23 = arith.constant 0 : index
    %c0_24 = arith.constant 0 : index
    %17 = vector.load %arg0[%c0_21, %c2_22, %c0_23, %c0_24] : memref<2x6x6x256xf32, #tpu.memory_space<vmem>>, vector<2x1x1x256xf32>
    %18 = vector.shape_cast %17 : vector<2x1x1x256xf32> to vector<2x256xf32>
    %19 = arith.maximumf %16, %18 : vector<2x256xf32>
    %c0_25 = arith.constant 0 : index
    %c2_26 = arith.constant 2 : index
    %c1_27 = arith.constant 1 : index
    %c0_28 = arith.constant 0 : index
    %20 = vector.load %arg0[%c0_25, %c2_26, %c1_27, %c0_28] : memref<2x6x6x256xf32, #tpu.memory_space<vmem>>, vector<2x1x1x256xf32>
    %21 = vector.shape_cast %20 : vector<2x1x1x256xf32> to vector<2x256xf32>
    %22 = arith.maximumf %19, %21 : vector<2x256xf32>
    %c0_29 = arith.constant 0 : index
    %c2_30 = arith.constant 2 : index
    %c2_31 = arith.constant 2 : index
    %c0_32 = arith.constant 0 : index
    %23 = vector.load %arg0[%c0_29, %c2_30, %c2_31, %c0_32] : memref<2x6x6x256xf32, #tpu.memory_space<vmem>>, vector<2x1x1x256xf32>
    %24 = vector.shape_cast %23 : vector<2x1x1x256xf32> to vector<2x256xf32>
    %25 = arith.maximumf %22, %24 : vector<2x256xf32>
    %c0_33 = arith.constant 0 : index
    %c0_34 = arith.constant 0 : index
    %c0_35 = arith.constant 0 : index
    %c0_36 = arith.constant 0 : index
    %26 = vector.load %arg1[%c0_33, %c0_34, %c0_35, %c0_36] : memref<2x2x2x256xf32, #tpu.memory_space<vmem>>, vector<2x1x1x256xf32>
    %27 = vector.shape_cast %26 : vector<2x1x1x256xf32> to vector<2x256xf32>
    %28 = vector.shape_cast %25 : vector<2x256xf32> to vector<2x1x1x256xf32>
    tpu.vector_store %arg1[%c0_33, %c0_34, %c0_35, %c0_36], %28 {strides = array<i32>} : memref<2x2x2x256xf32, #tpu.memory_space<vmem>>, vector<2x1x1x256xf32>,
    %c0_37 = arith.constant 0 : index
    %c0_38 = arith.constant 0 : index
    %c2_39 = arith.constant 2 : index
    %c0_40 = arith.constant 0 : index
    %29 = vector.load %arg0[%c0_37, %c0_38, %c2_39, %c0_40] : memref<2x6x6x256xf32, #tpu.memory_space<vmem>>, vector<2x1x1x256xf32>
    %30 = vector.shape_cast %29 : vector<2x1x1x256xf32> to vector<2x256xf32>
    %c0_41 = arith.constant 0 : index
    %c0_42 = arith.constant 0 : index
    %c3 = arith.constant 3 : index
    %c0_43 = arith.constant 0 : index
    %31 = vector.load %arg0[%c0_41, %c0_42, %c3, %c0_43] : memref<2x6x6x256xf32, #tpu.memory_space<vmem>>, vector<2x1x1x256xf32>
    %32 = vector.shape_cast %31 : vector<2x1x1x256xf32> to vector<2x256xf32>
    %33 = arith.maximumf %30, %32 : vector<2x256xf32>
    %c0_44 = arith.constant 0 : index
    %c0_45 = arith.constant 0 : index
    %c4 = arith.constant 4 : index
    %c0_46 = arith.constant 0 : index
    %34 = vector.load %arg0[%c0_44, %c0_45, %c4, %c0_46] : memref<2x6x6x256xf32, #tpu.memory_space<vmem>>, vector<2x1x1x256xf32>
    %35 = vector.shape_cast %34 : vector<2x1x1x256xf32> to vector<2x256xf32>
    %36 = arith.maximumf %33, %35 : vector<2x256xf32>
    %c0_47 = arith.constant 0 : index
    %c1_48 = arith.constant 1 : index
    %c2_49 = arith.constant 2 : index
    %c0_50 = arith.constant 0 : index
    %37 = vector.load %arg0[%c0_47, %c1_48, %c2_49, %c0_50] : memref<2x6x6x256xf32, #tpu.memory_space<vmem>>, vector<2x1x1x256xf32>
    %38 = vector.shape_cast %37 : vector<2x1x1x256xf32> to vector<2x256xf32>
    %39 = arith.maximumf %36, %38 : vector<2x256xf32>
    %c0_51 = arith.constant 0 : index
    %c1_52 = arith.constant 1 : index
    %c3_53 = arith.constant 3 : index
    %c0_54 = arith.constant 0 : index
    %40 = vector.load %arg0[%c0_51, %c1_52, %c3_53, %c0_54] : memref<2x6x6x256xf32, #tpu.memory_space<vmem>>, vector<2x1x1x256xf32>
    %41 = vector.shape_cast %40 : vector<2x1x1x256xf32> to vector<2x256xf32>
    %42 = arith.maximumf %39, %41 : vector<2x256xf32>
    %c0_55 = arith.constant 0 : index
    %c1_56 = arith.constant 1 : index
    %c4_57 = arith.constant 4 : index
    %c0_58 = arith.constant 0 : index
    %43 = vector.load %arg0[%c0_55, %c1_56, %c4_57, %c0_58] : memref<2x6x6x256xf32, #tpu.memory_space<vmem>>, vector<2x1x1x256xf32>
    %44 = vector.shape_cast %43 : vector<2x1x1x256xf32> to vector<2x256xf32>
    %45 = arith.maximumf %42, %44 : vector<2x256xf32>
    %c0_59 = arith.constant 0 : index
    %c2_60 = arith.constant 2 : index
    %c2_61 = arith.constant 2 : index
    %c0_62 = arith.constant 0 : index
    %46 = vector.load %arg0[%c0_59, %c2_60, %c2_61, %c0_62] : memref<2x6x6x256xf32, #tpu.memory_space<vmem>>, vector<2x1x1x256xf32>
    %47 = vector.shape_cast %46 : vector<2x1x1x256xf32> to vector<2x256xf32>
    %48 = arith.maximumf %45, %47 : vector<2x256xf32>
    %c0_63 = arith.constant 0 : index
    %c2_64 = arith.constant 2 : index
    %c3_65 = arith.constant 3 : index
    %c0_66 = arith.constant 0 : index
    %49 = vector.load %arg0[%c0_63, %c2_64, %c3_65, %c0_66] : memref<2x6x6x256xf32, #tpu.memory_space<vmem>>, vector<2x1x1x256xf32>
    %50 = vector.shape_cast %49 : vector<2x1x1x256xf32> to vector<2x256xf32>
    %51 = arith.maximumf %48, %50 : vector<2x256xf32>
    %c0_67 = arith.constant 0 : index
    %c2_68 = arith.constant 2 : index
    %c4_69 = arith.constant 4 : index
    %c0_70 = arith.constant 0 : index
    %52 = vector.load %arg0[%c0_67, %c2_68, %c4_69, %c0_70] : memref<2x6x6x256xf32, #tpu.memory_space<vmem>>, vector<2x1x1x256xf32>
    %53 = vector.shape_cast %52 : vector<2x1x1x256xf32> to vector<2x256xf32>
    %54 = arith.maximumf %51, %53 : vector<2x256xf32>
    %c0_71 = arith.constant 0 : index
    %c0_72 = arith.constant 0 : index
    %c1_73 = arith.constant 1 : index
    %c0_74 = arith.constant 0 : index
    %55 = vector.load %arg1[%c0_71, %c0_72, %c1_73, %c0_74] : memref<2x2x2x256xf32, #tpu.memory_space<vmem>>, vector<2x1x1x256xf32>
    %56 = vector.shape_cast %55 : vector<2x1x1x256xf32> to vector<2x256xf32>
    %57 = vector.shape_cast %54 : vector<2x256xf32> to vector<2x1x1x256xf32>
    tpu.vector_store %arg1[%c0_71, %c0_72, %c1_73, %c0_74], %57 {strides = array<i32>} : memref<2x2x2x256xf32, #tpu.memory_space<vmem>>, vector<2x1x1x256xf32>,
    %c0_75 = arith.constant 0 : index
    %c2_76 = arith.constant 2 : index
    %c0_77 = arith.constant 0 : index
    %c0_78 = arith.constant 0 : index
    %58 = vector.load %arg0[%c0_75, %c2_76, %c0_77, %c0_78] : memref<2x6x6x256xf32, #tpu.memory_space<vmem>>, vector<2x1x1x256xf32>
    %59 = vector.shape_cast %58 : vector<2x1x1x256xf32> to vector<2x256xf32>
    %c0_79 = arith.constant 0 : index
    %c2_80 = arith.constant 2 : index
    %c1_81 = arith.constant 1 : index
    %c0_82 = arith.constant 0 : index
    %60 = vector.load %arg0[%c0_79, %c2_80, %c1_81, %c0_82] : memref<2x6x6x256xf32, #tpu.memory_space<vmem>>, vector<2x1x1x256xf32>
    %61 = vector.shape_cast %60 : vector<2x1x1x256xf32> to vector<2x256xf32>
    %62 = arith.maximumf %59, %61 : vector<2x256xf32>
    %c0_83 = arith.constant 0 : index
    %c2_84 = arith.constant 2 : index
    %c2_85 = arith.constant 2 : index
    %c0_86 = arith.constant 0 : index
    %63 = vector.load %arg0[%c0_83, %c2_84, %c2_85, %c0_86] : memref<2x6x6x256xf32, #tpu.memory_space<vmem>>, vector<2x1x1x256xf32>
    %64 = vector.shape_cast %63 : vector<2x1x1x256xf32> to vector<2x256xf32>
    %65 = arith.maximumf %62, %64 : vector<2x256xf32>
    %c0_87 = arith.constant 0 : index
    %c3_88 = arith.constant 3 : index
    %c0_89 = arith.constant 0 : index
    %c0_90 = arith.constant 0 : index
    %66 = vector.load %arg0[%c0_87, %c3_88, %c0_89, %c0_90] : memref<2x6x6x256xf32, #tpu.memory_space<vmem>>, vector<2x1x1x256xf32>
    %67 = vector.shape_cast %66 : vector<2x1x1x256xf32> to vector<2x256xf32>
    %68 = arith.maximumf %65, %67 : vector<2x256xf32>
    %c0_91 = arith.constant 0 : index
    %c3_92 = arith.constant 3 : index
    %c1_93 = arith.constant 1 : index
    %c0_94 = arith.constant 0 : index
    %69 = vector.load %arg0[%c0_91, %c3_92, %c1_93, %c0_94] : memref<2x6x6x256xf32, #tpu.memory_space<vmem>>, vector<2x1x1x256xf32>
    %70 = vector.shape_cast %69 : vector<2x1x1x256xf32> to vector<2x256xf32>
    %71 = arith.maximumf %68, %70 : vector<2x256xf32>
    %c0_95 = arith.constant 0 : index
    %c3_96 = arith.constant 3 : index
    %c2_97 = arith.constant 2 : index
    %c0_98 = arith.constant 0 : index
    %72 = vector.load %arg0[%c0_95, %c3_96, %c2_97, %c0_98] : memref<2x6x6x256xf32, #tpu.memory_space<vmem>>, vector<2x1x1x256xf32>
    %73 = vector.shape_cast %72 : vector<2x1x1x256xf32> to vector<2x256xf32>
    %74 = arith.maximumf %71, %73 : vector<2x256xf32>
    %c0_99 = arith.constant 0 : index
    %c4_100 = arith.constant 4 : index
    %c0_101 = arith.constant 0 : index
    %c0_102 = arith.constant 0 : index
    %75 = vector.load %arg0[%c0_99, %c4_100, %c0_101, %c0_102] : memref<2x6x6x256xf32, #tpu.memory_space<vmem>>, vector<2x1x1x256xf32>
    %76 = vector.shape_cast %75 : vector<2x1x1x256xf32> to vector<2x256xf32>
    %77 = arith.maximumf %74, %76 : vector<2x256xf32>
    %c0_103 = arith.constant 0 : index
    %c4_104 = arith.constant 4 : index
    %c1_105 = arith.constant 1 : index
    %c0_106 = arith.constant 0 : index
    %78 = vector.load %arg0[%c0_103, %c4_104, %c1_105, %c0_106] : memref<2x6x6x256xf32, #tpu.memory_space<vmem>>, vector<2x1x1x256xf32>
    %79 = vector.shape_cast %78 : vector<2x1x1x256xf32> to vector<2x256xf32>
    %80 = arith.maximumf %77, %79 : vector<2x256xf32>
    %c0_107 = arith.constant 0 : index
    %c4_108 = arith.constant 4 : index
    %c2_109 = arith.constant 2 : index
    %c0_110 = arith.constant 0 : index
    %81 = vector.load %arg0[%c0_107, %c4_108, %c2_109, %c0_110] : memref<2x6x6x256xf32, #tpu.memory_space<vmem>>, vector<2x1x1x256xf32>
    %82 = vector.shape_cast %81 : vector<2x1x1x256xf32> to vector<2x256xf32>
    %83 = arith.maximumf %80, %82 : vector<2x256xf32>
    %c0_111 = arith.constant 0 : index
    %c1_112 = arith.constant 1 : index
    %c0_113 = arith.constant 0 : index
    %c0_114 = arith.constant 0 : index
    %84 = vector.load %arg1[%c0_111, %c1_112, %c0_113, %c0_114] : memref<2x2x2x256xf32, #tpu.memory_space<vmem>>, vector<2x1x1x256xf32>
    %85 = vector.shape_cast %84 : vector<2x1x1x256xf32> to vector<2x256xf32>
    %86 = vector.shape_cast %83 : vector<2x256xf32> to vector<2x1x1x256xf32>
    tpu.vector_store %arg1[%c0_111, %c1_112, %c0_113, %c0_114], %86 {strides = array<i32>} : memref<2x2x2x256xf32, #tpu.memory_space<vmem>>, vector<2x1x1x256xf32>,
    %c0_115 = arith.constant 0 : index
    %c2_116 = arith.constant 2 : index
    %c2_117 = arith.constant 2 : index
    %c0_118 = arith.constant 0 : index
    %87 = vector.load %arg0[%c0_115, %c2_116, %c2_117, %c0_118] : memref<2x6x6x256xf32, #tpu.memory_space<vmem>>, vector<2x1x1x256xf32>
    %88 = vector.shape_cast %87 : vector<2x1x1x256xf32> to vector<2x256xf32>
    %c0_119 = arith.constant 0 : index
    %c2_120 = arith.constant 2 : index
    %c3_121 = arith.constant 3 : index
    %c0_122 = arith.constant 0 : index
    %89 = vector.load %arg0[%c0_119, %c2_120, %c3_121, %c0_122] : memref<2x6x6x256xf32, #tpu.memory_space<vmem>>, vector<2x1x1x256xf32>
    %90 = vector.shape_cast %89 : vector<2x1x1x256xf32> to vector<2x256xf32>
    %91 = arith.maximumf %88, %90 : vector<2x256xf32>
    %c0_123 = arith.constant 0 : index
    %c2_124 = arith.constant 2 : index
    %c4_125 = arith.constant 4 : index
    %c0_126 = arith.constant 0 : index
    %92 = vector.load %arg0[%c0_123, %c2_124, %c4_125, %c0_126] : memref<2x6x6x256xf32, #tpu.memory_space<vmem>>, vector<2x1x1x256xf32>
    %93 = vector.shape_cast %92 : vector<2x1x1x256xf32> to vector<2x256xf32>
    %94 = arith.maximumf %91, %93 : vector<2x256xf32>
    %c0_127 = arith.constant 0 : index
    %c3_128 = arith.constant 3 : index
    %c2_129 = arith.constant 2 : index
    %c0_130 = arith.constant 0 : index
    %95 = vector.load %arg0[%c0_127, %c3_128, %c2_129, %c0_130] : memref<2x6x6x256xf32, #tpu.memory_space<vmem>>, vector<2x1x1x256xf32>
    %96 = vector.shape_cast %95 : vector<2x1x1x256xf32> to vector<2x256xf32>
    %97 = arith.maximumf %94, %96 : vector<2x256xf32>
    %c0_131 = arith.constant 0 : index
    %c3_132 = arith.constant 3 : index
    %c3_133 = arith.constant 3 : index
    %c0_134 = arith.constant 0 : index
    %98 = vector.load %arg0[%c0_131, %c3_132, %c3_133, %c0_134] : memref<2x6x6x256xf32, #tpu.memory_space<vmem>>, vector<2x1x1x256xf32>
    %99 = vector.shape_cast %98 : vector<2x1x1x256xf32> to vector<2x256xf32>
    %100 = arith.maximumf %97, %99 : vector<2x256xf32>
    %c0_135 = arith.constant 0 : index
    %c3_136 = arith.constant 3 : index
    %c4_137 = arith.constant 4 : index
    %c0_138 = arith.constant 0 : index
    %101 = vector.load %arg0[%c0_135, %c3_136, %c4_137, %c0_138] : memref<2x6x6x256xf32, #tpu.memory_space<vmem>>, vector<2x1x1x256xf32>
    %102 = vector.shape_cast %101 : vector<2x1x1x256xf32> to vector<2x256xf32>
    %103 = arith.maximumf %100, %102 : vector<2x256xf32>
    %c0_139 = arith.constant 0 : index
    %c4_140 = arith.constant 4 : index
    %c2_141 = arith.constant 2 : index
    %c0_142 = arith.constant 0 : index
    %104 = vector.load %arg0[%c0_139, %c4_140, %c2_141, %c0_142] : memref<2x6x6x256xf32, #tpu.memory_space<vmem>>, vector<2x1x1x256xf32>
    %105 = vector.shape_cast %104 : vector<2x1x1x256xf32> to vector<2x256xf32>
    %106 = arith.maximumf %103, %105 : vector<2x256xf32>
    %c0_143 = arith.constant 0 : index
    %c4_144 = arith.constant 4 : index
    %c3_145 = arith.constant 3 : index
    %c0_146 = arith.constant 0 : index
    %107 = vector.load %arg0[%c0_143, %c4_144, %c3_145, %c0_146] : memref<2x6x6x256xf32, #tpu.memory_space<vmem>>, vector<2x1x1x256xf32>
    %108 = vector.shape_cast %107 : vector<2x1x1x256xf32> to vector<2x256xf32>
    %109 = arith.maximumf %106, %108 : vector<2x256xf32>
    %c0_147 = arith.constant 0 : index
    %c4_148 = arith.constant 4 : index
    %c4_149 = arith.constant 4 : index
    %c0_150 = arith.constant 0 : index
    %110 = vector.load %arg0[%c0_147, %c4_148, %c4_149, %c0_150] : memref<2x6x6x256xf32, #tpu.memory_space<vmem>>, vector<2x1x1x256xf32>
    %111 = vector.shape_cast %110 : vector<2x1x1x256xf32> to vector<2x256xf32>
    %112 = arith.maximumf %109, %111 : vector<2x256xf32>
    %c0_151 = arith.constant 0 : index
    %c1_152 = arith.constant 1 : index
    %c1_153 = arith.constant 1 : index
    %c0_154 = arith.constant 0 : index
    %113 = vector.load %arg1[%c0_151, %c1_152, %c1_153, %c0_154] : memref<2x2x2x256xf32, #tpu.memory_space<vmem>>, vector<2x1x1x256xf32>
    %114 = vector.shape_cast %113 : vector<2x1x1x256xf32> to vector<2x256xf32>
    %115 = vector.shape_cast %112 : vector<2x256xf32> to vector<2x1x1x256xf32>
    tpu.vector_store %arg1[%c0_151, %c1_152, %c1_153, %c0_154], %115 {strides = array<i32>} : memref<2x2x2x256xf32, #tpu.memory_space<vmem>>, vector<2x1x1x256xf32>,
    return
  }
}

</mosaic_0001>

<bundles_post_ra>
// kernel: _lambda_.6
= control target key start
LH: loop header
LB: loop body
LE: loop exit
PB: predicated region body
PF: predicated region fallthrough
CT: control target
= control target key end

     0   :  { %v2878_v0 = vmov 0   ;;  %vm789_vm0 = vcmask 556032   ;;  %vm973_vm1 = vcmask 1041408   ;;  %vm2103_vm2 = vcmask 519168   ;;  %s4039_s1 = inlined_call_operand.vmem [shape: bf16[196,64], index: 1, kind: input, shape index: {}]   ;;  %s4040_s0 = inlined_call_operand.vmem [shape: bf16[968,196], index: 0, kind: input, shape index: {}]   ;;  %s4041_s2 = inlined_call_operand.vmem [shape: f32[1,64], index: 2, kind: input, shape index: {}]   ;;  %s4042_s3 = inlined_call_operand.vmem [shape: bf16[968,64], index: 3, kind: output, shape index: {}]  }
   0x1   :  { %977 = vmatprep.subr.bf16.mxu0 %v2878_v0  ;;  %v2695_v1 = vld [vmem:[%s4039_s1 + $0x38] sm:$0xff]   ;;  %2668 = vmatprep.subr.bf16.mxu1 %v2878_v0  ;;  %v2696_v2 = vld [vmem:[%s4039_s1 + $0x30] sm:$0xff]   ;;  %v2697_v3 = vld [vmem:[%s4039_s1 + $0x28] sm:$0xff]  }
   0x2   :  { %978 = vmatpush1.bf16.msra.mxu0 %v2695_v1  ;;  %2681 = vmatpush1.bf16.msra.mxu1 %v2695_v1  ;;  %v2698_v4 = vld [vmem:[%s4039_s1 + $0x20] sm:$0xff]   ;;  %v2699_v6 = vld [vmem:[%s4039_s1 + $0x18] sm:$0xff]   ;;  %v2700_v8 = vld [vmem:[%s4039_s1 + $0x10] sm:$0xff]  }
   0x3   :  { %979 = vmatprep.subr.bf16.mxu0 %v2878_v0  ;;  %2669 = vmatprep.subr.bf16.mxu1 %v2878_v0  ;;  %v2710_v5 = vld [vmem:[%s4040_s0 + $0x4] ss:$8 sps:$4 sm:$0xff]   ;;  %v2713_v7 = vld [vmem:[%s4040_s0 + $0x1f4] ss:$8 sps:$4 sm:$0xff]   ;;  %v2708_v17 = vld [vmem:[%s4040_s0] ss:$8 sps:$4 sm:$0xff]  }
   0x4   :  { %2365 = vmatprep.mubr.msk.bf16.mxu0 %vm789_vm0, %v2710_v5  ;;  %2396 = vmatprep.mubr.msk.bf16.mxu1 %vm789_vm0, %v2713_v7  ;;  %v2701_v9 = vld [vmem:[%s4039_s1 + $0x8] sm:$0xff]   ;;  %v2702_v10 = vld [vmem:[%s4039_s1] sm:$0xff]   ;;  %v2704_v13 = vld [vmem:[%s4039_s1 + $0x58] sm:$0xff]  }
   0x5   :  { %v2703_v11 = vld [vmem:[%s4039_s1 + $0x60] ss:$0 sps:$4 sm:$0x33]   ;;  %v2705_v14 = vld [vmem:[%s4039_s1 + $0x50] sm:$0xff]   ;;  %v2706_v15 = vld [vmem:[%s4039_s1 + $0x48] sm:$0xff]  }
   0x6   :  { %980 = vmatpush1.bf16.msra.mxu0 %v2696_v2  ;;  %2682 = vmatpush1.bf16.msra.mxu1 %v2696_v2  ;;  %v975_v12 = vsel %vm973_vm1, %v2703_v11, 0  ;;  %v2707_v16 = vld [vmem:[%s4039_s1 + $0x40] sm:$0xff]   ;;  %v2711_v18 = vld [vmem:[%s4040_s0 + $0x1f0] ss:$8 sps:$4 sm:$0xff]   ;;  %v2714_v19 = vld [vmem:[%s4040_s0 + $0x14] ss:$8 sps:$4 sm:$0xff]  }
   0x7   :  { %981 = vmatprep.subr.bf16.mxu0 %v2878_v0  ;;  %2670 = vmatprep.subr.bf16.mxu1 %v2878_v0  ;;  %v2717_v20 = vld [vmem:[%s4040_s0 + $0x204] ss:$8 sps:$4 sm:$0xff]   ;;  %v2716_v21 = vld [vmem:[%s4040_s0 + $0x10] ss:$8 sps:$4 sm:$0xff]   ;;  %v2719_v22 = vld [vmem:[%s4040_s0 + $0x200] ss:$8 sps:$4 sm:$0xff]  }
   0x8   :  { %v2720_v23 = vld [vmem:[%s4040_s0 + $0x24] ss:$8 sps:$4 sm:$0xff]   ;;  %v2723_v24 = vld [vmem:[%s4040_s0 + $0x214] ss:$8 sps:$4 sm:$0xff]   ;;  %v2722_v25 = vld [vmem:[%s4040_s0 + $0x20] ss:$8 sps:$4 sm:$0xff]  }
   0x9   :  { %v2725_v26 = vld [vmem:[%s4040_s0 + $0x210] ss:$8 sps:$4 sm:$0xff]   ;;  %v2726_v27 = vld [vmem:[%s4040_s0 + $0x34] ss:$8 sps:$4 sm:$0xff]   ;;  %v2729_v28 = vld [vmem:[%s4040_s0 + $0x224] ss:$8 sps:$4 sm:$0xff]  }
   0xa   :  { %982 = vmatpush1.bf16.msra.mxu0 %v2697_v3  ;;  %2683 = vmatpush1.bf16.msra.mxu1 %v2697_v3  ;;  %v2728_v29 = vld [vmem:[%s4040_s0 + $0x30] ss:$8 sps:$4 sm:$0xff]   ;;  %v2731_v30 = vld [vmem:[%s4040_s0 + $0x220] ss:$8 sps:$4 sm:$0xff]   ;;  %v2732_v31 = vld [vmem:[%s4040_s0 + $0x44] ss:$8 sps:$4 sm:$0xff]  }
   0xb   :  { %983 = vmatprep.subr.bf16.mxu0 %v2878_v0  ;;  %2671 = vmatprep.subr.bf16.mxu1 %v2878_v0  ;;  %v2735_v32 = vld [vmem:[%s4040_s0 + $0x234] ss:$8 sps:$4 sm:$0xff]   ;;  %v2734_v33 = vld [vmem:[%s4040_s0 + $0x40] ss:$8 sps:$4 sm:$0xff]   ;;  %v2737_v34 = vld [vmem:[%s4040_s0 + $0x230] ss:$8 sps:$4 sm:$0xff]  }
   0xc   :  { %v2738_v35 = vld [vmem:[%s4040_s0 + $0x54] ss:$8 sps:$4 sm:$0xff]   ;;  %v2741_v36 = vld [vmem:[%s4040_s0 + $0x244] ss:$8 sps:$4 sm:$0xff]   ;;  %v2740_v37 = vld [vmem:[%s4040_s0 + $0x50] ss:$8 sps:$4 sm:$0xff]  }
   0xd   :  { %v2743_v38 = vld [vmem:[%s4040_s0 + $0x240] ss:$8 sps:$4 sm:$0xff]   ;;  %v2744_v39 = vld [vmem:[%s4040_s0 + $0x64] ss:$8 sps:$4 sm:$0xff]   ;;  %v2747_v40 = vld [vmem:[%s4040_s0 + $0x254] ss:$8 sps:$4 sm:$0xff]  }
   0xe   :  { %984 = vmatpush1.bf16.msra.mxu0 %v2698_v4  ;;  %2684 = vmatpush1.bf16.msra.mxu1 %v2698_v4  ;;  %v2746_v41 = vld [vmem:[%s4040_s0 + $0x60] ss:$8 sps:$4 sm:$0xff]   ;;  %v2749_v42 = vld [vmem:[%s4040_s0 + $0x250] ss:$8 sps:$4 sm:$0xff]   ;;  %v2750_v43 = vld [vmem:[%s4040_s0 + $0x74] ss:$8 sps:$4 sm:$0xff]  }
   0xf   :  { %985 = vmatprep.subr.bf16.mxu0 %v2878_v0  ;;  %2672 = vmatprep.subr.bf16.mxu1 %v2878_v0  ;;  %v2753_v44 = vld [vmem:[%s4040_s0 + $0x264] ss:$8 sps:$4 sm:$0xff]   ;;  %v2752_v45 = vld [vmem:[%s4040_s0 + $0x70] ss:$8 sps:$4 sm:$0xff]   ;;  %v2755_v46 = vld [vmem:[%s4040_s0 + $0x260] ss:$8 sps:$4 sm:$0xff]  }
  0x10   :  { %v2756_v47 = vld [vmem:[%s4040_s0 + $0x84] ss:$8 sps:$4 sm:$0xff]   ;;  %v2759_v48 = vld [vmem:[%s4040_s0 + $0x274] ss:$8 sps:$4 sm:$0xff]   ;;  %v2758_v49 = vld [vmem:[%s4040_s0 + $0x80] ss:$8 sps:$4 sm:$0xff]  }
  0x11   :  { %v2761_v50 = vld [vmem:[%s4040_s0 + $0x270] ss:$8 sps:$4 sm:$0xff]   ;;  %v2762_v51 = vld [vmem:[%s4040_s0 + $0x94] ss:$8 sps:$4 sm:$0xff]   ;;  %v2765_v52 = vld [vmem:[%s4040_s0 + $0x284] ss:$8 sps:$4 sm:$0xff]  }
  0x12   :  { %986 = vmatpush1.bf16.msra.mxu0 %v2699_v6  ;;  %2685 = vmatpush1.bf16.msra.mxu1 %v2699_v6  ;;  %v2764_v53 = vld [vmem:[%s4040_s0 + $0x90] ss:$8 sps:$4 sm:$0xff]   ;;  %v2767_v54 = vld [vmem:[%s4040_s0 + $0x280] ss:$8 sps:$4 sm:$0xff]   ;;  %v2768_v55 = vld [vmem:[%s4040_s0 + $0xa4] ss:$8 sps:$4 sm:$0xff]  }
  0x13   :  { %987 = vmatprep.subr.bf16.mxu0 %v2878_v0  ;;  %2673 = vmatprep.subr.bf16.mxu1 %v2878_v0  ;;  %v2771_v56 = vld [vmem:[%s4040_s0 + $0x294] ss:$8 sps:$4 sm:$0xff]   ;;  %v2770_v57 = vld [vmem:[%s4040_s0 + $0xa0] ss:$8 sps:$4 sm:$0xff]   ;;  %v2773_v58 = vld [vmem:[%s4040_s0 + $0x290] ss:$8 sps:$4 sm:$0xff]  }
  0x14   :  { %v2774_v59 = vld [vmem:[%s4040_s0 + $0xb4] ss:$8 sps:$4 sm:$0xff]   ;;  %v2777_v60 = vld [vmem:[%s4040_s0 + $0x2a4] ss:$8 sps:$4 sm:$0xff]   ;;  %v2776_v61 = vld [vmem:[%s4040_s0 + $0xb0] ss:$8 sps:$4 sm:$0xff]  }
  0x15   :  { %v2779_v62 = vld [vmem:[%s4040_s0 + $0x2a0] ss:$8 sps:$4 sm:$0xff]   ;;  %v2780_v63 = vld [vmem:[%s4040_s0 + $0xc4] ss:$8 sps:$4 sm:$0xff]   ;;  %v2785_v2 = vld [vmem:[%s4040_s0 + $0x2b0] ss:$8 sps:$4 sm:$0xff]  }
  0x16   :  { %988 = vmatpush1.bf16.msra.mxu0 %v2700_v8  ;;  %2686 = vmatpush1.bf16.msra.mxu1 %v2700_v8  ;;  %v2782_v1 = vld [vmem:[%s4040_s0 + $0xc0] ss:$8 sps:$4 sm:$0xff]   ;;  %v2786_v3 = vld [vmem:[%s4040_s0 + $0xd4] ss:$8 sps:$4 sm:$0xff]   ;;  %v2789_v4 = vld [vmem:[%s4040_s0 + $0x2c4] ss:$8 sps:$4 sm:$0xff]  }
  0x17   :  { %989 = vmatprep.subr.bf16.mxu0 %v2878_v0  ;;  %2674 = vmatprep.subr.bf16.mxu1 %v2878_v0  ;;  %v2788_v5 = vld [vmem:[%s4040_s0 + $0xd0] ss:$8 sps:$4 sm:$0xff]   ;;  %v2791_v6 = vld [vmem:[%s4040_s0 + $0x2c0] ss:$8 sps:$4 sm:$0xff]   ;;  %v2792_v7 = vld [vmem:[%s4040_s0 + $0xe4] ss:$8 sps:$4 sm:$0xff]  }
  0x18   :  { %v2795_v8 = vld [vmem:[%s4040_s0 + $0x2d4] ss:$8 sps:$4 sm:$0xff]  }
  0x19   :  { %v2798_v11 = vld [vmem:[%s4040_s0 + $0xf4] ss:$8 sps:$4 sm:$0xff]  }
  0x1a   :  { %990 = vmatpush1.bf16.msra.mxu0 %v2701_v9  ;;  %2687 = vmatpush1.bf16.msra.mxu1 %v2701_v9  ;;  %v2794_v9 = vld [vmem:[%s4040_s0 + $0xe0] ss:$8 sps:$4 sm:$0xff]  }
  0x1b   :  { %991 = vmatprep.subr.bf16.mxu0 %v2878_v0  ;;  %2675 = vmatprep.subr.bf16.mxu1 %v2878_v0 }
  0x1e   :  { %992 = vmatpush1.bf16.msra.mxu0 %v2702_v10  ;;  %2688 = vmatpush1.bf16.msra.mxu1 %v2702_v10  ;;  %v2797_v10 = vld [vmem:[%s4040_s0 + $0x2d0] ss:$8 sps:$4 sm:$0xff]  }
  0x1f   :  { %999 = vmatprep.subr.bf16.mxu0 %v2878_v0  ;;  %2676 = vmatprep.subr.bf16.mxu1 %v2878_v0 }
  0x22   :  { %1000 = vmatpush2.bf16.msra.mxu0 %v975_v12  ;;  %2689 = vmatpush2.bf16.msra.mxu1 %v975_v12  ;;  %v2801_v12 = vld [vmem:[%s4040_s0 + $0x2e4] ss:$8 sps:$4 sm:$0xff]  }
  0x23   :  { %1001 = vmatprep.subr.bf16.mxu0 %v2878_v0  ;;  %2677 = vmatprep.subr.bf16.mxu1 %v2878_v0 }
  0x26   :  { %1002 = vmatpush2.bf16.msra.mxu0 %v2704_v13  ;;  %2690 = vmatpush2.bf16.msra.mxu1 %v2704_v13  ;;  %v2800_v13 = vld [vmem:[%s4040_s0 + $0xf0] ss:$8 sps:$4 sm:$0xff]  }
  0x27   :  { %1003 = vmatprep.subr.bf16.mxu0 %v2878_v0  ;;  %2678 = vmatprep.subr.bf16.mxu1 %v2878_v0 }
  0x2a   :  { %1004 = vmatpush2.bf16.msra.mxu0 %v2705_v14  ;;  %2691 = vmatpush2.bf16.msra.mxu1 %v2705_v14  ;;  %v2803_v14 = vld [vmem:[%s4040_s0 + $0x2e0] ss:$8 sps:$4 sm:$0xff]  }
  0x2b   :  { %1005 = vmatprep.subr.bf16.mxu0 %v2878_v0  ;;  %2679 = vmatprep.subr.bf16.mxu1 %v2878_v0 }
  0x2e   :  { %1006 = vmatpush2.bf16.msra.mxu0 %v2706_v15  ;;  %2692 = vmatpush2.bf16.msra.mxu1 %v2706_v15  ;;  %v2804_v15 = vld [vmem:[%s4040_s0 + $0x104] ss:$8 sps:$4 sm:$0xff]  }
  0x2f   :  { %1007 = vmatprep.subr.bf16.mxu0 %v2878_v0  ;;  %2680 = vmatprep.subr.bf16.mxu1 %v2878_v0  ;;  %v2783_v0 = vld [vmem:[%s4040_s0 + $0x2b4] ss:$8 sps:$4 sm:$0xff]  }
  0x32   :  { %1008 = vmatpush2.bf16.msra.mxu0 %v2707_v16  ;;  %2693 = vmatpush2.bf16.msra.mxu1 %v2707_v16  ;;  %v2807_v16 = vld [vmem:[%s4040_s0 + $0x2f4] ss:$8 sps:$4 sm:$0xff]  }
  0x35   :  { %1010 = vmatmul.mubr.bf16.vlgmr.msra.gmra.mxu0 %v2708_v17  ;;  %1258 = vmatmul.mubr.bf16.vlgmr.msra.gmra.mxu1 %v2711_v18  ;;  %v2806_v17 = vld [vmem:[%s4040_s0 + $0x100] ss:$8 sps:$4 sm:$0xff]   ;;  %v2809_v18 = vld [vmem:[%s4040_s0 + $0x2f0] ss:$8 sps:$4 sm:$0xff]  }
  0x36   :  { %2366 = vmatprep.mubr.msk.bf16.mxu0 %vm789_vm0, %v2714_v19  ;;  %2397 = vmatprep.mubr.msk.bf16.mxu1 %vm789_vm0, %v2717_v20  ;;  %v2810_v19 = vld [vmem:[%s4040_s0 + $0x114] ss:$8 sps:$4 sm:$0xff]   ;;  %v2813_v20 = vld [vmem:[%s4040_s0 + $0x304] ss:$8 sps:$4 sm:$0xff]  }
  0x3d   :  { %1018 = vmatmul.mubr.bf16.gmra.mxu0 %v2716_v21  ;;  %1266 = vmatmul.mubr.bf16.gmra.mxu1 %v2719_v22  ;;  %v2812_v21 = vld [vmem:[%s4040_s0 + $0x110] ss:$8 sps:$4 sm:$0xff]   ;;  %v2815_v22 = vld [vmem:[%s4040_s0 + $0x300] ss:$8 sps:$4 sm:$0xff]  }
  0x3e   :  { %2367 = vmatprep.mubr.msk.bf16.mxu0 %vm789_vm0, %v2720_v23  ;;  %2398 = vmatprep.mubr.msk.bf16.mxu1 %vm789_vm0, %v2723_v24  ;;  %v2816_v23 = vld [vmem:[%s4040_s0 + $0x124] ss:$8 sps:$4 sm:$0xff]   ;;  %v2819_v24 = vld [vmem:[%s4040_s0 + $0x314] ss:$8 sps:$4 sm:$0xff]  }
  0x45   :  { %1026 = vmatmul.mubr.bf16.gmra.mxu0 %v2722_v25  ;;  %1274 = vmatmul.mubr.bf16.gmra.mxu1 %v2725_v26  ;;  %v2818_v25 = vld [vmem:[%s4040_s0 + $0x120] ss:$8 sps:$4 sm:$0xff]   ;;  %v2821_v26 = vld [vmem:[%s4040_s0 + $0x310] ss:$8 sps:$4 sm:$0xff]  }
  0x46   :  { %2368 = vmatprep.mubr.msk.bf16.mxu0 %vm789_vm0, %v2726_v27  ;;  %2399 = vmatprep.mubr.msk.bf16.mxu1 %vm789_vm0, %v2729_v28  ;;  %v2822_v27 = vld [vmem:[%s4040_s0 + $0x134] ss:$8 sps:$4 sm:$0xff]   ;;  %v2825_v28 = vld [vmem:[%s4040_s0 + $0x324] ss:$8 sps:$4 sm:$0xff]  }
  0x4d   :  { %1034 = vmatmul.mubr.bf16.gmra.mxu0 %v2728_v29  ;;  %1282 = vmatmul.mubr.bf16.gmra.mxu1 %v2731_v30  ;;  %v2824_v29 = vld [vmem:[%s4040_s0 + $0x130] ss:$8 sps:$4 sm:$0xff]   ;;  %v2827_v30 = vld [vmem:[%s4040_s0 + $0x320] ss:$8 sps:$4 sm:$0xff]  }
  0x4e   :  { %2369 = vmatprep.mubr.msk.bf16.mxu0 %vm789_vm0, %v2732_v31  ;;  %2400 = vmatprep.mubr.msk.bf16.mxu1 %vm789_vm0, %v2735_v32  ;;  %v2828_v31 = vld [vmem:[%s4040_s0 + $0x144] ss:$8 sps:$4 sm:$0xff]   ;;  %v2831_v32 = vld [vmem:[%s4040_s0 + $0x334] ss:$8 sps:$4 sm:$0xff]  }
  0x55   :  { %1042 = vmatmul.mubr.bf16.gmra.mxu0 %v2734_v33  ;;  %1290 = vmatmul.mubr.bf16.gmra.mxu1 %v2737_v34  ;;  %v2830_v33 = vld [vmem:[%s4040_s0 + $0x140] ss:$8 sps:$4 sm:$0xff]   ;;  %v2833_v34 = vld [vmem:[%s4040_s0 + $0x330] ss:$8 sps:$4 sm:$0xff]  }
  0x56   :  { %2370 = vmatprep.mubr.msk.bf16.mxu0 %vm789_vm0, %v2738_v35  ;;  %2401 = vmatprep.mubr.msk.bf16.mxu1 %vm789_vm0, %v2741_v36  ;;  %v2834_v35 = vld [vmem:[%s4040_s0 + $0x154] ss:$8 sps:$4 sm:$0xff]   ;;  %v2837_v36 = vld [vmem:[%s4040_s0 + $0x344] ss:$8 sps:$4 sm:$0xff]  }
  0x5d   :  { %1050 = vmatmul.mubr.bf16.gmra.mxu0 %v2740_v37  ;;  %1298 = vmatmul.mubr.bf16.gmra.mxu1 %v2743_v38  ;;  %v2836_v37 = vld [vmem:[%s4040_s0 + $0x150] ss:$8 sps:$4 sm:$0xff]   ;;  %v2839_v38 = vld [vmem:[%s4040_s0 + $0x340] ss:$8 sps:$4 sm:$0xff]  }
  0x5e   :  { %2371 = vmatprep.mubr.msk.bf16.mxu0 %vm789_vm0, %v2744_v39  ;;  %2402 = vmatprep.mubr.msk.bf16.mxu1 %vm789_vm0, %v2747_v40  ;;  %v2840_v39 = vld [vmem:[%s4040_s0 + $0x164] ss:$8 sps:$4 sm:$0xff]   ;;  %v2843_v40 = vld [vmem:[%s4040_s0 + $0x354] ss:$8 sps:$4 sm:$0xff]  }
  0x65   :  { %1058 = vmatmul.mubr.bf16.gmra.mxu0 %v2746_v41  ;;  %1306 = vmatmul.mubr.bf16.gmra.mxu1 %v2749_v42  ;;  %v2842_v41 = vld [vmem:[%s4040_s0 + $0x160] ss:$8 sps:$4 sm:$0xff]   ;;  %v2845_v42 = vld [vmem:[%s4040_s0 + $0x350] ss:$8 sps:$4 sm:$0xff]  }
  0x66   :  { %2372 = vmatprep.mubr.msk.bf16.mxu0 %vm789_vm0, %v2750_v43  ;;  %2403 = vmatprep.mubr.msk.bf16.mxu1 %vm789_vm0, %v2753_v44  ;;  %v2846_v43 = vld [vmem:[%s4040_s0 + $0x174] ss:$8 sps:$4 sm:$0xff]   ;;  %v2849_v44 = vld [vmem:[%s4040_s0 + $0x364] ss:$8 sps:$4 sm:$0xff]  }
  0x6d   :  { %1066 = vmatmul.mubr.bf16.gmra.mxu0 %v2752_v45  ;;  %1314 = vmatmul.mubr.bf16.gmra.mxu1 %v2755_v46  ;;  %v2848_v45 = vld [vmem:[%s4040_s0 + $0x170] ss:$8 sps:$4 sm:$0xff]   ;;  %v2851_v46 = vld [vmem:[%s4040_s0 + $0x360] ss:$8 sps:$4 sm:$0xff]  }
  0x6e   :  { %2373 = vmatprep.mubr.msk.bf16.mxu0 %vm789_vm0, %v2756_v47  ;;  %2404 = vmatprep.mubr.msk.bf16.mxu1 %vm789_vm0, %v2759_v48  ;;  %v2852_v47 = vld [vmem:[%s4040_s0 + $0x184] ss:$8 sps:$4 sm:$0xff]   ;;  %v2854_v48 = vld [vmem:[%s4040_s0 + $0x374] ss:$8 sps:$4 sm:$0xff]  }
  0x75   :  { %1074 = vmatmul.mubr.bf16.gmra.mxu0 %v2758_v49  ;;  %1322 = vmatmul.mubr.bf16.gmra.mxu1 %v2761_v50  ;;  %v63_v49 = vld [vmem:[%s4040_s0 + $0x180] sm:$0xff]  ;;  %v64_v50 = vld [vmem:[%s4040_s0 + $0x188] sm:$0xff] }
  0x76   :  { %2374 = vmatprep.mubr.msk.bf16.mxu0 %vm789_vm0, %v2762_v51  ;;  %2405 = vmatprep.mubr.msk.bf16.mxu1 %vm789_vm0, %v2765_v52  ;;  %v125_v51 = vld [vmem:[%s4040_s0 + $0x370] sm:$0xff]  ;;  %v126_v52 = vld [vmem:[%s4040_s0 + $0x378] sm:$0xff] }
  0x7d   :  { %1082 = vmatmul.mubr.bf16.gmra.mxu0 %v2764_v53  ;;  %1330 = vmatmul.mubr.bf16.gmra.mxu1 %v2767_v54  ;;  %v2278_v53 = vcombine.low %v63_v49, %v64_v50  ;;  %v2340_v54 = vcombine.low %v125_v51, %v126_v52  ;;  %v69_v50 = vld [vmem:[%s4040_s0 + $0x1b0] sm:$0xff] }
  0x7e   :  { %2375 = vmatprep.mubr.msk.bf16.mxu0 %vm789_vm0, %v2768_v55  ;;  %2406 = vmatprep.mubr.msk.bf16.mxu1 %vm789_vm0, %v2771_v56  ;;  %v2856_v55 = vld [vmem:[%s4040_s0 + $0x194] ss:$8 sps:$4 sm:$0xff]   ;;  %v2858_v56 = vld [vmem:[%s4040_s0 + $0x384] ss:$8 sps:$4 sm:$0xff]  }
  0x85   :  { %1090 = vmatmul.mubr.bf16.gmra.mxu0 %v2770_v57  ;;  %1338 = vmatmul.mubr.bf16.gmra.mxu1 %v2773_v58  ;;  %v3329_v57 = vld [vmem:[%s4041_s2] ss:$0 sm:$0xff] }
  0x86   :  { %2376 = vmatprep.mubr.msk.bf16.mxu0 %vm789_vm0, %v2774_v59  ;;  %2407 = vmatprep.mubr.msk.bf16.mxu1 %vm789_vm0, %v2777_v60  ;;  %v65_v60 = vld [vmem:[%s4040_s0 + $0x190] sm:$0xff] }
  0x8d   :  { %1098 = vmatmul.mubr.bf16.gmra.mxu0 %v2776_v61  ;;  %1346 = vmatmul.mubr.bf16.gmra.mxu1 %v2779_v62 }
  0x8e   :  { %2377 = vmatprep.mubr.msk.bf16.mxu0 %vm789_vm0, %v2780_v63  ;;  %2408 = vmatprep.mubr.msk.bf16.mxu1 %vm789_vm0, %v2783_v0  ;;  %v66_v63 = vld [vmem:[%s4040_s0 + $0x198] sm:$0xff]  ;;  %v127_v0 = vld [vmem:[%s4040_s0 + $0x380] sm:$0xff] }
  0x95   :  { %1106 = vmatmul.mubr.bf16.gmra.mxu0 %v2782_v1  ;;  %1354 = vmatmul.mubr.bf16.gmra.mxu1 %v2785_v2  ;;  %v128_v1 = vld [vmem:[%s4040_s0 + $0x388] sm:$0xff] }
  0x96   :  { %2378 = vmatprep.mubr.msk.bf16.mxu0 %vm789_vm0, %v2786_v3  ;;  %2409 = vmatprep.mubr.msk.bf16.mxu1 %vm789_vm0, %v2789_v4 }
  0x9d   :  { %1114 = vmatmul.mubr.bf16.gmra.mxu0 %v2788_v5  ;;  %1362 = vmatmul.mubr.bf16.gmra.mxu1 %v2791_v6 }
  0x9e   :  { %2379 = vmatprep.mubr.msk.bf16.mxu0 %vm789_vm0, %v2792_v7  ;;  %2410 = vmatprep.mubr.msk.bf16.mxu1 %vm789_vm0, %v2795_v8  ;;  %v2280_v7 = vcombine.low %v65_v60, %v66_v63 }
  0xa5   :  { %1122 = vmatmul.mubr.bf16.gmra.mxu0 %v2794_v9  ;;  %1370 = vmatmul.mubr.bf16.gmra.mxu1 %v2797_v10  ;;  %v2342_v9 = vcombine.low %v127_v0, %v128_v1 }
  0xa6   :  { %2380 = vmatprep.mubr.msk.bf16.mxu0 %vm789_vm0, %v2798_v11  ;;  %2411 = vmatprep.mubr.msk.bf16.mxu1 %vm789_vm0, %v2801_v12 }
  0xad   :  { %1130 = vmatmul.mubr.bf16.gmra.mxu0 %v2800_v13  ;;  %1378 = vmatmul.mubr.bf16.gmra.mxu1 %v2803_v14  ;;  %v2860_v14 = vld [vmem:[%s4040_s0 + $0x1a4] ss:$8 sps:$4 sm:$0xff]  }
  0xae   :  { %2381 = vmatprep.mubr.msk.bf16.mxu0 %vm789_vm0, %v2804_v15  ;;  %2412 = vmatprep.mubr.msk.bf16.mxu1 %vm789_vm0, %v2807_v16 }
  0xb5   :  { %1138 = vmatmul.mubr.bf16.gmra.mxu0 %v2806_v17  ;;  %1386 = vmatmul.mubr.bf16.gmra.mxu1 %v2809_v18  ;;  %v2862_v17 = vld [vmem:[%s4040_s0 + $0x394] ss:$8 sps:$4 sm:$0xff]  }
  0xb6   :  { %2382 = vmatprep.mubr.msk.bf16.mxu0 %vm789_vm0, %v2810_v19  ;;  %2413 = vmatprep.mubr.msk.bf16.mxu1 %vm789_vm0, %v2813_v20 }
  0xbd   :  { %1146 = vmatmul.mubr.bf16.gmra.mxu0 %v2812_v21  ;;  %1394 = vmatmul.mubr.bf16.gmra.mxu1 %v2815_v22  ;;  %v67_v22 = vld [vmem:[%s4040_s0 + $0x1a0] sm:$0xff] }
  0xbe   :  { %2383 = vmatprep.mubr.msk.bf16.mxu0 %vm789_vm0, %v2816_v23  ;;  %2414 = vmatprep.mubr.msk.bf16.mxu1 %vm789_vm0, %v2819_v24 }
  0xc5   :  { %1154 = vmatmul.mubr.bf16.gmra.mxu0 %v2818_v25  ;;  %1402 = vmatmul.mubr.bf16.gmra.mxu1 %v2821_v26 }
  0xc6   :  { %2384 = vmatprep.mubr.msk.bf16.mxu0 %vm789_vm0, %v2822_v27  ;;  %2415 = vmatprep.mubr.msk.bf16.mxu1 %vm789_vm0, %v2825_v28  ;;  %v68_v27 = vld [vmem:[%s4040_s0 + $0x1a8] sm:$0xff]  ;;  %v129_v28 = vld [vmem:[%s4040_s0 + $0x390] sm:$0xff] }
  0xcd   :  { %1162 = vmatmul.mubr.bf16.gmra.mxu0 %v2824_v29  ;;  %1410 = vmatmul.mubr.bf16.gmra.mxu1 %v2827_v30  ;;  %v130_v29 = vld [vmem:[%s4040_s0 + $0x398] sm:$0xff] }
  0xce   :  { %2385 = vmatprep.mubr.msk.bf16.mxu0 %vm789_vm0, %v2828_v31  ;;  %2416 = vmatprep.mubr.msk.bf16.mxu1 %vm789_vm0, %v2831_v32 }
  0xd5   :  { %1170 = vmatmul.mubr.bf16.gmra.mxu0 %v2830_v33  ;;  %1418 = vmatmul.mubr.bf16.gmra.mxu1 %v2833_v34 }
  0xd6   :  { %2386 = vmatprep.mubr.msk.bf16.mxu0 %vm789_vm0, %v2834_v35  ;;  %2417 = vmatprep.mubr.msk.bf16.mxu1 %vm789_vm0, %v2837_v36  ;;  %v2282_v35 = vcombine.low %v67_v22, %v68_v27  ;;  %v134_v22 = vld [vmem:[%s4040_s0 + $0x3b8] sm:$0xff]  ;;  %v135_v27 = vld [vmem:[%s4040_s0 + $0x3c0] sm:$0xff] }
  0xdd   :  { %1178 = vmatmul.mubr.bf16.gmra.mxu0 %v2836_v37  ;;  %1426 = vmatmul.mubr.bf16.gmra.mxu1 %v2839_v38  ;;  %v2344_v37 = vcombine.low %v129_v28, %v130_v29 }
  0xde   :  { %2387 = vmatprep.mubr.msk.bf16.mxu0 %vm789_vm0, %v2840_v39  ;;  %2418 = vmatprep.mubr.msk.bf16.mxu1 %vm789_vm0, %v2843_v40 }
  0xe5   :  { %1186 = vmatmul.mubr.bf16.gmra.mxu0 %v2842_v41  ;;  %1434 = vmatmul.mubr.bf16.gmra.mxu1 %v2845_v42  ;;  %v2864_v42 = vld [vmem:[%s4040_s0 + $0x1b4] ss:$8 sps:$4 sm:$0xff]  }
  0xe6   :  { %2388 = vmatprep.mubr.msk.bf16.mxu0 %vm789_vm0, %v2846_v43  ;;  %2419 = vmatprep.mubr.msk.bf16.mxu1 %vm789_vm0, %v2849_v44 }
  0xed   :  { %1194 = vmatmul.mubr.bf16.gmra.mxu0 %v2848_v45  ;;  %1442 = vmatmul.mubr.bf16.gmra.mxu1 %v2851_v46  ;;  %v2866_v45 = vld [vmem:[%s4040_s0 + $0x3a4] ss:$8 sps:$4 sm:$0xff]  }
  0xee   :  { %2389 = vmatprep.mubr.msk.bf16.mxu0 %vm789_vm0, %v2852_v47  ;;  %2420 = vmatprep.mubr.msk.bf16.mxu1 %vm789_vm0, %v2854_v48 }
  0xf5   :  { %v1011_v58 = vpop.f32.mrf.mxu0  ;;  %1202 = vmatmul.mubr.bf16.gmra.mxu0 %v2278_v53  ;;  %v1259_v59 = vpop.f32.mrf.mxu1  ;;  %1450 = vmatmul.mubr.bf16.gmra.mxu1 %v2340_v54 }
  0xf6   :  { %v1012_v61 = vadd.f32 %v3329_v57, %v1011_v58  ;;  %v1260_v62 = vadd.f32 %v3329_v57, %v1259_v59  ;;  %2390 = vmatprep.mubr.msk.bf16.mxu0 %vm789_vm0, %v2856_v55  ;;  %2421 = vmatprep.mubr.msk.bf16.mxu1 %vm789_vm0, %v2858_v56  ;;  %v70_v55 = vld [vmem:[%s4040_s0 + $0x1b8] sm:$0xff]  ;;  %v131_v56 = vld [vmem:[%s4040_s0 + $0x3a0] sm:$0xff]  ;;  %v132_v58 = vld [vmem:[%s4040_s0 + $0x3a8] sm:$0xff] }
  0xf7   :  { %v1013_v2 = vpop.f32.mrf.mxu0  ;;  %v1261_v3 = vpop.f32.mrf.mxu1  ;;  %v2284_v0 = vcombine.low %v69_v50, %v70_v55 }
  0xf8   :  { %v1497_v4 = vmax.f32 %v1012_v61, 0.0  ;;  %v1559_v5 = vmax.f32 %v1260_v62, 0.0  ;;  %v2346_v2 = vcombine.low %v131_v56, %v132_v58  ;;  %v2350_v58 = vcombine.low %v135_v27, %v135_v27 }
  0xf9   :  { %v1014_v6 = vpop.f32.mrf.mxu0  ;;  %v1262_v8 = vpop.f32.mrf.mxu1 }
  0xfa   :  { %v2547_v10 = vpack.c.bf16 %v1497_v4, %v1497_v4  ;;  %v1015_v11 = vadd.f32 %v3329_v57, %v1014_v6  ;;  %v2609_v12 = vpack.c.bf16 %v1559_v5, %v1559_v5  ;;  %v1263_v13 = vadd.f32 %v3329_v57, %v1262_v8 }
  0xfb   :  { %v1016_v15 = vpop.f32.mrf.mxu0  ;;  %v1264_v16 = vpop.f32.mrf.mxu1 }
  0xfc   :  { %2104 = vst.msk [vmem:[%s4042_s3] sm:$0xf] %vm2103_vm2, %v2547_v10  ;;  %v1498_v18 = vmax.f32 %v1015_v11, 0.0  ;;  %2166 = vst.msk [vmem:[%s4042_s3 + $0xf8] sm:$0xf] %vm2103_vm2, %v2609_v12  ;;  %v1560_v19 = vmax.f32 %v1263_v13, 0.0 }
  0xfd   :  { %v1019_v20 = vpop.f32.mrf.mxu0  ;;  %1210 = vmatmul.mubr.bf16.gmra.mxu0 %v2280_v7  ;;  %v1267_v21 = vpop.f32.mrf.mxu1  ;;  %1458 = vmatmul.mubr.bf16.gmra.mxu1 %v2342_v9  ;;  %v2868_v7 = vld [vmem:[%s4040_s0 + $0x1c4] ss:$8 sps:$4 sm:$0xff]   ;;  %v2870_v10 = vld [vmem:[%s4040_s0 + $0x3b4] ss:$8 sps:$4 sm:$0xff]  }
  0xfe   :  { %v2548_v23 = vpack.c.bf16 %v1498_v18, %v1498_v18  ;;  %v1020_v24 = vadd.f32 %v3329_v57, %v1019_v20  ;;  %v2610_v25 = vpack.c.bf16 %v1560_v19, %v1560_v19  ;;  %v1268_v26 = vadd.f32 %v3329_v57, %v1267_v21  ;;  %2391 = vmatprep.mubr.msk.bf16.mxu0 %vm789_vm0, %v2860_v14  ;;  %v71_v15 = vld [vmem:[%s4040_s0 + $0x1c0] sm:$0xff]  ;;  %v72_v20 = vld [vmem:[%s4040_s0 + $0x1c8] sm:$0xff]  ;;  %v133_v21 = vld [vmem:[%s4040_s0 + $0x3b0] sm:$0xff] }
  0xff   :  { %v1021_v30 = vpop.f32.mrf.mxu0  ;;  %v1269_v31 = vpop.f32.mrf.mxu1  ;;  %2422 = vmatprep.mubr.msk.bf16.mxu1 %vm789_vm0, %v2862_v17  ;;  %v2286_v29 = vcombine.low %v71_v15, %v72_v20 }
 0x100   :  { %2105 = vst.msk [vmem:[%s4042_s3 + $0x4] sm:$0xf] %vm2103_vm2, %v2548_v23  ;;  %v1499_v32 = vmax.f32 %v1020_v24, 0.0  ;;  %2167 = vst.msk [vmem:[%s4042_s3 + $0xfc] sm:$0xf] %vm2103_vm2, %v2610_v25  ;;  %v1561_v33 = vmax.f32 %v1268_v26, 0.0  ;;  %v2348_v31 = vcombine.low %v133_v21, %v134_v22 }
 0x101   :  { %v1022_v34 = vpop.f32.mrf.mxu0  ;;  %v1270_v36 = vpop.f32.mrf.mxu1 }
 0x102   :  { %v2549_v38 = vpack.c.bf16 %v1499_v32, %v1499_v32  ;;  %v1023_v39 = vadd.f32 %v3329_v57, %v1022_v34  ;;  %v2611_v40 = vpack.c.bf16 %v1561_v33, %v1561_v33  ;;  %v1271_v41 = vadd.f32 %v3329_v57, %v1270_v36  ;;  %v2872_v36 = vld [vmem:[%s4040_s0 + $0x1d4] ss:$8 sps:$4 sm:$0xff]  }
 0x103   :  { %v1024_v43 = vpop.f32.mrf.mxu0  ;;  %v1272_v44 = vpop.f32.mrf.mxu1 }
 0x104   :  { %2106 = vst.msk [vmem:[%s4042_s3 + $0x8] sm:$0xf] %vm2103_vm2, %v2549_v38  ;;  %v1500_v46 = vmax.f32 %v1023_v39, 0.0  ;;  %2168 = vst.msk [vmem:[%s4042_s3 + $0x100] sm:$0xf] %vm2103_vm2, %v2611_v40  ;;  %v1562_v47 = vmax.f32 %v1271_v41, 0.0  ;;  %v2351_v39 = vcombine.high %v135_v27, %v135_v27 }
 0x105   :  { %v1027_v48 = vpop.f32.mrf.mxu0  ;;  %1218 = vmatmul.mubr.bf16.gmra.mxu0 %v2282_v35  ;;  %v1275_v49 = vpop.f32.mrf.mxu1  ;;  %1466 = vmatmul.mubr.bf16.gmra.mxu1 %v2344_v37 }
 0x106   :  { %v2550_v51 = vpack.c.bf16 %v1500_v46, %v1500_v46  ;;  %v1028_v52 = vadd.f32 %v3329_v57, %v1027_v48  ;;  %v2612_v53 = vpack.c.bf16 %v1562_v47, %v1562_v47  ;;  %v1276_v54 = vadd.f32 %v3329_v57, %v1275_v49  ;;  %2392 = vmatprep.mubr.msk.bf16.mxu0 %vm789_vm0, %v2864_v42  ;;  %v73_v48 = vld [vmem:[%s4040_s0 + $0x1d0] sm:$0xff]  ;;  %v74_v49 = vld [vmem:[%s4040_s0 + $0x1d8] sm:$0xff] }
 0x107   :  { %v1029_v59 = vpop.f32.mrf.mxu0  ;;  %v1277_v60 = vpop.f32.mrf.mxu1  ;;  %2423 = vmatprep.mubr.msk.bf16.mxu1 %vm789_vm0, %v2866_v45  ;;  %v2288_v55 = vcombine.low %v73_v48, %v74_v49 }
 0x108   :  { %2107 = vst.msk [vmem:[%s4042_s3 + $0xc] sm:$0xf] %vm2103_vm2, %v2550_v51  ;;  %v1501_v61 = vmax.f32 %v1028_v52, 0.0  ;;  %2169 = vst.msk [vmem:[%s4042_s3 + $0x104] sm:$0xf] %vm2103_vm2, %v2612_v53  ;;  %v1563_v62 = vmax.f32 %v1276_v54, 0.0 }
 0x109   :  { %v1030_v63 = vpop.f32.mrf.mxu0  ;;  %v1278_v1 = vpop.f32.mrf.mxu1 }
 0x10a   :  { %v2551_v3 = vpack.c.bf16 %v1501_v61, %v1501_v61  ;;  %v1031_v4 = vadd.f32 %v3329_v57, %v1030_v63  ;;  %v2613_v5 = vpack.c.bf16 %v1563_v62, %v1563_v62  ;;  %v1279_v6 = vadd.f32 %v3329_v57, %v1278_v1  ;;  %v2875_v63 = vld [vmem:[%s4040_s0 + $0x1e4] ss:$8 sps:$4 sm:$0xff]  }
 0x10b   :  { %v1032_v8 = vpop.f32.mrf.mxu0  ;;  %v1280_v9 = vpop.f32.mrf.mxu1 }
 0x10c   :  { %2108 = vst.msk [vmem:[%s4042_s3 + $0x10] sm:$0xf] %vm2103_vm2, %v2551_v3  ;;  %v1502_v11 = vmax.f32 %v1031_v4, 0.0  ;;  %2170 = vst.msk [vmem:[%s4042_s3 + $0x108] sm:$0xf] %vm2103_vm2, %v2613_v5  ;;  %v1564_v12 = vmax.f32 %v1279_v6, 0.0 }
 0x10d   :  { %v1035_v13 = vpop.f32.mrf.mxu0  ;;  %1226 = vmatmul.mubr.bf16.gmra.mxu0 %v2284_v0  ;;  %v1283_v14 = vpop.f32.mrf.mxu1  ;;  %1474 = vmatmul.mubr.bf16.gmra.mxu1 %v2346_v2 }
 0x10e   :  { %v2552_v16 = vpack.c.bf16 %v1502_v11, %v1502_v11  ;;  %v1036_v17 = vadd.f32 %v3329_v57, %v1035_v13  ;;  %v2614_v18 = vpack.c.bf16 %v1564_v12, %v1564_v12  ;;  %v1284_v19 = vadd.f32 %v3329_v57, %v1283_v14  ;;  %2393 = vmatprep.mubr.msk.bf16.mxu0 %vm789_vm0, %v2868_v7  ;;  %v76_v11 = vld [vmem:[%s4040_s0 + $0x1e8] sm:$0xff] }
 0x10f   :  { %v1037_v23 = vpop.f32.mrf.mxu0  ;;  %v1285_v24 = vpop.f32.mrf.mxu1  ;;  %2424 = vmatprep.mubr.msk.bf16.mxu1 %vm789_vm0, %v2870_v10  ;;  %v75_v10 = vld [vmem:[%s4040_s0 + $0x1e0] sm:$0xff] }
 0x110   :  { %2109 = vst.msk [vmem:[%s4042_s3 + $0x14] sm:$0xf] %vm2103_vm2, %v2552_v16  ;;  %v1503_v25 = vmax.f32 %v1036_v17, 0.0  ;;  %2171 = vst.msk [vmem:[%s4042_s3 + $0x10c] sm:$0xf] %vm2103_vm2, %v2614_v18  ;;  %v1565_v26 = vmax.f32 %v1284_v19, 0.0  ;;  %v2290_v17 = vcombine.low %v75_v10, %v76_v11 }
 0x111   :  { %v1038_v28 = vpop.f32.mrf.mxu0  ;;  %v1286_v30 = vpop.f32.mrf.mxu1 }
 0x112   :  { %v2553_v32 = vpack.c.bf16 %v1503_v25, %v1503_v25  ;;  %v1039_v33 = vadd.f32 %v3329_v57, %v1038_v28  ;;  %v2615_v34 = vpack.c.bf16 %v1565_v26, %v1565_v26  ;;  %v1287_v35 = vadd.f32 %v3329_v57, %v1286_v30 }
 0x113   :  { %v1040_v37 = vpop.f32.mrf.mxu0  ;;  %v1288_v38 = vpop.f32.mrf.mxu1 }
 0x114   :  { %2110 = vst.msk [vmem:[%s4042_s3 + $0x18] sm:$0xf] %vm2103_vm2, %v2553_v32  ;;  %v1504_v40 = vmax.f32 %v1039_v33, 0.0  ;;  %2172 = vst.msk [vmem:[%s4042_s3 + $0x110] sm:$0xf] %vm2103_vm2, %v2615_v34  ;;  %v1566_v41 = vmax.f32 %v1287_v35, 0.0 }
 0x115   :  { %v1043_v42 = vpop.f32.mrf.mxu0  ;;  %1234 = vmatmul.mubr.bf16.gmra.mxu0 %v2286_v29  ;;  %v1291_v43 = vpop.f32.mrf.mxu1  ;;  %1482 = vmatmul.mubr.bf16.gmra.mxu1 %v2348_v31 }
 0x116   :  { %v2554_v44 = vpack.c.bf16 %v1504_v40, %v1504_v40  ;;  %v1044_v45 = vadd.f32 %v3329_v57, %v1043_v42  ;;  %v2616_v46 = vpack.c.bf16 %v1566_v41, %v1566_v41  ;;  %v1292_v47 = vadd.f32 %v3329_v57, %v1291_v43  ;;  %2394 = vmatprep.mubr.msk.bf16.mxu0 %vm789_vm0, %v2872_v36 }
 0x117   :  { %v1045_v50 = vpop.f32.mrf.mxu0  ;;  %v1293_v51 = vpop.f32.mrf.mxu1  ;;  %2425 = vmatprep.mubr.msk.bf16.mxu1 %vm789_vm0, %v2351_v39 }
 0x118   :  { %2111 = vst.msk [vmem:[%s4042_s3 + $0x1c] sm:$0xf] %vm2103_vm2, %v2554_v44  ;;  %v1505_v52 = vmax.f32 %v1044_v45, 0.0  ;;  %2173 = vst.msk [vmem:[%s4042_s3 + $0x114] sm:$0xf] %vm2103_vm2, %v2616_v46  ;;  %v1567_v53 = vmax.f32 %v1292_v47, 0.0 }
 0x119   :  { %v1046_v54 = vpop.f32.mrf.mxu0  ;;  %v1294_v56 = vpop.f32.mrf.mxu1 }
 0x11a   :  { %v2555_v59 = vpack.c.bf16 %v1505_v52, %v1505_v52  ;;  %v1047_v60 = vadd.f32 %v3329_v57, %v1046_v54  ;;  %v2617_v61 = vpack.c.bf16 %v1567_v53, %v1567_v53  ;;  %v1295_v62 = vadd.f32 %v3329_v57, %v1294_v56 }
 0x11b   :  { %v1048_v0 = vpop.f32.mrf.mxu0  ;;  %v1296_v1 = vpop.f32.mrf.mxu1 }
 0x11c   :  { %2112 = vst.msk [vmem:[%s4042_s3 + $0x20] sm:$0xf] %vm2103_vm2, %v2555_v59  ;;  %v1506_v2 = vmax.f32 %v1047_v60, 0.0  ;;  %2174 = vst.msk [vmem:[%s4042_s3 + $0x118] sm:$0xf] %vm2103_vm2, %v2617_v61  ;;  %v1568_v3 = vmax.f32 %v1295_v62, 0.0 }
 0x11d   :  { %v1051_v4 = vpop.f32.mrf.mxu0  ;;  %1242 = vmatmul.mubr.bf16.gmra.mxu0 %v2288_v55  ;;  %v1299_v5 = vpop.f32.mrf.mxu1  ;;  %1490 = vmatmul.mubr.bf16.gmra.mxu1 %v2350_v58 }
 0x11e   :  { %v2556_v6 = vpack.c.bf16 %v1506_v2, %v1506_v2  ;;  %v1052_v7 = vadd.f32 %v3329_v57, %v1051_v4  ;;  %v2618_v8 = vpack.c.bf16 %v1568_v3, %v1568_v3  ;;  %v1300_v9 = vadd.f32 %v3329_v57, %v1299_v5  ;;  %2395 = vmatprep.mubr.msk.bf16.mxu0 %vm789_vm0, %v2875_v63 }
 0x11f   :  { %v1053_v12 = vpop.f32.mrf.mxu0  ;;  %v1301_v13 = vpop.f32.mrf.mxu1 }
 0x120   :  { %2113 = vst.msk [vmem:[%s4042_s3 + $0x24] sm:$0xf] %vm2103_vm2, %v2556_v6  ;;  %v1507_v14 = vmax.f32 %v1052_v7, 0.0  ;;  %2175 = vst.msk [vmem:[%s4042_s3 + $0x11c] sm:$0xf] %vm2103_vm2, %v2618_v8  ;;  %v1569_v15 = vmax.f32 %v1300_v9, 0.0 }
 0x121   :  { %v1054_v16 = vpop.f32.mrf.mxu0  ;;  %v1302_v18 = vpop.f32.mrf.mxu1 }
 0x122   :  { %v2557_v19 = vpack.c.bf16 %v1507_v14, %v1507_v14  ;;  %v1055_v20 = vadd.f32 %v3329_v57, %v1054_v16  ;;  %v2619_v21 = vpack.c.bf16 %v1569_v15, %v1569_v15  ;;  %v1303_v22 = vadd.f32 %v3329_v57, %v1302_v18 }
 0x123   :  { %v1056_v23 = vpop.f32.mrf.mxu0  ;;  %v1304_v24 = vpop.f32.mrf.mxu1 }
 0x124   :  { %2114 = vst.msk [vmem:[%s4042_s3 + $0x28] sm:$0xf] %vm2103_vm2, %v2557_v19  ;;  %v1508_v25 = vmax.f32 %v1055_v20, 0.0  ;;  %2176 = vst.msk [vmem:[%s4042_s3 + $0x120] sm:$0xf] %vm2103_vm2, %v2619_v21  ;;  %v1570_v26 = vmax.f32 %v1303_v22, 0.0 }
 0x125   :  { %v1059_v27 = vpop.f32.mrf.mxu0  ;;  %1250 = vmatmul.mubr.bf16.gmra.mxu0 %v2290_v17  ;;  %v1307_v28 = vpop.f32.mrf.mxu1 }
 0x126   :  { %v2558_v29 = vpack.c.bf16 %v1508_v25, %v1508_v25  ;;  %v1060_v30 = vadd.f32 %v3329_v57, %v1059_v27  ;;  %v2620_v31 = vpack.c.bf16 %v1570_v26, %v1570_v26  ;;  %v1308_v32 = vadd.f32 %v3329_v57, %v1307_v28 }
 0x127   :  { %v1061_v33 = vpop.f32.mrf.mxu0  ;;  %v1309_v34 = vpop.f32.mrf.mxu1 }
 0x128   :  { %2115 = vst.msk [vmem:[%s4042_s3 + $0x2c] sm:$0xf] %vm2103_vm2, %v2558_v29  ;;  %v1509_v35 = vmax.f32 %v1060_v30, 0.0  ;;  %2177 = vst.msk [vmem:[%s4042_s3 + $0x124] sm:$0xf] %vm2103_vm2, %v2620_v31  ;;  %v1571_v36 = vmax.f32 %v1308_v32, 0.0 }
 0x129   :  { %v1062_v37 = vpop.f32.mrf.mxu0  ;;  %v1310_v38 = vpop.f32.mrf.mxu1 }
 0x12a   :  { %v2559_v39 = vpack.c.bf16 %v1509_v35, %v1509_v35  ;;  %v1063_v40 = vadd.f32 %v3329_v57, %v1062_v37  ;;  %v2621_v41 = vpack.c.bf16 %v1571_v36, %v1571_v36  ;;  %v1311_v42 = vadd.f32 %v3329_v57, %v1310_v38 }
 0x12b   :  { %v1064_v43 = vpop.f32.mrf.mxu0  ;;  %v1312_v44 = vpop.f32.mrf.mxu1 }
 0x12c   :  { %2116 = vst.msk [vmem:[%s4042_s3 + $0x30] sm:$0xf] %vm2103_vm2, %v2559_v39  ;;  %v1510_v45 = vmax.f32 %v1063_v40, 0.0  ;;  %2178 = vst.msk [vmem:[%s4042_s3 + $0x128] sm:$0xf] %vm2103_vm2, %v2621_v41  ;;  %v1572_v46 = vmax.f32 %v1311_v42, 0.0 }
 0x12d   :  { %v1067_v47 = vpop.f32.mrf.mxu0  ;;  %v1315_v48 = vpop.f32.mrf.mxu1 }
 0x12e   :  { %v2560_v49 = vpack.c.bf16 %v1510_v45, %v1510_v45  ;;  %v1068_v50 = vadd.f32 %v3329_v57, %v1067_v47  ;;  %v2622_v51 = vpack.c.bf16 %v1572_v46, %v1572_v46  ;;  %v1316_v52 = vadd.f32 %v3329_v57, %v1315_v48 }
 0x12f   :  { %v1069_v53 = vpop.f32.mrf.mxu0  ;;  %v1317_v54 = vpop.f32.mrf.mxu1 }
 0x130   :  { %2117 = vst.msk [vmem:[%s4042_s3 + $0x34] sm:$0xf] %vm2103_vm2, %v2560_v49  ;;  %v1511_v55 = vmax.f32 %v1068_v50, 0.0  ;;  %2179 = vst.msk [vmem:[%s4042_s3 + $0x12c] sm:$0xf] %vm2103_vm2, %v2622_v51  ;;  %v1573_v56 = vmax.f32 %v1316_v52, 0.0 }
 0x131   :  { %v1070_v58 = vpop.f32.mrf.mxu0  ;;  %v1318_v59 = vpop.f32.mrf.mxu1 }
 0x132   :  { %v2561_v60 = vpack.c.bf16 %v1511_v55, %v1511_v55  ;;  %v1071_v61 = vadd.f32 %v3329_v57, %v1070_v58  ;;  %v2623_v62 = vpack.c.bf16 %v1573_v56, %v1573_v56  ;;  %v1319_v63 = vadd.f32 %v3329_v57, %v1318_v59 }
 0x133   :  { %v1072_v0 = vpop.f32.mrf.mxu0  ;;  %v1320_v1 = vpop.f32.mrf.mxu1 }
 0x134   :  { %2118 = vst.msk [vmem:[%s4042_s3 + $0x38] sm:$0xf] %vm2103_vm2, %v2561_v60  ;;  %v1512_v2 = vmax.f32 %v1071_v61, 0.0  ;;  %2180 = vst.msk [vmem:[%s4042_s3 + $0x130] sm:$0xf] %vm2103_vm2, %v2623_v62  ;;  %v1574_v3 = vmax.f32 %v1319_v63, 0.0 }
 0x135   :  { %v1075_v4 = vpop.f32.mrf.mxu0  ;;  %v1323_v5 = vpop.f32.mrf.mxu1 }
 0x136   :  { %v2562_v6 = vpack.c.bf16 %v1512_v2, %v1512_v2  ;;  %v1076_v7 = vadd.f32 %v3329_v57, %v1075_v4  ;;  %v2624_v8 = vpack.c.bf16 %v1574_v3, %v1574_v3  ;;  %v1324_v9 = vadd.f32 %v3329_v57, %v1323_v5 }
 0x137   :  { %v1077_v10 = vpop.f32.mrf.mxu0  ;;  %v1325_v11 = vpop.f32.mrf.mxu1 }
 0x138   :  { %2119 = vst.msk [vmem:[%s4042_s3 + $0x3c] sm:$0xf] %vm2103_vm2, %v2562_v6  ;;  %v1513_v12 = vmax.f32 %v1076_v7, 0.0  ;;  %2181 = vst.msk [vmem:[%s4042_s3 + $0x134] sm:$0xf] %vm2103_vm2, %v2624_v8  ;;  %v1575_v13 = vmax.f32 %v1324_v9, 0.0 }
 0x139   :  { %v1078_v14 = vpop.f32.mrf.mxu0  ;;  %v1326_v15 = vpop.f32.mrf.mxu1 }
 0x13a   :  { %v2563_v16 = vpack.c.bf16 %v1513_v12, %v1513_v12  ;;  %v1079_v17 = vadd.f32 %v3329_v57, %v1078_v14  ;;  %v2625_v18 = vpack.c.bf16 %v1575_v13, %v1575_v13  ;;  %v1327_v19 = vadd.f32 %v3329_v57, %v1326_v15 }
 0x13b   :  { %v1080_v20 = vpop.f32.mrf.mxu0  ;;  %v1328_v21 = vpop.f32.mrf.mxu1 }
 0x13c   :  { %2120 = vst.msk [vmem:[%s4042_s3 + $0x40] sm:$0xf] %vm2103_vm2, %v2563_v16  ;;  %v1514_v22 = vmax.f32 %v1079_v17, 0.0  ;;  %2182 = vst.msk [vmem:[%s4042_s3 + $0x138] sm:$0xf] %vm2103_vm2, %v2625_v18  ;;  %v1576_v23 = vmax.f32 %v1327_v19, 0.0 }
 0x13d   :  { %v1083_v24 = vpop.f32.mrf.mxu0  ;;  %v1331_v25 = vpop.f32.mrf.mxu1 }
 0x13e   :  { %v2564_v26 = vpack.c.bf16 %v1514_v22, %v1514_v22  ;;  %v1084_v27 = vadd.f32 %v3329_v57, %v1083_v24  ;;  %v2626_v28 = vpack.c.bf16 %v1576_v23, %v1576_v23  ;;  %v1332_v29 = vadd.f32 %v3329_v57, %v1331_v25 }
 0x13f   :  { %v1085_v30 = vpop.f32.mrf.mxu0  ;;  %v1333_v31 = vpop.f32.mrf.mxu1 }
 0x140   :  { %2121 = vst.msk [vmem:[%s4042_s3 + $0x44] sm:$0xf] %vm2103_vm2, %v2564_v26  ;;  %v1515_v32 = vmax.f32 %v1084_v27, 0.0  ;;  %2183 = vst.msk [vmem:[%s4042_s3 + $0x13c] sm:$0xf] %vm2103_vm2, %v2626_v28  ;;  %v1577_v33 = vmax.f32 %v1332_v29, 0.0 }
 0x141   :  { %v1086_v34 = vpop.f32.mrf.mxu0  ;;  %v1334_v35 = vpop.f32.mrf.mxu1 }
 0x142   :  { %v2565_v36 = vpack.c.bf16 %v1515_v32, %v1515_v32  ;;  %v1087_v37 = vadd.f32 %v3329_v57, %v1086_v34  ;;  %v2627_v38 = vpack.c.bf16 %v1577_v33, %v1577_v33  ;;  %v1335_v39 = vadd.f32 %v3329_v57, %v1334_v35 }
 0x143   :  { %v1088_v40 = vpop.f32.mrf.mxu0  ;;  %v1336_v41 = vpop.f32.mrf.mxu1 }
 0x144   :  { %2122 = vst.msk [vmem:[%s4042_s3 + $0x48] sm:$0xf] %vm2103_vm2, %v2565_v36  ;;  %v1516_v42 = vmax.f32 %v1087_v37, 0.0  ;;  %2184 = vst.msk [vmem:[%s4042_s3 + $0x140] sm:$0xf] %vm2103_vm2, %v2627_v38  ;;  %v1578_v43 = vmax.f32 %v1335_v39, 0.0 }
 0x145   :  { %v1091_v44 = vpop.f32.mrf.mxu0  ;;  %v1339_v45 = vpop.f32.mrf.mxu1 }
 0x146   :  { %v2566_v46 = vpack.c.bf16 %v1516_v42, %v1516_v42  ;;  %v1092_v47 = vadd.f32 %v3329_v57, %v1091_v44  ;;  %v2628_v48 = vpack.c.bf16 %v1578_v43, %v1578_v43  ;;  %v1340_v49 = vadd.f32 %v3329_v57, %v1339_v45 }
 0x147   :  { %v1093_v50 = vpop.f32.mrf.mxu0  ;;  %v1341_v51 = vpop.f32.mrf.mxu1 }
 0x148   :  { %2123 = vst.msk [vmem:[%s4042_s3 + $0x4c] sm:$0xf] %vm2103_vm2, %v2566_v46  ;;  %v1517_v52 = vmax.f32 %v1092_v47, 0.0  ;;  %2185 = vst.msk [vmem:[%s4042_s3 + $0x144] sm:$0xf] %vm2103_vm2, %v2628_v48  ;;  %v1579_v53 = vmax.f32 %v1340_v49, 0.0 }
 0x149   :  { %v1094_v54 = vpop.f32.mrf.mxu0  ;;  %v1342_v55 = vpop.f32.mrf.mxu1 }
 0x14a   :  { %v2567_v56 = vpack.c.bf16 %v1517_v52, %v1517_v52  ;;  %v1095_v58 = vadd.f32 %v3329_v57, %v1094_v54  ;;  %v2629_v59 = vpack.c.bf16 %v1579_v53, %v1579_v53  ;;  %v1343_v60 = vadd.f32 %v3329_v57, %v1342_v55 }
 0x14b   :  { %v1096_v61 = vpop.f32.mrf.mxu0  ;;  %v1344_v62 = vpop.f32.mrf.mxu1 }
 0x14c   :  { %2124 = vst.msk [vmem:[%s4042_s3 + $0x50] sm:$0xf] %vm2103_vm2, %v2567_v56  ;;  %v1518_v63 = vmax.f32 %v1095_v58, 0.0  ;;  %2186 = vst.msk [vmem:[%s4042_s3 + $0x148] sm:$0xf] %vm2103_vm2, %v2629_v59  ;;  %v1580_v0 = vmax.f32 %v1343_v60, 0.0 }
 0x14d   :  { %v1099_v1 = vpop.f32.mrf.mxu0  ;;  %v1347_v2 = vpop.f32.mrf.mxu1 }
 0x14e   :  { %v2568_v3 = vpack.c.bf16 %v1518_v63, %v1518_v63  ;;  %v1100_v4 = vadd.f32 %v3329_v57, %v1099_v1  ;;  %v2630_v5 = vpack.c.bf16 %v1580_v0, %v1580_v0  ;;  %v1348_v6 = vadd.f32 %v3329_v57, %v1347_v2 }
 0x14f   :  { %v1101_v7 = vpop.f32.mrf.mxu0  ;;  %v1349_v8 = vpop.f32.mrf.mxu1 }
 0x150   :  { %2125 = vst.msk [vmem:[%s4042_s3 + $0x54] sm:$0xf] %vm2103_vm2, %v2568_v3  ;;  %v1519_v9 = vmax.f32 %v1100_v4, 0.0  ;;  %2187 = vst.msk [vmem:[%s4042_s3 + $0x14c] sm:$0xf] %vm2103_vm2, %v2630_v5  ;;  %v1581_v10 = vmax.f32 %v1348_v6, 0.0 }
 0x151   :  { %v1102_v11 = vpop.f32.mrf.mxu0  ;;  %v1350_v12 = vpop.f32.mrf.mxu1 }
 0x152   :  { %v2569_v13 = vpack.c.bf16 %v1519_v9, %v1519_v9  ;;  %v1103_v14 = vadd.f32 %v3329_v57, %v1102_v11  ;;  %v2631_v15 = vpack.c.bf16 %v1581_v10, %v1581_v10  ;;  %v1351_v16 = vadd.f32 %v3329_v57, %v1350_v12 }
 0x153   :  { %v1104_v17 = vpop.f32.mrf.mxu0  ;;  %v1352_v18 = vpop.f32.mrf.mxu1 }
 0x154   :  { %2126 = vst.msk [vmem:[%s4042_s3 + $0x58] sm:$0xf] %vm2103_vm2, %v2569_v13  ;;  %v1520_v19 = vmax.f32 %v1103_v14, 0.0  ;;  %2188 = vst.msk [vmem:[%s4042_s3 + $0x150] sm:$0xf] %vm2103_vm2, %v2631_v15  ;;  %v1582_v20 = vmax.f32 %v1351_v16, 0.0 }
 0x155   :  { %v1107_v21 = vpop.f32.mrf.mxu0  ;;  %v1355_v22 = vpop.f32.mrf.mxu1 }
 0x156   :  { %v2570_v23 = vpack.c.bf16 %v1520_v19, %v1520_v19  ;;  %v1108_v24 = vadd.f32 %v3329_v57, %v1107_v21  ;;  %v2632_v25 = vpack.c.bf16 %v1582_v20, %v1582_v20  ;;  %v1356_v26 = vadd.f32 %v3329_v57, %v1355_v22 }
 0x157   :  { %v1109_v27 = vpop.f32.mrf.mxu0  ;;  %v1357_v28 = vpop.f32.mrf.mxu1 }
 0x158   :  { %2127 = vst.msk [vmem:[%s4042_s3 + $0x5c] sm:$0xf] %vm2103_vm2, %v2570_v23  ;;  %v1521_v29 = vmax.f32 %v1108_v24, 0.0  ;;  %2189 = vst.msk [vmem:[%s4042_s3 + $0x154] sm:$0xf] %vm2103_vm2, %v2632_v25  ;;  %v1583_v30 = vmax.f32 %v1356_v26, 0.0 }
 0x159   :  { %v1110_v31 = vpop.f32.mrf.mxu0  ;;  %v1358_v32 = vpop.f32.mrf.mxu1 }
 0x15a   :  { %v2571_v33 = vpack.c.bf16 %v1521_v29, %v1521_v29  ;;  %v1111_v34 = vadd.f32 %v3329_v57, %v1110_v31  ;;  %v2633_v35 = vpack.c.bf16 %v1583_v30, %v1583_v30  ;;  %v1359_v36 = vadd.f32 %v3329_v57, %v1358_v32 }
 0x15b   :  { %v1112_v37 = vpop.f32.mrf.mxu0  ;;  %v1360_v38 = vpop.f32.mrf.mxu1 }
 0x15c   :  { %2128 = vst.msk [vmem:[%s4042_s3 + $0x60] sm:$0xf] %vm2103_vm2, %v2571_v33  ;;  %v1522_v39 = vmax.f32 %v1111_v34, 0.0  ;;  %2190 = vst.msk [vmem:[%s4042_s3 + $0x158] sm:$0xf] %vm2103_vm2, %v2633_v35  ;;  %v1584_v40 = vmax.f32 %v1359_v36, 0.0 }
 0x15d   :  { %v1115_v41 = vpop.f32.mrf.mxu0  ;;  %v1363_v42 = vpop.f32.mrf.mxu1 }
 0x15e   :  { %v2572_v43 = vpack.c.bf16 %v1522_v39, %v1522_v39  ;;  %v1116_v44 = vadd.f32 %v3329_v57, %v1115_v41  ;;  %v2634_v45 = vpack.c.bf16 %v1584_v40, %v1584_v40  ;;  %v1364_v46 = vadd.f32 %v3329_v57, %v1363_v42 }
 0x15f   :  { %v1117_v47 = vpop.f32.mrf.mxu0  ;;  %v1365_v48 = vpop.f32.mrf.mxu1 }
 0x160   :  { %2129 = vst.msk [vmem:[%s4042_s3 + $0x64] sm:$0xf] %vm2103_vm2, %v2572_v43  ;;  %v1523_v49 = vmax.f32 %v1116_v44, 0.0  ;;  %2191 = vst.msk [vmem:[%s4042_s3 + $0x15c] sm:$0xf] %vm2103_vm2, %v2634_v45  ;;  %v1585_v50 = vmax.f32 %v1364_v46, 0.0 }
 0x161   :  { %v1118_v51 = vpop.f32.mrf.mxu0  ;;  %v1366_v52 = vpop.f32.mrf.mxu1 }
 0x162   :  { %v2573_v53 = vpack.c.bf16 %v1523_v49, %v1523_v49  ;;  %v1119_v54 = vadd.f32 %v3329_v57, %v1118_v51  ;;  %v2635_v55 = vpack.c.bf16 %v1585_v50, %v1585_v50  ;;  %v1367_v56 = vadd.f32 %v3329_v57, %v1366_v52 }
 0x163   :  { %v1120_v58 = vpop.f32.mrf.mxu0  ;;  %v1368_v59 = vpop.f32.mrf.mxu1 }
 0x164   :  { %2130 = vst.msk [vmem:[%s4042_s3 + $0x68] sm:$0xf] %vm2103_vm2, %v2573_v53  ;;  %v1524_v60 = vmax.f32 %v1119_v54, 0.0  ;;  %2192 = vst.msk [vmem:[%s4042_s3 + $0x160] sm:$0xf] %vm2103_vm2, %v2635_v55  ;;  %v1586_v61 = vmax.f32 %v1367_v56, 0.0 }
 0x165   :  { %v1123_v62 = vpop.f32.mrf.mxu0  ;;  %v1371_v63 = vpop.f32.mrf.mxu1 }
 0x166   :  { %v2574_v0 = vpack.c.bf16 %v1524_v60, %v1524_v60  ;;  %v1124_v1 = vadd.f32 %v3329_v57, %v1123_v62  ;;  %v2636_v2 = vpack.c.bf16 %v1586_v61, %v1586_v61  ;;  %v1372_v3 = vadd.f32 %v3329_v57, %v1371_v63 }
 0x167   :  { %v1125_v4 = vpop.f32.mrf.mxu0  ;;  %v1373_v5 = vpop.f32.mrf.mxu1 }
 0x168   :  { %2131 = vst.msk [vmem:[%s4042_s3 + $0x6c] sm:$0xf] %vm2103_vm2, %v2574_v0  ;;  %v1525_v6 = vmax.f32 %v1124_v1, 0.0  ;;  %2193 = vst.msk [vmem:[%s4042_s3 + $0x164] sm:$0xf] %vm2103_vm2, %v2636_v2  ;;  %v1587_v7 = vmax.f32 %v1372_v3, 0.0 }
 0x169   :  { %v1126_v8 = vpop.f32.mrf.mxu0  ;;  %v1374_v9 = vpop.f32.mrf.mxu1 }
 0x16a   :  { %v2575_v10 = vpack.c.bf16 %v1525_v6, %v1525_v6  ;;  %v1127_v11 = vadd.f32 %v3329_v57, %v1126_v8  ;;  %v2637_v12 = vpack.c.bf16 %v1587_v7, %v1587_v7  ;;  %v1375_v13 = vadd.f32 %v3329_v57, %v1374_v9 }
 0x16b   :  { %v1128_v14 = vpop.f32.mrf.mxu0  ;;  %v1376_v15 = vpop.f32.mrf.mxu1 }
 0x16c   :  { %2132 = vst.msk [vmem:[%s4042_s3 + $0x70] sm:$0xf] %vm2103_vm2, %v2575_v10  ;;  %v1526_v16 = vmax.f32 %v1127_v11, 0.0  ;;  %2194 = vst.msk [vmem:[%s4042_s3 + $0x168] sm:$0xf] %vm2103_vm2, %v2637_v12  ;;  %v1588_v17 = vmax.f32 %v1375_v13, 0.0 }
 0x16d   :  { %v1131_v18 = vpop.f32.mrf.mxu0  ;;  %v1379_v19 = vpop.f32.mrf.mxu1 }
 0x16e   :  { %v2576_v20 = vpack.c.bf16 %v1526_v16, %v1526_v16  ;;  %v1132_v21 = vadd.f32 %v3329_v57, %v1131_v18  ;;  %v2638_v22 = vpack.c.bf16 %v1588_v17, %v1588_v17  ;;  %v1380_v23 = vadd.f32 %v3329_v57, %v1379_v19 }
 0x16f   :  { %v1133_v24 = vpop.f32.mrf.mxu0  ;;  %v1381_v25 = vpop.f32.mrf.mxu1 }
 0x170   :  { %2133 = vst.msk [vmem:[%s4042_s3 + $0x74] sm:$0xf] %vm2103_vm2, %v2576_v20  ;;  %v1527_v26 = vmax.f32 %v1132_v21, 0.0  ;;  %2195 = vst.msk [vmem:[%s4042_s3 + $0x16c] sm:$0xf] %vm2103_vm2, %v2638_v22  ;;  %v1589_v27 = vmax.f32 %v1380_v23, 0.0 }
 0x171   :  { %v1134_v28 = vpop.f32.mrf.mxu0  ;;  %v1382_v29 = vpop.f32.mrf.mxu1 }
 0x172   :  { %v2577_v30 = vpack.c.bf16 %v1527_v26, %v1527_v26  ;;  %v1135_v31 = vadd.f32 %v3329_v57, %v1134_v28  ;;  %v2639_v32 = vpack.c.bf16 %v1589_v27, %v1589_v27  ;;  %v1383_v33 = vadd.f32 %v3329_v57, %v1382_v29 }
 0x173   :  { %v1136_v34 = vpop.f32.mrf.mxu0  ;;  %v1384_v35 = vpop.f32.mrf.mxu1 }
 0x174   :  { %2134 = vst.msk [vmem:[%s4042_s3 + $0x78] sm:$0xf] %vm2103_vm2, %v2577_v30  ;;  %v1528_v36 = vmax.f32 %v1135_v31, 0.0  ;;  %2196 = vst.msk [vmem:[%s4042_s3 + $0x170] sm:$0xf] %vm2103_vm2, %v2639_v32  ;;  %v1590_v37 = vmax.f32 %v1383_v33, 0.0 }
 0x175   :  { %v1139_v38 = vpop.f32.mrf.mxu0  ;;  %v1387_v39 = vpop.f32.mrf.mxu1  ;;  %v3795_v30 = vld [vmem:[%s4041_s2] ss:$0 sm:$0xff] }
 0x176   :  { %v2578_v40 = vpack.c.bf16 %v1528_v36, %v1528_v36  ;;  %v1140_v41 = vadd.f32 %v3329_v57, %v1139_v38  ;;  %v2640_v42 = vpack.c.bf16 %v1590_v37, %v1590_v37  ;;  %v1388_v43 = vadd.f32 %v3329_v57, %v1387_v39 }
 0x177   :  { %v1141_v44 = vpop.f32.mrf.mxu0  ;;  %v1389_v45 = vpop.f32.mrf.mxu1 }
 0x178   :  { %2135 = vst.msk [vmem:[%s4042_s3 + $0x7c] sm:$0xf] %vm2103_vm2, %v2578_v40  ;;  %v1529_v46 = vmax.f32 %v1140_v41, 0.0  ;;  %2197 = vst.msk [vmem:[%s4042_s3 + $0x174] sm:$0xf] %vm2103_vm2, %v2640_v42  ;;  %v1591_v47 = vmax.f32 %v1388_v43, 0.0 }
 0x179   :  { %v1142_v48 = vpop.f32.mrf.mxu0  ;;  %v1390_v49 = vpop.f32.mrf.mxu1 }
 0x17a   :  { %v2579_v50 = vpack.c.bf16 %v1529_v46, %v1529_v46  ;;  %v1143_v51 = vadd.f32 %v3329_v57, %v1142_v48  ;;  %v2641_v52 = vpack.c.bf16 %v1591_v47, %v1591_v47  ;;  %v1391_v53 = vadd.f32 %v3329_v57, %v1390_v49 }
 0x17b   :  { %v1144_v54 = vpop.f32.mrf.mxu0  ;;  %v1392_v55 = vpop.f32.mrf.mxu1 }
 0x17c   :  { %2136 = vst.msk [vmem:[%s4042_s3 + $0x80] sm:$0xf] %vm2103_vm2, %v2579_v50  ;;  %v1530_v56 = vmax.f32 %v1143_v51, 0.0  ;;  %2198 = vst.msk [vmem:[%s4042_s3 + $0x178] sm:$0xf] %vm2103_vm2, %v2641_v52  ;;  %v1592_v58 = vmax.f32 %v1391_v53, 0.0 }
 0x17d   :  { %v1147_v59 = vpop.f32.mrf.mxu0  ;;  %v1395_v60 = vpop.f32.mrf.mxu1 }
 0x17e   :  { %v2580_v61 = vpack.c.bf16 %v1530_v56, %v1530_v56  ;;  %v1148_v62 = vadd.f32 %v3329_v57, %v1147_v59  ;;  %v2642_v63 = vpack.c.bf16 %v1592_v58, %v1592_v58  ;;  %v1396_v0 = vadd.f32 %v3329_v57, %v1395_v60 }
 0x17f   :  { %v1149_v1 = vpop.f32.mrf.mxu0  ;;  %v1397_v2 = vpop.f32.mrf.mxu1 }
 0x180   :  { %2137 = vst.msk [vmem:[%s4042_s3 + $0x84] sm:$0xf] %vm2103_vm2, %v2580_v61  ;;  %v1531_v3 = vmax.f32 %v1148_v62, 0.0  ;;  %2199 = vst.msk [vmem:[%s4042_s3 + $0x17c] sm:$0xf] %vm2103_vm2, %v2642_v63  ;;  %v1593_v4 = vmax.f32 %v1396_v0, 0.0 }
 0x181   :  { %v1150_v5 = vpop.f32.mrf.mxu0  ;;  %v1398_v6 = vpop.f32.mrf.mxu1 }
 0x182   :  { %v2581_v7 = vpack.c.bf16 %v1531_v3, %v1531_v3  ;;  %v1151_v8 = vadd.f32 %v3329_v57, %v1150_v5  ;;  %v2643_v9 = vpack.c.bf16 %v1593_v4, %v1593_v4  ;;  %v1399_v10 = vadd.f32 %v3329_v57, %v1398_v6 }
 0x183   :  { %v1152_v11 = vpop.f32.mrf.mxu0  ;;  %v1400_v12 = vpop.f32.mrf.mxu1 }
 0x184   :  { %2138 = vst.msk [vmem:[%s4042_s3 + $0x88] sm:$0xf] %vm2103_vm2, %v2581_v7  ;;  %v1532_v13 = vmax.f32 %v1151_v8, 0.0  ;;  %2200 = vst.msk [vmem:[%s4042_s3 + $0x180] sm:$0xf] %vm2103_vm2, %v2643_v9  ;;  %v1594_v14 = vmax.f32 %v1399_v10, 0.0 }
 0x185   :  { %v1155_v15 = vpop.f32.mrf.mxu0  ;;  %v1403_v16 = vpop.f32.mrf.mxu1 }
 0x186   :  { %v2582_v17 = vpack.c.bf16 %v1532_v13, %v1532_v13  ;;  %v1156_v18 = vadd.f32 %v3329_v57, %v1155_v15  ;;  %v2644_v19 = vpack.c.bf16 %v1594_v14, %v1594_v14  ;;  %v1404_v20 = vadd.f32 %v3329_v57, %v1403_v16 }
 0x187   :  { %v1157_v21 = vpop.f32.mrf.mxu0  ;;  %v1405_v22 = vpop.f32.mrf.mxu1 }
 0x188   :  { %2139 = vst.msk [vmem:[%s4042_s3 + $0x8c] sm:$0xf] %vm2103_vm2, %v2582_v17  ;;  %v1533_v23 = vmax.f32 %v1156_v18, 0.0  ;;  %2201 = vst.msk [vmem:[%s4042_s3 + $0x184] sm:$0xf] %vm2103_vm2, %v2644_v19  ;;  %v1595_v24 = vmax.f32 %v1404_v20, 0.0 }
 0x189   :  { %v1158_v25 = vpop.f32.mrf.mxu0  ;;  %v1406_v26 = vpop.f32.mrf.mxu1 }
 0x18a   :  { %v2583_v27 = vpack.c.bf16 %v1533_v23, %v1533_v23  ;;  %v1159_v28 = vadd.f32 %v3329_v57, %v1158_v25  ;;  %v2645_v29 = vpack.c.bf16 %v1595_v24, %v1595_v24  ;;  %v1407_v31 = vadd.f32 %v3795_v30, %v1406_v26 }
 0x18b   :  { %v1160_v32 = vpop.f32.mrf.mxu0  ;;  %v1408_v33 = vpop.f32.mrf.mxu1 }
 0x18c   :  { %2140 = vst.msk [vmem:[%s4042_s3 + $0x90] sm:$0xf] %vm2103_vm2, %v2583_v27  ;;  %v1534_v34 = vmax.f32 %v1159_v28, 0.0  ;;  %2202 = vst.msk [vmem:[%s4042_s3 + $0x188] sm:$0xf] %vm2103_vm2, %v2645_v29  ;;  %v1596_v57 = vmax.f32 %v1407_v31, 0.0 }
 0x18d   :  { %v1163_v35 = vpop.f32.mrf.mxu0  ;;  %v1411_v36 = vpop.f32.mrf.mxu1 }
 0x18e   :  { %v2584_v37 = vpack.c.bf16 %v1534_v34, %v1534_v34  ;;  %v1164_v38 = vadd.f32 %v3795_v30, %v1163_v35  ;;  %v2646_v39 = vpack.c.bf16 %v1596_v57, %v1596_v57  ;;  %v1412_v40 = vadd.f32 %v3795_v30, %v1411_v36 }
 0x18f   :  { %v1165_v41 = vpop.f32.mrf.mxu0  ;;  %v1413_v42 = vpop.f32.mrf.mxu1 }
 0x190   :  { %2141 = vst.msk [vmem:[%s4042_s3 + $0x94] sm:$0xf] %vm2103_vm2, %v2584_v37  ;;  %v1535_v43 = vmax.f32 %v1164_v38, 0.0  ;;  %2203 = vst.msk [vmem:[%s4042_s3 + $0x18c] sm:$0xf] %vm2103_vm2, %v2646_v39  ;;  %v1597_v44 = vmax.f32 %v1412_v40, 0.0 }
 0x191   :  { %v1166_v45 = vpop.f32.mrf.mxu0  ;;  %v1414_v46 = vpop.f32.mrf.mxu1 }
 0x192   :  { %v2585_v47 = vpack.c.bf16 %v1535_v43, %v1535_v43  ;;  %v1167_v48 = vadd.f32 %v3795_v30, %v1166_v45  ;;  %v2647_v49 = vpack.c.bf16 %v1597_v44, %v1597_v44  ;;  %v1415_v50 = vadd.f32 %v3795_v30, %v1414_v46 }
 0x193   :  { %v1168_v51 = vpop.f32.mrf.mxu0  ;;  %v1416_v52 = vpop.f32.mrf.mxu1 }
 0x194   :  { %2142 = vst.msk [vmem:[%s4042_s3 + $0x98] sm:$0xf] %vm2103_vm2, %v2585_v47  ;;  %v1536_v53 = vmax.f32 %v1167_v48, 0.0  ;;  %2204 = vst.msk [vmem:[%s4042_s3 + $0x190] sm:$0xf] %vm2103_vm2, %v2647_v49  ;;  %v1598_v54 = vmax.f32 %v1415_v50, 0.0 }
 0x195   :  { %v1171_v55 = vpop.f32.mrf.mxu0  ;;  %v1419_v56 = vpop.f32.mrf.mxu1 }
 0x196   :  { %v2586_v58 = vpack.c.bf16 %v1536_v53, %v1536_v53  ;;  %v1172_v59 = vadd.f32 %v3795_v30, %v1171_v55  ;;  %v2648_v60 = vpack.c.bf16 %v1598_v54, %v1598_v54  ;;  %v1420_v61 = vadd.f32 %v3795_v30, %v1419_v56 }
 0x197   :  { %v1173_v62 = vpop.f32.mrf.mxu0  ;;  %v1421_v63 = vpop.f32.mrf.mxu1 }
 0x198   :  { %2143 = vst.msk [vmem:[%s4042_s3 + $0x9c] sm:$0xf] %vm2103_vm2, %v2586_v58  ;;  %v1537_v0 = vmax.f32 %v1172_v59, 0.0  ;;  %2205 = vst.msk [vmem:[%s4042_s3 + $0x194] sm:$0xf] %vm2103_vm2, %v2648_v60  ;;  %v1599_v1 = vmax.f32 %v1420_v61, 0.0 }
 0x199   :  { %v1174_v2 = vpop.f32.mrf.mxu0  ;;  %v1422_v3 = vpop.f32.mrf.mxu1 }
 0x19a   :  { %v2587_v4 = vpack.c.bf16 %v1537_v0, %v1537_v0  ;;  %v1175_v5 = vadd.f32 %v3795_v30, %v1174_v2  ;;  %v2649_v6 = vpack.c.bf16 %v1599_v1, %v1599_v1  ;;  %v1423_v7 = vadd.f32 %v3795_v30, %v1422_v3 }
 0x19b   :  { %v1176_v8 = vpop.f32.mrf.mxu0  ;;  %v1424_v9 = vpop.f32.mrf.mxu1 }
 0x19c   :  { %2144 = vst.msk [vmem:[%s4042_s3 + $0xa0] sm:$0xf] %vm2103_vm2, %v2587_v4  ;;  %v1538_v10 = vmax.f32 %v1175_v5, 0.0  ;;  %2206 = vst.msk [vmem:[%s4042_s3 + $0x198] sm:$0xf] %vm2103_vm2, %v2649_v6  ;;  %v1600_v11 = vmax.f32 %v1423_v7, 0.0 }
 0x19d   :  { %v1179_v12 = vpop.f32.mrf.mxu0  ;;  %v1427_v13 = vpop.f32.mrf.mxu1 }
 0x19e   :  { %v2588_v14 = vpack.c.bf16 %v1538_v10, %v1538_v10  ;;  %v1180_v15 = vadd.f32 %v3795_v30, %v1179_v12  ;;  %v2650_v16 = vpack.c.bf16 %v1600_v11, %v1600_v11  ;;  %v1428_v17 = vadd.f32 %v3795_v30, %v1427_v13 }
 0x19f   :  { %v1181_v18 = vpop.f32.mrf.mxu0  ;;  %v1429_v19 = vpop.f32.mrf.mxu1 }
 0x1a0   :  { %2145 = vst.msk [vmem:[%s4042_s3 + $0xa4] sm:$0xf] %vm2103_vm2, %v2588_v14  ;;  %v1539_v20 = vmax.f32 %v1180_v15, 0.0  ;;  %2207 = vst.msk [vmem:[%s4042_s3 + $0x19c] sm:$0xf] %vm2103_vm2, %v2650_v16  ;;  %v1601_v21 = vmax.f32 %v1428_v17, 0.0 }
 0x1a1   :  { %v1182_v22 = vpop.f32.mrf.mxu0  ;;  %v1430_v23 = vpop.f32.mrf.mxu1 }
 0x1a2   :  { %v2589_v24 = vpack.c.bf16 %v1539_v20, %v1539_v20  ;;  %v1183_v25 = vadd.f32 %v3795_v30, %v1182_v22  ;;  %v2651_v26 = vpack.c.bf16 %v1601_v21, %v1601_v21  ;;  %v1431_v27 = vadd.f32 %v3795_v30, %v1430_v23 }
 0x1a3   :  { %v1184_v28 = vpop.f32.mrf.mxu0  ;;  %v1432_v29 = vpop.f32.mrf.mxu1 }
 0x1a4   :  { %2146 = vst.msk [vmem:[%s4042_s3 + $0xa8] sm:$0xf] %vm2103_vm2, %v2589_v24  ;;  %v1540_v31 = vmax.f32 %v1183_v25, 0.0  ;;  %2208 = vst.msk [vmem:[%s4042_s3 + $0x1a0] sm:$0xf] %vm2103_vm2, %v2651_v26  ;;  %v1602_v32 = vmax.f32 %v1431_v27, 0.0 }
 0x1a5   :  { %v1187_v33 = vpop.f32.mrf.mxu0  ;;  %v1435_v34 = vpop.f32.mrf.mxu1 }
 0x1a6   :  { %v2590_v57 = vpack.c.bf16 %v1540_v31, %v1540_v31  ;;  %v1188_v35 = vadd.f32 %v3795_v30, %v1187_v33  ;;  %v2652_v36 = vpack.c.bf16 %v1602_v32, %v1602_v32  ;;  %v1436_v37 = vadd.f32 %v3795_v30, %v1435_v34 }
 0x1a7   :  { %v1189_v38 = vpop.f32.mrf.mxu0  ;;  %v1437_v39 = vpop.f32.mrf.mxu1 }
 0x1a8   :  { %2147 = vst.msk [vmem:[%s4042_s3 + $0xac] sm:$0xf] %vm2103_vm2, %v2590_v57  ;;  %v1541_v40 = vmax.f32 %v1188_v35, 0.0  ;;  %2209 = vst.msk [vmem:[%s4042_s3 + $0x1a4] sm:$0xf] %vm2103_vm2, %v2652_v36  ;;  %v1603_v41 = vmax.f32 %v1436_v37, 0.0 }
 0x1a9   :  { %v1190_v42 = vpop.f32.mrf.mxu0  ;;  %v1438_v43 = vpop.f32.mrf.mxu1 }
 0x1aa   :  { %v2591_v44 = vpack.c.bf16 %v1541_v40, %v1541_v40  ;;  %v1191_v45 = vadd.f32 %v3795_v30, %v1190_v42  ;;  %v2653_v46 = vpack.c.bf16 %v1603_v41, %v1603_v41  ;;  %v1439_v47 = vadd.f32 %v3795_v30, %v1438_v43 }
 0x1ab   :  { %v1192_v48 = vpop.f32.mrf.mxu0  ;;  %v1440_v49 = vpop.f32.mrf.mxu1 }
 0x1ac   :  { %2148 = vst.msk [vmem:[%s4042_s3 + $0xb0] sm:$0xf] %vm2103_vm2, %v2591_v44  ;;  %v1542_v50 = vmax.f32 %v1191_v45, 0.0  ;;  %2210 = vst.msk [vmem:[%s4042_s3 + $0x1a8] sm:$0xf] %vm2103_vm2, %v2653_v46  ;;  %v1604_v51 = vmax.f32 %v1439_v47, 0.0 }
 0x1ad   :  { %v1195_v52 = vpop.f32.mrf.mxu0  ;;  %v1443_v53 = vpop.f32.mrf.mxu1 }
 0x1ae   :  { %v2592_v54 = vpack.c.bf16 %v1542_v50, %v1542_v50  ;;  %v1196_v55 = vadd.f32 %v3795_v30, %v1195_v52  ;;  %v2654_v56 = vpack.c.bf16 %v1604_v51, %v1604_v51  ;;  %v1444_v58 = vadd.f32 %v3795_v30, %v1443_v53 }
 0x1af   :  { %v1197_v59 = vpop.f32.mrf.mxu0  ;;  %v1445_v60 = vpop.f32.mrf.mxu1 }
 0x1b0   :  { %2149 = vst.msk [vmem:[%s4042_s3 + $0xb4] sm:$0xf] %vm2103_vm2, %v2592_v54  ;;  %v1543_v61 = vmax.f32 %v1196_v55, 0.0  ;;  %2211 = vst.msk [vmem:[%s4042_s3 + $0x1ac] sm:$0xf] %vm2103_vm2, %v2654_v56  ;;  %v1605_v62 = vmax.f32 %v1444_v58, 0.0 }
 0x1b1   :  { %v1198_v63 = vpop.f32.mrf.mxu0  ;;  %v1446_v0 = vpop.f32.mrf.mxu1 }
 0x1b2   :  { %v2593_v1 = vpack.c.bf16 %v1543_v61, %v1543_v61  ;;  %v1199_v2 = vadd.f32 %v3795_v30, %v1198_v63  ;;  %v2655_v3 = vpack.c.bf16 %v1605_v62, %v1605_v62  ;;  %v1447_v4 = vadd.f32 %v3795_v30, %v1446_v0 }
 0x1b3   :  { %v1200_v5 = vpop.f32.mrf.mxu0  ;;  %v1448_v6 = vpop.f32.mrf.mxu1 }
 0x1b4   :  { %2150 = vst.msk [vmem:[%s4042_s3 + $0xb8] sm:$0xf] %vm2103_vm2, %v2593_v1  ;;  %v1544_v7 = vmax.f32 %v1199_v2, 0.0  ;;  %2212 = vst.msk [vmem:[%s4042_s3 + $0x1b0] sm:$0xf] %vm2103_vm2, %v2655_v3  ;;  %v1606_v8 = vmax.f32 %v1447_v4, 0.0 }
 0x1b5   :  { %v1203_v9 = vpop.f32.mrf.mxu0  ;;  %v1451_v10 = vpop.f32.mrf.mxu1 }
 0x1b6   :  { %v2594_v11 = vpack.c.bf16 %v1544_v7, %v1544_v7  ;;  %v1204_v12 = vadd.f32 %v3795_v30, %v1203_v9  ;;  %v2656_v13 = vpack.c.bf16 %v1606_v8, %v1606_v8  ;;  %v1452_v14 = vadd.f32 %v3795_v30, %v1451_v10 }
 0x1b7   :  { %v1205_v15 = vpop.f32.mrf.mxu0  ;;  %v1453_v16 = vpop.f32.mrf.mxu1 }
 0x1b8   :  { %2151 = vst.msk [vmem:[%s4042_s3 + $0xbc] sm:$0xf] %vm2103_vm2, %v2594_v11  ;;  %v1545_v17 = vmax.f32 %v1204_v12, 0.0  ;;  %2213 = vst.msk [vmem:[%s4042_s3 + $0x1b4] sm:$0xf] %vm2103_vm2, %v2656_v13  ;;  %v1607_v18 = vmax.f32 %v1452_v14, 0.0 }
 0x1b9   :  { %v1206_v19 = vpop.f32.mrf.mxu0  ;;  %v1454_v20 = vpop.f32.mrf.mxu1 }
 0x1ba   :  { %v2595_v21 = vpack.c.bf16 %v1545_v17, %v1545_v17  ;;  %v1207_v22 = vadd.f32 %v3795_v30, %v1206_v19  ;;  %v2657_v23 = vpack.c.bf16 %v1607_v18, %v1607_v18  ;;  %v1455_v24 = vadd.f32 %v3795_v30, %v1454_v20 }
 0x1bb   :  { %v1208_v25 = vpop.f32.mrf.mxu0  ;;  %v1456_v26 = vpop.f32.mrf.mxu1 }
 0x1bc   :  { %2152 = vst.msk [vmem:[%s4042_s3 + $0xc0] sm:$0xf] %vm2103_vm2, %v2595_v21  ;;  %v1546_v27 = vmax.f32 %v1207_v22, 0.0  ;;  %2214 = vst.msk [vmem:[%s4042_s3 + $0x1b8] sm:$0xf] %vm2103_vm2, %v2657_v23  ;;  %v1608_v28 = vmax.f32 %v1455_v24, 0.0 }
 0x1bd   :  { %v1211_v29 = vpop.f32.mrf.mxu0  ;;  %v1459_v31 = vpop.f32.mrf.mxu1 }
 0x1be   :  { %v2596_v32 = vpack.c.bf16 %v1546_v27, %v1546_v27  ;;  %v1212_v33 = vadd.f32 %v3795_v30, %v1211_v29  ;;  %v2658_v34 = vpack.c.bf16 %v1608_v28, %v1608_v28  ;;  %v1460_v57 = vadd.f32 %v3795_v30, %v1459_v31 }
 0x1bf   :  { %v1213_v35 = vpop.f32.mrf.mxu0  ;;  %v1461_v36 = vpop.f32.mrf.mxu1 }
 0x1c0   :  { %2153 = vst.msk [vmem:[%s4042_s3 + $0xc4] sm:$0xf] %vm2103_vm2, %v2596_v32  ;;  %v1547_v37 = vmax.f32 %v1212_v33, 0.0  ;;  %2215 = vst.msk [vmem:[%s4042_s3 + $0x1bc] sm:$0xf] %vm2103_vm2, %v2658_v34  ;;  %v1609_v38 = vmax.f32 %v1460_v57, 0.0 }
 0x1c1   :  { %v1214_v39 = vpop.f32.mrf.mxu0  ;;  %v1462_v40 = vpop.f32.mrf.mxu1 }
 0x1c2   :  { %v2597_v41 = vpack.c.bf16 %v1547_v37, %v1547_v37  ;;  %v1215_v42 = vadd.f32 %v3795_v30, %v1214_v39  ;;  %v2659_v43 = vpack.c.bf16 %v1609_v38, %v1609_v38  ;;  %v1463_v44 = vadd.f32 %v3795_v30, %v1462_v40 }
 0x1c3   :  { %v1216_v45 = vpop.f32.mrf.mxu0  ;;  %v1464_v46 = vpop.f32.mrf.mxu1 }
 0x1c4   :  { %2154 = vst.msk [vmem:[%s4042_s3 + $0xc8] sm:$0xf] %vm2103_vm2, %v2597_v41  ;;  %v1548_v47 = vmax.f32 %v1215_v42, 0.0  ;;  %2216 = vst.msk [vmem:[%s4042_s3 + $0x1c0] sm:$0xf] %vm2103_vm2, %v2659_v43  ;;  %v1610_v48 = vmax.f32 %v1463_v44, 0.0 }
 0x1c5   :  { %v1219_v49 = vpop.f32.mrf.mxu0  ;;  %v1467_v50 = vpop.f32.mrf.mxu1 }
 0x1c6   :  { %v2598_v51 = vpack.c.bf16 %v1548_v47, %v1548_v47  ;;  %v1220_v52 = vadd.f32 %v3795_v30, %v1219_v49  ;;  %v2660_v53 = vpack.c.bf16 %v1610_v48, %v1610_v48  ;;  %v1468_v54 = vadd.f32 %v3795_v30, %v1467_v50 }
 0x1c7   :  { %v1221_v55 = vpop.f32.mrf.mxu0  ;;  %v1469_v56 = vpop.f32.mrf.mxu1 }
 0x1c8   :  { %2155 = vst.msk [vmem:[%s4042_s3 + $0xcc] sm:$0xf] %vm2103_vm2, %v2598_v51  ;;  %v1549_v58 = vmax.f32 %v1220_v52, 0.0  ;;  %2217 = vst.msk [vmem:[%s4042_s3 + $0x1c4] sm:$0xf] %vm2103_vm2, %v2660_v53  ;;  %v1611_v59 = vmax.f32 %v1468_v54, 0.0 }
 0x1c9   :  { %v1222_v60 = vpop.f32.mrf.mxu0  ;;  %v1470_v61 = vpop.f32.mrf.mxu1 }
 0x1ca   :  { %v2599_v62 = vpack.c.bf16 %v1549_v58, %v1549_v58  ;;  %v1223_v63 = vadd.f32 %v3795_v30, %v1222_v60  ;;  %v2661_v0 = vpack.c.bf16 %v1611_v59, %v1611_v59  ;;  %v1471_v1 = vadd.f32 %v3795_v30, %v1470_v61 }
 0x1cb   :  { %v1224_v2 = vpop.f32.mrf.mxu0  ;;  %v1472_v3 = vpop.f32.mrf.mxu1 }
 0x1cc   :  { %2156 = vst.msk [vmem:[%s4042_s3 + $0xd0] sm:$0xf] %vm2103_vm2, %v2599_v62  ;;  %v1550_v4 = vmax.f32 %v1223_v63, 0.0  ;;  %2218 = vst.msk [vmem:[%s4042_s3 + $0x1c8] sm:$0xf] %vm2103_vm2, %v2661_v0  ;;  %v1612_v5 = vmax.f32 %v1471_v1, 0.0 }
 0x1cd   :  { %v1227_v6 = vpop.f32.mrf.mxu0  ;;  %v1475_v7 = vpop.f32.mrf.mxu1 }
 0x1ce   :  { %v2600_v8 = vpack.c.bf16 %v1550_v4, %v1550_v4  ;;  %v1228_v9 = vadd.f32 %v3795_v30, %v1227_v6  ;;  %v2662_v10 = vpack.c.bf16 %v1612_v5, %v1612_v5  ;;  %v1476_v11 = vadd.f32 %v3795_v30, %v1475_v7 }
 0x1cf   :  { %v1229_v12 = vpop.f32.mrf.mxu0  ;;  %v1477_v13 = vpop.f32.mrf.mxu1 }
 0x1d0   :  { %2157 = vst.msk [vmem:[%s4042_s3 + $0xd4] sm:$0xf] %vm2103_vm2, %v2600_v8  ;;  %v1551_v14 = vmax.f32 %v1228_v9, 0.0  ;;  %2219 = vst.msk [vmem:[%s4042_s3 + $0x1cc] sm:$0xf] %vm2103_vm2, %v2662_v10  ;;  %v1613_v15 = vmax.f32 %v1476_v11, 0.0 }
 0x1d1   :  { %v1230_v16 = vpop.f32.mrf.mxu0  ;;  %v1478_v17 = vpop.f32.mrf.mxu1 }
 0x1d2   :  { %v2601_v18 = vpack.c.bf16 %v1551_v14, %v1551_v14  ;;  %v1231_v19 = vadd.f32 %v3795_v30, %v1230_v16  ;;  %v2663_v20 = vpack.c.bf16 %v1613_v15, %v1613_v15  ;;  %v1479_v21 = vadd.f32 %v3795_v30, %v1478_v17 }
 0x1d3   :  { %v1232_v22 = vpop.f32.mrf.mxu0  ;;  %v1480_v23 = vpop.f32.mrf.mxu1 }
 0x1d4   :  { %2158 = vst.msk [vmem:[%s4042_s3 + $0xd8] sm:$0xf] %vm2103_vm2, %v2601_v18  ;;  %v1552_v24 = vmax.f32 %v1231_v19, 0.0  ;;  %2220 = vst.msk [vmem:[%s4042_s3 + $0x1d0] sm:$0xf] %vm2103_vm2, %v2663_v20  ;;  %v1614_v25 = vmax.f32 %v1479_v21, 0.0 }
 0x1d5   :  { %v1235_v26 = vpop.f32.mrf.mxu0  ;;  %v1483_v27 = vpop.f32.mrf.mxu1 }
 0x1d6   :  { %v2602_v28 = vpack.c.bf16 %v1552_v24, %v1552_v24  ;;  %v1236_v29 = vadd.f32 %v3795_v30, %v1235_v26  ;;  %v2664_v31 = vpack.c.bf16 %v1614_v25, %v1614_v25  ;;  %v1484_v32 = vadd.f32 %v3795_v30, %v1483_v27 }
 0x1d7   :  { %v1237_v33 = vpop.f32.mrf.mxu0  ;;  %v1485_v34 = vpop.f32.mrf.mxu1 }
 0x1d8   :  { %2159 = vst.msk [vmem:[%s4042_s3 + $0xdc] sm:$0xf] %vm2103_vm2, %v2602_v28  ;;  %v1553_v57 = vmax.f32 %v1236_v29, 0.0  ;;  %2221 = vst.msk [vmem:[%s4042_s3 + $0x1d4] sm:$0xf] %vm2103_vm2, %v2664_v31  ;;  %v1615_v35 = vmax.f32 %v1484_v32, 0.0 }
 0x1d9   :  { %v1238_v36 = vpop.f32.mrf.mxu0  ;;  %v1486_v37 = vpop.f32.mrf.mxu1 }
 0x1da   :  { %v2603_v38 = vpack.c.bf16 %v1553_v57, %v1553_v57  ;;  %v1239_v39 = vadd.f32 %v3795_v30, %v1238_v36  ;;  %v2665_v40 = vpack.c.bf16 %v1615_v35, %v1615_v35  ;;  %v1487_v41 = vadd.f32 %v3795_v30, %v1486_v37 }
 0x1db   :  { %v1240_v42 = vpop.f32.mrf.mxu0  ;;  %v1488_v43 = vpop.f32.mrf.mxu1 }
 0x1dc   :  { %2160 = vst.msk [vmem:[%s4042_s3 + $0xe0] sm:$0xf] %vm2103_vm2, %v2603_v38  ;;  %v1554_v44 = vmax.f32 %v1239_v39, 0.0  ;;  %2222 = vst.msk [vmem:[%s4042_s3 + $0x1d8] sm:$0xf] %vm2103_vm2, %v2665_v40  ;;  %v1616_v45 = vmax.f32 %v1487_v41, 0.0 }
 0x1dd   :  { %v1243_v46 = vpop.f32.mrf.mxu0  ;;  %v1491_v47 = vpop.f32.mrf.mxu1 }
 0x1de   :  { %v2604_v48 = vpack.c.bf16 %v1554_v44, %v1554_v44  ;;  %v1244_v49 = vadd.f32 %v3795_v30, %v1243_v46  ;;  %v2666_v50 = vpack.c.bf16 %v1616_v45, %v1616_v45  ;;  %v1492_v51 = vadd.f32 %v3795_v30, %v1491_v47 }
 0x1df   :  { %v1245_v52 = vpop.f32.mrf.mxu0  ;;  %v1493_v53 = vpop.f32.mrf.mxu1 }
 0x1e0   :  { %2161 = vst.msk [vmem:[%s4042_s3 + $0xe4] sm:$0xf] %vm2103_vm2, %v2604_v48  ;;  %v1555_v54 = vmax.f32 %v1244_v49, 0.0  ;;  %2223 = vst.msk [vmem:[%s4042_s3 + $0x1dc] sm:$0xf] %vm2103_vm2, %v2666_v50  ;;  %v1617_v55 = vmax.f32 %v1492_v51, 0.0 }
 0x1e1   :  { %v1246_v56 = vpop.f32.mrf.mxu0  ;;  %v1494_v58 = vpop.f32.mrf.mxu1 }
 0x1e2   :  { %v2605_v59 = vpack.c.bf16 %v1555_v54, %v1555_v54  ;;  %v1247_v60 = vadd.f32 %v3795_v30, %v1246_v56  ;;  %v2667_v61 = vpack.c.bf16 %v1617_v55, %v1617_v55 }
 0x1e3   :  { %v1248_v62 = vpop.f32.mrf.mxu0  ;;  %v1495_v63 = vpop.f32.mrf.mxu1 }
 0x1e4   :  { %2162 = vst.msk [vmem:[%s4042_s3 + $0xe8] sm:$0xf] %vm2103_vm2, %v2605_v59  ;;  %v1556_v0 = vmax.f32 %v1247_v60, 0.0  ;;  %2224 = vst.msk [vmem:[%s4042_s3 + $0x1e0] sm:$0xf] %vm2103_vm2, %v2667_v61 }
 0x1e5   :  { %v1251_v1 = vpop.f32.mrf.mxu0 }
 0x1e6   :  { %v2606_v2 = vpack.c.bf16 %v1556_v0, %v1556_v0  ;;  %v1252_v3 = vadd.f32 %v3795_v30, %v1251_v1 }
 0x1e7   :  { %v1253_v4 = vpop.f32.mrf.mxu0 }
 0x1e8   :  { %2163 = vst.msk [vmem:[%s4042_s3 + $0xec] sm:$0xf] %vm2103_vm2, %v2606_v2  ;;  %v1557_v5 = vmax.f32 %v1252_v3, 0.0 }
 0x1e9   :  { %v1254_v6 = vpop.f32.mrf.mxu0 }
 0x1ea   :  { %v2607_v7 = vpack.c.bf16 %v1557_v5, %v1557_v5  ;;  %v1255_v8 = vadd.f32 %v3795_v30, %v1254_v6 }
 0x1eb   :  { %v1256_v9 = vpop.f32.mrf.mxu0 }
 0x1ec   :  { %2164 = vst.msk [vmem:[%s4042_s3 + $0xf0] sm:$0xf] %vm2103_vm2, %v2607_v7  ;;  %v1558_v10 = vmax.f32 %v1255_v8, 0.0 }
 0x1ee   :  { %v2608_v11 = vpack.c.bf16 %v1558_v10, %v1558_v10 }
 0x1f0   :  { %2165 = vst.msk [vmem:[%s4042_s3 + $0xf4] sm:$0xf] %vm2103_vm2, %v2608_v11 }

// kernel: _lambda_.7
= control target key start
LH: loop header
LB: loop body
LE: loop exit
PB: predicated region body
PF: predicated region fallthrough
CT: control target
= control target key end

     0   :  { %v8255_v0 = vmov 0   ;;  %vm6205_vm0 = vmmov 0   ;;  %vm2770_vm1 = vcmask 523264   ;;  %s8249_s1 = inlined_call_operand.vmem [shape: bf16[1600,128], index: 1, kind: input, shape index: {}]   ;;  %s8250_s0 = inlined_call_operand.vmem [shape: bf16[392,1600], index: 0, kind: input, shape index: {}]   ;;  %s8251_s2 = inlined_call_operand.vmem [shape: f32[1,128], index: 2, kind: input, shape index: {}]   ;;  %s8252_s3 = inlined_call_operand.vmem [shape: bf16[392,128], index: 3, kind: output, shape index: {}]  }
   0x1   :  { %2846 = vmatprep.subr.bf16.mxu0 %v8255_v0  ;;  %5598 = vmatprep.subr.bf16.mxu1 %v8255_v0  ;;  %v5633_v1 = vld [vmem:[%s8249_s1 + $0x38] sm:$0xff]   ;;  %v5634_v2 = vld [vmem:[%s8249_s1 + $0x30] sm:$0xff]   ;;  %v5635_v3 = vld [vmem:[%s8249_s1 + $0x28] sm:$0xff]  }
   0x2   :  { %2847 = vmatpush1.bf16.msra.mxu0 %v5633_v1  ;;  %5614 = vmatpush1.bf16.msra.mxu1 %v5633_v1  ;;  %v5636_v4 = vld [vmem:[%s8249_s1 + $0x20] sm:$0xff]   ;;  %v5637_v5 = vld [vmem:[%s8249_s1 + $0x18] sm:$0xff]   ;;  %v5638_v7 = vld [vmem:[%s8249_s1 + $0x10] sm:$0xff]  }
   0x3   :  { %2848 = vmatprep.subr.bf16.mxu0 %v8255_v0  ;;  %5599 = vmatprep.subr.bf16.mxu1 %v8255_v0  ;;  %v5651_v6 = vld [vmem:[%s8250_s0 + $0x4] ss:$52 sps:$4 sm:$0xff]   ;;  %v5654_v8 = vld [vmem:[%s8250_s0 + $0x54c] ss:$52 sps:$4 sm:$0xff]   ;;  %v5642_v12 = vld [vmem:[%s8249_s1 + $0x70] sm:$0xff]  }
   0x4   :  { %2878 = vmatprep.mubr.bf16.mxu0 %v5651_v6  ;;  %2982 = vmatprep.mubr.bf16.mxu1 %v5654_v8  ;;  %v5639_v9 = vld [vmem:[%s8249_s1 + $0x8] sm:$0xff]   ;;  %v5640_v10 = vld [vmem:[%s8249_s1] sm:$0xff]   ;;  %v5641_v11 = vld [vmem:[%s8249_s1 + $0x78] sm:$0xff]  }
   0x5   :  { %v5643_v13 = vld [vmem:[%s8249_s1 + $0x68] sm:$0xff]   ;;  %v5644_v14 = vld [vmem:[%s8249_s1 + $0x60] sm:$0xff]   ;;  %v5645_v15 = vld [vmem:[%s8249_s1 + $0x58] sm:$0xff]  }
   0x6   :  { %2849 = vmatpush1.bf16.msra.mxu0 %v5634_v2  ;;  %5615 = vmatpush1.bf16.msra.mxu1 %v5634_v2  ;;  %v5646_v16 = vld [vmem:[%s8249_s1 + $0x50] sm:$0xff]   ;;  %v5647_v17 = vld [vmem:[%s8249_s1 + $0x48] sm:$0xff]   ;;  %v5648_v18 = vld [vmem:[%s8249_s1 + $0x40] sm:$0xff]  }
   0x7   :  { %2850 = vmatprep.subr.bf16.mxu0 %v8255_v0  ;;  %5600 = vmatprep.subr.bf16.mxu1 %v8255_v0  ;;  %v5649_v19 = vld [vmem:[%s8250_s0] ss:$52 sps:$4 sm:$0xff]   ;;  %v5652_v20 = vld [vmem:[%s8250_s0 + $0x548] ss:$52 sps:$4 sm:$0xff]   ;;  %v5662_v28 = vld [vmem:[%s8250_s0 + $0x5b0] ss:$52 sps:$4 sm:$0xff]  }
   0x8   :  { %v5655_v21 = vld [vmem:[%s8249_s1 + $0x138] sm:$0xff]   ;;  %v5656_v22 = vld [vmem:[%s8250_s0 + $0x6c] ss:$52 sps:$4 sm:$0xff]   ;;  %v5658_v23 = vld [vmem:[%s8250_s0 + $0x5b4] ss:$52 sps:$4 sm:$0xff]  }
   0x9   :  { %v5660_v24 = vld [vmem:[%s8249_s1 + $0xb8] sm:$0xff]   ;;  %v5663_v25 = vld [vmem:[%s8249_s1 + $0x130] sm:$0xff]   ;;  %v5665_v29 = vld [vmem:[%s8249_s1 + $0x128] sm:$0xff]  }
   0xa   :  { %2851 = vmatpush1.bf16.msra.mxu0 %v5635_v3  ;;  %5616 = vmatpush1.bf16.msra.mxu1 %v5635_v3  ;;  %v5661_v26 = vld [vmem:[%s8250_s0 + $0x68] ss:$52 sps:$4 sm:$0xff]   ;;  %v5664_v27 = vld [vmem:[%s8249_s1 + $0xb0] sm:$0xff]   ;;  %v5673_v33 = vld [vmem:[%s8249_s1 + $0x120] sm:$0xff]  }
   0xb   :  { %2852 = vmatprep.subr.bf16.mxu0 %v8255_v0  ;;  %5601 = vmatprep.subr.bf16.mxu1 %v8255_v0  ;;  %v5666_v30 = vld [vmem:[%s8250_s0 + $0xd4] ss:$52 sps:$4 sm:$0xff]   ;;  %v5668_v31 = vld [vmem:[%s8250_s0 + $0x61c] ss:$52 sps:$4 sm:$0xff]   ;;  %v5671_v35 = vld [vmem:[%s8250_s0 + $0x618] ss:$52 sps:$4 sm:$0xff]  }
   0xc   :  { %v5672_v32 = vld [vmem:[%s8249_s1 + $0xa8] sm:$0xff]   ;;  %v5670_v34 = vld [vmem:[%s8250_s0 + $0xd0] ss:$52 sps:$4 sm:$0xff]   ;;  %v5681_v39 = vld [vmem:[%s8249_s1 + $0x118] sm:$0xff]  }
   0xd   :  { %v5680_v36 = vld [vmem:[%s8249_s1 + $0xa0] sm:$0xff]   ;;  %v5674_v37 = vld [vmem:[%s8250_s0 + $0x13c] ss:$52 sps:$4 sm:$0xff]   ;;  %v5678_v41 = vld [vmem:[%s8250_s0 + $0x138] ss:$52 sps:$4 sm:$0xff]  }
   0xe   :  { %2853 = vmatpush1.bf16.msra.mxu0 %v5636_v4  ;;  %5617 = vmatpush1.bf16.msra.mxu1 %v5636_v4  ;;  %v5676_v38 = vld [vmem:[%s8250_s0 + $0x684] ss:$52 sps:$4 sm:$0xff]   ;;  %v5679_v42 = vld [vmem:[%s8250_s0 + $0x680] ss:$52 sps:$4 sm:$0xff]   ;;  %v5697_v47 = vld [vmem:[%s8249_s1 + $0x108] sm:$0xff]  }
   0xf   :  { %2854 = vmatprep.subr.bf16.mxu0 %v8255_v0  ;;  %5602 = vmatprep.subr.bf16.mxu1 %v8255_v0  ;;  %v5686_v40 = vld [vmem:[%s8249_s1 + $0x98] sm:$0xff]   ;;  %v5689_v43 = vld [vmem:[%s8249_s1 + $0x110] sm:$0xff]   ;;  %v5684_v46 = vld [vmem:[%s8250_s0 + $0x6ec] ss:$52 sps:$4 sm:$0xff]  }
  0x10   :  { %v5690_v44 = vld [vmem:[%s8249_s1 + $0x90] sm:$0xff]   ;;  %v5682_v45 = vld [vmem:[%s8250_s0 + $0x1a4] ss:$52 sps:$4 sm:$0xff]   ;;  %v5698_v48 = vld [vmem:[%s8249_s1 + $0x88] sm:$0xff]  }
  0x11   :  { %v5703_v49 = vld [vmem:[%s8249_s1 + $0x100] sm:$0xff]   ;;  %v5688_v52 = vld [vmem:[%s8250_s0 + $0x6e8] ss:$52 sps:$4 sm:$0xff]   ;;  %v5715_v57 = vld [vmem:[%s8249_s1 + $0x170] sm:$0xff]  }
  0x12   :  { %2855 = vmatpush1.bf16.msra.mxu0 %v5637_v5  ;;  %5618 = vmatpush1.bf16.msra.mxu1 %v5637_v5  ;;  %v5706_v50 = vld [vmem:[%s8249_s1 + $0x80] sm:$0xff]   ;;  %v5693_v54 = vld [vmem:[%s8250_s0 + $0x754] ss:$52 sps:$4 sm:$0xff]   ;;  %v5707_v55 = vld [vmem:[%s8249_s1 + $0x178] sm:$0xff]  }
  0x13   :  { %2856 = vmatprep.subr.bf16.mxu0 %v8255_v0  ;;  %5603 = vmatprep.subr.bf16.mxu1 %v8255_v0  ;;  %v5687_v51 = vld [vmem:[%s8250_s0 + $0x1a0] ss:$52 sps:$4 sm:$0xff]   ;;  %v5712_v56 = vld [vmem:[%s8249_s1 + $0xf8] sm:$0xff]   ;;  %v5696_v60 = vld [vmem:[%s8250_s0 + $0x750] ss:$52 sps:$4 sm:$0xff]  }
  0x14   :  { %v5691_v53 = vld [vmem:[%s8250_s0 + $0x20c] ss:$52 sps:$4 sm:$0xff]   ;;  %v5716_v58 = vld [vmem:[%s8249_s1 + $0xf0] sm:$0xff]   ;;  %v5695_v59 = vld [vmem:[%s8250_s0 + $0x208] ss:$52 sps:$4 sm:$0xff]  }
  0x15   :  { %v5699_v61 = vld [vmem:[%s8250_s0 + $0x274] ss:$52 sps:$4 sm:$0xff]   ;;  %v5701_v62 = vld [vmem:[%s8250_s0 + $0x7bc] ss:$52 sps:$4 sm:$0xff]   ;;  %v5705_v3 = vld [vmem:[%s8250_s0 + $0x7b8] ss:$52 sps:$4 sm:$0xff]  }
  0x16   :  { %2857 = vmatpush1.bf16.msra.mxu0 %v5638_v7  ;;  %5619 = vmatpush1.bf16.msra.mxu1 %v5638_v7  ;;  %v5723_v63 = vld [vmem:[%s8249_s1 + $0x168] sm:$0xff]   ;;  %v5704_v2 = vld [vmem:[%s8250_s0 + $0x270] ss:$52 sps:$4 sm:$0xff]   ;;  %v5737_v8 = vld [vmem:[%s8249_s1 + $0xd8] sm:$0xff]  }
  0x17   :  { %2858 = vmatprep.subr.bf16.mxu0 %v8255_v0  ;;  %5604 = vmatprep.subr.bf16.mxu1 %v8255_v0  ;;  %v5724_v1 = vld [vmem:[%s8249_s1 + $0xe8] sm:$0xff]   ;;  %v5731_v4 = vld [vmem:[%s8249_s1 + $0xe0] sm:$0xff]   ;;  %v5708_v6 = vld [vmem:[%s8250_s0 + $0x2dc] ss:$52 sps:$4 sm:$0xff]  }
  0x18   :  { %v5732_v5 = vld [vmem:[%s8249_s1 + $0x160] sm:$0xff]  }
  0x19   :  { %v5710_v7 = vld [vmem:[%s8250_s0 + $0x824] ss:$52 sps:$4 sm:$0xff]  }
  0x1a   :  { %2859 = vmatpush1.bf16.msra.mxu0 %v5639_v9  ;;  %5620 = vmatpush1.bf16.msra.mxu1 %v5639_v9  ;;  %v5738_v9 = vld [vmem:[%s8249_s1 + $0x158] sm:$0xff]  }
  0x1b   :  { %2860 = vmatprep.subr.bf16.mxu0 %v8255_v0  ;;  %5605 = vmatprep.subr.bf16.mxu1 %v8255_v0 }
  0x1e   :  { %2861 = vmatpush1.bf16.msra.mxu0 %v5640_v10  ;;  %5621 = vmatpush1.bf16.msra.mxu1 %v5640_v10  ;;  %v5741_v10 = vld [vmem:[%s8249_s1 + $0xd0] sm:$0xff]  }
  0x1f   :  { %2862 = vmatprep.subr.bf16.mxu0 %v8255_v0  ;;  %5606 = vmatprep.subr.bf16.mxu1 %v8255_v0 }
  0x22   :  { %2863 = vmatpush2.bf16.msra.mxu0 %v5641_v11  ;;  %5622 = vmatpush2.bf16.msra.mxu1 %v5641_v11  ;;  %v5742_v11 = vld [vmem:[%s8249_s1 + $0x150] sm:$0xff]  }
  0x23   :  { %2864 = vmatprep.subr.bf16.mxu0 %v8255_v0  ;;  %5607 = vmatprep.subr.bf16.mxu1 %v8255_v0 }
  0x26   :  { %2865 = vmatpush2.bf16.msra.mxu0 %v5642_v12  ;;  %5623 = vmatpush2.bf16.msra.mxu1 %v5642_v12  ;;  %v5713_v12 = vld [vmem:[%s8250_s0 + $0x2d8] ss:$52 sps:$4 sm:$0xff]  }
  0x27   :  { %2866 = vmatprep.subr.bf16.mxu0 %v8255_v0  ;;  %5608 = vmatprep.subr.bf16.mxu1 %v8255_v0 }
  0x2a   :  { %2867 = vmatpush2.bf16.msra.mxu0 %v5643_v13  ;;  %5624 = vmatpush2.bf16.msra.mxu1 %v5643_v13  ;;  %v5714_v13 = vld [vmem:[%s8250_s0 + $0x820] ss:$52 sps:$4 sm:$0xff]  }
  0x2b   :  { %2868 = vmatprep.subr.bf16.mxu0 %v8255_v0  ;;  %5609 = vmatprep.subr.bf16.mxu1 %v8255_v0 }
  0x2e   :  { %2869 = vmatpush2.bf16.msra.mxu0 %v5644_v14  ;;  %5625 = vmatpush2.bf16.msra.mxu1 %v5644_v14  ;;  %v5717_v14 = vld [vmem:[%s8250_s0 + $0x344] ss:$52 sps:$4 sm:$0xff]  }
  0x2f   :  { %2870 = vmatprep.subr.bf16.mxu0 %v8255_v0  ;;  %5610 = vmatprep.subr.bf16.mxu1 %v8255_v0 }
  0x32   :  { %2871 = vmatpush2.bf16.msra.mxu0 %v5645_v15  ;;  %5626 = vmatpush2.bf16.msra.mxu1 %v5645_v15  ;;  %v5719_v15 = vld [vmem:[%s8250_s0 + $0x88c] ss:$52 sps:$4 sm:$0xff]  }
  0x33   :  { %2872 = vmatprep.subr.bf16.mxu0 %v8255_v0  ;;  %5611 = vmatprep.subr.bf16.mxu1 %v8255_v0 }
  0x36   :  { %2873 = vmatpush2.bf16.msra.mxu0 %v5646_v16  ;;  %5627 = vmatpush2.bf16.msra.mxu1 %v5646_v16  ;;  %v5748_v16 = vld [vmem:[%s8249_s1 + $0xc8] sm:$0xff]  }
  0x37   :  { %2874 = vmatprep.subr.bf16.mxu0 %v8255_v0  ;;  %5612 = vmatprep.subr.bf16.mxu1 %v8255_v0 }
  0x3a   :  { %2875 = vmatpush2.bf16.msra.mxu0 %v5647_v17  ;;  %5628 = vmatpush2.bf16.msra.mxu1 %v5647_v17  ;;  %v5749_v17 = vld [vmem:[%s8249_s1 + $0x148] sm:$0xff]  }
  0x3b   :  { %2876 = vmatprep.subr.bf16.mxu0 %v8255_v0  ;;  %5613 = vmatprep.subr.bf16.mxu1 %v8255_v0 }
  0x3e   :  { %2877 = vmatpush2.bf16.msra.mxu0 %v5648_v18  ;;  %5629 = vmatpush2.bf16.msra.mxu1 %v5648_v18  ;;  %v5750_v18 = vld [vmem:[%s8249_s1 + $0xc0] sm:$0xff]  }
  0x3f   :  { %3310 = vmatprep.subr.bf16.mxu0 %v8255_v0  ;;  %3078 = vmatprep.subr.bf16.mxu1 %v8255_v0 }
  0x41   :  { %2879 = vmatmul.mubr.bf16.vlgmr.msra.gmra.mxu0 %v5649_v19  ;;  %2983 = vmatmul.mubr.bf16.vlgmr.msra.gmra.mxu1 %v5652_v20  ;;  %v5757_v19 = vld [vmem:[%s8249_s1 + $0x140] sm:$0xff]  }
  0x42   :  { %3311 = vmatpush1.bf16.msra.mxu0 %v5655_v21  ;;  %2886 = vmatprep.mubr.bf16.mxu0 %v5656_v22  ;;  %v5721_v20 = vld [vmem:[%s8250_s0 + $0x340] ss:$52 sps:$4 sm:$0xff]   ;;  %v5722_v21 = vld [vmem:[%s8250_s0 + $0x888] ss:$52 sps:$4 sm:$0xff]  }
  0x43   :  { %2990 = vmatprep.mubr.bf16.mxu1 %v5658_v23  ;;  %3079 = vmatpush1.bf16.msra.mxu1 %v5660_v24  ;;  %v5725_v22 = vld [vmem:[%s8250_s0 + $0x3ac] ss:$52 sps:$4 sm:$0xff]   ;;  %v5727_v23 = vld [vmem:[%s8250_s0 + $0x8f4] ss:$52 sps:$4 sm:$0xff]  }
  0x44   :  { %3312 = vmatprep.subr.bf16.mxu0 %v8255_v0  ;;  %3080 = vmatprep.subr.bf16.mxu1 %v8255_v0  ;;  %v5729_v24 = vld [vmem:[%s8250_s0 + $0x3a8] ss:$52 sps:$4 sm:$0xff]  }
  0x46   :  { %3313 = vmatpush1.bf16.msra.mxu0 %v5663_v25  ;;  %v5730_v25 = vld [vmem:[%s8250_s0 + $0x8f0] ss:$52 sps:$4 sm:$0xff]  }
  0x47   :  { %3081 = vmatpush1.bf16.msra.mxu1 %v5664_v27  ;;  %3314 = vmatprep.subr.bf16.mxu0 %v8255_v0  ;;  %v5735_v27 = vld [vmem:[%s8250_s0 + $0x95c] ss:$52 sps:$4 sm:$0xff]  }
  0x48   :  { %3082 = vmatprep.subr.bf16.mxu1 %v8255_v0 }
  0x49   :  { %2887 = vmatmul.mubr.bf16.gmra.mxu0 %v5661_v26  ;;  %2991 = vmatmul.mubr.bf16.gmra.mxu1 %v5662_v28  ;;  %v5733_v26 = vld [vmem:[%s8250_s0 + $0x414] ss:$52 sps:$4 sm:$0xff]   ;;  %v5739_v28 = vld [vmem:[%s8250_s0 + $0x410] ss:$52 sps:$4 sm:$0xff]  }
  0x4a   :  { %3315 = vmatpush1.bf16.msra.mxu0 %v5665_v29  ;;  %2894 = vmatprep.mubr.bf16.mxu0 %v5666_v30  ;;  %v5740_v29 = vld [vmem:[%s8250_s0 + $0x958] ss:$52 sps:$4 sm:$0xff]   ;;  %v351_v30 = vld [vmem:[%s8250_s0 + $0x9c0] sm:$0xff] }
  0x4b   :  { %2998 = vmatprep.mubr.bf16.mxu1 %v5668_v31  ;;  %3083 = vmatpush1.bf16.msra.mxu1 %v5672_v32  ;;  %v5743_v31 = vld [vmem:[%s8250_s0 + $0x47c] ss:$52 sps:$4 sm:$0xff]   ;;  %v5083_v32 = vcombine.high %v351_v30, %v351_v30 }
  0x4c   :  { %3316 = vmatprep.subr.bf16.mxu0 %v8255_v0  ;;  %3084 = vmatprep.subr.bf16.mxu1 %v8255_v0 }
  0x4e   :  { %3317 = vmatpush1.bf16.msra.mxu0 %v5673_v33  ;;  %v5746_v33 = vld [vmem:[%s8250_s0 + $0x478] ss:$52 sps:$4 sm:$0xff]  }
  0x4f   :  { %3085 = vmatpush1.bf16.msra.mxu1 %v5680_v36  ;;  %3318 = vmatprep.subr.bf16.mxu0 %v8255_v0  ;;  %v5755_v36 = vld [vmem:[%s8250_s0 + $0xc] ss:$52 sps:$4 sm:$0xff]  }
  0x50   :  { %3086 = vmatprep.subr.bf16.mxu1 %v8255_v0 }
  0x51   :  { %2895 = vmatmul.mubr.bf16.gmra.mxu0 %v5670_v34  ;;  %2999 = vmatmul.mubr.bf16.gmra.mxu1 %v5671_v35  ;;  %v5082_v34 = vcombine.low %v351_v30, %v351_v30  ;;  %v5751_v35 = vld [vmem:[%s8250_s0 + $0x4e4] ss:$52 sps:$4 sm:$0xff]   ;;  %v5810_v30 = vld [vmem:[%s8250_s0 + $0x34c] ss:$52 sps:$4 sm:$0xff]  }
  0x52   :  { %2902 = vmatprep.mubr.bf16.mxu0 %v5674_v37  ;;  %3006 = vmatprep.mubr.bf16.mxu1 %v5676_v38  ;;  %v5753_v37 = vld [vmem:[%s8250_s0 + $0x8] ss:$52 sps:$4 sm:$0xff]   ;;  %v5756_v38 = vld [vmem:[%s8250_s0 + $0x4e0] ss:$52 sps:$4 sm:$0xff]  }
  0x53   :  { %3319 = vmatpush1.bf16.msra.mxu0 %v5681_v39  ;;  %3087 = vmatpush1.bf16.msra.mxu1 %v5686_v40  ;;  %v5758_v39 = vld [vmem:[%s8250_s0 + $0x74] ss:$52 sps:$4 sm:$0xff]  }
  0x54   :  { %3320 = vmatprep.subr.bf16.mxu0 %v8255_v0  ;;  %3088 = vmatprep.subr.bf16.mxu1 %v8255_v0  ;;  %v5762_v40 = vld [vmem:[%s8250_s0 + $0x14] ss:$52 sps:$4 sm:$0xff]  }
  0x57   :  { %3321 = vmatpush1.bf16.msra.mxu0 %v5689_v43  ;;  %3089 = vmatpush1.bf16.msra.mxu1 %v5690_v44  ;;  %v5760_v43 = vld [vmem:[%s8250_s0 + $0x10] ss:$52 sps:$4 sm:$0xff]  }
  0x58   :  { %3322 = vmatprep.subr.bf16.mxu0 %v8255_v0  ;;  %3090 = vmatprep.subr.bf16.mxu1 %v8255_v0  ;;  %v5764_v44 = vld [vmem:[%s8250_s0 + $0x70] ss:$52 sps:$4 sm:$0xff]  }
  0x59   :  { %2903 = vmatmul.mubr.bf16.gmra.mxu0 %v5678_v41  ;;  %3007 = vmatmul.mubr.bf16.gmra.mxu1 %v5679_v42  ;;  %v5763_v41 = vld [vmem:[%s8249_s1 + $0x1b8] sm:$0xff]   ;;  %v5772_v42 = vld [vmem:[%s8249_s1 + $0x1b0] sm:$0xff]  }
  0x5a   :  { %2910 = vmatprep.mubr.bf16.mxu0 %v5682_v45  ;;  %3014 = vmatprep.mubr.bf16.mxu1 %v5684_v46  ;;  %v5765_v45 = vld [vmem:[%s8249_s1 + $0x238] sm:$0xff]  }
  0x5b   :  { %3323 = vmatpush1.bf16.msra.mxu0 %v5697_v47  ;;  %3091 = vmatpush1.bf16.msra.mxu1 %v5698_v48  ;;  %v5766_v46 = vld [vmem:[%s8250_s0 + $0xdc] ss:$52 sps:$4 sm:$0xff]   ;;  %v5786_v48 = vld [vmem:[%s8249_s1 + $0x1a8] sm:$0xff]  }
  0x5c   :  { %3324 = vmatprep.subr.bf16.mxu0 %v8255_v0  ;;  %3092 = vmatprep.subr.bf16.mxu1 %v8255_v0  ;;  %v5768_v47 = vld [vmem:[%s8250_s0 + $0x7c] ss:$52 sps:$4 sm:$0xff]  }
  0x5f   :  { %3325 = vmatpush1.bf16.msra.mxu0 %v5703_v49  ;;  %3093 = vmatpush1.bf16.msra.mxu1 %v5706_v50  ;;  %v5773_v49 = vld [vmem:[%s8249_s1 + $0x230] sm:$0xff]   ;;  %v5794_v50 = vld [vmem:[%s8249_s1 + $0x1a0] sm:$0xff]  }
  0x60   :  { %3326 = vmatprep.subr.bf16.mxu0 %v8255_v0  ;;  %3094 = vmatprep.subr.bf16.mxu1 %v8255_v0 }
  0x61   :  { %2911 = vmatmul.mubr.bf16.gmra.mxu0 %v5687_v51  ;;  %3015 = vmatmul.mubr.bf16.gmra.mxu1 %v5688_v52  ;;  %v5770_v51 = vld [vmem:[%s8250_s0 + $0xd8] ss:$52 sps:$4 sm:$0xff]  }
  0x62   :  { %2918 = vmatprep.mubr.bf16.mxu0 %v5691_v53  ;;  %3022 = vmatprep.mubr.bf16.mxu1 %v5693_v54  ;;  %v5771_v52 = vld [vmem:[%s8250_s0 + $0x78] ss:$52 sps:$4 sm:$0xff]  }
  0x63   :  { %3327 = vmatpush2.bf16.msra.mxu0 %v5707_v55  ;;  %3095 = vmatpush2.bf16.msra.mxu1 %v5712_v56  ;;  %v5774_v53 = vld [vmem:[%s8250_s0 + $0x144] ss:$52 sps:$4 sm:$0xff]   ;;  %v5787_v55 = vld [vmem:[%s8249_s1 + $0x228] sm:$0xff]  }
  0x64   :  { %3328 = vmatprep.subr.bf16.mxu0 %v8255_v0  ;;  %3096 = vmatprep.subr.bf16.mxu1 %v8255_v0  ;;  %v5776_v54 = vld [vmem:[%s8250_s0 + $0xe4] ss:$52 sps:$4 sm:$0xff]  }
  0x65   :  { %v5808_v56 = vld [vmem:[%s8249_s1 + $0x198] sm:$0xff]  }
  0x67   :  { %3329 = vmatpush2.bf16.msra.mxu0 %v5715_v57  ;;  %3097 = vmatpush2.bf16.msra.mxu1 %v5716_v58  ;;  %v5799_v57 = vld [vmem:[%s8249_s1 + $0x220] sm:$0xff]  }
  0x68   :  { %3330 = vmatprep.subr.bf16.mxu0 %v8255_v0  ;;  %3098 = vmatprep.subr.bf16.mxu1 %v8255_v0  ;;  %v5778_v58 = vld [vmem:[%s8250_s0 + $0x140] ss:$52 sps:$4 sm:$0xff]  }
  0x69   :  { %2919 = vmatmul.mubr.bf16.gmra.mxu0 %v5695_v59  ;;  %3023 = vmatmul.mubr.bf16.gmra.mxu1 %v5696_v60  ;;  %v5779_v59 = vld [vmem:[%s8250_s0 + $0xe0] ss:$52 sps:$4 sm:$0xff]  }
  0x6a   :  { %2926 = vmatprep.mubr.bf16.mxu0 %v5699_v61  ;;  %3030 = vmatprep.mubr.bf16.mxu1 %v5701_v62  ;;  %v5816_v60 = vld [vmem:[%s8249_s1 + $0x190] sm:$0xff]   ;;  %v5780_v61 = vld [vmem:[%s8250_s0 + $0x1ac] ss:$52 sps:$4 sm:$0xff]  }
  0x6b   :  { %3331 = vmatpush2.bf16.msra.mxu0 %v5723_v63  ;;  %3099 = vmatpush2.bf16.msra.mxu1 %v5724_v1  ;;  %v5782_v62 = vld [vmem:[%s8250_s0 + $0x14c] ss:$52 sps:$4 sm:$0xff]   ;;  %v5809_v63 = vld [vmem:[%s8249_s1 + $0x218] sm:$0xff]  }
  0x6c   :  { %3100 = vmatprep.subr.bf16.mxu1 %v8255_v0  ;;  %3332 = vmatprep.subr.bf16.mxu0 %v8255_v0  ;;  %v5830_v1 = vld [vmem:[%s8249_s1 + $0x188] sm:$0xff]  }
  0x6f   :  { %3101 = vmatpush2.bf16.msra.mxu1 %v5731_v4  ;;  %3333 = vmatpush2.bf16.msra.mxu0 %v5732_v5  ;;  %v5784_v4 = vld [vmem:[%s8250_s0 + $0x1a8] ss:$52 sps:$4 sm:$0xff]  }
  0x70   :  { %3102 = vmatprep.subr.bf16.mxu1 %v8255_v0  ;;  %3334 = vmatprep.subr.bf16.mxu0 %v8255_v0  ;;  %v5785_v5 = vld [vmem:[%s8250_s0 + $0x148] ss:$52 sps:$4 sm:$0xff]  }
  0x71   :  { %2927 = vmatmul.mubr.bf16.gmra.mxu0 %v5704_v2  ;;  %3031 = vmatmul.mubr.bf16.gmra.mxu1 %v5705_v3  ;;  %v5823_v2 = vld [vmem:[%s8249_s1 + $0x210] sm:$0xff]   ;;  %v5842_v3 = vld [vmem:[%s8249_s1 + $0x180] sm:$0xff]  }
  0x72   :  { %2934 = vmatprep.mubr.bf16.mxu0 %v5708_v6  ;;  %3038 = vmatprep.mubr.bf16.mxu1 %v5710_v7  ;;  %v5788_v6 = vld [vmem:[%s8250_s0 + $0x214] ss:$52 sps:$4 sm:$0xff]  }
  0x73   :  { %3103 = vmatpush2.bf16.msra.mxu1 %v5737_v8  ;;  %3335 = vmatpush2.bf16.msra.mxu0 %v5738_v9  ;;  %v5790_v7 = vld [vmem:[%s8250_s0 + $0x1b4] ss:$52 sps:$4 sm:$0xff]   ;;  %v5852_v9 = vld [vmem:[%s8249_s1 + $0x1f8] sm:$0xff]  }
  0x74   :  { %3104 = vmatprep.subr.bf16.mxu1 %v8255_v0  ;;  %3336 = vmatprep.subr.bf16.mxu0 %v8255_v0  ;;  %v5831_v8 = vld [vmem:[%s8249_s1 + $0x208] sm:$0xff]  }
  0x77   :  { %3105 = vmatpush2.bf16.msra.mxu1 %v5741_v10  ;;  %3337 = vmatpush2.bf16.msra.mxu0 %v5742_v11  ;;  %v5845_v10 = vld [vmem:[%s8249_s1 + $0x200] sm:$0xff]   ;;  %v5866_v11 = vld [vmem:[%s8249_s1 + $0x1f0] sm:$0xff]  }
  0x78   :  { %3106 = vmatprep.subr.bf16.mxu1 %v8255_v0  ;;  %3338 = vmatprep.subr.bf16.mxu0 %v8255_v0 }
  0x79   :  { %2935 = vmatmul.mubr.bf16.gmra.mxu0 %v5713_v12  ;;  %3039 = vmatmul.mubr.bf16.gmra.mxu1 %v5714_v13  ;;  %v5792_v12 = vld [vmem:[%s8250_s0 + $0x210] ss:$52 sps:$4 sm:$0xff]  }
  0x7a   :  { %2942 = vmatprep.mubr.bf16.mxu0 %v5717_v14  ;;  %3046 = vmatprep.mubr.bf16.mxu1 %v5719_v15  ;;  %v5793_v13 = vld [vmem:[%s8250_s0 + $0x1b0] ss:$52 sps:$4 sm:$0xff]  }
  0x7b   :  { %3107 = vmatpush2.bf16.msra.mxu1 %v5748_v16  ;;  %3339 = vmatpush2.bf16.msra.mxu0 %v5749_v17  ;;  %v5795_v14 = vld [vmem:[%s8250_s0 + $0x27c] ss:$52 sps:$4 sm:$0xff]   ;;  %v5874_v17 = vld [vmem:[%s8249_s1 + $0x1e8] sm:$0xff]  }
  0x7c   :  { %3108 = vmatprep.subr.bf16.mxu1 %v8255_v0  ;;  %3340 = vmatprep.subr.bf16.mxu0 %v8255_v0  ;;  %v5797_v15 = vld [vmem:[%s8250_s0 + $0x21c] ss:$52 sps:$4 sm:$0xff]  }
  0x7d   :  { %v5853_v16 = vld [vmem:[%s8249_s1 + $0x278] sm:$0xff]  }
  0x7f   :  { %3109 = vmatpush2.bf16.msra.mxu1 %v5750_v18  ;;  %3341 = vmatpush2.bf16.msra.mxu0 %v5757_v19  ;;  %v5867_v18 = vld [vmem:[%s8249_s1 + $0x270] sm:$0xff]   ;;  %v5800_v19 = vld [vmem:[%s8250_s0 + $0x278] ss:$52 sps:$4 sm:$0xff]  }
  0x80   :  { %3542 = vmatprep.subr.bf16.mxu1 %v8255_v0  ;;  %3774 = vmatprep.subr.bf16.mxu0 %v8255_v0 }
  0x81   :  { %2943 = vmatmul.mubr.bf16.gmra.mxu0 %v5721_v20  ;;  %3047 = vmatmul.mubr.bf16.gmra.mxu1 %v5722_v21  ;;  %v5801_v20 = vld [vmem:[%s8250_s0 + $0x218] ss:$52 sps:$4 sm:$0xff]   ;;  %v5888_v21 = vld [vmem:[%s8249_s1 + $0x1e0] sm:$0xff]  }
  0x82   :  { %2950 = vmatprep.mubr.bf16.mxu0 %v5725_v22  ;;  %3054 = vmatprep.mubr.bf16.mxu1 %v5727_v23  ;;  %v5802_v22 = vld [vmem:[%s8250_s0 + $0x2e4] ss:$52 sps:$4 sm:$0xff]  }
  0x83   :  { %v5804_v23 = vld [vmem:[%s8250_s0 + $0x284] ss:$52 sps:$4 sm:$0xff]  }
  0x89   :  { %2951 = vmatmul.mubr.bf16.gmra.mxu0 %v5729_v24  ;;  %3055 = vmatmul.mubr.bf16.gmra.mxu1 %v5730_v25  ;;  %v5875_v24 = vld [vmem:[%s8249_s1 + $0x268] sm:$0xff]   ;;  %v5896_v25 = vld [vmem:[%s8249_s1 + $0x1d8] sm:$0xff]  }
  0x8a   :  { %2958 = vmatprep.mubr.bf16.mxu0 %v5733_v26  ;;  %3062 = vmatprep.mubr.bf16.mxu1 %v5735_v27  ;;  %v5889_v26 = vld [vmem:[%s8249_s1 + $0x260] sm:$0xff]   ;;  %v5910_v27 = vld [vmem:[%s8249_s1 + $0x1d0] sm:$0xff]  }
  0x91   :  { %2959 = vmatmul.mubr.bf16.gmra.mxu0 %v5739_v28  ;;  %3063 = vmatmul.mubr.bf16.gmra.mxu1 %v5740_v29  ;;  %v5806_v28 = vld [vmem:[%s8250_s0 + $0x2e0] ss:$52 sps:$4 sm:$0xff]  }
  0x92   :  { %2966 = vmatprep.mubr.bf16.mxu0 %v5743_v31  ;;  %3070 = vmatprep.mubr.bf16.mxu1 %v5083_v32  ;;  %v5807_v29 = vld [vmem:[%s8250_s0 + $0x280] ss:$52 sps:$4 sm:$0xff]   ;;  %v5903_v32 = vld [vmem:[%s8249_s1 + $0x258] sm:$0xff]  }
  0x93   :  { %v5812_v31 = vld [vmem:[%s8250_s0 + $0x2ec] ss:$52 sps:$4 sm:$0xff]  }
  0x99   :  { %2967 = vmatmul.mubr.bf16.gmra.mxu0 %v5746_v33  ;;  %3071 = vmatmul.mubr.bf16.gmra.mxu1 %v5082_v34  ;;  %v5918_v33 = vld [vmem:[%s8249_s1 + $0x1c8] sm:$0xff]   ;;  %v5911_v34 = vld [vmem:[%s8249_s1 + $0x250] sm:$0xff]  }
  0x9a   :  { %2974 = vmatprep.mubr.bf16.mxu0 %v5751_v35  ;;  %3110 = vmatprep.mubr.bf16.mxu1 %v5755_v36  ;;  %v5814_v35 = vld [vmem:[%s8250_s0 + $0x348] ss:$52 sps:$4 sm:$0xff]  }
  0x9b   :  { %v5815_v36 = vld [vmem:[%s8250_s0 + $0x2e8] ss:$52 sps:$4 sm:$0xff]  }
  0xa1   :  { %2975 = vmatmul.mubr.bf16.gmra.mxu0 %v5756_v38  ;;  %3111 = vmatmul.mubr.bf16.vlgmr.msra.gmra.mxu1 %v5753_v37  ;;  %v5817_v37 = vld [vmem:[%s8250_s0 + $0x3b4] ss:$52 sps:$4 sm:$0xff]  }
  0xa2   :  { %3118 = vmatprep.mubr.bf16.mxu1 %v5758_v39  ;;  %3342 = vmatprep.mubr.bf16.mxu0 %v5762_v40  ;;  %v5819_v38 = vld [vmem:[%s8250_s0 + $0x354] ss:$52 sps:$4 sm:$0xff]   ;;  %v5821_v40 = vld [vmem:[%s8250_s0 + $0x3b0] ss:$52 sps:$4 sm:$0xff]  }
  0xa3   :  { %3543 = vmatpush1.bf16.msra.mxu1 %v5763_v41  ;;  %v5925_v39 = vld [vmem:[%s8249_s1 + $0x248] sm:$0xff]   ;;  %v5822_v41 = vld [vmem:[%s8250_s0 + $0x350] ss:$52 sps:$4 sm:$0xff]  }
  0xa4   :  { %3544 = vmatprep.subr.bf16.mxu1 %v8255_v0 }
  0xa7   :  { %3545 = vmatpush1.bf16.msra.mxu1 %v5772_v42  ;;  %v5931_v42 = vld [vmem:[%s8249_s1 + $0x1c0] sm:$0xff]  }
  0xa8   :  { %3546 = vmatprep.subr.bf16.mxu1 %v8255_v0 }
  0xa9   :  { %3119 = vmatmul.mubr.bf16.gmra.mxu1 %v5764_v44  ;;  %3343 = vmatmul.mubr.bf16.vlgmr.msra.gmra.mxu0 %v5760_v43  ;;  %v5824_v43 = vld [vmem:[%s8250_s0 + $0x41c] ss:$52 sps:$4 sm:$0xff]  }
  0xaa   :  { %3775 = vmatpush1.bf16.msra.mxu0 %v5765_v45  ;;  %3126 = vmatprep.mubr.bf16.mxu1 %v5766_v46  ;;  %v5826_v44 = vld [vmem:[%s8250_s0 + $0x3bc] ss:$52 sps:$4 sm:$0xff]   ;;  %v5932_v45 = vld [vmem:[%s8249_s1 + $0x240] sm:$0xff]   ;;  %v5828_v46 = vld [vmem:[%s8250_s0 + $0x418] ss:$52 sps:$4 sm:$0xff]  }
  0xab   :  { %3350 = vmatprep.mubr.bf16.mxu0 %v5768_v47  ;;  %3776 = vmatprep.subr.bf16.mxu0 %v8255_v0  ;;  %v5829_v47 = vld [vmem:[%s8250_s0 + $0x3b8] ss:$52 sps:$4 sm:$0xff]  }
  0xac   :  { %3547 = vmatpush1.bf16.msra.mxu1 %v5786_v48  ;;  %v5832_v48 = vld [vmem:[%s8250_s0 + $0x484] ss:$52 sps:$4 sm:$0xff]  }
  0xad   :  { %3548 = vmatprep.subr.bf16.mxu1 %v8255_v0 }
  0xae   :  { %3777 = vmatpush1.bf16.msra.mxu0 %v5773_v49  ;;  %v5834_v49 = vld [vmem:[%s8250_s0 + $0x424] ss:$52 sps:$4 sm:$0xff]  }
  0xaf   :  { %3778 = vmatprep.subr.bf16.mxu0 %v8255_v0 }
  0xb0   :  { %3549 = vmatpush1.bf16.msra.mxu1 %v5794_v50  ;;  %v5836_v50 = vld [vmem:[%s8250_s0 + $0x480] ss:$52 sps:$4 sm:$0xff]  }
  0xb1   :  { %3127 = vmatmul.mubr.bf16.gmra.mxu1 %v5770_v51  ;;  %3351 = vmatmul.mubr.bf16.gmra.mxu0 %v5771_v52  ;;  %v5837_v51 = vld [vmem:[%s8250_s0 + $0x420] ss:$52 sps:$4 sm:$0xff]   ;;  %v8253_v52 = vmov 0.0  }
  0xb2   :  { %3134 = vmatprep.mubr.bf16.mxu1 %v5774_v53  ;;  %3358 = vmatprep.mubr.bf16.mxu0 %v5776_v54  ;;  %v5838_v53 = vld [vmem:[%s8250_s0 + $0x4ec] ss:$52 sps:$4 sm:$0xff]  }
  0xb3   :  { %3779 = vmatpush1.bf16.msra.mxu0 %v5787_v55  ;;  %3550 = vmatprep.subr.bf16.mxu1 %v8255_v0  ;;  %v5840_v54 = vld [vmem:[%s8250_s0 + $0x48c] ss:$52 sps:$4 sm:$0xff]   ;;  %v5843_v55 = vld [vmem:[%s8250_s0 + $0x4e8] ss:$52 sps:$4 sm:$0xff]  }
  0xb4   :  { %3780 = vmatprep.subr.bf16.mxu0 %v8255_v0  ;;  %3551 = vmatpush1.bf16.msra.mxu1 %v5808_v56  ;;  %v5844_v56 = vld [vmem:[%s8250_s0 + $0x488] ss:$52 sps:$4 sm:$0xff]  }
  0xb5   :  { %3552 = vmatprep.subr.bf16.mxu1 %v8255_v0 }
  0xb7   :  { %3781 = vmatpush1.bf16.msra.mxu0 %v5799_v57  ;;  %v5846_v57 = vld [vmem:[%s8250_s0 + $0x554] ss:$52 sps:$4 sm:$0xff]  }
  0xb8   :  { %3782 = vmatprep.subr.bf16.mxu0 %v8255_v0  ;;  %3553 = vmatpush1.bf16.msra.mxu1 %v5816_v60 }
  0xb9   :  { %3135 = vmatmul.mubr.bf16.gmra.mxu1 %v5778_v58  ;;  %3359 = vmatmul.mubr.bf16.gmra.mxu0 %v5779_v59  ;;  %v5848_v58 = vld [vmem:[%s8250_s0 + $0x4f4] ss:$52 sps:$4 sm:$0xff]  }
  0xba   :  { %3142 = vmatprep.mubr.bf16.mxu1 %v5780_v61  ;;  %3366 = vmatprep.mubr.bf16.mxu0 %v5782_v62 }
  0xbb   :  { %3783 = vmatpush1.bf16.msra.mxu0 %v5809_v63  ;;  %3554 = vmatprep.subr.bf16.mxu1 %v8255_v0 }
  0xbc   :  { %3784 = vmatprep.subr.bf16.mxu0 %v8255_v0  ;;  %3555 = vmatpush1.bf16.msra.mxu1 %v5830_v1 }
  0xbd   :  { %3556 = vmatprep.subr.bf16.mxu1 %v8255_v0 }
  0xbf   :  { %3785 = vmatpush1.bf16.msra.mxu0 %v5823_v2  ;;  %v5850_v2 = vld [vmem:[%s8250_s0 + $0x550] ss:$52 sps:$4 sm:$0xff]  }
  0xc0   :  { %3786 = vmatprep.subr.bf16.mxu0 %v8255_v0  ;;  %3557 = vmatpush1.bf16.msra.mxu1 %v5842_v3  ;;  %v5851_v3 = vld [vmem:[%s8250_s0 + $0x4f0] ss:$52 sps:$4 sm:$0xff]  }
  0xc1   :  { %3143 = vmatmul.mubr.bf16.gmra.mxu1 %v5784_v4  ;;  %3367 = vmatmul.mubr.bf16.gmra.mxu0 %v5785_v5  ;;  %v5854_v4 = vld [vmem:[%s8250_s0 + $0x5bc] ss:$52 sps:$4 sm:$0xff]  }
  0xc2   :  { %3150 = vmatprep.mubr.bf16.mxu1 %v5788_v6  ;;  %3374 = vmatprep.mubr.bf16.mxu0 %v5790_v7  ;;  %v5856_v5 = vld [vmem:[%s8250_s0 + $0x55c] ss:$52 sps:$4 sm:$0xff]  }
  0xc3   :  { %3787 = vmatpush1.bf16.msra.mxu0 %v5831_v8  ;;  %3558 = vmatprep.subr.bf16.mxu1 %v8255_v0 }
  0xc4   :  { %3788 = vmatprep.subr.bf16.mxu0 %v8255_v0  ;;  %3559 = vmatpush2.bf16.msra.mxu1 %v5852_v9 }
  0xc5   :  { %3560 = vmatprep.subr.bf16.mxu1 %v8255_v0 }
  0xc7   :  { %3789 = vmatpush1.bf16.msra.mxu0 %v5845_v10 }
  0xc8   :  { %3790 = vmatprep.subr.bf16.mxu0 %v8255_v0  ;;  %3561 = vmatpush2.bf16.msra.mxu1 %v5866_v11 }
  0xc9   :  { %3151 = vmatmul.mubr.bf16.gmra.mxu1 %v5792_v12  ;;  %3375 = vmatmul.mubr.bf16.gmra.mxu0 %v5793_v13 }
  0xca   :  { %3158 = vmatprep.mubr.bf16.mxu1 %v5795_v14  ;;  %3382 = vmatprep.mubr.bf16.mxu0 %v5797_v15  ;;  %v5858_v14 = vld [vmem:[%s8250_s0 + $0x5b8] ss:$52 sps:$4 sm:$0xff]  }
  0xcb   :  { %3791 = vmatpush2.bf16.msra.mxu0 %v5853_v16  ;;  %3562 = vmatprep.subr.bf16.mxu1 %v8255_v0  ;;  %v5859_v15 = vld [vmem:[%s8250_s0 + $0x558] ss:$52 sps:$4 sm:$0xff]  }
  0xcc   :  { %3792 = vmatprep.subr.bf16.mxu0 %v8255_v0  ;;  %3563 = vmatpush2.bf16.msra.mxu1 %v5874_v17  ;;  %v5860_v16 = vld [vmem:[%s8250_s0 + $0x624] ss:$52 sps:$4 sm:$0xff]  }
  0xcd   :  { %3564 = vmatprep.subr.bf16.mxu1 %v8255_v0  ;;  %v5862_v17 = vld [vmem:[%s8250_s0 + $0x5c4] ss:$52 sps:$4 sm:$0xff]  }
  0xcf   :  { %3793 = vmatpush2.bf16.msra.mxu0 %v5867_v18 }
  0xd0   :  { %3794 = vmatprep.subr.bf16.mxu0 %v8255_v0  ;;  %3565 = vmatpush2.bf16.msra.mxu1 %v5888_v21 }
  0xd1   :  { %3159 = vmatmul.mubr.bf16.gmra.mxu1 %v5800_v19  ;;  %3383 = vmatmul.mubr.bf16.gmra.mxu0 %v5801_v20 }
  0xd2   :  { %3166 = vmatprep.mubr.bf16.mxu1 %v5802_v22  ;;  %3390 = vmatprep.mubr.bf16.mxu0 %v5804_v23 }
  0xd3   :  { %3795 = vmatpush2.bf16.msra.mxu0 %v5875_v24  ;;  %3566 = vmatprep.subr.bf16.mxu1 %v8255_v0 }
  0xd4   :  { %3796 = vmatprep.subr.bf16.mxu0 %v8255_v0  ;;  %3567 = vmatpush2.bf16.msra.mxu1 %v5896_v25 }
  0xd5   :  { %3568 = vmatprep.subr.bf16.mxu1 %v8255_v0 }
  0xd7   :  { %3797 = vmatpush2.bf16.msra.mxu0 %v5889_v26  ;;  %v5864_v26 = vld [vmem:[%s8250_s0 + $0x620] ss:$52 sps:$4 sm:$0xff]  }
  0xd8   :  { %3798 = vmatprep.subr.bf16.mxu0 %v8255_v0  ;;  %3569 = vmatpush2.bf16.msra.mxu1 %v5910_v27  ;;  %v5865_v27 = vld [vmem:[%s8250_s0 + $0x5c0] ss:$52 sps:$4 sm:$0xff]  }
  0xd9   :  { %3167 = vmatmul.mubr.bf16.gmra.mxu1 %v5806_v28  ;;  %3391 = vmatmul.mubr.bf16.gmra.mxu0 %v5807_v29  ;;  %v5870_v28 = vld [vmem:[%s8250_s0 + $0x68c] ss:$52 sps:$4 sm:$0xff]  }
  0xda   :  { %3174 = vmatprep.mubr.bf16.mxu1 %v5810_v30  ;;  %3398 = vmatprep.mubr.bf16.mxu0 %v5812_v31  ;;  %v5873_v29 = vld [vmem:[%s8250_s0 + $0x62c] ss:$52 sps:$4 sm:$0xff]  }
  0xdb   :  { %3799 = vmatpush2.bf16.msra.mxu0 %v5903_v32  ;;  %3570 = vmatprep.subr.bf16.mxu1 %v8255_v0 }
  0xdc   :  { %3800 = vmatprep.subr.bf16.mxu0 %v8255_v0  ;;  %3571 = vmatpush2.bf16.msra.mxu1 %v5918_v33 }
  0xdd   :  { %3572 = vmatprep.subr.bf16.mxu1 %v8255_v0 }
  0xdf   :  { %3801 = vmatpush2.bf16.msra.mxu0 %v5911_v34 }
  0xe0   :  { %3802 = vmatprep.subr.bf16.mxu0 %v8255_v0  ;;  %3573 = vmatpush2.bf16.msra.mxu1 %v5931_v42 }
  0xe1   :  { %3175 = vmatmul.mubr.bf16.gmra.mxu1 %v5814_v35  ;;  %3399 = vmatmul.mubr.bf16.gmra.mxu0 %v5815_v36 }
  0xe2   :  { %3182 = vmatprep.mubr.bf16.mxu1 %v5817_v37  ;;  %3406 = vmatprep.mubr.bf16.mxu0 %v5819_v38  ;;  %v5868_v38 = vld [vmem:[%s8250_s0 + $0x688] ss:$52 sps:$4 sm:$0xff]  }
  0xe3   :  { %3803 = vmatpush2.bf16.msra.mxu0 %v5925_v39  ;;  %4006 = vmatprep.subr.bf16.mxu1 %v8255_v0  ;;  %v5871_v39 = vld [vmem:[%s8250_s0 + $0x628] ss:$52 sps:$4 sm:$0xff]  }
  0xe4   :  { %3804 = vmatprep.subr.bf16.mxu0 %v8255_v0 }
  0xe7   :  { %3805 = vmatpush2.bf16.msra.mxu0 %v5932_v45 }
  0xe8   :  { %5490 = vmatprep.subr.bf16.mxu0 %v8253_v52 }
  0xe9   :  { %3183 = vmatmul.mubr.bf16.gmra.mxu1 %v5821_v40  ;;  %3407 = vmatmul.mubr.bf16.gmra.mxu0 %v5822_v41  ;;  %v5878_v40 = vld [vmem:[%s8250_s0 + $0x6f4] ss:$52 sps:$4 sm:$0xff]  }
  0xea   :  { %3190 = vmatprep.mubr.bf16.mxu1 %v5824_v43  ;;  %3414 = vmatprep.mubr.bf16.mxu0 %v5826_v44  ;;  %v5881_v41 = vld [vmem:[%s8250_s0 + $0x694] ss:$52 sps:$4 sm:$0xff]  }
  0xf1   :  { %3191 = vmatmul.mubr.bf16.gmra.mxu1 %v5828_v46  ;;  %3415 = vmatmul.mubr.bf16.gmra.mxu0 %v5829_v47 }
  0xf2   :  { %3198 = vmatprep.mubr.bf16.mxu1 %v5832_v48  ;;  %3422 = vmatprep.mubr.bf16.mxu0 %v5834_v49 }
  0xf9   :  { %3199 = vmatmul.mubr.bf16.gmra.mxu1 %v5836_v50  ;;  %3423 = vmatmul.mubr.bf16.gmra.mxu0 %v5837_v51  ;;  %v5876_v50 = vld [vmem:[%s8250_s0 + $0x6f0] ss:$52 sps:$4 sm:$0xff]  }
  0xfa   :  { %3206 = vmatprep.mubr.bf16.mxu1 %v5838_v53  ;;  %3430 = vmatprep.mubr.bf16.mxu0 %v5840_v54  ;;  %v5879_v51 = vld [vmem:[%s8250_s0 + $0x690] ss:$52 sps:$4 sm:$0xff]  }
  0xfb   :  { %v5884_v53 = vld [vmem:[%s8250_s0 + $0x75c] ss:$52 sps:$4 sm:$0xff]  }
  0xfc   :  { %v5887_v54 = vld [vmem:[%s8250_s0 + $0x6fc] ss:$52 sps:$4 sm:$0xff]  }
 0x101   :  { %v6867_v59 = vpop.f32.mrf.mxu0  ;;  %v6869_v60 = vpop.f32.mrf.mxu1  ;;  %3207 = vmatmul.mubr.bf16.gmra.mxu1 %v5843_v55  ;;  %3431 = vmatmul.mubr.bf16.gmra.mxu0 %v5844_v56 }
 0x102   :  { %3214 = vmatprep.mubr.bf16.mxu1 %v5846_v57  ;;  %3438 = vmatprep.mubr.bf16.mxu0 %v5848_v58 }
 0x103   :  { %v2882_v61 = vpop.f32.mrf.mxu0  ;;  %v2986_v62 = vpop.f32.mrf.mxu1 }
 0x105   :  { %v6871_v63 = vpop.f32.mrf.mxu0  ;;  %v6873_v1 = vpop.f32.mrf.mxu1 }
 0x107   :  { %v2885_v6 = vpop.f32.mrf.mxu0  ;;  %v2989_v7 = vpop.f32.mrf.mxu1 }
 0x108   :  { %v5892_v6 = vld [vmem:[%s8250_s0 + $0x7c4] ss:$52 sps:$4 sm:$0xff]  }
 0x109   :  { %v6887_v8 = vpop.f32.mrf.mxu0  ;;  %v6889_v9 = vpop.f32.mrf.mxu1  ;;  %3215 = vmatmul.mubr.bf16.gmra.mxu1 %v5850_v2  ;;  %3439 = vmatmul.mubr.bf16.gmra.mxu0 %v5851_v3  ;;  %v5895_v7 = vld [vmem:[%s8250_s0 + $0x764] ss:$52 sps:$4 sm:$0xff]  }
 0x10a   :  { %3222 = vmatprep.mubr.bf16.mxu1 %v5854_v4  ;;  %3446 = vmatprep.mubr.bf16.mxu0 %v5856_v5  ;;  %v5882_v4 = vld [vmem:[%s8250_s0 + $0x758] ss:$52 sps:$4 sm:$0xff]  }
 0x10b   :  { %v2890_v10 = vpop.f32.mrf.mxu0  ;;  %v2994_v11 = vpop.f32.mrf.mxu1  ;;  %v5885_v5 = vld [vmem:[%s8250_s0 + $0x6f8] ss:$52 sps:$4 sm:$0xff]  }
 0x10d   :  { %v6891_v12 = vpop.f32.mrf.mxu0  ;;  %v6893_v13 = vpop.f32.mrf.mxu1 }
 0x10f   :  { %v2893_v18 = vpop.f32.mrf.mxu0  ;;  %v2997_v19 = vpop.f32.mrf.mxu1 }
 0x111   :  { %v6907_v20 = vpop.f32.mrf.mxu0  ;;  %v6909_v21 = vpop.f32.mrf.mxu1  ;;  %3223 = vmatmul.mubr.bf16.gmra.mxu1 %v5858_v14  ;;  %3447 = vmatmul.mubr.bf16.gmra.mxu0 %v5859_v15 }
 0x112   :  { %3230 = vmatprep.mubr.bf16.mxu1 %v5860_v16  ;;  %3454 = vmatprep.mubr.bf16.mxu0 %v5862_v17 }
 0x113   :  { %v2898_v22 = vpop.f32.mrf.mxu0  ;;  %v3002_v23 = vpop.f32.mrf.mxu1 }
 0x114   :  { %v5890_v22 = vld [vmem:[%s8250_s0 + $0x7c0] ss:$52 sps:$4 sm:$0xff]  }
 0x115   :  { %v6911_v24 = vpop.f32.mrf.mxu0  ;;  %v6913_v25 = vpop.f32.mrf.mxu1  ;;  %v5893_v23 = vld [vmem:[%s8250_s0 + $0x760] ss:$52 sps:$4 sm:$0xff]  }
 0x117   :  { %v2901_v30 = vpop.f32.mrf.mxu0  ;;  %v3005_v31 = vpop.f32.mrf.mxu1 }
 0x119   :  { %v6927_v32 = vpop.f32.mrf.mxu0  ;;  %v6929_v33 = vpop.f32.mrf.mxu1  ;;  %3231 = vmatmul.mubr.bf16.gmra.mxu1 %v5864_v26  ;;  %3455 = vmatmul.mubr.bf16.gmra.mxu0 %v5865_v27  ;;  %v5899_v26 = vld [vmem:[%s8250_s0 + $0x82c] ss:$52 sps:$4 sm:$0xff]  }
 0x11a   :  { %3238 = vmatprep.mubr.bf16.mxu1 %v5870_v28  ;;  %3462 = vmatprep.mubr.bf16.mxu0 %v5873_v29  ;;  %v5902_v27 = vld [vmem:[%s8250_s0 + $0x7cc] ss:$52 sps:$4 sm:$0xff]  }
 0x11b   :  { %v2906_v34 = vpop.f32.mrf.mxu0  ;;  %v3010_v35 = vpop.f32.mrf.mxu1 }
 0x11d   :  { %v6931_v36 = vpop.f32.mrf.mxu0  ;;  %v6933_v37 = vpop.f32.mrf.mxu1 }
 0x11f   :  { %v2909_v42 = vpop.f32.mrf.mxu0  ;;  %v3013_v43 = vpop.f32.mrf.mxu1 }
 0x120   :  { %v5906_v42 = vld [vmem:[%s8250_s0 + $0x894] ss:$52 sps:$4 sm:$0xff]  }
 0x121   :  { %v6947_v44 = vpop.f32.mrf.mxu0  ;;  %v6949_v45 = vpop.f32.mrf.mxu1  ;;  %3239 = vmatmul.mubr.bf16.gmra.mxu1 %v5868_v38  ;;  %3463 = vmatmul.mubr.bf16.gmra.mxu0 %v5871_v39  ;;  %v5909_v43 = vld [vmem:[%s8250_s0 + $0x834] ss:$52 sps:$4 sm:$0xff]  }
 0x122   :  { %3246 = vmatprep.mubr.bf16.mxu1 %v5878_v40  ;;  %3470 = vmatprep.mubr.bf16.mxu0 %v5881_v41  ;;  %v5897_v40 = vld [vmem:[%s8250_s0 + $0x828] ss:$52 sps:$4 sm:$0xff]  }
 0x123   :  { %v2914_v46 = vpop.f32.mrf.mxu0  ;;  %v3018_v47 = vpop.f32.mrf.mxu1  ;;  %v5900_v41 = vld [vmem:[%s8250_s0 + $0x7c8] ss:$52 sps:$4 sm:$0xff]  }
 0x125   :  { %v6951_v48 = vpop.f32.mrf.mxu0  ;;  %v6953_v49 = vpop.f32.mrf.mxu1 }
 0x127   :  { %v2917_v55 = vpop.f32.mrf.mxu0  ;;  %v3021_v56 = vpop.f32.mrf.mxu1 }
 0x129   :  { %v6967_v57 = vpop.f32.mrf.mxu0  ;;  %v6969_v58 = vpop.f32.mrf.mxu1  ;;  %3247 = vmatmul.mubr.bf16.gmra.mxu1 %v5876_v50  ;;  %3471 = vmatmul.mubr.bf16.gmra.mxu0 %v5879_v51 }
 0x12a   :  { %3254 = vmatprep.mubr.bf16.mxu1 %v5884_v53  ;;  %3478 = vmatprep.mubr.bf16.mxu0 %v5887_v54 }
 0x12b   :  { %v2922_v61 = vpop.f32.mrf.mxu0  ;;  %v3026_v62 = vpop.f32.mrf.mxu1 }
 0x12c   :  { %v5904_v61 = vld [vmem:[%s8250_s0 + $0x890] ss:$52 sps:$4 sm:$0xff]  }
 0x12d   :  { %v6971_v2 = vpop.f32.mrf.mxu0  ;;  %v6973_v3 = vpop.f32.mrf.mxu1  ;;  %v5907_v62 = vld [vmem:[%s8250_s0 + $0x830] ss:$52 sps:$4 sm:$0xff]  }
 0x12f   :  { %v2925_v10 = vpop.f32.mrf.mxu0  ;;  %v3029_v11 = vpop.f32.mrf.mxu1 }
 0x131   :  { %v6987_v14 = vpop.f32.mrf.mxu0  ;;  %v6989_v15 = vpop.f32.mrf.mxu1  ;;  %3255 = vmatmul.mubr.bf16.gmra.mxu1 %v5882_v4  ;;  %3479 = vmatmul.mubr.bf16.gmra.mxu0 %v5885_v5  ;;  %v5914_v4 = vld [vmem:[%s8250_s0 + $0x8fc] ss:$52 sps:$4 sm:$0xff]  }
 0x132   :  { %3262 = vmatprep.mubr.bf16.mxu1 %v5892_v6  ;;  %3486 = vmatprep.mubr.bf16.mxu0 %v5895_v7  ;;  %v5917_v5 = vld [vmem:[%s8250_s0 + $0x89c] ss:$52 sps:$4 sm:$0xff]  }
 0x133   :  { %v2930_v16 = vpop.f32.mrf.mxu0  ;;  %v3034_v17 = vpop.f32.mrf.mxu1 }
 0x135   :  { %v6991_v18 = vpop.f32.mrf.mxu0  ;;  %v6993_v19 = vpop.f32.mrf.mxu1 }
 0x137   :  { %v2933_v28 = vpop.f32.mrf.mxu0  ;;  %v3037_v29 = vpop.f32.mrf.mxu1 }
 0x138   :  { %v5921_v28 = vld [vmem:[%s8250_s0 + $0x964] ss:$52 sps:$4 sm:$0xff]  }
 0x139   :  { %v7007_v30 = vpop.f32.mrf.mxu0  ;;  %v7009_v31 = vpop.f32.mrf.mxu1  ;;  %3263 = vmatmul.mubr.bf16.gmra.mxu1 %v5890_v22  ;;  %3487 = vmatmul.mubr.bf16.gmra.mxu0 %v5893_v23  ;;  %v5924_v29 = vld [vmem:[%s8250_s0 + $0x904] ss:$52 sps:$4 sm:$0xff]  }
 0x13a   :  { %3270 = vmatprep.mubr.bf16.mxu1 %v5899_v26  ;;  %3494 = vmatprep.mubr.bf16.mxu0 %v5902_v27  ;;  %v5912_v26 = vld [vmem:[%s8250_s0 + $0x8f8] ss:$52 sps:$4 sm:$0xff]  }
 0x13b   :  { %v2938_v34 = vpop.f32.mrf.mxu0  ;;  %v3042_v35 = vpop.f32.mrf.mxu1  ;;  %v5915_v27 = vld [vmem:[%s8250_s0 + $0x898] ss:$52 sps:$4 sm:$0xff]  }
 0x13d   :  { %v7011_v38 = vpop.f32.mrf.mxu0  ;;  %v7013_v39 = vpop.f32.mrf.mxu1 }
 0x13f   :  { %v2941_v46 = vpop.f32.mrf.mxu0  ;;  %v3045_v47 = vpop.f32.mrf.mxu1 }
 0x140   :  { %v352_v46 = vld [vmem:[%s8250_s0 + $0x9c8] sm:$0xff] }
 0x141   :  { %v7027_v50 = vpop.f32.mrf.mxu0  ;;  %v7029_v51 = vpop.f32.mrf.mxu1  ;;  %3271 = vmatmul.mubr.bf16.gmra.mxu1 %v5897_v40  ;;  %3495 = vmatmul.mubr.bf16.gmra.mxu0 %v5900_v41 }
 0x142   :  { %3278 = vmatprep.mubr.bf16.mxu1 %v5906_v42  ;;  %3502 = vmatprep.mubr.bf16.mxu0 %v5909_v43 }
 0x143   :  { %v2946_v53 = vpop.f32.mrf.mxu0  ;;  %v3050_v54 = vpop.f32.mrf.mxu1 }
 0x144   :  { %v5919_v54 = vld [vmem:[%s8250_s0 + $0x960] ss:$52 sps:$4 sm:$0xff]  }
 0x145   :  { %v7031_v55 = vpop.f32.mrf.mxu0  ;;  %v7033_v56 = vpop.f32.mrf.mxu1 }
 0x147   :  { %v2949_v6 = vpop.f32.mrf.mxu0  ;;  %v3053_v7 = vpop.f32.mrf.mxu1 }
 0x149   :  { %v7047_v10 = vpop.f32.mrf.mxu0  ;;  %v7049_v11 = vpop.f32.mrf.mxu1  ;;  %3279 = vmatmul.mubr.bf16.gmra.mxu1 %v5904_v61  ;;  %3503 = vmatmul.mubr.bf16.gmra.mxu0 %v5907_v62  ;;  %v5922_v61 = vld [vmem:[%s8250_s0 + $0x900] ss:$52 sps:$4 sm:$0xff]   ;;  %v5085_v62 = vcombine.high %v352_v46, %v352_v46 }
 0x14a   :  { %3286 = vmatprep.mubr.bf16.mxu1 %v5914_v4  ;;  %3510 = vmatprep.mubr.bf16.mxu0 %v5917_v5  ;;  %v5930_v4 = vld [vmem:[%s8250_s0 + $0x96c] ss:$52 sps:$4 sm:$0xff]  }
 0x14b   :  { %v2954_v16 = vpop.f32.mrf.mxu0  ;;  %v3058_v17 = vpop.f32.mrf.mxu1 }
 0x14d   :  { %v7051_v22 = vpop.f32.mrf.mxu0  ;;  %v7053_v23 = vpop.f32.mrf.mxu1 }
 0x14f   :  { %v2957_v34 = vpop.f32.mrf.mxu0  ;;  %v3061_v35 = vpop.f32.mrf.mxu1 }
 0x150   :  { %v5084_v35 = vcombine.low %v352_v46, %v352_v46 }
 0x151   :  { %v7067_v40 = vpop.f32.mrf.mxu0  ;;  %v7069_v41 = vpop.f32.mrf.mxu1  ;;  %3287 = vmatmul.mubr.bf16.gmra.mxu1 %v5912_v26  ;;  %3511 = vmatmul.mubr.bf16.gmra.mxu0 %v5915_v27  ;;  %v353_v27 = vld [vmem:[%s8250_s0 + $0x9d0] sm:$0xff] }
 0x152   :  { %3294 = vmatprep.mubr.bf16.mxu1 %v5921_v28  ;;  %3518 = vmatprep.mubr.bf16.mxu0 %v5924_v29  ;;  %v7097_v28 = vld [vmem:[%s8251_s2] ss:$0 sm:$0xff] }
 0x153   :  { %v2962_v42 = vpop.f32.mrf.mxu0  ;;  %v3066_v43 = vpop.f32.mrf.mxu1 }
 0x154   :  { %v5928_v42 = vld [vmem:[%s8250_s0 + $0x968] ss:$52 sps:$4 sm:$0xff]   ;;  %v5087_v43 = vcombine.high %v353_v27, %v353_v27 }
 0x155   :  { %v7074_v47 = vpop.f32.mrf.mxu0  ;;  %v7076_v53 = vpop.f32.mrf.mxu1 }
 0x157   :  { %v2965_v5 = vpop.f32.mrf.mxu0  ;;  %v3069_v6 = vpop.f32.mrf.mxu1 }
 0x159   :  { %v7087_v7 = vpop.f32.mrf.mxu0  ;;  %v7089_v16 = vpop.f32.mrf.mxu1  ;;  %3295 = vmatmul.mubr.bf16.gmra.mxu1 %v5919_v54  ;;  %3519 = vmatmul.mubr.bf16.gmra.mxu0 %v5922_v61  ;;  %v5937_v54 = vld [vmem:[%s8250_s0 + $0x1c] ss:$52 sps:$4 sm:$0xff]  }
 0x15a   :  { %8257 = vst [vmem:[#allocation2_spill] sm:$0xff] %v7089_v16  ;;  %3302 = vmatprep.mubr.bf16.mxu1 %v5085_v62  ;;  %3526 = vmatprep.mubr.bf16.mxu0 %v5930_v4  ;;  %v2881_v4 = vadd.f32 %v7097_v28, %v6867_v59  ;;  %v5935_v59 = vld [vmem:[%s8250_s0 + $0x18] ss:$52 sps:$4 sm:$0xff]  }
 0x15b   :  { %v2970_v17 = vpop.f32.mrf.mxu0  ;;  %v3074_v26 = vpop.f32.mrf.mxu1 }
 0x15d   :  { %v7099_v29 = vpop.f32.mrf.mxu0  ;;  %v3075_v34 = vpop.f32.mrf.mxu1 }
 0x15e   :  { %v2884_v34 = vadd.f32 %v7097_v28, %v6871_v63  ;;  %v5944_v63 = vld [vmem:[%s8249_s1 + $0x2b8] sm:$0xff]  }
 0x15f   :  { %v2973_v61 = vpop.f32.mrf.mxu0  ;;  %v3076_v62 = vpop.f32.mrf.mxu1 }
 0x160   :  { %v5086_v62 = vcombine.low %v353_v27, %v353_v27  ;;  %v2889_v27 = vadd.f32 %v7097_v28, %v6887_v8  ;;  %v8258_v8 = vmov 0  }
 0x161   :  { %v7109_v5 = vpop.f32.mrf.mxu0  ;;  %v3112_v6 = vpop.f32.mrf.mxu1  ;;  %3303 = vmatmul.mubr.bf16.gmra.mxu1 %v5084_v35  ;;  %3527 = vmatmul.mubr.bf16.gmra.mxu0 %v5928_v42  ;;  %v5940_v35 = vld [vmem:[%s8250_s0 + $0x84] ss:$52 sps:$4 sm:$0xff]  }
 0x162   :  { %v3113_v46 = vadd.f32 %v3112_v6, %v2881_v4  ;;  %3534 = vmatprep.mubr.bf16.mxu0 %v5087_v43  ;;  %3574 = vmatprep.mubr.bf16.mxu1 %v5937_v54  ;;  %v5943_v42 = vld [vmem:[%s8250_s0 + $0x24] ss:$52 sps:$4 sm:$0xff]  }
 0x163   :  { %v2978_v17 = vpop.f32.mrf.mxu0  ;;  %v3114_v26 = vpop.f32.mrf.mxu1 }
 0x165   :  { %v7113_v52 = vpop.f32.mrf.mxu0  ;;  %v3115_v61 = vpop.f32.mrf.mxu1 }
 0x166   :  { %v3116_v0 = vadd.f32 %v3115_v61, %v2884_v34 }
 0x167   :  { %v2981_v43 = vpop.f32.mrf.mxu0  ;;  %v3117_v54 = vpop.f32.mrf.mxu1 }
 0x168   :  { %v5952_v43 = vld [vmem:[%s8249_s1 + $0x2b0] sm:$0xff]   ;;  %v2892_v54 = vadd.f32 %v7097_v28, %v6891_v12  ;;  %v5948_v12 = vld [vmem:[%s8250_s0 + $0xec] ss:$52 sps:$4 sm:$0xff]  }
 0x169   :  { %v3120_v4 = vpop.f32.mrf.mxu1  ;;  %v3344_v6 = vpop.f32.mrf.mxu0  ;;  %3535 = vmatmul.mubr.bf16.gmra.mxu0 %v5086_v62  ;;  %3575 = vmatmul.mubr.bf16.vlgmr.msra.gmra.mxu1 %v5935_v59  ;;  %v5941_v59 = vld [vmem:[%s8250_s0 + $0x20] ss:$52 sps:$4 sm:$0xff]  }
 0x16a   :  { %v3121_v17 = vadd.f32 %v3120_v4, %v2889_v27  ;;  %v7129_v26 = vadd.f32 %v3344_v6, %v3113_v46  ;;  %3582 = vmatprep.mubr.bf16.mxu1 %v5940_v35  ;;  %3806 = vmatprep.mubr.bf16.mxu0 %v5943_v42  ;;  %v5938_v46 = vld [vmem:[%s8250_s0 + $0x80] ss:$52 sps:$4 sm:$0xff]  }
 0x16b   :  { %v3122_v34 = vpop.f32.mrf.mxu1  ;;  %v3346_v61 = vpop.f32.mrf.mxu0  ;;  %4007 = vmatpush1.bf16.msra.mxu1 %v5944_v63  ;;  %v5945_v63 = vld [vmem:[%s8249_s1 + $0x318] sm:$0xff]   ;;  %v5951_v6 = vld [vmem:[%s8250_s0 + $0x8c] ss:$52 sps:$4 sm:$0xff]  }
 0x16c   :  { %4008 = vmatprep.subr.bf16.mxu1 %v8258_v8 }
 0x16d   :  { %v3123_v16 = vpop.f32.mrf.mxu1  ;;  %v3347_v62 = vpop.f32.mrf.mxu0 }
 0x16e   :  { %v3124_v35 = vadd.f32 %v3123_v16, %v2892_v54  ;;  %v7143_v42 = vadd.f32 %v3347_v62, %v3116_v0  ;;  %v5965_v0 = vld [vmem:[%s8249_s1 + $0x2a8] sm:$0xff]   ;;  %v2897_v16 = vadd.f32 %v7097_v28, %v6907_v20  ;;  %v5972_v20 = vld [vmem:[%s8249_s1 + $0x2a0] sm:$0xff]  }
 0x16f   :  { %v3125_v27 = vpop.f32.mrf.mxu1  ;;  %v3349_v4 = vpop.f32.mrf.mxu0  ;;  %4009 = vmatpush1.bf16.msra.mxu1 %v5952_v43  ;;  %v5986_v43 = vld [vmem:[%s8249_s1 + $0x310] sm:$0xff]  }
 0x170   :  { %4010 = vmatprep.subr.bf16.mxu1 %v8258_v8 }
 0x171   :  { %v3128_v34 = vpop.f32.mrf.mxu1  ;;  %v3352_v61 = vpop.f32.mrf.mxu0  ;;  %3583 = vmatmul.mubr.bf16.gmra.mxu1 %v5938_v46  ;;  %3807 = vmatmul.mubr.bf16.vlgmr.msra.gmra.mxu0 %v5941_v59  ;;  %v2900_v46 = vadd.f32 %v7097_v28, %v6911_v24  ;;  %v5955_v24 = vld [vmem:[%s8250_s0 + $0x154] ss:$52 sps:$4 sm:$0xff]  }
 0x172   :  { %v3129_v54 = vadd.f32 %v3128_v34, %v2897_v16  ;;  %v7160_v62 = vadd.f32 %v3352_v61, %v3121_v17  ;;  %5491 = vmatpush3.bf16.msra.mxu0 %v5945_v63  ;;  %3590 = vmatprep.mubr.bf16.mxu1 %v5948_v12  ;;  %v8259_v17 = vmov 0.0   ;;  %v5946_v12 = vld [vmem:[%s8250_s0 + $0xe8] ss:$52 sps:$4 sm:$0xff]  }
 0x173   :  { %v3130_v27 = vpop.f32.mrf.mxu1  ;;  %v3354_v4 = vpop.f32.mrf.mxu0  ;;  %3814 = vmatprep.mubr.bf16.mxu0 %v5951_v6  ;;  %4011 = vmatpush1.bf16.msra.mxu1 %v5965_v0  ;;  %v5949_v6 = vld [vmem:[%s8250_s0 + $0x88] ss:$52 sps:$4 sm:$0xff]  }
 0x174   :  { %4012 = vmatprep.subr.bf16.mxu1 %v8258_v8  ;;  %5492 = vmatprep.subr.bf16.mxu0 %v8259_v17  ;;  %v5958_v34 = vld [vmem:[%s8250_s0 + $0xf4] ss:$52 sps:$4 sm:$0xff]   ;;  %v5985_v4 = vld [vmem:[%s8249_s1 + $0x298] sm:$0xff]  }
 0x175   :  { %v3131_v59 = vpop.f32.mrf.mxu1  ;;  %v3355_v63 = vpop.f32.mrf.mxu0 }
 0x176   :  { %v3132_v0 = vadd.f32 %v3131_v59, %v2900_v46  ;;  %v7178_v16 = vadd.f32 %v3355_v63, %v3124_v35  ;;  %5493 = vmatpush3.bf16.msra.mxu0 %v5986_v43  ;;  %v6027_v35 = vld [vmem:[%s8249_s1 + $0x308] sm:$0xff]   ;;  %v2905_v46 = vadd.f32 %v7097_v28, %v6927_v32  ;;  %v2908_v32 = vadd.f32 %v7097_v28, %v6931_v36  ;;  %v5961_v36 = vld [vmem:[%s8250_s0 + $0x1bc] ss:$52 sps:$4 sm:$0xff]  }
 0x177   :  { %v3133_v61 = vpop.f32.mrf.mxu1  ;;  %v3357_v27 = vpop.f32.mrf.mxu0  ;;  %4013 = vmatpush1.bf16.msra.mxu1 %v5972_v20  ;;  %5494 = vmatprep.subr.bf16.mxu0 %v8259_v17 }
 0x178   :  { %8260 = vst [vmem:[#allocation3_spill] sm:$0xff] %v7178_v16  ;;  %4014 = vmatprep.subr.bf16.mxu1 %v8258_v8  ;;  %v5993_v16 = vld [vmem:[%s8249_s1 + $0x290] sm:$0xff]  }
 0x179   :  { %v3136_v59 = vpop.f32.mrf.mxu1  ;;  %v3360_v43 = vpop.f32.mrf.mxu0  ;;  %3591 = vmatmul.mubr.bf16.gmra.mxu1 %v5946_v12  ;;  %3815 = vmatmul.mubr.bf16.gmra.mxu0 %v5949_v6  ;;  %v5953_v6 = vld [vmem:[%s8250_s0 + $0x150] ss:$52 sps:$4 sm:$0xff]  }
 0x17a   :  { %v3137_v20 = vadd.f32 %v3136_v59, %v2905_v46  ;;  %v7196_v63 = vadd.f32 %v3360_v43, %v3129_v54  ;;  %3598 = vmatprep.mubr.bf16.mxu1 %v5955_v24  ;;  %3822 = vmatprep.mubr.bf16.mxu0 %v5958_v34  ;;  %v5956_v24 = vld [vmem:[%s8250_s0 + $0xf0] ss:$52 sps:$4 sm:$0xff]   ;;  %v6006_v43 = vld [vmem:[%s8249_s1 + $0x288] sm:$0xff]  }
 0x17b   :  { %v3138_v61 = vpop.f32.mrf.mxu1  ;;  %v3362_v27 = vpop.f32.mrf.mxu0  ;;  %4015 = vmatpush1.bf16.msra.mxu1 %v5985_v4  ;;  %5495 = vmatpush3.bf16.msra.mxu0 %v6027_v35  ;;  %v5964_v35 = vld [vmem:[%s8250_s0 + $0x15c] ss:$52 sps:$4 sm:$0xff]  }
 0x17c   :  { %4016 = vmatprep.subr.bf16.mxu1 %v8258_v8  ;;  %5496 = vmatprep.subr.bf16.mxu0 %v8259_v17  ;;  %v2913_v61 = vadd.f32 %v7097_v28, %v6947_v44  ;;  %v2916_v44 = vadd.f32 %v7097_v28, %v6951_v48  ;;  %v5971_v48 = vld [vmem:[%s8250_s0 + $0x1c4] ss:$52 sps:$4 sm:$0xff]  }
 0x17d   :  { %v3139_v12 = vpop.f32.mrf.mxu1  ;;  %v3363_v54 = vpop.f32.mrf.mxu0 }
 0x17e   :  { %v3140_v34 = vadd.f32 %v3139_v12, %v2908_v32  ;;  %v7211_v4 = vadd.f32 %v3363_v54, %v3132_v0 }
 0x17f   :  { %v3141_v46 = vpop.f32.mrf.mxu1  ;;  %v3365_v59 = vpop.f32.mrf.mxu0  ;;  %4017 = vmatpush1.bf16.msra.mxu1 %v5993_v16 }
 0x180   :  { %4018 = vmatprep.subr.bf16.mxu1 %v8258_v8  ;;  %v6019_v46 = vld [vmem:[%s8249_s1 + $0x280] sm:$0xff]  }
 0x181   :  { %v3144_v0 = vpop.f32.mrf.mxu1  ;;  %v3368_v27 = vpop.f32.mrf.mxu0  ;;  %3599 = vmatmul.mubr.bf16.gmra.mxu1 %v5953_v6  ;;  %3823 = vmatmul.mubr.bf16.gmra.mxu0 %v5956_v24  ;;  %v5962_v24 = vld [vmem:[%s8250_s0 + $0x158] ss:$52 sps:$4 sm:$0xff]  }
 0x182   :  { %v3145_v32 = vadd.f32 %v3144_v0, %v2913_v61  ;;  %v7225_v12 = vadd.f32 %v3368_v27, %v3137_v20  ;;  %3606 = vmatprep.mubr.bf16.mxu1 %v5961_v36  ;;  %3830 = vmatprep.mubr.bf16.mxu0 %v5964_v35  ;;  %v5959_v20 = vld [vmem:[%s8250_s0 + $0x1b8] ss:$52 sps:$4 sm:$0xff]  }
 0x183   :  { %v3146_v54 = vpop.f32.mrf.mxu1  ;;  %v3370_v16 = vpop.f32.mrf.mxu0  ;;  %4019 = vmatpush1.bf16.msra.mxu1 %v6006_v43  ;;  %v5968_v43 = vld [vmem:[%s8250_s0 + $0x224] ss:$52 sps:$4 sm:$0xff]  }
 0x184   :  { %4020 = vmatprep.subr.bf16.mxu1 %v8258_v8  ;;  %v6026_v27 = vld [vmem:[%s8249_s1 + $0x2f8] sm:$0xff]   ;;  %v2921_v54 = vadd.f32 %v7097_v28, %v6967_v57  ;;  %v2924_v57 = vadd.f32 %v7097_v28, %v6971_v2  ;;  %v5978_v2 = vld [vmem:[%s8250_s0 + $0x22c] ss:$52 sps:$4 sm:$0xff]  }
 0x185   :  { %v3147_v59 = vpop.f32.mrf.mxu1  ;;  %v3371_v6 = vpop.f32.mrf.mxu0 }
 0x186   :  { %v3148_v36 = vadd.f32 %v3147_v59, %v2916_v44  ;;  %v7239_v35 = vadd.f32 %v3371_v6, %v3140_v34  ;;  %v6074_v34 = vld [vmem:[%s8249_s1 + $0x300] sm:$0xff]  }
 0x187   :  { %v3149_v61 = vpop.f32.mrf.mxu1  ;;  %v3373_v0 = vpop.f32.mrf.mxu0  ;;  %4021 = vmatpush1.bf16.msra.mxu1 %v6019_v46  ;;  %5497 = vmatpush3.bf16.msra.mxu0 %v6074_v34  ;;  %v5975_v34 = vld [vmem:[%s8250_s0 + $0x28c] ss:$52 sps:$4 sm:$0xff]  }
 0x188   :  { %4022 = vmatprep.subr.bf16.mxu1 %v8258_v8  ;;  %v6040_v0 = vld [vmem:[%s8249_s1 + $0x2f0] sm:$0xff]  }
 0x189   :  { %v3152_v16 = vpop.f32.mrf.mxu1  ;;  %v3376_v44 = vpop.f32.mrf.mxu0  ;;  %3607 = vmatmul.mubr.bf16.gmra.mxu1 %v5959_v20  ;;  %3831 = vmatmul.mubr.bf16.gmra.mxu0 %v5962_v24 }
 0x18a   :  { %v3153_v59 = vadd.f32 %v3152_v16, %v2921_v54  ;;  %v7256_v6 = vadd.f32 %v3376_v44, %v3145_v32  ;;  %3614 = vmatprep.mubr.bf16.mxu1 %v5968_v43  ;;  %3838 = vmatprep.mubr.bf16.mxu0 %v5971_v48  ;;  %v5966_v32 = vld [vmem:[%s8250_s0 + $0x220] ss:$52 sps:$4 sm:$0xff]   ;;  %v6047_v44 = vld [vmem:[%s8249_s1 + $0x2e8] sm:$0xff]  }
 0x18b   :  { %v3154_v46 = vpop.f32.mrf.mxu1  ;;  %v3378_v61 = vpop.f32.mrf.mxu0  ;;  %4023 = vmatpush2.bf16.msra.mxu1 %v6026_v27  ;;  %v5969_v43 = vld [vmem:[%s8250_s0 + $0x1c0] ss:$52 sps:$4 sm:$0xff]  }
 0x18c   :  { %4024 = vmatprep.subr.bf16.mxu1 %v8258_v8  ;;  %v2929_v46 = vadd.f32 %v7097_v28, %v6987_v14  ;;  %v2932_v14 = vadd.f32 %v7097_v28, %v6991_v18  ;;  %v5984_v18 = vld [vmem:[%s8250_s0 + $0x294] ss:$52 sps:$4 sm:$0xff]  }
 0x18d   :  { %v3155_v20 = vpop.f32.mrf.mxu1  ;;  %v3379_v24 = vpop.f32.mrf.mxu0 }
 0x18e   :  { %v3156_v48 = vadd.f32 %v3155_v20, %v2924_v57  ;;  %v7270_v27 = vadd.f32 %v3379_v24, %v3148_v36 }
 0x18f   :  { %v3157_v54 = vpop.f32.mrf.mxu1  ;;  %v3381_v16 = vpop.f32.mrf.mxu0  ;;  %4025 = vmatpush2.bf16.msra.mxu1 %v6040_v0 }
 0x190   :  { %4026 = vmatprep.subr.bf16.mxu1 %v8258_v8  ;;  %v6060_v54 = vld [vmem:[%s8249_s1 + $0x2e0] sm:$0xff]  }
 0x191   :  { %v3160_v36 = vpop.f32.mrf.mxu1  ;;  %v3384_v61 = vpop.f32.mrf.mxu0  ;;  %3615 = vmatmul.mubr.bf16.gmra.mxu1 %v5966_v32  ;;  %3839 = vmatmul.mubr.bf16.gmra.mxu0 %v5969_v43  ;;  %v5976_v43 = vld [vmem:[%s8250_s0 + $0x228] ss:$52 sps:$4 sm:$0xff]  }
 0x192   :  { %v3161_v57 = vadd.f32 %v3160_v36, %v2929_v46  ;;  %v7284_v20 = vadd.f32 %v3384_v61, %v3153_v59  ;;  %3622 = vmatprep.mubr.bf16.mxu1 %v5975_v34  ;;  %3846 = vmatprep.mubr.bf16.mxu0 %v5978_v2  ;;  %v5973_v59 = vld [vmem:[%s8250_s0 + $0x288] ss:$52 sps:$4 sm:$0xff]  }
 0x193   :  { %v3162_v24 = vpop.f32.mrf.mxu1  ;;  %v3386_v0 = vpop.f32.mrf.mxu0  ;;  %4027 = vmatpush2.bf16.msra.mxu1 %v6047_v44  ;;  %v5981_v44 = vld [vmem:[%s8250_s0 + $0x2f4] ss:$52 sps:$4 sm:$0xff]   ;;  %v6067_v61 = vld [vmem:[%s8249_s1 + $0x2d8] sm:$0xff]  }
 0x194   :  { %4028 = vmatprep.subr.bf16.mxu1 %v8258_v8  ;;  %v2937_v24 = vadd.f32 %v7097_v28, %v7007_v30  ;;  %v2940_v30 = vadd.f32 %v7097_v28, %v7011_v38  ;;  %v5992_v38 = vld [vmem:[%s8250_s0 + $0x2fc] ss:$52 sps:$4 sm:$0xff]  }
 0x195   :  { %v3163_v16 = vpop.f32.mrf.mxu1  ;;  %v3387_v32 = vpop.f32.mrf.mxu0 }
 0x196   :  { %v3164_v34 = vadd.f32 %v3163_v16, %v2932_v14  ;;  %v7298_v2 = vadd.f32 %v3387_v32, %v3156_v48 }
 0x197   :  { %v3165_v46 = vpop.f32.mrf.mxu1  ;;  %v3389_v36 = vpop.f32.mrf.mxu0  ;;  %4029 = vmatpush2.bf16.msra.mxu1 %v6060_v54 }
 0x198   :  { %4030 = vmatprep.subr.bf16.mxu1 %v8258_v8  ;;  %v6081_v46 = vld [vmem:[%s8249_s1 + $0x2d0] sm:$0xff]  }
 0x199   :  { %v3168_v48 = vpop.f32.mrf.mxu1  ;;  %v3392_v0 = vpop.f32.mrf.mxu0  ;;  %3623 = vmatmul.mubr.bf16.gmra.mxu1 %v5973_v59  ;;  %3847 = vmatmul.mubr.bf16.gmra.mxu0 %v5976_v43  ;;  %v5982_v43 = vld [vmem:[%s8250_s0 + $0x290] ss:$52 sps:$4 sm:$0xff]  }
 0x19a   :  { %v3169_v14 = vadd.f32 %v3168_v48, %v2937_v24  ;;  %v7312_v16 = vadd.f32 %v3392_v0, %v3161_v57  ;;  %3630 = vmatprep.mubr.bf16.mxu1 %v5981_v44  ;;  %3854 = vmatprep.mubr.bf16.mxu0 %v5984_v18  ;;  %v5979_v57 = vld [vmem:[%s8250_s0 + $0x2f0] ss:$52 sps:$4 sm:$0xff]   ;;  %v6088_v0 = vld [vmem:[%s8249_s1 + $0x2c8] sm:$0xff]  }
 0x19b   :  { %v3170_v32 = vpop.f32.mrf.mxu1  ;;  %v3394_v54 = vpop.f32.mrf.mxu0  ;;  %4031 = vmatpush2.bf16.msra.mxu1 %v6067_v61  ;;  %v5989_v61 = vld [vmem:[%s8250_s0 + $0x35c] ss:$52 sps:$4 sm:$0xff]  }
 0x19c   :  { %4032 = vmatprep.subr.bf16.mxu1 %v8258_v8  ;;  %v2945_v32 = vadd.f32 %v7097_v28, %v7027_v50 }
 0x19d   :  { %v3171_v36 = vpop.f32.mrf.mxu1  ;;  %v3395_v59 = vpop.f32.mrf.mxu0 }
 0x19e   :  { %v3172_v44 = vadd.f32 %v3171_v36, %v2940_v30  ;;  %v7326_v18 = vadd.f32 %v3395_v59, %v3164_v34 }
 0x19f   :  { %v3173_v24 = vpop.f32.mrf.mxu1  ;;  %v3397_v48 = vpop.f32.mrf.mxu0  ;;  %4033 = vmatpush2.bf16.msra.mxu1 %v6081_v46 }
 0x1a0   :  { %4034 = vmatprep.subr.bf16.mxu1 %v8258_v8  ;;  %v2948_v24 = vadd.f32 %v7097_v28, %v7031_v55  ;;  %v5999_v55 = vld [vmem:[%s8250_s0 + $0x364] ss:$52 sps:$4 sm:$0xff]  }
 0x1a1   :  { %v3176_v34 = vpop.f32.mrf.mxu1  ;;  %v3400_v54 = vpop.f32.mrf.mxu0  ;;  %3631 = vmatmul.mubr.bf16.gmra.mxu1 %v5979_v57  ;;  %3855 = vmatmul.mubr.bf16.gmra.mxu0 %v5982_v43  ;;  %v5987_v57 = vld [vmem:[%s8250_s0 + $0x358] ss:$52 sps:$4 sm:$0xff]  }
 0x1a2   :  { %v3177_v30 = vadd.f32 %v3176_v34, %v2945_v32  ;;  %v7340_v36 = vadd.f32 %v3400_v54, %v3169_v14  ;;  %3638 = vmatprep.mubr.bf16.mxu1 %v5989_v61  ;;  %3862 = vmatprep.mubr.bf16.mxu0 %v5992_v38  ;;  %v5990_v14 = vld [vmem:[%s8250_s0 + $0x2f8] ss:$52 sps:$4 sm:$0xff]   ;;  %v2953_v32 = vadd.f32 %v7097_v28, %v7047_v10 }
 0x1a3   :  { %v3178_v59 = vpop.f32.mrf.mxu1  ;;  %v3402_v46 = vpop.f32.mrf.mxu0  ;;  %4035 = vmatpush2.bf16.msra.mxu1 %v6088_v0  ;;  %v5996_v38 = vld [vmem:[%s8250_s0 + $0x3c4] ss:$52 sps:$4 sm:$0xff]  }
 0x1a4   :  { %4036 = vmatprep.subr.bf16.mxu1 %v8258_v8 }
 0x1a5   :  { %v3179_v50 = vpop.f32.mrf.mxu1  ;;  %v3403_v48 = vpop.f32.mrf.mxu0 }
 0x1a6   :  { %v3180_v43 = vadd.f32 %v3179_v50, %v2948_v24  ;;  %v7351_v61 = vadd.f32 %v3403_v48, %v3172_v44  ;;  %v6100_v50 = vld [vmem:[%s8249_s1 + $0x2c0] sm:$0xff]   ;;  %v2956_v48 = vadd.f32 %v7097_v28, %v7051_v22 }
 0x1a7   :  { %v3181_v8 = vpop.f32.mrf.mxu1  ;;  %v3405_v0 = vpop.f32.mrf.mxu0  ;;  %4037 = vmatpush2.bf16.msra.mxu1 %v6100_v50  ;;  %v6005_v22 = vld [vmem:[%s8250_s0 + $0x3cc] ss:$52 sps:$4 sm:$0xff]  }
 0x1a9   :  { %v3184_v34 = vpop.f32.mrf.mxu1  ;;  %v3408_v54 = vpop.f32.mrf.mxu0  ;;  %3639 = vmatmul.mubr.bf16.gmra.mxu1 %v5987_v57  ;;  %3863 = vmatmul.mubr.bf16.gmra.mxu0 %v5990_v14  ;;  %v5994_v57 = vld [vmem:[%s8250_s0 + $0x3c0] ss:$52 sps:$4 sm:$0xff]  }
 0x1aa   :  { %v3185_v59 = vadd.f32 %v3184_v34, %v2953_v32  ;;  %v7361_v44 = vadd.f32 %v3408_v54, %v3177_v30  ;;  %3646 = vmatprep.mubr.bf16.mxu1 %v5996_v38  ;;  %3870 = vmatprep.mubr.bf16.mxu0 %v5999_v55  ;;  %v5997_v30 = vld [vmem:[%s8250_s0 + $0x360] ss:$52 sps:$4 sm:$0xff]   ;;  %v2961_v34 = vadd.f32 %v7097_v28, %v7067_v40  ;;  %v6000_v40 = vld [vmem:[%s8250_s0 + $0x428] ss:$52 sps:$4 sm:$0xff]  }
 0x1ab   :  { %v3186_v46 = vpop.f32.mrf.mxu1  ;;  %v3410_v24 = vpop.f32.mrf.mxu0  ;;  %v6002_v55 = vld [vmem:[%s8250_s0 + $0x42c] ss:$52 sps:$4 sm:$0xff]  }
 0x1ad   :  { %v3187_v8 = vpop.f32.mrf.mxu1  ;;  %v3411_v10 = vpop.f32.mrf.mxu0 }
 0x1ae   :  { %v3188_v14 = vadd.f32 %v3187_v8, %v2956_v48  ;;  %v7374_v38 = vadd.f32 %v3411_v10, %v3180_v43  ;;  %v2964_v8 = vadd.f32 %v7097_v28, %v7074_v47  ;;  %v6012_v47 = vld [vmem:[%s8250_s0 + $0x434] ss:$52 sps:$4 sm:$0xff]  }
 0x1af   :  { %v3189_v0 = vpop.f32.mrf.mxu1  ;;  %v3413_v32 = vpop.f32.mrf.mxu0 }
 0x1b1   :  { %v3192_v54 = vpop.f32.mrf.mxu1  ;;  %v3416_v46 = vpop.f32.mrf.mxu0  ;;  %3647 = vmatmul.mubr.bf16.gmra.mxu1 %v5994_v57  ;;  %3871 = vmatmul.mubr.bf16.gmra.mxu0 %v5997_v30  ;;  %v6003_v57 = vld [vmem:[%s8250_s0 + $0x3c8] ss:$52 sps:$4 sm:$0xff]  }
 0x1b2   :  { %v3193_v24 = vadd.f32 %v3192_v54, %v2961_v34  ;;  %v7384_v43 = vadd.f32 %v3416_v46, %v3185_v59  ;;  %3654 = vmatprep.mubr.bf16.mxu1 %v6002_v55  ;;  %3878 = vmatprep.mubr.bf16.mxu0 %v6005_v22  ;;  %v6009_v55 = vld [vmem:[%s8250_s0 + $0x494] ss:$52 sps:$4 sm:$0xff]   ;;  %v2969_v34 = vadd.f32 %v7097_v28, %v7087_v7  ;;  %v6007_v7 = vld [vmem:[%s8250_s0 + $0x490] ss:$52 sps:$4 sm:$0xff]  }
 0x1b3   :  { %v3194_v50 = vpop.f32.mrf.mxu1  ;;  %v3418_v48 = vpop.f32.mrf.mxu0 }
 0x1b5   :  { %v3195_v10 = vpop.f32.mrf.mxu1  ;;  %v3419_v0 = vpop.f32.mrf.mxu0 }
 0x1b6   :  { %v3196_v30 = vadd.f32 %v3195_v10, %v2964_v8  ;;  %v7394_v59 = vadd.f32 %v3419_v0, %v3188_v14  ;;  %v2972_v10 = vadd.f32 %v7097_v28, %v7099_v29  ;;  %v6018_v29 = vld [vmem:[%s8250_s0 + $0x49c] ss:$52 sps:$4 sm:$0xff]  }
 0x1b7   :  { %v3197_v22 = vpop.f32.mrf.mxu1  ;;  %v3421_v32 = vpop.f32.mrf.mxu0 }
 0x1b9   :  { %v3200_v54 = vpop.f32.mrf.mxu1  ;;  %v3424_v46 = vpop.f32.mrf.mxu0  ;;  %3655 = vmatmul.mubr.bf16.gmra.mxu1 %v6000_v40  ;;  %3879 = vmatmul.mubr.bf16.gmra.mxu0 %v6003_v57  ;;  %v6010_v40 = vld [vmem:[%s8250_s0 + $0x430] ss:$52 sps:$4 sm:$0xff]  }
 0x1ba   :  { %v3201_v50 = vadd.f32 %v3200_v54, %v2969_v34  ;;  %v7404_v14 = vadd.f32 %v3424_v46, %v3193_v24  ;;  %3662 = vmatprep.mubr.bf16.mxu1 %v6009_v55  ;;  %3886 = vmatprep.mubr.bf16.mxu0 %v6012_v47  ;;  %v6015_v55 = vld [vmem:[%s8250_s0 + $0x4fc] ss:$52 sps:$4 sm:$0xff]   ;;  %v2977_v34 = vadd.f32 %v7097_v28, %v7109_v5  ;;  %v6013_v5 = vld [vmem:[%s8250_s0 + $0x4f8] ss:$52 sps:$4 sm:$0xff]  }
 0x1bb   :  { %v3202_v48 = vpop.f32.mrf.mxu1  ;;  %v3426_v8 = vpop.f32.mrf.mxu0 }
 0x1bd   :  { %v3203_v0 = vpop.f32.mrf.mxu1  ;;  %v3427_v22 = vpop.f32.mrf.mxu0 }
 0x1be   :  { %v3204_v57 = vadd.f32 %v3203_v0, %v2972_v10  ;;  %v7414_v24 = vadd.f32 %v3427_v22, %v3196_v30  ;;  %v2980_v0 = vadd.f32 %v7097_v28, %v7113_v52  ;;  %v6025_v52 = vld [vmem:[%s8250_s0 + $0x504] ss:$52 sps:$4 sm:$0xff]  }
 0x1bf   :  { %v3205_v47 = vpop.f32.mrf.mxu1  ;;  %v3429_v32 = vpop.f32.mrf.mxu0 }
 0x1c1   :  { %v3208_v54 = vpop.f32.mrf.mxu1  ;;  %v3432_v46 = vpop.f32.mrf.mxu0  ;;  %3663 = vmatmul.mubr.bf16.gmra.mxu1 %v6007_v7  ;;  %3887 = vmatmul.mubr.bf16.gmra.mxu0 %v6010_v40  ;;  %v6016_v7 = vld [vmem:[%s8250_s0 + $0x498] ss:$52 sps:$4 sm:$0xff]  }
 0x1c2   :  { %v3209_v48 = vadd.f32 %v3208_v54, %v2977_v34  ;;  %v7424_v30 = vadd.f32 %v3432_v46, %v3201_v50  ;;  %3670 = vmatprep.mubr.bf16.mxu1 %v6015_v55  ;;  %3894 = vmatprep.mubr.bf16.mxu0 %v6018_v29  ;;  %v6022_v55 = vld [vmem:[%s8250_s0 + $0x564] ss:$52 sps:$4 sm:$0xff]   ;;  %v2985_v34 = vadd.f32 %v7097_v28, %v6869_v60  ;;  %v6020_v60 = vld [vmem:[%s8250_s0 + $0x560] ss:$52 sps:$4 sm:$0xff]  }
 0x1c3   :  { %v3210_v8 = vpop.f32.mrf.mxu1  ;;  %v3434_v10 = vpop.f32.mrf.mxu0 }
 0x1c5   :  { %v3211_v22 = vpop.f32.mrf.mxu1  ;;  %v3435_v47 = vpop.f32.mrf.mxu0 }
 0x1c6   :  { %v3212_v40 = vadd.f32 %v3211_v22, %v2980_v0  ;;  %v7434_v50 = vadd.f32 %v3435_v47, %v3204_v57  ;;  %v2988_v22 = vadd.f32 %v7097_v28, %v6873_v1  ;;  %v6033_v1 = vld [vmem:[%s8250_s0 + $0x56c] ss:$52 sps:$4 sm:$0xff]  }
 0x1c7   :  { %v3213_v29 = vpop.f32.mrf.mxu1  ;;  %v3437_v32 = vpop.f32.mrf.mxu0 }
 0x1c9   :  { %v3216_v54 = vpop.f32.mrf.mxu1  ;;  %v3440_v46 = vpop.f32.mrf.mxu0  ;;  %3671 = vmatmul.mubr.bf16.gmra.mxu1 %v6013_v5  ;;  %3895 = vmatmul.mubr.bf16.gmra.mxu0 %v6016_v7  ;;  %v6023_v5 = vld [vmem:[%s8250_s0 + $0x500] ss:$52 sps:$4 sm:$0xff]  }
 0x1ca   :  { %v3217_v8 = vadd.f32 %v3216_v54, %v2985_v34  ;;  %v7444_v57 = vadd.f32 %v3440_v46, %v3209_v48  ;;  %3678 = vmatprep.mubr.bf16.mxu1 %v6022_v55  ;;  %3902 = vmatprep.mubr.bf16.mxu0 %v6025_v52  ;;  %v6030_v55 = vld [vmem:[%s8250_s0 + $0x5cc] ss:$52 sps:$4 sm:$0xff]   ;;  %v2993_v34 = vadd.f32 %v7097_v28, %v6889_v9  ;;  %v6028_v9 = vld [vmem:[%s8250_s0 + $0x5c8] ss:$52 sps:$4 sm:$0xff]  }
 0x1cb   :  { %v3218_v10 = vpop.f32.mrf.mxu1  ;;  %v3442_v0 = vpop.f32.mrf.mxu0 }
 0x1cd   :  { %v3219_v47 = vpop.f32.mrf.mxu1  ;;  %v3443_v29 = vpop.f32.mrf.mxu0 }
 0x1ce   :  { %v3220_v7 = vadd.f32 %v3219_v47, %v2988_v22  ;;  %v7454_v48 = vadd.f32 %v3443_v29, %v3212_v40  ;;  %v2996_v47 = vadd.f32 %v7097_v28, %v6893_v13  ;;  %v6039_v13 = vld [vmem:[%s8250_s0 + $0x5d4] ss:$52 sps:$4 sm:$0xff]  }
 0x1cf   :  { %v3221_v52 = vpop.f32.mrf.mxu1  ;;  %v3445_v32 = vpop.f32.mrf.mxu0 }
 0x1d1   :  { %v3224_v54 = vpop.f32.mrf.mxu1  ;;  %v3448_v46 = vpop.f32.mrf.mxu0  ;;  %3679 = vmatmul.mubr.bf16.gmra.mxu1 %v6020_v60  ;;  %3903 = vmatmul.mubr.bf16.gmra.mxu0 %v6023_v5  ;;  %v6031_v60 = vld [vmem:[%s8250_s0 + $0x568] ss:$52 sps:$4 sm:$0xff]  }
 0x1d2   :  { %v3225_v10 = vadd.f32 %v3224_v54, %v2993_v34  ;;  %v7464_v40 = vadd.f32 %v3448_v46, %v3217_v8  ;;  %3686 = vmatprep.mubr.bf16.mxu1 %v6030_v55  ;;  %3910 = vmatprep.mubr.bf16.mxu0 %v6033_v1  ;;  %v6036_v55 = vld [vmem:[%s8250_s0 + $0x634] ss:$52 sps:$4 sm:$0xff]   ;;  %v3001_v34 = vadd.f32 %v7097_v28, %v6909_v21  ;;  %v6034_v21 = vld [vmem:[%s8250_s0 + $0x630] ss:$52 sps:$4 sm:$0xff]  }
 0x1d3   :  { %v3226_v0 = vpop.f32.mrf.mxu1  ;;  %v3450_v22 = vpop.f32.mrf.mxu0 }
 0x1d5   :  { %v3227_v29 = vpop.f32.mrf.mxu1  ;;  %v3451_v52 = vpop.f32.mrf.mxu0 }
 0x1d6   :  { %v3228_v5 = vadd.f32 %v3227_v29, %v2996_v47  ;;  %v7474_v8 = vadd.f32 %v3451_v52, %v3220_v7  ;;  %v3004_v29 = vadd.f32 %v7097_v28, %v6913_v25  ;;  %v6046_v25 = vld [vmem:[%s8250_s0 + $0x63c] ss:$52 sps:$4 sm:$0xff]  }
 0x1d7   :  { %v3229_v1 = vpop.f32.mrf.mxu1  ;;  %v3453_v32 = vpop.f32.mrf.mxu0 }
 0x1d9   :  { %v3232_v54 = vpop.f32.mrf.mxu1  ;;  %v3456_v46 = vpop.f32.mrf.mxu0  ;;  %3687 = vmatmul.mubr.bf16.gmra.mxu1 %v6028_v9  ;;  %3911 = vmatmul.mubr.bf16.gmra.mxu0 %v6031_v60  ;;  %v6037_v9 = vld [vmem:[%s8250_s0 + $0x5d0] ss:$52 sps:$4 sm:$0xff]  }
 0x1da   :  { %v3233_v0 = vadd.f32 %v3232_v54, %v3001_v34  ;;  %v7484_v7 = vadd.f32 %v3456_v46, %v3225_v10  ;;  %3694 = vmatprep.mubr.bf16.mxu1 %v6036_v55  ;;  %3918 = vmatprep.mubr.bf16.mxu0 %v6039_v13  ;;  %v6043_v55 = vld [vmem:[%s8250_s0 + $0x69c] ss:$52 sps:$4 sm:$0xff]   ;;  %v3009_v34 = vadd.f32 %v7097_v28, %v6929_v33  ;;  %v6041_v33 = vld [vmem:[%s8250_s0 + $0x698] ss:$52 sps:$4 sm:$0xff]  }
 0x1db   :  { %v3234_v22 = vpop.f32.mrf.mxu1  ;;  %v3458_v47 = vpop.f32.mrf.mxu0 }
 0x1dd   :  { %v3235_v52 = vpop.f32.mrf.mxu1  ;;  %v3459_v1 = vpop.f32.mrf.mxu0 }
 0x1de   :  { %v3236_v60 = vadd.f32 %v3235_v52, %v3004_v29  ;;  %v7494_v10 = vadd.f32 %v3459_v1, %v3228_v5  ;;  %v3012_v52 = vadd.f32 %v7097_v28, %v6933_v37  ;;  %v6053_v37 = vld [vmem:[%s8250_s0 + $0x6a4] ss:$52 sps:$4 sm:$0xff]  }
 0x1df   :  { %v3237_v13 = vpop.f32.mrf.mxu1  ;;  %v3461_v32 = vpop.f32.mrf.mxu0 }
 0x1e1   :  { %v3240_v54 = vpop.f32.mrf.mxu1  ;;  %v3464_v46 = vpop.f32.mrf.mxu0  ;;  %3695 = vmatmul.mubr.bf16.gmra.mxu1 %v6034_v21  ;;  %3919 = vmatmul.mubr.bf16.gmra.mxu0 %v6037_v9  ;;  %v6044_v21 = vld [vmem:[%s8250_s0 + $0x638] ss:$52 sps:$4 sm:$0xff]  }
 0x1e2   :  { %v3241_v22 = vadd.f32 %v3240_v54, %v3009_v34  ;;  %v7504_v5 = vadd.f32 %v3464_v46, %v3233_v0  ;;  %3702 = vmatprep.mubr.bf16.mxu1 %v6043_v55  ;;  %3926 = vmatprep.mubr.bf16.mxu0 %v6046_v25  ;;  %v6050_v55 = vld [vmem:[%s8250_s0 + $0x704] ss:$52 sps:$4 sm:$0xff]   ;;  %v3017_v34 = vadd.f32 %v7097_v28, %v6949_v45  ;;  %v6048_v45 = vld [vmem:[%s8250_s0 + $0x700] ss:$52 sps:$4 sm:$0xff]  }
 0x1e3   :  { %v3242_v47 = vpop.f32.mrf.mxu1  ;;  %v3466_v29 = vpop.f32.mrf.mxu0 }
 0x1e5   :  { %v3243_v1 = vpop.f32.mrf.mxu1  ;;  %v3467_v13 = vpop.f32.mrf.mxu0 }
 0x1e6   :  { %v3244_v9 = vadd.f32 %v3243_v1, %v3012_v52  ;;  %v7514_v0 = vadd.f32 %v3467_v13, %v3236_v60  ;;  %v3020_v1 = vadd.f32 %v7097_v28, %v6953_v49  ;;  %v6059_v49 = vld [vmem:[%s8250_s0 + $0x70c] ss:$52 sps:$4 sm:$0xff]  }
 0x1e7   :  { %v3245_v25 = vpop.f32.mrf.mxu1  ;;  %v3469_v32 = vpop.f32.mrf.mxu0 }
 0x1e9   :  { %v3248_v54 = vpop.f32.mrf.mxu1  ;;  %v3472_v46 = vpop.f32.mrf.mxu0  ;;  %3703 = vmatmul.mubr.bf16.gmra.mxu1 %v6041_v33  ;;  %3927 = vmatmul.mubr.bf16.gmra.mxu0 %v6044_v21  ;;  %v6051_v33 = vld [vmem:[%s8250_s0 + $0x6a0] ss:$52 sps:$4 sm:$0xff]  }
 0x1ea   :  { %v3249_v47 = vadd.f32 %v3248_v54, %v3017_v34  ;;  %v7524_v60 = vadd.f32 %v3472_v46, %v3241_v22  ;;  %3710 = vmatprep.mubr.bf16.mxu1 %v6050_v55  ;;  %3934 = vmatprep.mubr.bf16.mxu0 %v6053_v37  ;;  %v6056_v55 = vld [vmem:[%s8250_s0 + $0x76c] ss:$52 sps:$4 sm:$0xff]   ;;  %v3025_v34 = vadd.f32 %v7097_v28, %v6969_v58  ;;  %v6054_v58 = vld [vmem:[%s8250_s0 + $0x768] ss:$52 sps:$4 sm:$0xff]  }
 0x1eb   :  { %v3250_v29 = vpop.f32.mrf.mxu1  ;;  %v3474_v52 = vpop.f32.mrf.mxu0 }
 0x1ed   :  { %v3251_v13 = vpop.f32.mrf.mxu1  ;;  %v3475_v25 = vpop.f32.mrf.mxu0 }
 0x1ee   :  { %v3252_v21 = vadd.f32 %v3251_v13, %v3020_v1  ;;  %v7534_v22 = vadd.f32 %v3475_v25, %v3244_v9  ;;  %v3028_v13 = vadd.f32 %v7097_v28, %v6973_v3  ;;  %v6066_v3 = vld [vmem:[%s8250_s0 + $0x774] ss:$52 sps:$4 sm:$0xff]  }
 0x1ef   :  { %v3253_v37 = vpop.f32.mrf.mxu1  ;;  %v3477_v32 = vpop.f32.mrf.mxu0 }
 0x1f1   :  { %v3256_v54 = vpop.f32.mrf.mxu1  ;;  %v3480_v46 = vpop.f32.mrf.mxu0  ;;  %3711 = vmatmul.mubr.bf16.gmra.mxu1 %v6048_v45  ;;  %3935 = vmatmul.mubr.bf16.gmra.mxu0 %v6051_v33  ;;  %v6057_v45 = vld [vmem:[%s8250_s0 + $0x708] ss:$52 sps:$4 sm:$0xff]  }
 0x1f2   :  { %v3257_v29 = vadd.f32 %v3256_v54, %v3025_v34  ;;  %v7544_v9 = vadd.f32 %v3480_v46, %v3249_v47  ;;  %3718 = vmatprep.mubr.bf16.mxu1 %v6056_v55  ;;  %3942 = vmatprep.mubr.bf16.mxu0 %v6059_v49  ;;  %v6063_v55 = vld [vmem:[%s8250_s0 + $0x7d4] ss:$52 sps:$4 sm:$0xff]   ;;  %v3033_v34 = vadd.f32 %v7097_v28, %v6989_v15  ;;  %v6061_v15 = vld [vmem:[%s8250_s0 + $0x7d0] ss:$52 sps:$4 sm:$0xff]  }
 0x1f3   :  { %v3258_v52 = vpop.f32.mrf.mxu1  ;;  %v3482_v1 = vpop.f32.mrf.mxu0 }
 0x1f5   :  { %v3259_v25 = vpop.f32.mrf.mxu1  ;;  %v3483_v37 = vpop.f32.mrf.mxu0 }
 0x1f6   :  { %v3260_v33 = vadd.f32 %v3259_v25, %v3028_v13  ;;  %v7554_v47 = vadd.f32 %v3483_v37, %v3252_v21  ;;  %v3036_v25 = vadd.f32 %v7097_v28, %v6993_v19  ;;  %v6073_v19 = vld [vmem:[%s8250_s0 + $0x7dc] ss:$52 sps:$4 sm:$0xff]  }
 0x1f7   :  { %v3261_v49 = vpop.f32.mrf.mxu1  ;;  %v3485_v32 = vpop.f32.mrf.mxu0 }
 0x1f9   :  { %v3264_v54 = vpop.f32.mrf.mxu1  ;;  %v3488_v46 = vpop.f32.mrf.mxu0  ;;  %3719 = vmatmul.mubr.bf16.gmra.mxu1 %v6054_v58  ;;  %3943 = vmatmul.mubr.bf16.gmra.mxu0 %v6057_v45  ;;  %v6064_v58 = vld [vmem:[%s8250_s0 + $0x770] ss:$52 sps:$4 sm:$0xff]  }
 0x1fa   :  { %v3265_v52 = vadd.f32 %v3264_v54, %v3033_v34  ;;  %v7564_v21 = vadd.f32 %v3488_v46, %v3257_v29  ;;  %3726 = vmatprep.mubr.bf16.mxu1 %v6063_v55  ;;  %3950 = vmatprep.mubr.bf16.mxu0 %v6066_v3  ;;  %v6070_v55 = vld [vmem:[%s8250_s0 + $0x83c] ss:$52 sps:$4 sm:$0xff]   ;;  %v3041_v34 = vadd.f32 %v7097_v28, %v7009_v31 }
 0x1fb   :  { %v3266_v1 = vpop.f32.mrf.mxu1  ;;  %v3490_v13 = vpop.f32.mrf.mxu0 }
 0x1fd   :  { %v3267_v37 = vpop.f32.mrf.mxu1  ;;  %v3491_v49 = vpop.f32.mrf.mxu0 }
 0x1fe   :  { %v3268_v45 = vadd.f32 %v3267_v37, %v3036_v25  ;;  %v7574_v29 = vadd.f32 %v3491_v49, %v3260_v33  ;;  %v7589_v37 = vld [vmem:[%s8251_s2] ss:$0 sm:$0xff] }
 0x1ff   :  { %v3269_v3 = vpop.f32.mrf.mxu1  ;;  %v3493_v32 = vpop.f32.mrf.mxu0  ;;  %v3044_v49 = vadd.f32 %v7589_v37, %v7013_v39  ;;  %v6080_v39 = vld [vmem:[%s8250_s0 + $0x844] ss:$52 sps:$4 sm:$0xff]  }
 0x201   :  { %v3272_v54 = vpop.f32.mrf.mxu1  ;;  %v3496_v46 = vpop.f32.mrf.mxu0  ;;  %3727 = vmatmul.mubr.bf16.gmra.mxu1 %v6061_v15  ;;  %3951 = vmatmul.mubr.bf16.gmra.mxu0 %v6064_v58  ;;  %v6068_v15 = vld [vmem:[%s8250_s0 + $0x838] ss:$52 sps:$4 sm:$0xff]  }
 0x202   :  { %v3273_v1 = vadd.f32 %v3272_v54, %v3041_v34  ;;  %v7584_v33 = vadd.f32 %v3496_v46, %v3265_v52  ;;  %3734 = vmatprep.mubr.bf16.mxu1 %v6070_v55  ;;  %3958 = vmatprep.mubr.bf16.mxu0 %v6073_v19  ;;  %v6071_v52 = vld [vmem:[%s8250_s0 + $0x7d8] ss:$52 sps:$4 sm:$0xff]   ;;  %v3049_v34 = vadd.f32 %v7589_v37, %v7029_v51  ;;  %v6075_v51 = vld [vmem:[%s8250_s0 + $0x8a0] ss:$52 sps:$4 sm:$0xff]  }
 0x203   :  { %v3274_v13 = vpop.f32.mrf.mxu1  ;;  %v3498_v25 = vpop.f32.mrf.mxu0  ;;  %v6077_v19 = vld [vmem:[%s8250_s0 + $0x8a4] ss:$52 sps:$4 sm:$0xff]  }
 0x205   :  { %v3275_v31 = vpop.f32.mrf.mxu1  ;;  %v3499_v28 = vpop.f32.mrf.mxu0 }
 0x206   :  { %v3276_v58 = vadd.f32 %v3275_v31, %v3044_v49  ;;  %v7599_v55 = vadd.f32 %v3499_v28, %v3268_v45  ;;  %v3052_v31 = vadd.f32 %v7589_v37, %v7033_v56  ;;  %v6087_v56 = vld [vmem:[%s8250_s0 + $0x8ac] ss:$52 sps:$4 sm:$0xff]  }
 0x207   :  { %v3277_v3 = vpop.f32.mrf.mxu1  ;;  %v3501_v32 = vpop.f32.mrf.mxu0 }
 0x209   :  { %v3280_v54 = vpop.f32.mrf.mxu1  ;;  %v3504_v46 = vpop.f32.mrf.mxu0  ;;  %3735 = vmatmul.mubr.bf16.gmra.mxu1 %v6068_v15  ;;  %3959 = vmatmul.mubr.bf16.gmra.mxu0 %v6071_v52  ;;  %v6078_v15 = vld [vmem:[%s8250_s0 + $0x840] ss:$52 sps:$4 sm:$0xff]  }
 0x20a   :  { %v3281_v13 = vadd.f32 %v3280_v54, %v3049_v34  ;;  %v7609_v45 = vadd.f32 %v3504_v46, %v3273_v1  ;;  %3742 = vmatprep.mubr.bf16.mxu1 %v6077_v19  ;;  %3966 = vmatprep.mubr.bf16.mxu0 %v6080_v39  ;;  %v6084_v19 = vld [vmem:[%s8250_s0 + $0x90c] ss:$52 sps:$4 sm:$0xff]   ;;  %v3057_v34 = vadd.f32 %v7589_v37, %v7049_v11  ;;  %v6082_v11 = vld [vmem:[%s8250_s0 + $0x908] ss:$52 sps:$4 sm:$0xff]  }
 0x20b   :  { %v3282_v25 = vpop.f32.mrf.mxu1  ;;  %v3506_v49 = vpop.f32.mrf.mxu0 }
 0x20d   :  { %v3283_v28 = vpop.f32.mrf.mxu1  ;;  %v3507_v3 = vpop.f32.mrf.mxu0 }
 0x20e   :  { %v3284_v52 = vadd.f32 %v3283_v28, %v3052_v31  ;;  %v7619_v1 = vadd.f32 %v3507_v3, %v3276_v58  ;;  %v3060_v28 = vadd.f32 %v7589_v37, %v7053_v23  ;;  %v6094_v23 = vld [vmem:[%s8250_s0 + $0x914] ss:$52 sps:$4 sm:$0xff]  }
 0x20f   :  { %v3285_v39 = vpop.f32.mrf.mxu1  ;;  %v3509_v32 = vpop.f32.mrf.mxu0 }
 0x211   :  { %v3288_v54 = vpop.f32.mrf.mxu1  ;;  %v3512_v46 = vpop.f32.mrf.mxu0  ;;  %3743 = vmatmul.mubr.bf16.gmra.mxu1 %v6075_v51  ;;  %3967 = vmatmul.mubr.bf16.gmra.mxu0 %v6078_v15  ;;  %v6085_v51 = vld [vmem:[%s8250_s0 + $0x8a8] ss:$52 sps:$4 sm:$0xff]  }
 0x212   :  { %v3289_v25 = vadd.f32 %v3288_v54, %v3057_v34  ;;  %v7629_v58 = vadd.f32 %v3512_v46, %v3281_v13  ;;  %3750 = vmatprep.mubr.bf16.mxu1 %v6084_v19  ;;  %3974 = vmatprep.mubr.bf16.mxu0 %v6087_v56  ;;  %v6091_v19 = vld [vmem:[%s8250_s0 + $0x974] ss:$52 sps:$4 sm:$0xff]   ;;  %v3065_v34 = vadd.f32 %v7589_v37, %v7069_v41 }
 0x213   :  { %v3290_v49 = vpop.f32.mrf.mxu1  ;;  %v3514_v31 = vpop.f32.mrf.mxu0 }
 0x215   :  { %v3291_v3 = vpop.f32.mrf.mxu1  ;;  %v3515_v39 = vpop.f32.mrf.mxu0 }
 0x216   :  { %v3292_v15 = vadd.f32 %v3291_v3, %v3060_v28  ;;  %v7639_v13 = vadd.f32 %v3515_v39, %v3284_v52  ;;  %v354_v3 = vld [vmem:[%s8250_s0 + $0x9d8] sm:$0xff]  ;;  %v3068_v39 = vadd.f32 %v7589_v37, %v7076_v53 }
 0x217   :  { %v3293_v56 = vpop.f32.mrf.mxu1  ;;  %v3517_v32 = vpop.f32.mrf.mxu0 }
 0x218   :  { %8261 = vst [vmem:[#allocation4_spill] sm:$0xff] %v7639_v13  ;;  %v6099_v32 = vld [vmem:[%s8250_s0 + $0x97c] ss:$52 sps:$4 sm:$0xff]  }
 0x219   :  { %v3296_v54 = vpop.f32.mrf.mxu1  ;;  %v3520_v46 = vpop.f32.mrf.mxu0  ;;  %3751 = vmatmul.mubr.bf16.gmra.mxu1 %v6082_v11  ;;  %3975 = vmatmul.mubr.bf16.gmra.mxu0 %v6085_v51  ;;  %v6089_v11 = vld [vmem:[%s8250_s0 + $0x970] ss:$52 sps:$4 sm:$0xff]  }
 0x21a   :  { %v3297_v49 = vadd.f32 %v3296_v54, %v3065_v34  ;;  %v7649_v52 = vadd.f32 %v3520_v46, %v3289_v25  ;;  %3758 = vmatprep.mubr.bf16.mxu1 %v6091_v19  ;;  %3982 = vmatprep.mubr.bf16.mxu0 %v6094_v23  ;;  %v6092_v25 = vld [vmem:[%s8250_s0 + $0x910] ss:$52 sps:$4 sm:$0xff]   ;;  %v5089_v23 = vcombine.high %v354_v3, %v354_v3 }
 0x21b   :  { %v3298_v31 = vpop.f32.mrf.mxu1  ;;  %v3522_v28 = vpop.f32.mrf.mxu0  ;;  %v8263_v54 = vld [vmem:[#allocation2_spill] sm:$0xff] }
 0x21c   :  { %8262 = vst [vmem:[#allocation5_spill] sm:$0xff] %v7649_v52  ;;  %v3073_v46 = vadd.f32 %v7589_v37, %v8263_v54  ;;  %v6097_v37 = vld [vmem:[%s8250_s0 + $0x978] ss:$52 sps:$4 sm:$0xff]  }
 0x21d   :  { %v3299_v56 = vpop.f32.mrf.mxu1  ;;  %v3523_v41 = vpop.f32.mrf.mxu0 }
 0x21e   :  { %v3300_v51 = vadd.f32 %v3299_v56, %v3068_v39  ;;  %v7662_v19 = vadd.f32 %v3523_v41, %v3292_v15  ;;  %v355_v56 = vld [vmem:[%s8250_s0 + $0x9e0] sm:$0xff] }
 0x21f   :  { %v3301_v34 = vpop.f32.mrf.mxu1  ;;  %v3525_v53 = vpop.f32.mrf.mxu0 }
 0x220   :  { %v5088_v53 = vcombine.low %v354_v3, %v354_v3 }
 0x221   :  { %v3304_v31 = vpop.f32.mrf.mxu1  ;;  %v3528_v28 = vpop.f32.mrf.mxu0  ;;  %3759 = vmatmul.mubr.bf16.gmra.mxu1 %v6089_v11  ;;  %3983 = vmatmul.mubr.bf16.gmra.mxu0 %v6092_v25  ;;  %v5091_v25 = vcombine.high %v355_v56, %v355_v56 }
 0x222   :  { %v3305_v52 = vadd.f32 %v3304_v31, %v3073_v46  ;;  %v7669_v13 = vadd.f32 %v3528_v28, %v3297_v49  ;;  %3766 = vmatprep.mubr.bf16.mxu1 %v5089_v23  ;;  %3990 = vmatprep.mubr.bf16.mxu0 %v6099_v32  ;;  %v6105_v49 = vld [vmem:[%s8250_s0 + $0x2c] ss:$52 sps:$4 sm:$0xff]  }
 0x223   :  { %v3306_v15 = vpop.f32.mrf.mxu1  ;;  %v3530_v39 = vpop.f32.mrf.mxu0 }
 0x225   :  { %v3307_v41 = vpop.f32.mrf.mxu1  ;;  %v3531_v34 = vpop.f32.mrf.mxu0 }
 0x226   :  { %v7677_v11 = vadd.f32 %v3531_v34, %v3300_v51  ;;  %v5090_v41 = vcombine.low %v355_v56, %v355_v56  ;;  %v6103_v34 = vld [vmem:[%s8250_s0 + $0x28] ss:$52 sps:$4 sm:$0xff]  }
 0x227   :  { %v3308_v23 = vpop.f32.mrf.mxu1  ;;  %v3533_v32 = vpop.f32.mrf.mxu0 }
 0x229   :  { %v3536_v54 = vpop.f32.mrf.mxu0  ;;  %v3576_v46 = vpop.f32.mrf.mxu1  ;;  %3767 = vmatmul.mubr.bf16.gmra.mxu1 %v5088_v53  ;;  %3991 = vmatmul.mubr.bf16.gmra.mxu0 %v6097_v37 }
 0x22a   :  { %v7682_v31 = vadd.f32 %v3536_v54, %v3305_v52  ;;  %v3577_v3 = vadd.f32 %v3576_v46, %v7129_v26  ;;  %3998 = vmatprep.mubr.bf16.mxu0 %v5091_v25  ;;  %4038 = vmatprep.mubr.bf16.mxu1 %v6105_v49  ;;  %v6108_v52 = vld [vmem:[%s8250_s0 + $0x94] ss:$52 sps:$4 sm:$0xff]  }
 0x22b   :  { %v3538_v28 = vpop.f32.mrf.mxu0  ;;  %v3578_v51 = vpop.f32.mrf.mxu1 }
 0x22c   :  { %v6106_v28 = vld [vmem:[%s8250_s0 + $0x90] ss:$52 sps:$4 sm:$0xff]  }
 0x22d   :  { %v3539_v15 = vpop.f32.mrf.mxu0  ;;  %v3579_v39 = vpop.f32.mrf.mxu1  ;;  %v6109_v51 = vld [vmem:[%s8250_s0 + $0x30] ss:$52 sps:$4 sm:$0xff]  }
 0x22e   :  { %v3580_v23 = vadd.f32 %v3579_v39, %v7143_v42  ;;  %v6112_v39 = vld [vmem:[%s8250_s0 + $0xfc] ss:$52 sps:$4 sm:$0xff]  }
 0x22f   :  { %v3540_v53 = vpop.f32.mrf.mxu0  ;;  %v3581_v37 = vpop.f32.mrf.mxu1 }
 0x231   :  { %v3584_v26 = vpop.f32.mrf.mxu1  ;;  %v3808_v25 = vpop.f32.mrf.mxu0  ;;  %3999 = vmatmul.mubr.bf16.gmra.mxu0 %v5090_v41  ;;  %4039 = vmatmul.mubr.bf16.vlgmr.msra.gmra.mxu1 %v6103_v34 }
 0x232   :  { %v3585_v49 = vadd.f32 %v3584_v26, %v7160_v62  ;;  %v7693_v32 = vadd.f32 %v3808_v25, %v3577_v3  ;;  %4046 = vmatprep.mubr.bf16.mxu1 %v6108_v52  ;;  %5498 = vmatprep.mubr.msk.bf16.mxu0 %vm6205_vm0, %v8259_v17  ;;  %v8264_v62 = vld [vmem:[#allocation3_spill] sm:$0xff] }
 0x233   :  { %v3586_v42 = vpop.f32.mrf.mxu1  ;;  %v3810_v56 = vpop.f32.mrf.mxu0 }
 0x235   :  { %v3587_v54 = vpop.f32.mrf.mxu1  ;;  %v3811_v46 = vpop.f32.mrf.mxu0 }
 0x236   :  { %v3588_v3 = vadd.f32 %v3587_v54, %v8264_v62  ;;  %v7704_v15 = vadd.f32 %v3811_v46, %v3580_v23  ;;  %v6110_v54 = vld [vmem:[%s8250_s0 + $0xf8] ss:$52 sps:$4 sm:$0xff]  }
 0x237   :  { %v3589_v41 = vpop.f32.mrf.mxu1  ;;  %v3813_v34 = vpop.f32.mrf.mxu0  ;;  %v6113_v46 = vld [vmem:[%s8250_s0 + $0x98] ss:$52 sps:$4 sm:$0xff]  }
 0x239   :  { %v3592_v52 = vpop.f32.mrf.mxu1  ;;  %v3816_v53 = vpop.f32.mrf.mxu0  ;;  %4047 = vmatmul.mubr.bf16.gmra.mxu1 %v6106_v28  ;;  %5499 = vmatmul.mubr.msk.bf16.vlgmr.msra.gmra.mxu0 %vm2770_vm1, %v6109_v51  ;;  %v6116_v28 = vld [vmem:[%s8250_s0 + $0x164] ss:$52 sps:$4 sm:$0xff]  }
 0x23a   :  { %v3593_v37 = vadd.f32 %v3592_v52, %v7196_v63  ;;  %v7711_v26 = vadd.f32 %v3816_v53, %v3585_v49  ;;  %4054 = vmatprep.mubr.bf16.mxu1 %v6112_v39  ;;  %5502 = vmatprep.mubr.msk.bf16.mxu0 %vm6205_vm0, %v8259_v17 }
 0x23b   :  { %v3594_v23 = vpop.f32.mrf.mxu1  ;;  %v3818_v25 = vpop.f32.mrf.mxu0 }
 0x23c   :  { %v6114_v25 = vld [vmem:[%s8250_s0 + $0x160] ss:$52 sps:$4 sm:$0xff]  }
 0x23d   :  { %v3595_v42 = vpop.f32.mrf.mxu1  ;;  %v3819_v56 = vpop.f32.mrf.mxu0 }
 0x23e   :  { %v3596_v63 = vadd.f32 %v3595_v42, %v7211_v4  ;;  %v7722_v49 = vadd.f32 %v3819_v56, %v3588_v3  ;;  %v6117_v42 = vld [vmem:[%s8250_s0 + $0x100] ss:$52 sps:$4 sm:$0xff]  }
 0x23f   :  { %v3597_v51 = vpop.f32.mrf.mxu1  ;;  %v3821_v62 = vpop.f32.mrf.mxu0  ;;  %v6120_v56 = vld [vmem:[%s8250_s0 + $0x1cc] ss:$52 sps:$4 sm:$0xff]  }
 0x241   :  { %v3600_v39 = vpop.f32.mrf.mxu1  ;;  %v3824_v41 = vpop.f32.mrf.mxu0  ;;  %4055 = vmatmul.mubr.bf16.gmra.mxu1 %v6110_v54  ;;  %5503 = vmatmul.mubr.msk.bf16.gmra.mxu0 %vm2770_vm1, %v6113_v46 }
 0x242   :  { %v3601_v34 = vadd.f32 %v3600_v39, %v7225_v12  ;;  %v7729_v52 = vadd.f32 %v3824_v41, %v3593_v37  ;;  %4062 = vmatprep.mubr.bf16.mxu1 %v6116_v28  ;;  %5506 = vmatprep.mubr.msk.bf16.mxu0 %vm6205_vm0, %v8259_v17 }
 0x243   :  { %v3602_v4 = vpop.f32.mrf.mxu1  ;;  %v3826_v3 = vpop.f32.mrf.mxu0 }
 0x244   :  { %v6118_v3 = vld [vmem:[%s8250_s0 + $0x1c8] ss:$52 sps:$4 sm:$0xff]  }
 0x245   :  { %v3603_v53 = vpop.f32.mrf.mxu1  ;;  %v3827_v23 = vpop.f32.mrf.mxu0 }
 0x246   :  { %v3604_v12 = vadd.f32 %v3603_v53, %v7239_v35  ;;  %v7740_v37 = vadd.f32 %v3827_v23, %v3596_v63  ;;  %v6121_v53 = vld [vmem:[%s8250_s0 + $0x168] ss:$52 sps:$4 sm:$0xff]  }
 0x247   :  { %v3605_v54 = vpop.f32.mrf.mxu1  ;;  %v3829_v46 = vpop.f32.mrf.mxu0  ;;  %v6124_v23 = vld [vmem:[%s8250_s0 + $0x234] ss:$52 sps:$4 sm:$0xff]  }
 0x249   :  { %v3608_v28 = vpop.f32.mrf.mxu1  ;;  %v3832_v51 = vpop.f32.mrf.mxu0  ;;  %4063 = vmatmul.mubr.bf16.gmra.mxu1 %v6114_v25  ;;  %5507 = vmatmul.mubr.msk.bf16.gmra.mxu0 %vm2770_vm1, %v6117_v42 }
 0x24a   :  { %v3609_v62 = vadd.f32 %v3608_v28, %v7256_v6  ;;  %v7747_v39 = vadd.f32 %v3832_v51, %v3601_v34  ;;  %4070 = vmatprep.mubr.bf16.mxu1 %v6120_v56  ;;  %5510 = vmatprep.mubr.msk.bf16.mxu0 %vm6205_vm0, %v8259_v17 }
 0x24b   :  { %v3610_v35 = vpop.f32.mrf.mxu1  ;;  %v3834_v63 = vpop.f32.mrf.mxu0 }
 0x24c   :  { %v6122_v63 = vld [vmem:[%s8250_s0 + $0x230] ss:$52 sps:$4 sm:$0xff]  }
 0x24d   :  { %v3611_v41 = vpop.f32.mrf.mxu1  ;;  %v3835_v4 = vpop.f32.mrf.mxu0 }
 0x24e   :  { %v3612_v6 = vadd.f32 %v3611_v41, %v7270_v27  ;;  %v7758_v34 = vadd.f32 %v3835_v4, %v3604_v12  ;;  %v6125_v41 = vld [vmem:[%s8250_s0 + $0x1d0] ss:$52 sps:$4 sm:$0xff]  }
 0x24f   :  { %v3613_v25 = vpop.f32.mrf.mxu1  ;;  %v3837_v42 = vpop.f32.mrf.mxu0  ;;  %v6128_v4 = vld [vmem:[%s8250_s0 + $0x29c] ss:$52 sps:$4 sm:$0xff]  }
 0x251   :  { %v3616_v56 = vpop.f32.mrf.mxu1  ;;  %v3840_v54 = vpop.f32.mrf.mxu0  ;;  %4071 = vmatmul.mubr.bf16.gmra.mxu1 %v6118_v3  ;;  %5511 = vmatmul.mubr.msk.bf16.gmra.mxu0 %vm2770_vm1, %v6121_v53 }
 0x252   :  { %v3617_v46 = vadd.f32 %v3616_v56, %v7284_v20  ;;  %v7765_v28 = vadd.f32 %v3840_v54, %v3609_v62  ;;  %4078 = vmatprep.mubr.bf16.mxu1 %v6124_v23  ;;  %5514 = vmatprep.mubr.msk.bf16.mxu0 %vm6205_vm0, %v8259_v17 }
 0x253   :  { %v3618_v27 = vpop.f32.mrf.mxu1  ;;  %v3842_v12 = vpop.f32.mrf.mxu0 }
 0x254   :  { %v6126_v12 = vld [vmem:[%s8250_s0 + $0x298] ss:$52 sps:$4 sm:$0xff]  }
 0x255   :  { %v3619_v51 = vpop.f32.mrf.mxu1  ;;  %v3843_v35 = vpop.f32.mrf.mxu0 }
 0x256   :  { %v3620_v20 = vadd.f32 %v3619_v51, %v7298_v2  ;;  %v7776_v62 = vadd.f32 %v3843_v35, %v3612_v6  ;;  %v6129_v51 = vld [vmem:[%s8250_s0 + $0x238] ss:$52 sps:$4 sm:$0xff]  }
 0x257   :  { %v3621_v3 = vpop.f32.mrf.mxu1  ;;  %v3845_v53 = vpop.f32.mrf.mxu0  ;;  %v6132_v35 = vld [vmem:[%s8250_s0 + $0x304] ss:$52 sps:$4 sm:$0xff]  }
 0x259   :  { %v3624_v23 = vpop.f32.mrf.mxu1  ;;  %v3848_v25 = vpop.f32.mrf.mxu0  ;;  %4079 = vmatmul.mubr.bf16.gmra.mxu1 %v6122_v63  ;;  %5515 = vmatmul.mubr.msk.bf16.gmra.mxu0 %vm2770_vm1, %v6125_v41 }
 0x25a   :  { %v3625_v42 = vadd.f32 %v3624_v23, %v7312_v16  ;;  %v7783_v56 = vadd.f32 %v3848_v25, %v3617_v46  ;;  %4086 = vmatprep.mubr.bf16.mxu1 %v6128_v4  ;;  %5518 = vmatprep.mubr.msk.bf16.mxu0 %vm6205_vm0, %v8259_v17 }
 0x25b   :  { %v3626_v2 = vpop.f32.mrf.mxu1  ;;  %v3850_v6 = vpop.f32.mrf.mxu0 }
 0x25c   :  { %v6130_v6 = vld [vmem:[%s8250_s0 + $0x300] ss:$52 sps:$4 sm:$0xff]  }
 0x25d   :  { %v3627_v54 = vpop.f32.mrf.mxu1  ;;  %v3851_v27 = vpop.f32.mrf.mxu0 }
 0x25e   :  { %v3628_v16 = vadd.f32 %v3627_v54, %v7326_v18  ;;  %v7794_v46 = vadd.f32 %v3851_v27, %v3620_v20  ;;  %v6133_v54 = vld [vmem:[%s8250_s0 + $0x2a0] ss:$52 sps:$4 sm:$0xff]  }
 0x25f   :  { %v3629_v63 = vpop.f32.mrf.mxu1  ;;  %v3853_v41 = vpop.f32.mrf.mxu0  ;;  %v6136_v27 = vld [vmem:[%s8250_s0 + $0x36c] ss:$52 sps:$4 sm:$0xff]  }
 0x261   :  { %v3632_v4 = vpop.f32.mrf.mxu1  ;;  %v3856_v3 = vpop.f32.mrf.mxu0  ;;  %4087 = vmatmul.mubr.bf16.gmra.mxu1 %v6126_v12  ;;  %5519 = vmatmul.mubr.msk.bf16.gmra.mxu0 %vm2770_vm1, %v6129_v51 }
 0x262   :  { %v3633_v53 = vadd.f32 %v3632_v4, %v7340_v36  ;;  %v7801_v23 = vadd.f32 %v3856_v3, %v3625_v42  ;;  %4094 = vmatprep.mubr.bf16.mxu1 %v6132_v35  ;;  %5522 = vmatprep.mubr.msk.bf16.mxu0 %vm6205_vm0, %v8259_v17 }
 0x263   :  { %v3634_v18 = vpop.f32.mrf.mxu1  ;;  %v3858_v20 = vpop.f32.mrf.mxu0 }
 0x264   :  { %v6134_v20 = vld [vmem:[%s8250_s0 + $0x368] ss:$52 sps:$4 sm:$0xff]  }
 0x265   :  { %v3635_v25 = vpop.f32.mrf.mxu1  ;;  %v3859_v2 = vpop.f32.mrf.mxu0 }
 0x266   :  { %v3636_v36 = vadd.f32 %v3635_v25, %v7351_v61  ;;  %v7812_v42 = vadd.f32 %v3859_v2, %v3628_v16  ;;  %v6137_v25 = vld [vmem:[%s8250_s0 + $0x308] ss:$52 sps:$4 sm:$0xff]  }
 0x267   :  { %v3637_v12 = vpop.f32.mrf.mxu1  ;;  %v3861_v51 = vpop.f32.mrf.mxu0  ;;  %v6140_v2 = vld [vmem:[%s8250_s0 + $0x3d4] ss:$52 sps:$4 sm:$0xff]  }
 0x269   :  { %v3640_v35 = vpop.f32.mrf.mxu1  ;;  %v3864_v63 = vpop.f32.mrf.mxu0  ;;  %4095 = vmatmul.mubr.bf16.gmra.mxu1 %v6130_v6  ;;  %5523 = vmatmul.mubr.msk.bf16.gmra.mxu0 %vm2770_vm1, %v6133_v54 }
 0x26a   :  { %v3641_v41 = vadd.f32 %v3640_v35, %v7361_v44  ;;  %v7819_v4 = vadd.f32 %v3864_v63, %v3633_v53  ;;  %4102 = vmatprep.mubr.bf16.mxu1 %v6136_v27  ;;  %5526 = vmatprep.mubr.msk.bf16.mxu0 %vm6205_vm0, %v8259_v17 }
 0x26b   :  { %v3642_v61 = vpop.f32.mrf.mxu1  ;;  %v3866_v16 = vpop.f32.mrf.mxu0 }
 0x26c   :  { %v6138_v16 = vld [vmem:[%s8250_s0 + $0x3d0] ss:$52 sps:$4 sm:$0xff]  }
 0x26d   :  { %v3643_v3 = vpop.f32.mrf.mxu1  ;;  %v3867_v18 = vpop.f32.mrf.mxu0 }
 0x26e   :  { %v3644_v44 = vadd.f32 %v3643_v3, %v7374_v38  ;;  %v7830_v53 = vadd.f32 %v3867_v18, %v3636_v36  ;;  %v6141_v3 = vld [vmem:[%s8250_s0 + $0x370] ss:$52 sps:$4 sm:$0xff]  }
 0x26f   :  { %v3645_v6 = vpop.f32.mrf.mxu1  ;;  %v3869_v54 = vpop.f32.mrf.mxu0  ;;  %v6144_v18 = vld [vmem:[%s8250_s0 + $0x43c] ss:$52 sps:$4 sm:$0xff]  }
 0x271   :  { %v3648_v27 = vpop.f32.mrf.mxu1  ;;  %v3872_v12 = vpop.f32.mrf.mxu0  ;;  %4103 = vmatmul.mubr.bf16.gmra.mxu1 %v6134_v20  ;;  %5527 = vmatmul.mubr.msk.bf16.gmra.mxu0 %vm2770_vm1, %v6137_v25 }
 0x272   :  { %v3649_v51 = vadd.f32 %v3648_v27, %v7384_v43  ;;  %v7837_v35 = vadd.f32 %v3872_v12, %v3641_v41  ;;  %4110 = vmatprep.mubr.bf16.mxu1 %v6140_v2  ;;  %5530 = vmatprep.mubr.msk.bf16.mxu0 %vm6205_vm0, %v8259_v17 }
 0x273   :  { %v3650_v38 = vpop.f32.mrf.mxu1  ;;  %v3874_v36 = vpop.f32.mrf.mxu0 }
 0x274   :  { %v6142_v36 = vld [vmem:[%s8250_s0 + $0x438] ss:$52 sps:$4 sm:$0xff]  }
 0x275   :  { %v3651_v63 = vpop.f32.mrf.mxu1  ;;  %v3875_v61 = vpop.f32.mrf.mxu0 }
 0x276   :  { %v3652_v43 = vadd.f32 %v3651_v63, %v7394_v59  ;;  %v7848_v41 = vadd.f32 %v3875_v61, %v3644_v44  ;;  %v6145_v63 = vld [vmem:[%s8250_s0 + $0x3d8] ss:$52 sps:$4 sm:$0xff]  }
 0x277   :  { %v3653_v20 = vpop.f32.mrf.mxu1  ;;  %v3877_v25 = vpop.f32.mrf.mxu0  ;;  %v6148_v61 = vld [vmem:[%s8250_s0 + $0x4a4] ss:$52 sps:$4 sm:$0xff]  }
 0x279   :  { %v3656_v2 = vpop.f32.mrf.mxu1  ;;  %v3880_v6 = vpop.f32.mrf.mxu0  ;;  %4111 = vmatmul.mubr.bf16.gmra.mxu1 %v6138_v16  ;;  %5531 = vmatmul.mubr.msk.bf16.gmra.mxu0 %vm2770_vm1, %v6141_v3 }
 0x27a   :  { %v3657_v54 = vadd.f32 %v3656_v2, %v7404_v14  ;;  %v7855_v27 = vadd.f32 %v3880_v6, %v3649_v51  ;;  %4118 = vmatprep.mubr.bf16.mxu1 %v6144_v18  ;;  %5534 = vmatprep.mubr.msk.bf16.mxu0 %vm6205_vm0, %v8259_v17 }
 0x27b   :  { %v3658_v59 = vpop.f32.mrf.mxu1  ;;  %v3882_v44 = vpop.f32.mrf.mxu0 }
 0x27c   :  { %v6146_v44 = vld [vmem:[%s8250_s0 + $0x4a0] ss:$52 sps:$4 sm:$0xff]  }
 0x27d   :  { %v3659_v12 = vpop.f32.mrf.mxu1  ;;  %v3883_v38 = vpop.f32.mrf.mxu0 }
 0x27e   :  { %v3660_v14 = vadd.f32 %v3659_v12, %v7414_v24  ;;  %v7866_v51 = vadd.f32 %v3883_v38, %v3652_v43  ;;  %v6149_v12 = vld [vmem:[%s8250_s0 + $0x440] ss:$52 sps:$4 sm:$0xff]  }
 0x27f   :  { %v3661_v16 = vpop.f32.mrf.mxu1  ;;  %v3885_v3 = vpop.f32.mrf.mxu0  ;;  %v6152_v38 = vld [vmem:[%s8250_s0 + $0x50c] ss:$52 sps:$4 sm:$0xff]  }
 0x281   :  { %v3664_v18 = vpop.f32.mrf.mxu1  ;;  %v3888_v20 = vpop.f32.mrf.mxu0  ;;  %4119 = vmatmul.mubr.bf16.gmra.mxu1 %v6142_v36  ;;  %5535 = vmatmul.mubr.msk.bf16.gmra.mxu0 %vm2770_vm1, %v6145_v63 }
 0x282   :  { %v3665_v25 = vadd.f32 %v3664_v18, %v7424_v30  ;;  %v7873_v2 = vadd.f32 %v3888_v20, %v3657_v54  ;;  %4126 = vmatprep.mubr.bf16.mxu1 %v6148_v61  ;;  %5538 = vmatprep.mubr.msk.bf16.mxu0 %vm6205_vm0, %v8259_v17 }
 0x283   :  { %v3666_v24 = vpop.f32.mrf.mxu1  ;;  %v3890_v43 = vpop.f32.mrf.mxu0 }
 0x284   :  { %v6150_v43 = vld [vmem:[%s8250_s0 + $0x508] ss:$52 sps:$4 sm:$0xff]  }
 0x285   :  { %v3667_v6 = vpop.f32.mrf.mxu1  ;;  %v3891_v59 = vpop.f32.mrf.mxu0 }
 0x286   :  { %v3668_v30 = vadd.f32 %v3667_v6, %v7434_v50  ;;  %v7884_v54 = vadd.f32 %v3891_v59, %v3660_v14  ;;  %v6153_v6 = vld [vmem:[%s8250_s0 + $0x4a8] ss:$52 sps:$4 sm:$0xff]  }
 0x287   :  { %v3669_v36 = vpop.f32.mrf.mxu1  ;;  %v3893_v63 = vpop.f32.mrf.mxu0  ;;  %v6156_v59 = vld [vmem:[%s8250_s0 + $0x574] ss:$52 sps:$4 sm:$0xff]  }
 0x289   :  { %v3672_v61 = vpop.f32.mrf.mxu1  ;;  %v3896_v16 = vpop.f32.mrf.mxu0  ;;  %4127 = vmatmul.mubr.bf16.gmra.mxu1 %v6146_v44  ;;  %5539 = vmatmul.mubr.msk.bf16.gmra.mxu0 %vm2770_vm1, %v6149_v12 }
 0x28a   :  { %v3673_v3 = vadd.f32 %v3672_v61, %v7444_v57  ;;  %v7891_v18 = vadd.f32 %v3896_v16, %v3665_v25  ;;  %4134 = vmatprep.mubr.bf16.mxu1 %v6152_v38  ;;  %5542 = vmatprep.mubr.msk.bf16.mxu0 %vm6205_vm0, %v8259_v17 }
 0x28b   :  { %v3674_v50 = vpop.f32.mrf.mxu1  ;;  %v3898_v14 = vpop.f32.mrf.mxu0 }
 0x28c   :  { %v6154_v14 = vld [vmem:[%s8250_s0 + $0x570] ss:$52 sps:$4 sm:$0xff]  }
 0x28d   :  { %v3675_v20 = vpop.f32.mrf.mxu1  ;;  %v3899_v24 = vpop.f32.mrf.mxu0 }
 0x28e   :  { %v3676_v57 = vadd.f32 %v3675_v20, %v7454_v48  ;;  %v7902_v25 = vadd.f32 %v3899_v24, %v3668_v30  ;;  %v6157_v20 = vld [vmem:[%s8250_s0 + $0x510] ss:$52 sps:$4 sm:$0xff]  }
 0x28f   :  { %v3677_v44 = vpop.f32.mrf.mxu1  ;;  %v3901_v12 = vpop.f32.mrf.mxu0  ;;  %v6160_v24 = vld [vmem:[%s8250_s0 + $0x5dc] ss:$52 sps:$4 sm:$0xff]  }
 0x291   :  { %v3680_v38 = vpop.f32.mrf.mxu1  ;;  %v3904_v36 = vpop.f32.mrf.mxu0  ;;  %4135 = vmatmul.mubr.bf16.gmra.mxu1 %v6150_v43  ;;  %5543 = vmatmul.mubr.msk.bf16.gmra.mxu0 %vm2770_vm1, %v6153_v6 }
 0x292   :  { %v3681_v63 = vadd.f32 %v3680_v38, %v7464_v40  ;;  %v7909_v61 = vadd.f32 %v3904_v36, %v3673_v3  ;;  %4142 = vmatprep.mubr.bf16.mxu1 %v6156_v59  ;;  %5546 = vmatprep.mubr.msk.bf16.mxu0 %vm6205_vm0, %v8259_v17 }
 0x293   :  { %v3682_v48 = vpop.f32.mrf.mxu1  ;;  %v3906_v30 = vpop.f32.mrf.mxu0 }
 0x294   :  { %v6158_v30 = vld [vmem:[%s8250_s0 + $0x5d8] ss:$52 sps:$4 sm:$0xff]  }
 0x295   :  { %v3683_v16 = vpop.f32.mrf.mxu1  ;;  %v3907_v50 = vpop.f32.mrf.mxu0 }
 0x296   :  { %v3684_v40 = vadd.f32 %v3683_v16, %v7474_v8  ;;  %v7920_v3 = vadd.f32 %v3907_v50, %v3676_v57  ;;  %v6161_v16 = vld [vmem:[%s8250_s0 + $0x578] ss:$52 sps:$4 sm:$0xff]  }
 0x297   :  { %v3685_v43 = vpop.f32.mrf.mxu1  ;;  %v3909_v6 = vpop.f32.mrf.mxu0  ;;  %v6164_v50 = vld [vmem:[%s8250_s0 + $0x644] ss:$52 sps:$4 sm:$0xff]  }
 0x299   :  { %v3688_v59 = vpop.f32.mrf.mxu1  ;;  %v3912_v44 = vpop.f32.mrf.mxu0  ;;  %4143 = vmatmul.mubr.bf16.gmra.mxu1 %v6154_v14  ;;  %5547 = vmatmul.mubr.msk.bf16.gmra.mxu0 %vm2770_vm1, %v6157_v20 }
 0x29a   :  { %v3689_v12 = vadd.f32 %v3688_v59, %v7484_v7  ;;  %v7927_v38 = vadd.f32 %v3912_v44, %v3681_v63  ;;  %4150 = vmatprep.mubr.bf16.mxu1 %v6160_v24  ;;  %5550 = vmatprep.mubr.msk.bf16.mxu0 %vm6205_vm0, %v8259_v17 }
 0x29b   :  { %v3690_v8 = vpop.f32.mrf.mxu1  ;;  %v3914_v57 = vpop.f32.mrf.mxu0 }
 0x29c   :  { %v6162_v57 = vld [vmem:[%s8250_s0 + $0x640] ss:$52 sps:$4 sm:$0xff]  }
 0x29d   :  { %v3691_v36 = vpop.f32.mrf.mxu1  ;;  %v3915_v48 = vpop.f32.mrf.mxu0 }
 0x29e   :  { %v3692_v7 = vadd.f32 %v3691_v36, %v7494_v10  ;;  %v7938_v63 = vadd.f32 %v3915_v48, %v3684_v40  ;;  %v6165_v36 = vld [vmem:[%s8250_s0 + $0x5e0] ss:$52 sps:$4 sm:$0xff]  }
 0x29f   :  { %v3693_v14 = vpop.f32.mrf.mxu1  ;;  %v3917_v20 = vpop.f32.mrf.mxu0  ;;  %v6168_v48 = vld [vmem:[%s8250_s0 + $0x6ac] ss:$52 sps:$4 sm:$0xff]  }
 0x2a1   :  { %v3696_v24 = vpop.f32.mrf.mxu1  ;;  %v3920_v43 = vpop.f32.mrf.mxu0  ;;  %4151 = vmatmul.mubr.bf16.gmra.mxu1 %v6158_v30  ;;  %5551 = vmatmul.mubr.msk.bf16.gmra.mxu0 %vm2770_vm1, %v6161_v16 }
 0x2a2   :  { %v3697_v6 = vadd.f32 %v3696_v24, %v7504_v5  ;;  %v7945_v59 = vadd.f32 %v3920_v43, %v3689_v12  ;;  %4158 = vmatprep.mubr.bf16.mxu1 %v6164_v50  ;;  %5554 = vmatprep.mubr.msk.bf16.mxu0 %vm6205_vm0, %v8259_v17 }
 0x2a3   :  { %v3698_v10 = vpop.f32.mrf.mxu1  ;;  %v3922_v40 = vpop.f32.mrf.mxu0 }
 0x2a4   :  { %v6166_v40 = vld [vmem:[%s8250_s0 + $0x6a8] ss:$52 sps:$4 sm:$0xff]  }
 0x2a5   :  { %v3699_v44 = vpop.f32.mrf.mxu1  ;;  %v3923_v8 = vpop.f32.mrf.mxu0 }
 0x2a6   :  { %v3700_v5 = vadd.f32 %v3699_v44, %v7514_v0  ;;  %v7956_v12 = vadd.f32 %v3923_v8, %v3692_v7  ;;  %v6169_v44 = vld [vmem:[%s8250_s0 + $0x648] ss:$52 sps:$4 sm:$0xff]  }
 0x2a7   :  { %v3701_v30 = vpop.f32.mrf.mxu1  ;;  %v3925_v16 = vpop.f32.mrf.mxu0  ;;  %v6172_v8 = vld [vmem:[%s8250_s0 + $0x714] ss:$52 sps:$4 sm:$0xff]  }
 0x2a9   :  { %v3704_v50 = vpop.f32.mrf.mxu1  ;;  %v3928_v14 = vpop.f32.mrf.mxu0  ;;  %4159 = vmatmul.mubr.bf16.gmra.mxu1 %v6162_v57  ;;  %5555 = vmatmul.mubr.msk.bf16.gmra.mxu0 %vm2770_vm1, %v6165_v36 }
 0x2aa   :  { %v3705_v20 = vadd.f32 %v3704_v50, %v7524_v60  ;;  %v7963_v24 = vadd.f32 %v3928_v14, %v3697_v6  ;;  %4166 = vmatprep.mubr.bf16.mxu1 %v6168_v48  ;;  %5558 = vmatprep.mubr.msk.bf16.mxu0 %vm6205_vm0, %v8259_v17 }
 0x2ab   :  { %v3706_v0 = vpop.f32.mrf.mxu1  ;;  %v3930_v7 = vpop.f32.mrf.mxu0 }
 0x2ac   :  { %v6170_v7 = vld [vmem:[%s8250_s0 + $0x710] ss:$52 sps:$4 sm:$0xff]  }
 0x2ad   :  { %v3707_v43 = vpop.f32.mrf.mxu1  ;;  %v3931_v10 = vpop.f32.mrf.mxu0 }
 0x2ae   :  { %v3708_v60 = vadd.f32 %v3707_v43, %v7534_v22  ;;  %v7974_v6 = vadd.f32 %v3931_v10, %v3700_v5  ;;  %v6173_v43 = vld [vmem:[%s8250_s0 + $0x6b0] ss:$52 sps:$4 sm:$0xff]  }
 0x2af   :  { %v3709_v57 = vpop.f32.mrf.mxu1  ;;  %v3933_v36 = vpop.f32.mrf.mxu0  ;;  %v6176_v10 = vld [vmem:[%s8250_s0 + $0x77c] ss:$52 sps:$4 sm:$0xff]  }
 0x2b1   :  { %v3712_v48 = vpop.f32.mrf.mxu1  ;;  %v3936_v30 = vpop.f32.mrf.mxu0  ;;  %4167 = vmatmul.mubr.bf16.gmra.mxu1 %v6166_v40  ;;  %5559 = vmatmul.mubr.msk.bf16.gmra.mxu0 %vm2770_vm1, %v6169_v44 }
 0x2b2   :  { %v3713_v16 = vadd.f32 %v3712_v48, %v7544_v9  ;;  %v7981_v50 = vadd.f32 %v3936_v30, %v3705_v20  ;;  %4174 = vmatprep.mubr.bf16.mxu1 %v6172_v8  ;;  %5562 = vmatprep.mubr.msk.bf16.mxu0 %vm6205_vm0, %v8259_v17 }
 0x2b3   :  { %v3714_v22 = vpop.f32.mrf.mxu1  ;;  %v3938_v5 = vpop.f32.mrf.mxu0 }
 0x2b4   :  { %v6174_v5 = vld [vmem:[%s8250_s0 + $0x778] ss:$52 sps:$4 sm:$0xff]  }
 0x2b5   :  { %v3715_v14 = vpop.f32.mrf.mxu1  ;;  %v3939_v0 = vpop.f32.mrf.mxu0 }
 0x2b6   :  { %v3716_v9 = vadd.f32 %v3715_v14, %v7554_v47  ;;  %v7992_v20 = vadd.f32 %v3939_v0, %v3708_v60  ;;  %v6177_v14 = vld [vmem:[%s8250_s0 + $0x718] ss:$52 sps:$4 sm:$0xff]  }
 0x2b7   :  { %v3717_v40 = vpop.f32.mrf.mxu1  ;;  %v3941_v44 = vpop.f32.mrf.mxu0  ;;  %v6180_v0 = vld [vmem:[%s8250_s0 + $0x7e4] ss:$52 sps:$4 sm:$0xff]  }
 0x2b9   :  { %v3720_v8 = vpop.f32.mrf.mxu1  ;;  %v3944_v57 = vpop.f32.mrf.mxu0  ;;  %4175 = vmatmul.mubr.bf16.gmra.mxu1 %v6170_v7  ;;  %5563 = vmatmul.mubr.msk.bf16.gmra.mxu0 %vm2770_vm1, %v6173_v43 }
 0x2ba   :  { %v3721_v36 = vadd.f32 %v3720_v8, %v7564_v21  ;;  %v7999_v48 = vadd.f32 %v3944_v57, %v3713_v16  ;;  %4182 = vmatprep.mubr.bf16.mxu1 %v6176_v10  ;;  %5566 = vmatprep.mubr.msk.bf16.mxu0 %vm6205_vm0, %v8259_v17 }
 0x2bb   :  { %v3722_v47 = vpop.f32.mrf.mxu1  ;;  %v3946_v60 = vpop.f32.mrf.mxu0 }
 0x2bc   :  { %v6178_v60 = vld [vmem:[%s8250_s0 + $0x7e0] ss:$52 sps:$4 sm:$0xff]  }
 0x2bd   :  { %v3723_v30 = vpop.f32.mrf.mxu1  ;;  %v3947_v22 = vpop.f32.mrf.mxu0 }
 0x2be   :  { %v3724_v21 = vadd.f32 %v3723_v30, %v7574_v29  ;;  %v8010_v16 = vadd.f32 %v3947_v22, %v3716_v9  ;;  %v6181_v30 = vld [vmem:[%s8250_s0 + $0x780] ss:$52 sps:$4 sm:$0xff]  }
 0x2bf   :  { %v3725_v7 = vpop.f32.mrf.mxu1  ;;  %v3949_v43 = vpop.f32.mrf.mxu0  ;;  %v6184_v22 = vld [vmem:[%s8250_s0 + $0x84c] ss:$52 sps:$4 sm:$0xff]  }
 0x2c1   :  { %v3728_v10 = vpop.f32.mrf.mxu1  ;;  %v3952_v40 = vpop.f32.mrf.mxu0  ;;  %4183 = vmatmul.mubr.bf16.gmra.mxu1 %v6174_v5  ;;  %5567 = vmatmul.mubr.msk.bf16.gmra.mxu0 %vm2770_vm1, %v6177_v14 }
 0x2c2   :  { %v3729_v44 = vadd.f32 %v3728_v10, %v7584_v33  ;;  %v8017_v8 = vadd.f32 %v3952_v40, %v3721_v36  ;;  %4190 = vmatprep.mubr.bf16.mxu1 %v6180_v0  ;;  %5570 = vmatprep.mubr.msk.bf16.mxu0 %vm6205_vm0, %v8259_v17 }
 0x2c3   :  { %v3730_v29 = vpop.f32.mrf.mxu1  ;;  %v3954_v9 = vpop.f32.mrf.mxu0 }
 0x2c4   :  { %v6182_v9 = vld [vmem:[%s8250_s0 + $0x848] ss:$52 sps:$4 sm:$0xff]  }
 0x2c5   :  { %v3731_v57 = vpop.f32.mrf.mxu1  ;;  %v3955_v47 = vpop.f32.mrf.mxu0 }
 0x2c6   :  { %v3732_v33 = vadd.f32 %v3731_v57, %v7599_v55  ;;  %v8028_v36 = vadd.f32 %v3955_v47, %v3724_v21  ;;  %v6185_v57 = vld [vmem:[%s8250_s0 + $0x7e8] ss:$52 sps:$4 sm:$0xff]  }
 0x2c7   :  { %v3733_v5 = vpop.f32.mrf.mxu1  ;;  %v3957_v14 = vpop.f32.mrf.mxu0  ;;  %v6188_v47 = vld [vmem:[%s8250_s0 + $0x8b4] ss:$52 sps:$4 sm:$0xff]  }
 0x2c9   :  { %v3736_v0 = vpop.f32.mrf.mxu1  ;;  %v3960_v7 = vpop.f32.mrf.mxu0  ;;  %4191 = vmatmul.mubr.bf16.gmra.mxu1 %v6178_v60  ;;  %5571 = vmatmul.mubr.msk.bf16.gmra.mxu0 %vm2770_vm1, %v6181_v30 }
 0x2ca   :  { %v3737_v43 = vadd.f32 %v3736_v0, %v7609_v45  ;;  %v8035_v10 = vadd.f32 %v3960_v7, %v3729_v44  ;;  %4198 = vmatprep.mubr.bf16.mxu1 %v6184_v22  ;;  %5574 = vmatprep.mubr.msk.bf16.mxu0 %vm6205_vm0, %v8259_v17 }
 0x2cb   :  { %v3738_v55 = vpop.f32.mrf.mxu1  ;;  %v3962_v21 = vpop.f32.mrf.mxu0 }
 0x2cc   :  { %v6186_v21 = vld [vmem:[%s8250_s0 + $0x8b0] ss:$52 sps:$4 sm:$0xff]  }
 0x2cd   :  { %v3739_v40 = vpop.f32.mrf.mxu1  ;;  %v3963_v29 = vpop.f32.mrf.mxu0 }
 0x2ce   :  { %v3740_v45 = vadd.f32 %v3739_v40, %v7619_v1  ;;  %v8046_v44 = vadd.f32 %v3963_v29, %v3732_v33  ;;  %v6189_v40 = vld [vmem:[%s8250_s0 + $0x850] ss:$52 sps:$4 sm:$0xff]  }
 0x2cf   :  { %v3741_v60 = vpop.f32.mrf.mxu1  ;;  %v3965_v30 = vpop.f32.mrf.mxu0  ;;  %v8265_v29 = vld [vmem:[#allocation4_spill] sm:$0xff] }
 0x2d1   :  { %v3744_v22 = vpop.f32.mrf.mxu1  ;;  %v3968_v5 = vpop.f32.mrf.mxu0  ;;  %4199 = vmatmul.mubr.bf16.gmra.mxu1 %v6182_v9  ;;  %5575 = vmatmul.mubr.msk.bf16.gmra.mxu0 %vm2770_vm1, %v6185_v57  ;;  %v6192_v9 = vld [vmem:[%s8250_s0 + $0x91c] ss:$52 sps:$4 sm:$0xff]  }
 0x2d2   :  { %v3745_v14 = vadd.f32 %v3744_v22, %v7629_v58  ;;  %v8053_v0 = vadd.f32 %v3968_v5, %v3737_v43  ;;  %4206 = vmatprep.mubr.bf16.mxu1 %v6188_v47  ;;  %5578 = vmatprep.mubr.msk.bf16.mxu0 %vm6205_vm0, %v8259_v17  ;;  %v8266_v22 = vld [vmem:[#allocation5_spill] sm:$0xff] }
 0x2d3   :  { %v3746_v1 = vpop.f32.mrf.mxu1  ;;  %v3970_v33 = vpop.f32.mrf.mxu0 }
 0x2d5   :  { %v3747_v7 = vpop.f32.mrf.mxu1  ;;  %v3971_v55 = vpop.f32.mrf.mxu0 }
 0x2d6   :  { %v3748_v58 = vadd.f32 %v3747_v7, %v8265_v29  ;;  %v8064_v43 = vadd.f32 %v3971_v55, %v3740_v45  ;;  %v6190_v29 = vld [vmem:[%s8250_s0 + $0x918] ss:$52 sps:$4 sm:$0xff]  }
 0x2d7   :  { %v3749_v57 = vpop.f32.mrf.mxu1  ;;  %v3973_v47 = vpop.f32.mrf.mxu0 }
 0x2d9   :  { %v3752_v60 = vpop.f32.mrf.mxu1  ;;  %v3976_v30 = vpop.f32.mrf.mxu0  ;;  %4207 = vmatmul.mubr.bf16.gmra.mxu1 %v6186_v21  ;;  %5579 = vmatmul.mubr.msk.bf16.gmra.mxu0 %vm2770_vm1, %v6189_v40  ;;  %v6193_v21 = vld [vmem:[%s8250_s0 + $0x8b8] ss:$52 sps:$4 sm:$0xff]  }
 0x2da   :  { %v3753_v5 = vadd.f32 %v3752_v60, %v8266_v22  ;;  %v8071_v1 = vadd.f32 %v3976_v30, %v3745_v14  ;;  %4214 = vmatprep.mubr.bf16.mxu1 %v6192_v9  ;;  %5582 = vmatprep.mubr.msk.bf16.mxu0 %vm6205_vm0, %v8259_v17  ;;  %v6196_v9 = vld [vmem:[%s8250_s0 + $0x984] ss:$52 sps:$4 sm:$0xff]  }
 0x2db   :  { %v3754_v45 = vpop.f32.mrf.mxu1  ;;  %v3978_v33 = vpop.f32.mrf.mxu0 }
 0x2dc   :  { %8267 = vst [vmem:[#allocation2_spill] sm:$0xff] %v8071_v1  ;;  %v356_v33 = vld [vmem:[%s8250_s0 + $0x9e8] sm:$0xff] }
 0x2dd   :  { %v3755_v7 = vpop.f32.mrf.mxu1  ;;  %v3979_v55 = vpop.f32.mrf.mxu0 }
 0x2de   :  { %v3756_v40 = vadd.f32 %v3755_v7, %v7662_v19  ;;  %v8082_v14 = vadd.f32 %v3979_v55, %v3748_v58 }
 0x2df   :  { %v3757_v57 = vpop.f32.mrf.mxu1  ;;  %v3981_v47 = vpop.f32.mrf.mxu0 }
 0x2e0   :  { %8268 = vst [vmem:[#allocation3_spill] sm:$0xff] %v8082_v14 }
 0x2e1   :  { %v3760_v60 = vpop.f32.mrf.mxu1  ;;  %v3984_v30 = vpop.f32.mrf.mxu0  ;;  %4215 = vmatmul.mubr.bf16.gmra.mxu1 %v6190_v29  ;;  %5583 = vmatmul.mubr.msk.bf16.gmra.mxu0 %vm2770_vm1, %v6193_v21  ;;  %v6194_v29 = vld [vmem:[%s8250_s0 + $0x980] ss:$52 sps:$4 sm:$0xff]  }
 0x2e2   :  { %v3761_v22 = vadd.f32 %v3760_v60, %v7669_v13  ;;  %v8089_v45 = vadd.f32 %v3984_v30, %v3753_v5  ;;  %4222 = vmatprep.mubr.bf16.mxu1 %v6196_v9  ;;  %5586 = vmatprep.mubr.msk.bf16.mxu0 %vm6205_vm0, %v8259_v17  ;;  %v6197_v13 = vld [vmem:[%s8250_s0 + $0x920] ss:$52 sps:$4 sm:$0xff]   ;;  %v5093_v9 = vcombine.high %v356_v33, %v356_v33 }
 0x2e3   :  { %v3762_v19 = vpop.f32.mrf.mxu1  ;;  %v3986_v58 = vpop.f32.mrf.mxu0 }
 0x2e4   :  { %8269 = vst [vmem:[#allocation4_spill] sm:$0xff] %v8089_v45 }
 0x2e5   :  { %v3763_v7 = vpop.f32.mrf.mxu1  ;;  %v3987_v55 = vpop.f32.mrf.mxu0 }
 0x2e6   :  { %v3764_v5 = vadd.f32 %v3763_v7, %v7677_v11  ;;  %v8103_v21 = vadd.f32 %v3987_v55, %v3756_v40  ;;  %v5092_v55 = vcombine.low %v356_v33, %v356_v33 }
 0x2e7   :  { %v3765_v57 = vpop.f32.mrf.mxu1  ;;  %v3989_v47 = vpop.f32.mrf.mxu0 }
 0x2e8   :  { %8270 = vst [vmem:[#allocation5_spill] sm:$0xff] %v8103_v21  ;;  %v6200_v57 = vld [vmem:[%s8250_s0 + $0x988] ss:$52 sps:$4 sm:$0xff]  }
 0x2e9   :  { %v3768_v60 = vpop.f32.mrf.mxu1  ;;  %v3992_v30 = vpop.f32.mrf.mxu0  ;;  %4223 = vmatmul.mubr.bf16.gmra.mxu1 %v6194_v29  ;;  %5587 = vmatmul.mubr.msk.bf16.gmra.mxu0 %vm2770_vm1, %v6197_v13 }
 0x2ea   :  { %v3769_v19 = vadd.f32 %v3768_v60, %v7682_v31  ;;  %v8107_v58 = vadd.f32 %v3992_v30, %v3761_v22  ;;  %4230 = vmatprep.mubr.bf16.mxu1 %v5093_v9  ;;  %5590 = vmatprep.mubr.msk.bf16.mxu0 %vm6205_vm0, %v8259_v17 }
 0x2eb   :  { %v3770_v45 = vpop.f32.mrf.mxu1  ;;  %v3994_v11 = vpop.f32.mrf.mxu0 }
 0x2ec   :  { %8271 = vst [vmem:[#allocation6_spill] sm:$0xff] %v8107_v58 }
 0x2ed   :  { %v3771_v40 = vpop.f32.mrf.mxu1  ;;  %v3995_v7 = vpop.f32.mrf.mxu0 }
 0x2ee   :  { %v8114_v29 = vadd.f32 %v3995_v7, %v3764_v5  ;;  %v6201_v5 = vld [vmem:[%s8250_s0 + $0x9f0] ss:$0 sps:$4 sm:$0xff]  }
 0x2ef   :  { %v3772_v13 = vpop.f32.mrf.mxu1  ;;  %v3997_v47 = vpop.f32.mrf.mxu0 }
 0x2f0   :  { %8272 = vst [vmem:[#allocation7_spill] sm:$0xff] %v8114_v29 }
 0x2f1   :  { %v4000_v31 = vpop.f32.mrf.mxu0  ;;  %v4040_v22 = vpop.f32.mrf.mxu1  ;;  %4231 = vmatmul.mubr.bf16.gmra.mxu1 %v5092_v55  ;;  %5591 = vmatmul.mubr.msk.bf16.gmra.mxu0 %vm2770_vm1, %v6200_v57 }
 0x2f2   :  { %v8117_v9 = vadd.f32 %v4000_v31, %v3769_v19  ;;  %5594 = vmatprep.mubr.msk.bf16.mxu0 %vm6205_vm0, %v8259_v17  ;;  %v4041_v19 = vadd.f32 %v4040_v22, %v7693_v32 }
 0x2f3   :  { %v4002_v45 = vpop.f32.mrf.mxu0  ;;  %v4042_v33 = vpop.f32.mrf.mxu1 }
 0x2f4   :  { %8273 = vst [vmem:[#allocation8_spill] sm:$0xff] %v8117_v9 }
 0x2f5   :  { %v4003_v60 = vpop.f32.mrf.mxu0  ;;  %v4043_v30 = vpop.f32.mrf.mxu1 }
 0x2f6   :  { %v4044_v17 = vadd.f32 %v4043_v30, %v7704_v15 }
 0x2f7   :  { %v4004_v11 = vpop.f32.mrf.mxu0  ;;  %v4045_v40 = vpop.f32.mrf.mxu1 }
 0x2f9   :  { %v4048_v7 = vpop.f32.mrf.mxu1  ;;  %v4272_v13 = vpop.f32.mrf.mxu0  ;;  %5595 = vmatmul.mubr.msk.bf16.gmra.mxu0 %vm2770_vm1, %v6201_v5 }
 0x2fa   :  { %v4273_v47 = vadd.f32 %v4272_v13, %v4041_v19  ;;  %v4049_v21 = vadd.f32 %v4048_v7, %v7711_v26 }
 0x2fb   :  { %v4050_v55 = vpop.f32.mrf.mxu1  ;;  %v5500_v57 = vpop.f32.mrf.mxu0 }
 0x2fc   :  { %v4470_v29 = vmax.f32 %v4273_v47, 0.0 }
 0x2fd   :  { %v4051_v31 = vpop.f32.mrf.mxu1  ;;  %v4275_v45 = vpop.f32.mrf.mxu0 }
 0x2fe   :  { %v4276_v33 = vadd.f32 %v4275_v45, %v4044_v17  ;;  %v4052_v32 = vadd.f32 %v4051_v31, %v7722_v49 }
 0x2ff   :  { %v4053_v60 = vpop.f32.mrf.mxu1  ;;  %v5501_v9 = vpop.f32.mrf.mxu0 }
 0x300   :  { %v4471_v58 = vmax.f32 %v4276_v33, 0.0 }
 0x301   :  { %v4056_v11 = vpop.f32.mrf.mxu1  ;;  %v4280_v40 = vpop.f32.mrf.mxu0 }
 0x302   :  { %v5321_v14 = vpack.c.bf16 %v4471_v58, %v4470_v29  ;;  %v4281_v15 = vadd.f32 %v4280_v40, %v4049_v21  ;;  %v4057_v26 = vadd.f32 %v4056_v11, %v7729_v52 }
 0x303   :  { %v4058_v5 = vpop.f32.mrf.mxu1  ;;  %v5504_v1 = vpop.f32.mrf.mxu0 }
 0x304   :  { %5322 = vst [vmem:[%s8252_s3] sm:$0xff] %v5321_v14   ;;  %v4472_v55 = vmax.f32 %v4281_v15, 0.0 }
 0x305   :  { %v4059_v22 = vpop.f32.mrf.mxu1  ;;  %v4283_v30 = vpop.f32.mrf.mxu0 }
 0x306   :  { %v4284_v13 = vadd.f32 %v4283_v30, %v4052_v32  ;;  %v4060_v49 = vadd.f32 %v4059_v22, %v7740_v37 }
 0x307   :  { %v4061_v9 = vpop.f32.mrf.mxu1  ;;  %v5505_v19 = vpop.f32.mrf.mxu0 }
 0x308   :  { %v4473_v57 = vmax.f32 %v4284_v13, 0.0 }
 0x309   :  { %v4064_v17 = vpop.f32.mrf.mxu1  ;;  %v4288_v47 = vpop.f32.mrf.mxu0 }
 0x30a   :  { %v5326_v58 = vpack.c.bf16 %v4473_v57, %v4472_v55  ;;  %v4289_v14 = vadd.f32 %v4288_v47, %v4057_v26  ;;  %v4065_v52 = vadd.f32 %v4064_v17, %v7747_v39 }
 0x30b   :  { %v4066_v1 = vpop.f32.mrf.mxu1  ;;  %v5508_v29 = vpop.f32.mrf.mxu0 }
 0x30c   :  { %5438 = vst [vmem:[%s8252_s3 + $0x8] sm:$0xff] %v5326_v58   ;;  %v4474_v60 = vmax.f32 %v4289_v14, 0.0 }
 0x30d   :  { %v4067_v21 = vpop.f32.mrf.mxu1  ;;  %v4291_v7 = vpop.f32.mrf.mxu0 }
 0x30e   :  { %v4292_v31 = vadd.f32 %v4291_v7, %v4060_v49  ;;  %v4068_v37 = vadd.f32 %v4067_v21, %v7758_v34 }
 0x30f   :  { %v4069_v45 = vpop.f32.mrf.mxu1  ;;  %v5509_v33 = vpop.f32.mrf.mxu0 }
 0x310   :  { %v4475_v40 = vmax.f32 %v4292_v31, 0.0 }
 0x311   :  { %v4072_v5 = vpop.f32.mrf.mxu1  ;;  %v4296_v32 = vpop.f32.mrf.mxu0 }
 0x312   :  { %v5331_v11 = vpack.c.bf16 %v4475_v40, %v4474_v60  ;;  %v4297_v22 = vadd.f32 %v4296_v32, %v4065_v52  ;;  %v4073_v39 = vadd.f32 %v4072_v5, %v7765_v28 }
 0x313   :  { %v4074_v15 = vpop.f32.mrf.mxu1  ;;  %v5512_v30 = vpop.f32.mrf.mxu0 }
 0x314   :  { %5439 = vst [vmem:[%s8252_s3 + $0x10] sm:$0xff] %v5331_v11   ;;  %v4476_v47 = vmax.f32 %v4297_v22, 0.0 }
 0x315   :  { %v4075_v13 = vpop.f32.mrf.mxu1  ;;  %v4299_v9 = vpop.f32.mrf.mxu0 }
 0x316   :  { %v4300_v19 = vadd.f32 %v4299_v9, %v4068_v37  ;;  %v4076_v34 = vadd.f32 %v4075_v13, %v7776_v62 }
 0x317   :  { %v4077_v55 = vpop.f32.mrf.mxu1  ;;  %v5513_v57 = vpop.f32.mrf.mxu0 }
 0x318   :  { %v4477_v26 = vmax.f32 %v4300_v19, 0.0 }
 0x319   :  { %v4080_v58 = vpop.f32.mrf.mxu1  ;;  %v4304_v1 = vpop.f32.mrf.mxu0 }
 0x31a   :  { %v5336_v17 = vpack.c.bf16 %v4477_v26, %v4476_v47  ;;  %v4305_v14 = vadd.f32 %v4304_v1, %v4073_v39  ;;  %v4081_v28 = vadd.f32 %v4080_v58, %v7783_v56 }
 0x31b   :  { %v4082_v29 = vpop.f32.mrf.mxu1  ;;  %v5516_v49 = vpop.f32.mrf.mxu0 }
 0x31c   :  { %5440 = vst [vmem:[%s8252_s3 + $0x18] sm:$0xff] %v5336_v17   ;;  %v4478_v60 = vmax.f32 %v4305_v14, 0.0 }
 0x31d   :  { %v4083_v21 = vpop.f32.mrf.mxu1  ;;  %v4307_v7 = vpop.f32.mrf.mxu0 }
 0x31e   :  { %v4308_v31 = vadd.f32 %v4307_v7, %v4076_v34  ;;  %v4084_v62 = vadd.f32 %v4083_v21, %v7794_v46 }
 0x31f   :  { %v4085_v45 = vpop.f32.mrf.mxu1  ;;  %v5517_v33 = vpop.f32.mrf.mxu0 }
 0x320   :  { %v4479_v40 = vmax.f32 %v4308_v31, 0.0 }
 0x321   :  { %v4088_v32 = vpop.f32.mrf.mxu1  ;;  %v4312_v52 = vpop.f32.mrf.mxu0 }
 0x322   :  { %v5341_v5 = vpack.c.bf16 %v4479_v40, %v4478_v60  ;;  %v4313_v30 = vadd.f32 %v4312_v52, %v4081_v28  ;;  %v4089_v56 = vadd.f32 %v4088_v32, %v7801_v23 }
 0x323   :  { %v4090_v11 = vpop.f32.mrf.mxu1  ;;  %v5520_v15 = vpop.f32.mrf.mxu0 }
 0x324   :  { %5441 = vst [vmem:[%s8252_s3 + $0x20] sm:$0xff] %v5341_v5   ;;  %v4480_v55 = vmax.f32 %v4313_v30, 0.0 }
 0x325   :  { %v4091_v37 = vpop.f32.mrf.mxu1  ;;  %v4315_v22 = vpop.f32.mrf.mxu0 }
 0x326   :  { %v4316_v13 = vadd.f32 %v4315_v22, %v4084_v62  ;;  %v4092_v46 = vadd.f32 %v4091_v37, %v7812_v42 }
 0x327   :  { %v4093_v9 = vpop.f32.mrf.mxu1  ;;  %v5521_v19 = vpop.f32.mrf.mxu0 }
 0x328   :  { %v4481_v57 = vmax.f32 %v4316_v13, 0.0 }
 0x329   :  { %v4096_v47 = vpop.f32.mrf.mxu1  ;;  %v4320_v26 = vpop.f32.mrf.mxu0 }
 0x32a   :  { %v5346_v58 = vpack.c.bf16 %v4481_v57, %v4480_v55  ;;  %v4321_v17 = vadd.f32 %v4320_v26, %v4089_v56  ;;  %v4097_v23 = vadd.f32 %v4096_v47, %v7819_v4 }
 0x32b   :  { %v4098_v1 = vpop.f32.mrf.mxu1  ;;  %v5524_v39 = vpop.f32.mrf.mxu0 }
 0x32c   :  { %5442 = vst [vmem:[%s8252_s3 + $0x28] sm:$0xff] %v5346_v58   ;;  %v4482_v7 = vmax.f32 %v4321_v17, 0.0 }
 0x32d   :  { %v4099_v29 = vpop.f32.mrf.mxu1  ;;  %v4323_v49 = vpop.f32.mrf.mxu0 }
 0x32e   :  { %v4324_v34 = vadd.f32 %v4323_v49, %v4092_v46  ;;  %v4100_v42 = vadd.f32 %v4099_v29, %v7830_v53 }
 0x32f   :  { %v4101_v14 = vpop.f32.mrf.mxu1  ;;  %v5525_v21 = vpop.f32.mrf.mxu0 }
 0x330   :  { %v4483_v31 = vmax.f32 %v4324_v34, 0.0 }
 0x331   :  { %v4104_v45 = vpop.f32.mrf.mxu1  ;;  %v4328_v33 = vpop.f32.mrf.mxu0 }
 0x332   :  { %v5351_v60 = vpack.c.bf16 %v4483_v31, %v4482_v7  ;;  %v4329_v52 = vadd.f32 %v4328_v33, %v4097_v23  ;;  %v4105_v4 = vadd.f32 %v4104_v45, %v7837_v35 }
 0x333   :  { %v4106_v40 = vpop.f32.mrf.mxu1  ;;  %v5528_v32 = vpop.f32.mrf.mxu0 }
 0x334   :  { %5443 = vst [vmem:[%s8252_s3 + $0x30] sm:$0xff] %v5351_v60   ;;  %v4484_v30 = vmax.f32 %v4329_v52, 0.0 }
 0x335   :  { %v4107_v28 = vpop.f32.mrf.mxu1  ;;  %v4331_v5 = vpop.f32.mrf.mxu0 }
 0x336   :  { %v4332_v11 = vadd.f32 %v4331_v5, %v4100_v42  ;;  %v4108_v53 = vadd.f32 %v4107_v28, %v7848_v41 }
 0x337   :  { %v4109_v15 = vpop.f32.mrf.mxu1  ;;  %v5529_v62 = vpop.f32.mrf.mxu0 }
 0x338   :  { %v4485_v37 = vmax.f32 %v4332_v11, 0.0 }
 0x339   :  { %v4112_v22 = vpop.f32.mrf.mxu1  ;;  %v4336_v13 = vpop.f32.mrf.mxu0 }
 0x33a   :  { %v5356_v9 = vpack.c.bf16 %v4485_v37, %v4484_v30  ;;  %v4337_v57 = vadd.f32 %v4336_v13, %v4105_v4  ;;  %v4113_v35 = vadd.f32 %v4112_v22, %v7855_v27 }
 0x33b   :  { %v4114_v19 = vpop.f32.mrf.mxu1  ;;  %v5532_v55 = vpop.f32.mrf.mxu0 }
 0x33c   :  { %5444 = vst [vmem:[%s8252_s3 + $0x38] sm:$0xff] %v5356_v9   ;;  %v4486_v39 = vmax.f32 %v4337_v57, 0.0 }
 0x33d   :  { %v4115_v47 = vpop.f32.mrf.mxu1  ;;  %v4339_v26 = vpop.f32.mrf.mxu0 }
 0x33e   :  { %v4340_v56 = vadd.f32 %v4339_v26, %v4108_v53  ;;  %v4116_v41 = vadd.f32 %v4115_v47, %v7866_v51 }
 0x33f   :  { %v4117_v58 = vpop.f32.mrf.mxu1  ;;  %v5533_v1 = vpop.f32.mrf.mxu0 }
 0x340   :  { %v4487_v46 = vmax.f32 %v4340_v56, 0.0 }
 0x341   :  { %v4120_v17 = vpop.f32.mrf.mxu1  ;;  %v4344_v29 = vpop.f32.mrf.mxu0 }
 0x342   :  { %v5361_v49 = vpack.c.bf16 %v4487_v46, %v4486_v39  ;;  %v4345_v21 = vadd.f32 %v4344_v29, %v4113_v35  ;;  %v4121_v27 = vadd.f32 %v4120_v17, %v7873_v2 }
 0x343   :  { %v4122_v34 = vpop.f32.mrf.mxu1  ;;  %v5536_v14 = vpop.f32.mrf.mxu0 }
 0x344   :  { %5445 = vst [vmem:[%s8252_s3 + $0x40] sm:$0xff] %v5361_v49   ;;  %v4488_v60 = vmax.f32 %v4345_v21, 0.0 }
 0x345   :  { %v4123_v7 = vpop.f32.mrf.mxu1  ;;  %v4347_v31 = vpop.f32.mrf.mxu0 }
 0x346   :  { %v4348_v45 = vadd.f32 %v4347_v31, %v4116_v41  ;;  %v4124_v51 = vadd.f32 %v4123_v7, %v7884_v54 }
 0x347   :  { %v4125_v33 = vpop.f32.mrf.mxu1  ;;  %v5537_v23 = vpop.f32.mrf.mxu0 }
 0x348   :  { %v4489_v40 = vmax.f32 %v4348_v45, 0.0 }
 0x349   :  { %v4128_v32 = vpop.f32.mrf.mxu1  ;;  %v4352_v42 = vpop.f32.mrf.mxu0 }
 0x34a   :  { %v5366_v52 = vpack.c.bf16 %v4489_v40, %v4488_v60  ;;  %v4353_v11 = vadd.f32 %v4352_v42, %v4121_v27  ;;  %v4129_v2 = vadd.f32 %v4128_v32, %v7891_v18 }
 0x34b   :  { %v4130_v28 = vpop.f32.mrf.mxu1  ;;  %v5540_v5 = vpop.f32.mrf.mxu0 }
 0x34c   :  { %5446 = vst [vmem:[%s8252_s3 + $0x48] sm:$0xff] %v5366_v52   ;;  %v4490_v13 = vmax.f32 %v4353_v11, 0.0 }
 0x34d   :  { %v4131_v15 = vpop.f32.mrf.mxu1  ;;  %v4355_v62 = vpop.f32.mrf.mxu0 }
 0x34e   :  { %v4356_v30 = vadd.f32 %v4355_v62, %v4124_v51  ;;  %v4132_v54 = vadd.f32 %v4131_v15, %v7902_v25 }
 0x34f   :  { %v4133_v37 = vpop.f32.mrf.mxu1  ;;  %v5541_v22 = vpop.f32.mrf.mxu0 }
 0x350   :  { %v4491_v4 = vmax.f32 %v4356_v30, 0.0 }
 0x351   :  { %v4136_v9 = vpop.f32.mrf.mxu1  ;;  %v4360_v19 = vpop.f32.mrf.mxu0 }
 0x352   :  { %v5371_v55 = vpack.c.bf16 %v4491_v4, %v4490_v13  ;;  %v4361_v47 = vadd.f32 %v4360_v19, %v4129_v2  ;;  %v4137_v18 = vadd.f32 %v4136_v9, %v7909_v61 }
 0x353   :  { %v4138_v53 = vpop.f32.mrf.mxu1  ;;  %v5544_v57 = vpop.f32.mrf.mxu0 }
 0x354   :  { %5447 = vst [vmem:[%s8252_s3 + $0x50] sm:$0xff] %v5371_v55   ;;  %v4492_v46 = vmax.f32 %v4361_v47, 0.0 }
 0x355   :  { %v4139_v26 = vpop.f32.mrf.mxu1  ;;  %v4363_v56 = vpop.f32.mrf.mxu0 }
 0x356   :  { %v4364_v58 = vadd.f32 %v4363_v56, %v4132_v54  ;;  %v4140_v25 = vadd.f32 %v4139_v26, %v7920_v3 }
 0x357   :  { %v4141_v1 = vpop.f32.mrf.mxu1  ;;  %v5545_v39 = vpop.f32.mrf.mxu0 }
 0x358   :  { %v4493_v17 = vmax.f32 %v4364_v58, 0.0 }
 0x359   :  { %v4144_v29 = vpop.f32.mrf.mxu1  ;;  %v4368_v35 = vpop.f32.mrf.mxu0 }
 0x35a   :  { %v5376_v49 = vpack.c.bf16 %v4493_v17, %v4492_v46  ;;  %v4369_v41 = vadd.f32 %v4368_v35, %v4137_v18  ;;  %v4145_v61 = vadd.f32 %v4144_v29, %v7927_v38 }
 0x35b   :  { %v4146_v34 = vpop.f32.mrf.mxu1  ;;  %v5548_v14 = vpop.f32.mrf.mxu0 }
 0x35c   :  { %5448 = vst [vmem:[%s8252_s3 + $0x58] sm:$0xff] %v5376_v49   ;;  %v4494_v23 = vmax.f32 %v4369_v41, 0.0 }
 0x35d   :  { %v4147_v21 = vpop.f32.mrf.mxu1  ;;  %v4371_v7 = vpop.f32.mrf.mxu0 }
 0x35e   :  { %v4372_v31 = vadd.f32 %v4371_v7, %v4140_v25  ;;  %v4148_v3 = vadd.f32 %v4147_v21, %v7938_v63 }
 0x35f   :  { %v4149_v45 = vpop.f32.mrf.mxu1  ;;  %v5549_v33 = vpop.f32.mrf.mxu0 }
 0x360   :  { %v4495_v60 = vmax.f32 %v4372_v31, 0.0 }
 0x361   :  { %v4152_v40 = vpop.f32.mrf.mxu1  ;;  %v4376_v32 = vpop.f32.mrf.mxu0 }
 0x362   :  { %v5381_v42 = vpack.c.bf16 %v4495_v60, %v4494_v23  ;;  %v4377_v28 = vadd.f32 %v4376_v32, %v4145_v61  ;;  %v4153_v38 = vadd.f32 %v4152_v40, %v7945_v59 }
 0x363   :  { %v4154_v27 = vpop.f32.mrf.mxu1  ;;  %v5552_v52 = vpop.f32.mrf.mxu0 }
 0x364   :  { %5449 = vst [vmem:[%s8252_s3 + $0x60] sm:$0xff] %v5381_v42   ;;  %v4496_v30 = vmax.f32 %v4377_v28, 0.0 }
 0x365   :  { %v4155_v5 = vpop.f32.mrf.mxu1  ;;  %v4379_v51 = vpop.f32.mrf.mxu0 }
 0x366   :  { %v4380_v11 = vadd.f32 %v4379_v51, %v4148_v3  ;;  %v4156_v63 = vadd.f32 %v4155_v5, %v7956_v12 }
 0x367   :  { %v4157_v15 = vpop.f32.mrf.mxu1  ;;  %v5553_v62 = vpop.f32.mrf.mxu0 }
 0x368   :  { %v4497_v37 = vmax.f32 %v4380_v11, 0.0 }
 0x369   :  { %v4160_v22 = vpop.f32.mrf.mxu1  ;;  %v4384_v13 = vpop.f32.mrf.mxu0 }
 0x36a   :  { %v5386_v4 = vpack.c.bf16 %v4497_v37, %v4496_v30  ;;  %v4385_v2 = vadd.f32 %v4384_v13, %v4153_v38  ;;  %v4161_v59 = vadd.f32 %v4160_v22, %v7963_v24 }
 0x36b   :  { %v4162_v9 = vpop.f32.mrf.mxu1  ;;  %v5556_v19 = vpop.f32.mrf.mxu0 }
 0x36c   :  { %5450 = vst [vmem:[%s8252_s3 + $0x68] sm:$0xff] %v5386_v4   ;;  %v4498_v26 = vmax.f32 %v4385_v2, 0.0 }
 0x36d   :  { %v4163_v55 = vpop.f32.mrf.mxu1  ;;  %v4387_v53 = vpop.f32.mrf.mxu0 }
 0x36e   :  { %v4388_v57 = vadd.f32 %v4387_v53, %v4156_v63  ;;  %v4164_v12 = vadd.f32 %v4163_v55, %v7974_v6 }
 0x36f   :  { %v4165_v54 = vpop.f32.mrf.mxu1  ;;  %v5557_v47 = vpop.f32.mrf.mxu0 }
 0x370   :  { %v4499_v56 = vmax.f32 %v4388_v57, 0.0 }
 0x371   :  { %v4168_v58 = vpop.f32.mrf.mxu1  ;;  %v4392_v1 = vpop.f32.mrf.mxu0 }
 0x372   :  { %v5391_v39 = vpack.c.bf16 %v4499_v56, %v4498_v26  ;;  %v4393_v29 = vadd.f32 %v4392_v1, %v4161_v59  ;;  %v4169_v24 = vadd.f32 %v4168_v58, %v7981_v50 }
 0x373   :  { %v4170_v46 = vpop.f32.mrf.mxu1  ;;  %v5560_v17 = vpop.f32.mrf.mxu0 }
 0x374   :  { %5451 = vst [vmem:[%s8252_s3 + $0x70] sm:$0xff] %v5391_v39   ;;  %v4500_v25 = vmax.f32 %v4393_v29, 0.0 }
 0x375   :  { %v4171_v35 = vpop.f32.mrf.mxu1  ;;  %v4395_v18 = vpop.f32.mrf.mxu0 }
 0x376   :  { %v4396_v49 = vadd.f32 %v4395_v18, %v4164_v12  ;;  %v4172_v6 = vadd.f32 %v4171_v35, %v7992_v20 }
 0x377   :  { %v4173_v34 = vpop.f32.mrf.mxu1  ;;  %v5561_v14 = vpop.f32.mrf.mxu0 }
 0x378   :  { %v4501_v41 = vmax.f32 %v4396_v49, 0.0 }
 0x379   :  { %v4176_v21 = vpop.f32.mrf.mxu1  ;;  %v4400_v7 = vpop.f32.mrf.mxu0 }
 0x37a   :  { %v5396_v31 = vpack.c.bf16 %v4501_v41, %v4500_v25  ;;  %v4401_v23 = vadd.f32 %v4400_v7, %v4169_v24  ;;  %v4177_v50 = vadd.f32 %v4176_v21, %v7999_v48 }
 0x37b   :  { %v4178_v45 = vpop.f32.mrf.mxu1  ;;  %v5564_v33 = vpop.f32.mrf.mxu0 }
 0x37c   :  { %5452 = vst [vmem:[%s8252_s3 + $0x78] sm:$0xff] %v5396_v31   ;;  %v4502_v27 = vmax.f32 %v4401_v23, 0.0 }
 0x37d   :  { %v4179_v60 = vpop.f32.mrf.mxu1  ;;  %v4403_v40 = vpop.f32.mrf.mxu0 }
 0x37e   :  { %v4404_v32 = vadd.f32 %v4403_v40, %v4172_v6  ;;  %v4180_v20 = vadd.f32 %v4179_v60, %v8010_v16 }
 0x37f   :  { %v4181_v61 = vpop.f32.mrf.mxu1  ;;  %v5565_v42 = vpop.f32.mrf.mxu0 }
 0x380   :  { %v4503_v52 = vmax.f32 %v4404_v32, 0.0 }
 0x381   :  { %v4184_v3 = vpop.f32.mrf.mxu1  ;;  %v4408_v28 = vpop.f32.mrf.mxu0 }
 0x382   :  { %v5401_v5 = vpack.c.bf16 %v4503_v52, %v4502_v27  ;;  %v4409_v15 = vadd.f32 %v4408_v28, %v4177_v50  ;;  %v4185_v48 = vadd.f32 %v4184_v3, %v8017_v8 }
 0x383   :  { %v4186_v51 = vpop.f32.mrf.mxu1  ;;  %v5568_v11 = vpop.f32.mrf.mxu0 }
 0x384   :  { %5453 = vst [vmem:[%s8252_s3 + $0x80] sm:$0xff] %v5401_v5   ;;  %v4504_v38 = vmax.f32 %v4409_v15, 0.0 }
 0x385   :  { %v4187_v62 = vpop.f32.mrf.mxu1  ;;  %v4411_v30 = vpop.f32.mrf.mxu0 }
 0x386   :  { %v4412_v37 = vadd.f32 %v4411_v30, %v4180_v20  ;;  %v4188_v16 = vadd.f32 %v4187_v62, %v8028_v36 }
 0x387   :  { %v4189_v22 = vpop.f32.mrf.mxu1  ;;  %v5569_v13 = vpop.f32.mrf.mxu0 }
 0x388   :  { %v4505_v4 = vmax.f32 %v4412_v37, 0.0 }
 0x389   :  { %v4192_v9 = vpop.f32.mrf.mxu1  ;;  %v4416_v19 = vpop.f32.mrf.mxu0 }
 0x38a   :  { %v5406_v63 = vpack.c.bf16 %v4505_v4, %v4504_v38  ;;  %v4417_v53 = vadd.f32 %v4416_v19, %v4185_v48  ;;  %v4193_v8 = vadd.f32 %v4192_v9, %v8035_v10  ;;  %v8276_v9 = vld [vmem:[#allocation4_spill] sm:$0xff] }
 0x38b   :  { %v4194_v2 = vpop.f32.mrf.mxu1  ;;  %v5572_v55 = vpop.f32.mrf.mxu0 }
 0x38c   :  { %5454 = vst [vmem:[%s8252_s3 + $0x88] sm:$0xff] %v5406_v63   ;;  %v4506_v58 = vmax.f32 %v4417_v53, 0.0  ;;  %v8277_v55 = vld [vmem:[#allocation5_spill] sm:$0xff] }
 0x38d   :  { %v4195_v57 = vpop.f32.mrf.mxu1  ;;  %v4419_v54 = vpop.f32.mrf.mxu0 }
 0x38e   :  { %v4420_v47 = vadd.f32 %v4419_v54, %v4188_v16  ;;  %v4196_v36 = vadd.f32 %v4195_v57, %v8046_v44 }
 0x38f   :  { %v4197_v26 = vpop.f32.mrf.mxu1  ;;  %v5573_v56 = vpop.f32.mrf.mxu0 }
 0x390   :  { %v4507_v1 = vmax.f32 %v4420_v47, 0.0 }
 0x391   :  { %v4200_v59 = vpop.f32.mrf.mxu1  ;;  %v4424_v39 = vpop.f32.mrf.mxu0 }
 0x392   :  { %v5411_v46 = vpack.c.bf16 %v4507_v1, %v4506_v58  ;;  %v4425_v29 = vadd.f32 %v4424_v39, %v4193_v8  ;;  %v4201_v10 = vadd.f32 %v4200_v59, %v8053_v0  ;;  %v8274_v0 = vld [vmem:[#allocation2_spill] sm:$0xff] }
 0x393   :  { %v4202_v17 = vpop.f32.mrf.mxu1  ;;  %v5576_v12 = vpop.f32.mrf.mxu0  ;;  %v8278_v8 = vld [vmem:[#allocation6_spill] sm:$0xff] }
 0x394   :  { %5455 = vst [vmem:[%s8252_s3 + $0x90] sm:$0xff] %v5411_v46   ;;  %v4508_v25 = vmax.f32 %v4425_v29, 0.0  ;;  %v8279_v29 = vld [vmem:[#allocation7_spill] sm:$0xff] }
 0x395   :  { %v4203_v35 = vpop.f32.mrf.mxu1  ;;  %v4427_v18 = vpop.f32.mrf.mxu0 }
 0x396   :  { %v4428_v49 = vadd.f32 %v4427_v18, %v4196_v36  ;;  %v4204_v44 = vadd.f32 %v4203_v35, %v8064_v43  ;;  %v8275_v43 = vld [vmem:[#allocation3_spill] sm:$0xff] }
 0x397   :  { %v4205_v34 = vpop.f32.mrf.mxu1  ;;  %v5577_v14 = vpop.f32.mrf.mxu0 }
 0x398   :  { %v4509_v41 = vmax.f32 %v4428_v49, 0.0 }
 0x399   :  { %v4208_v21 = vpop.f32.mrf.mxu1  ;;  %v4432_v7 = vpop.f32.mrf.mxu0 }
 0x39a   :  { %v5416_v24 = vpack.c.bf16 %v4509_v41, %v4508_v25  ;;  %v4433_v33 = vadd.f32 %v4432_v7, %v4201_v10  ;;  %v4209_v3 = vadd.f32 %v4208_v21, %v8274_v0  ;;  %v8280_v21 = vld [vmem:[#allocation8_spill] sm:$0xff] }
 0x39b   :  { %v4210_v31 = vpop.f32.mrf.mxu1  ;;  %v5580_v45 = vpop.f32.mrf.mxu0 }
 0x39c   :  { %5456 = vst [vmem:[%s8252_s3 + $0x98] sm:$0xff] %v5416_v24   ;;  %v4510_v61 = vmax.f32 %v4433_v33, 0.0 }
 0x39d   :  { %v4211_v6 = vpop.f32.mrf.mxu1  ;;  %v4435_v23 = vpop.f32.mrf.mxu0 }
 0x39e   :  { %v4436_v60 = vadd.f32 %v4435_v23, %v4204_v44  ;;  %v4212_v51 = vadd.f32 %v4211_v6, %v8275_v43 }
 0x39f   :  { %v4213_v40 = vpop.f32.mrf.mxu1  ;;  %v5581_v32 = vpop.f32.mrf.mxu0 }
 0x3a0   :  { %v4511_v42 = vmax.f32 %v4436_v60, 0.0 }
 0x3a1   :  { %v4216_v27 = vpop.f32.mrf.mxu1  ;;  %v4440_v52 = vpop.f32.mrf.mxu0 }
 0x3a2   :  { %v5421_v28 = vpack.c.bf16 %v4511_v42, %v4510_v61  ;;  %v4441_v11 = vadd.f32 %v4440_v52, %v4209_v3  ;;  %v4217_v19 = vadd.f32 %v4216_v27, %v8276_v9 }
 0x3a3   :  { %v4218_v50 = vpop.f32.mrf.mxu1  ;;  %v5584_v5 = vpop.f32.mrf.mxu0 }
 0x3a4   :  { %5457 = vst [vmem:[%s8252_s3 + $0xa0] sm:$0xff] %v5421_v28   ;;  %v4512_v22 = vmax.f32 %v4441_v11, 0.0 }
 0x3a5   :  { %v4219_v20 = vpop.f32.mrf.mxu1  ;;  %v4443_v15 = vpop.f32.mrf.mxu0 }
 0x3a6   :  { %v4444_v62 = vadd.f32 %v4443_v15, %v4212_v51  ;;  %v4220_v16 = vadd.f32 %v4219_v20, %v8277_v55 }
 0x3a7   :  { %v4221_v30 = vpop.f32.mrf.mxu1  ;;  %v5585_v37 = vpop.f32.mrf.mxu0 }
 0x3a8   :  { %v4513_v13 = vmax.f32 %v4444_v62, 0.0 }
 0x3a9   :  { %v4224_v38 = vpop.f32.mrf.mxu1  ;;  %v4448_v4 = vpop.f32.mrf.mxu0 }
 0x3aa   :  { %v5426_v48 = vpack.c.bf16 %v4513_v13, %v4512_v22  ;;  %v4449_v53 = vadd.f32 %v4448_v4, %v4217_v19  ;;  %v4225_v46 = vadd.f32 %v4224_v38, %v8278_v8 }
 0x3ab   :  { %v4226_v63 = vpop.f32.mrf.mxu1  ;;  %v5588_v2 = vpop.f32.mrf.mxu0 }
 0x3ac   :  { %5458 = vst [vmem:[%s8252_s3 + $0xa8] sm:$0xff] %v5426_v48   ;;  %v4514_v58 = vmax.f32 %v4449_v53, 0.0 }
 0x3ad   :  { %v4227_v57 = vpop.f32.mrf.mxu1  ;;  %v4451_v54 = vpop.f32.mrf.mxu0 }
 0x3ae   :  { %v4452_v47 = vadd.f32 %v4451_v54, %v4220_v16  ;;  %v4228_v35 = vadd.f32 %v4227_v57, %v8279_v29 }
 0x3af   :  { %v4229_v26 = vpop.f32.mrf.mxu1  ;;  %v5589_v56 = vpop.f32.mrf.mxu0 }
 0x3b0   :  { %v4515_v1 = vmax.f32 %v4452_v47, 0.0 }
 0x3b1   :  { %v4232_v59 = vpop.f32.mrf.mxu1  ;;  %v4456_v39 = vpop.f32.mrf.mxu0 }
 0x3b2   :  { %v5431_v17 = vpack.c.bf16 %v4515_v1, %v4514_v58  ;;  %v4457_v18 = vadd.f32 %v4456_v39, %v4225_v46  ;;  %v4233_v7 = vadd.f32 %v4232_v59, %v8280_v21 }
 0x3b3   :  { %v5592_v12 = vpop.f32.mrf.mxu0  ;;  %v4234_v36 = vpop.f32.mrf.mxu1 }
 0x3b4   :  { %5459 = vst [vmem:[%s8252_s3 + $0xb0] sm:$0xff] %v5431_v17   ;;  %v4516_v10 = vmax.f32 %v4457_v18, 0.0 }
 0x3b5   :  { %v4459_v49 = vpop.f32.mrf.mxu0  ;;  %v4235_v34 = vpop.f32.mrf.mxu1 }
 0x3b6   :  { %v4460_v14 = vadd.f32 %v4459_v49, %v4228_v35 }
 0x3b7   :  { %v5593_v25 = vpop.f32.mrf.mxu0  ;;  %v4236_v41 = vpop.f32.mrf.mxu1 }
 0x3b8   :  { %v4517_v24 = vmax.f32 %v4460_v14, 0.0 }
 0x3b9   :  { %v4464_v31 = vpop.f32.mrf.mxu0 }
 0x3ba   :  { %v5436_v45 = vpack.c.bf16 %v4517_v24, %v4516_v10  ;;  %v4465_v44 = vadd.f32 %v4464_v31, %v4233_v7 }
 0x3bb   :  { %v5596_v33 = vpop.f32.mrf.mxu0 }
 0x3bc   :  { %5460 = vst [vmem:[%s8252_s3 + $0xb8] sm:$0xff] %v5436_v45   ;;  %v4518_v6 = vmax.f32 %v4465_v44, 0.0 }
 0x3bd   :  { %v4467_v23 = vpop.f32.mrf.mxu0 }
 0x3be   :  { %v5317_v60 = vpack.c.bf16 %v4518_v6, %v4518_v6 }
 0x3bf   :  { %v5597_v40 = vpop.f32.mrf.mxu0 }
 0x3c0   :  { %4764 = vst [vmem:[%s8252_s3 + $0xc0] sm:$0xf] %v5317_v60 }

// kernel: _lambda_.8
= control target key start
LH: loop header
LB: loop body
LE: loop exit
PB: predicated region body
PF: predicated region fallthrough
CT: control target
= control target key end

     0   :  { %s2857_s1 = inlined_call_operand.vmem [shape: bf16[1152,256], index: 1, kind: input, shape index: {}]   ;;  %s2858_s0 = inlined_call_operand.vmem [shape: bf16[72,1152], index: 0, kind: input, shape index: {}]   ;;  %s2859_s2 = inlined_call_operand.vmem [shape: f32[1,256], index: 2, kind: input, shape index: {}]   ;;  %s2860_s3 = inlined_call_operand.vmem [shape: bf16[72,256], index: 3, kind: output, shape index: {}]  }
   0x1   :  { %v1868_v0 = vld [vmem:[%s2857_s1 + $0x74] ss:$8 sps:$4 sm:$0xff]   ;;  %v1872_v2 = vld [vmem:[%s2857_s1 + $0x70] ss:$8 sps:$4 sm:$0xff]   ;;  %v1874_v4 = vld [vmem:[%s2857_s1 + $0x64] ss:$8 sps:$4 sm:$0xff]  }
   0x2   :  { %v1870_v1 = vld [vmem:[%s2857_s1 + $0x174] ss:$8 sps:$4 sm:$0xff]   ;;  %1152 = vmatprep.subr.bf16.mxu0 %v1868_v0  ;;  %v1873_v3 = vld [vmem:[%s2857_s1 + $0x170] ss:$8 sps:$4 sm:$0xff]   ;;  %v1876_v5 = vld [vmem:[%s2857_s1 + $0x164] ss:$8 sps:$4 sm:$0xff]  }
   0x3   :  { %1233 = vmatprep.subr.bf16.mxu1 %v1870_v1  ;;  %1153 = vmatpush1.bf16.msra.mxu0 %v1872_v2  ;;  %v1878_v6 = vld [vmem:[%s2857_s1 + $0x60] ss:$8 sps:$4 sm:$0xff]   ;;  %v1880_v8 = vld [vmem:[%s2857_s1 + $0x54] ss:$8 sps:$4 sm:$0xff]   ;;  %v1884_v10 = vld [vmem:[%s2857_s1 + $0x50] ss:$8 sps:$4 sm:$0xff]  }
   0x4   :  { %1234 = vmatpush1.bf16.msra.mxu1 %v1873_v3  ;;  %1154 = vmatprep.subr.bf16.mxu0 %v1874_v4  ;;  %v1879_v7 = vld [vmem:[%s2857_s1 + $0x160] ss:$8 sps:$4 sm:$0xff]   ;;  %v1882_v9 = vld [vmem:[%s2857_s1 + $0x154] ss:$8 sps:$4 sm:$0xff]   ;;  %v1885_v11 = vld [vmem:[%s2857_s1 + $0x150] ss:$8 sps:$4 sm:$0xff]  }
   0x5   :  { %1235 = vmatprep.subr.bf16.mxu1 %v1876_v5  ;;  %v1886_v12 = vld [vmem:[%s2857_s1 + $0x44] ss:$8 sps:$4 sm:$0xff]   ;;  %v1890_v14 = vld [vmem:[%s2857_s1 + $0x40] ss:$8 sps:$4 sm:$0xff]   ;;  %v1892_v16 = vld [vmem:[%s2857_s1 + $0x34] ss:$8 sps:$4 sm:$0xff]  }
   0x6   :  { %v1888_v13 = vld [vmem:[%s2857_s1 + $0x144] ss:$8 sps:$4 sm:$0xff]   ;;  %v1891_v15 = vld [vmem:[%s2857_s1 + $0x140] ss:$8 sps:$4 sm:$0xff]   ;;  %v1894_v17 = vld [vmem:[%s2857_s1 + $0x134] ss:$8 sps:$4 sm:$0xff]  }
   0x7   :  { %1155 = vmatpush1.bf16.msra.mxu0 %v1878_v6  ;;  %v1896_v18 = vld [vmem:[%s2857_s1 + $0x30] ss:$8 sps:$4 sm:$0xff]   ;;  %v1898_v20 = vld [vmem:[%s2857_s1 + $0x24] ss:$8 sps:$4 sm:$0xff]   ;;  %v1902_v22 = vld [vmem:[%s2857_s1 + $0x20] ss:$8 sps:$4 sm:$0xff]  }
   0x8   :  { %1236 = vmatpush1.bf16.msra.mxu1 %v1879_v7  ;;  %1156 = vmatprep.subr.bf16.mxu0 %v1880_v8  ;;  %v1897_v19 = vld [vmem:[%s2857_s1 + $0x130] ss:$8 sps:$4 sm:$0xff]   ;;  %v1900_v21 = vld [vmem:[%s2857_s1 + $0x124] ss:$8 sps:$4 sm:$0xff]   ;;  %v1903_v23 = vld [vmem:[%s2857_s1 + $0x120] ss:$8 sps:$4 sm:$0xff]  }
   0x9   :  { %1237 = vmatprep.subr.bf16.mxu1 %v1882_v9  ;;  %v1904_v24 = vld [vmem:[%s2857_s1 + $0x14] ss:$8 sps:$4 sm:$0xff]   ;;  %v1908_v26 = vld [vmem:[%s2857_s1 + $0x10] ss:$8 sps:$4 sm:$0xff]   ;;  %v1910_v28 = vld [vmem:[%s2857_s1 + $0x4] ss:$8 sps:$4 sm:$0xff]  }
   0xa   :  { %v1906_v25 = vld [vmem:[%s2857_s1 + $0x114] ss:$8 sps:$4 sm:$0xff]   ;;  %v1909_v27 = vld [vmem:[%s2857_s1 + $0x110] ss:$8 sps:$4 sm:$0xff]   ;;  %v1912_v29 = vld [vmem:[%s2857_s1 + $0x104] ss:$8 sps:$4 sm:$0xff]  }
   0xb   :  { %1157 = vmatpush1.bf16.msra.mxu0 %v1884_v10  ;;  %v1914_v30 = vld [vmem:[%s2857_s1] ss:$8 sps:$4 sm:$0xff]   ;;  %v1916_v32 = vld [vmem:[%s2857_s1 + $0xf4] ss:$8 sps:$4 sm:$0xff]   ;;  %v1920_v34 = vld [vmem:[%s2857_s1 + $0xf0] ss:$8 sps:$4 sm:$0xff]  }
   0xc   :  { %1238 = vmatpush1.bf16.msra.mxu1 %v1885_v11  ;;  %1158 = vmatprep.subr.bf16.mxu0 %v1886_v12  ;;  %v1915_v31 = vld [vmem:[%s2857_s1 + $0x100] ss:$8 sps:$4 sm:$0xff]   ;;  %v1918_v33 = vld [vmem:[%s2857_s1 + $0x1f4] ss:$8 sps:$4 sm:$0xff]   ;;  %v1921_v35 = vld [vmem:[%s2857_s1 + $0x1f0] ss:$8 sps:$4 sm:$0xff]  }
   0xd   :  { %1239 = vmatprep.subr.bf16.mxu1 %v1888_v13  ;;  %v1922_v36 = vld [vmem:[%s2857_s1 + $0xe4] ss:$8 sps:$4 sm:$0xff]   ;;  %v1926_v38 = vld [vmem:[%s2857_s1 + $0xe0] ss:$8 sps:$4 sm:$0xff]   ;;  %v1928_v40 = vld [vmem:[%s2857_s1 + $0xd4] ss:$8 sps:$4 sm:$0xff]  }
   0xe   :  { %v1924_v37 = vld [vmem:[%s2857_s1 + $0x1e4] ss:$8 sps:$4 sm:$0xff]   ;;  %v1927_v39 = vld [vmem:[%s2857_s1 + $0x1e0] ss:$8 sps:$4 sm:$0xff]   ;;  %v1930_v41 = vld [vmem:[%s2857_s1 + $0x1d4] ss:$8 sps:$4 sm:$0xff]  }
   0xf   :  { %1159 = vmatpush1.bf16.msra.mxu0 %v1890_v14  ;;  %v1932_v42 = vld [vmem:[%s2857_s1 + $0xd0] ss:$8 sps:$4 sm:$0xff]   ;;  %v1934_v44 = vld [vmem:[%s2857_s1 + $0xc4] ss:$8 sps:$4 sm:$0xff]   ;;  %v1938_v46 = vld [vmem:[%s2857_s1 + $0xc0] ss:$8 sps:$4 sm:$0xff]  }
  0x10   :  { %1240 = vmatpush1.bf16.msra.mxu1 %v1891_v15  ;;  %1160 = vmatprep.subr.bf16.mxu0 %v1892_v16  ;;  %v1933_v43 = vld [vmem:[%s2857_s1 + $0x1d0] ss:$8 sps:$4 sm:$0xff]   ;;  %v1936_v45 = vld [vmem:[%s2857_s1 + $0x1c4] ss:$8 sps:$4 sm:$0xff]   ;;  %v1939_v47 = vld [vmem:[%s2857_s1 + $0x1c0] ss:$8 sps:$4 sm:$0xff]  }
  0x11   :  { %1241 = vmatprep.subr.bf16.mxu1 %v1894_v17  ;;  %v1940_v48 = vld [vmem:[%s2857_s1 + $0xb4] ss:$8 sps:$4 sm:$0xff]   ;;  %v1966_v49 = vld [vmem:[%s2858_s0 + $0x4] ss:$36 sps:$4 sm:$0xff]   ;;  %v1969_v51 = vld [vmem:[%s2858_s0 + $0xc] ss:$36 sps:$4 sm:$0xff]  }
  0x12   :  { %v1942_v50 = vld [vmem:[%s2857_s1 + $0x1b4] ss:$8 sps:$4 sm:$0xff]   ;;  %1184 = vmatprep.mubr.bf16.mxu0 %v1966_v49  ;;  %v1944_v52 = vld [vmem:[%s2857_s1 + $0xb0] ss:$8 sps:$4 sm:$0xff]   ;;  %1265 = vmatprep.mubr.bf16.mxu1 %v1969_v51  ;;  %v1946_v54 = vld [vmem:[%s2857_s1 + $0xa4] ss:$8 sps:$4 sm:$0xff]  }
  0x13   :  { %1161 = vmatpush1.bf16.msra.mxu0 %v1896_v18  ;;  %v1945_v53 = vld [vmem:[%s2857_s1 + $0x1b0] ss:$8 sps:$4 sm:$0xff]   ;;  %v1948_v55 = vld [vmem:[%s2857_s1 + $0x1a4] ss:$8 sps:$4 sm:$0xff]   ;;  %v1950_v56 = vld [vmem:[%s2857_s1 + $0xa0] ss:$8 sps:$4 sm:$0xff]  }
  0x14   :  { %1242 = vmatpush1.bf16.msra.mxu1 %v1897_v19  ;;  %1162 = vmatprep.subr.bf16.mxu0 %v1898_v20  ;;  %v1951_v57 = vld [vmem:[%s2857_s1 + $0x1a0] ss:$8 sps:$4 sm:$0xff]   ;;  %v1952_v58 = vld [vmem:[%s2857_s1 + $0x94] ss:$8 sps:$4 sm:$0xff]   ;;  %v1956_v60 = vld [vmem:[%s2857_s1 + $0x90] ss:$8 sps:$4 sm:$0xff]  }
  0x15   :  { %1243 = vmatprep.subr.bf16.mxu1 %v1900_v21  ;;  %v1954_v59 = vld [vmem:[%s2857_s1 + $0x194] ss:$8 sps:$4 sm:$0xff]   ;;  %v1957_v61 = vld [vmem:[%s2857_s1 + $0x190] ss:$8 sps:$4 sm:$0xff]   ;;  %v1958_v62 = vld [vmem:[%s2857_s1 + $0x84] ss:$8 sps:$4 sm:$0xff]  }
  0x16   :  { %v1960_v63 = vld [vmem:[%s2857_s1 + $0x184] ss:$8 sps:$4 sm:$0xff]   ;;  %v1962_v0 = vld [vmem:[%s2857_s1 + $0x80] ss:$8 sps:$4 sm:$0xff]   ;;  %v1972_v2 = vld [vmem:[%s2857_s1 + $0x274] ss:$8 sps:$4 sm:$0xff]  }
  0x17   :  { %1163 = vmatpush1.bf16.msra.mxu0 %v1902_v22  ;;  %v1963_v1 = vld [vmem:[%s2857_s1 + $0x180] ss:$8 sps:$4 sm:$0xff]   ;;  %v1975_v4 = vld [vmem:[%s2857_s1 + $0x374] ss:$8 sps:$4 sm:$0xff]   ;;  %v1970_v6 = vld [vmem:[%s2857_s1 + $0x270] ss:$8 sps:$4 sm:$0xff]  }
  0x18   :  { %1244 = vmatpush1.bf16.msra.mxu1 %v1903_v23  ;;  %1164 = vmatprep.subr.bf16.mxu0 %v1904_v24  ;;  %v1964_v3 = vld [vmem:[%s2858_s0] ss:$36 sps:$4 sm:$0xff]   ;;  %v1967_v5 = vld [vmem:[%s2858_s0 + $0x8] ss:$36 sps:$4 sm:$0xff]   ;;  %v1973_v7 = vld [vmem:[%s2857_s1 + $0x370] ss:$8 sps:$4 sm:$0xff]  }
  0x19   :  { %1245 = vmatprep.subr.bf16.mxu1 %v1906_v25  ;;  %v1978_v8 = vld [vmem:[%s2857_s1 + $0x264] ss:$8 sps:$4 sm:$0xff]   ;;  %v2015_v11 = vld [vmem:[%s2858_s0 + $0x54] ss:$36 sps:$4 sm:$0xff]   ;;  %v1976_v12 = vld [vmem:[%s2857_s1 + $0x260] ss:$8 sps:$4 sm:$0xff]  }
  0x1a   :  { %v1981_v9 = vld [vmem:[%s2857_s1 + $0x364] ss:$8 sps:$4 sm:$0xff]   ;;  %v1979_v13 = vld [vmem:[%s2857_s1 + $0x360] ss:$8 sps:$4 sm:$0xff]   ;;  %v1984_v14 = vld [vmem:[%s2857_s1 + $0x254] ss:$8 sps:$4 sm:$0xff]  }
  0x1b   :  { %1165 = vmatpush1.bf16.msra.mxu0 %v1908_v26  ;;  %v2012_v10 = vld [vmem:[%s2858_s0 + $0x4c] ss:$36 sps:$4 sm:$0xff]   ;;  %v1987_v15 = vld [vmem:[%s2857_s1 + $0x354] ss:$8 sps:$4 sm:$0xff]   ;;  %v1988_v24 = vld [vmem:[%s2857_s1 + $0x240] ss:$8 sps:$4 sm:$0xff]  }
  0x1c   :  { %1246 = vmatpush1.bf16.msra.mxu1 %v1909_v27  ;;  %1166 = vmatprep.subr.bf16.mxu0 %v1910_v28  ;;  %v1982_v16 = vld [vmem:[%s2857_s1 + $0x250] ss:$8 sps:$4 sm:$0xff]   ;;  %v1990_v18 = vld [vmem:[%s2857_s1 + $0x244] ss:$8 sps:$4 sm:$0xff]   ;;  %v2033_v23 = vld [vmem:[%s2858_s0 + $0x9c] ss:$36 sps:$4 sm:$0xff]  }
  0x1d   :  { %1247 = vmatprep.subr.bf16.mxu1 %v1912_v29  ;;  %v1985_v17 = vld [vmem:[%s2857_s1 + $0x350] ss:$8 sps:$4 sm:$0xff]   ;;  %v2014_v19 = vld [vmem:[%s2858_s0 + $0x48] ss:$36 sps:$4 sm:$0xff]   ;;  %v1996_v26 = vld [vmem:[%s2857_s1 + $0x234] ss:$8 sps:$4 sm:$0xff]  }
  0x1e   :  { %v2023_v20 = vld [vmem:[%s2858_s0 + $0x50] ss:$36 sps:$4 sm:$0xff]   ;;  %v1993_v21 = vld [vmem:[%s2857_s1 + $0x344] ss:$8 sps:$4 sm:$0xff]   ;;  %v1991_v25 = vld [vmem:[%s2857_s1 + $0x340] ss:$8 sps:$4 sm:$0xff]  }
  0x1f   :  { %1167 = vmatpush1.bf16.msra.mxu0 %v1914_v30  ;;  %v2030_v22 = vld [vmem:[%s2858_s0 + $0x94] ss:$36 sps:$4 sm:$0xff]   ;;  %v2002_v30 = vld [vmem:[%s2857_s1 + $0x224] ss:$8 sps:$4 sm:$0xff]   ;;  %v2017_v49 = vld [vmem:[%s2857_s1 + $0x200] ss:$8 sps:$4 sm:$0xff]  }
  0x20   :  { %1248 = vmatpush1.bf16.msra.mxu1 %v1915_v31  ;;  %1168 = vmatprep.subr.bf16.mxu0 %v1916_v32  ;;  %v1999_v27 = vld [vmem:[%s2857_s1 + $0x334] ss:$8 sps:$4 sm:$0xff]   ;;  %v1994_v28 = vld [vmem:[%s2857_s1 + $0x230] ss:$8 sps:$4 sm:$0xff]  }
  0x21   :  { %1249 = vmatprep.subr.bf16.mxu1 %v1918_v33  ;;  %v1997_v29 = vld [vmem:[%s2857_s1 + $0x330] ss:$8 sps:$4 sm:$0xff]   ;;  %v2005_v33 = vld [vmem:[%s2857_s1 + $0x324] ss:$8 sps:$4 sm:$0xff]  }
  0x22   :  { %v2032_v31 = vld [vmem:[%s2858_s0 + $0x90] ss:$36 sps:$4 sm:$0xff]   ;;  %v2041_v32 = vld [vmem:[%s2858_s0 + $0x98] ss:$36 sps:$4 sm:$0xff]  }
  0x23   :  { %1169 = vmatpush2.bf16.msra.mxu0 %v1920_v34  ;;  %v2048_v34 = vld [vmem:[%s2858_s0 + $0xdc] ss:$36 sps:$4 sm:$0xff]  }
  0x24   :  { %1250 = vmatpush2.bf16.msra.mxu1 %v1921_v35  ;;  %1170 = vmatprep.subr.bf16.mxu0 %v1922_v36  ;;  %v2051_v35 = vld [vmem:[%s2858_s0 + $0xe4] ss:$36 sps:$4 sm:$0xff]  }
  0x25   :  { %1251 = vmatprep.subr.bf16.mxu1 %v1924_v37  ;;  %v2000_v36 = vld [vmem:[%s2857_s1 + $0x220] ss:$8 sps:$4 sm:$0xff]  }
  0x26   :  { %v2003_v37 = vld [vmem:[%s2857_s1 + $0x320] ss:$8 sps:$4 sm:$0xff]  }
  0x27   :  { %1171 = vmatpush2.bf16.msra.mxu0 %v1926_v38  ;;  %v2008_v38 = vld [vmem:[%s2857_s1 + $0x214] ss:$8 sps:$4 sm:$0xff]  }
  0x28   :  { %1252 = vmatpush2.bf16.msra.mxu1 %v1927_v39  ;;  %1172 = vmatprep.subr.bf16.mxu0 %v1928_v40  ;;  %v2011_v39 = vld [vmem:[%s2857_s1 + $0x314] ss:$8 sps:$4 sm:$0xff]   ;;  %v2006_v40 = vld [vmem:[%s2857_s1 + $0x210] ss:$8 sps:$4 sm:$0xff]  }
  0x29   :  { %1253 = vmatprep.subr.bf16.mxu1 %v1930_v41  ;;  %v2009_v41 = vld [vmem:[%s2857_s1 + $0x310] ss:$8 sps:$4 sm:$0xff]  }
  0x2b   :  { %1173 = vmatpush2.bf16.msra.mxu0 %v1932_v42  ;;  %v2050_v42 = vld [vmem:[%s2858_s0 + $0xd8] ss:$36 sps:$4 sm:$0xff]  }
  0x2c   :  { %1254 = vmatpush2.bf16.msra.mxu1 %v1933_v43  ;;  %1174 = vmatprep.subr.bf16.mxu0 %v1934_v44  ;;  %v2059_v43 = vld [vmem:[%s2858_s0 + $0xe0] ss:$36 sps:$4 sm:$0xff]  }
  0x2d   :  { %1255 = vmatprep.subr.bf16.mxu1 %v1936_v45  ;;  %v55_v44 = vld [vmem:[%s2858_s0 + $0x120] sm:$0xff] }
  0x2e   :  { %v2019_v45 = vld [vmem:[%s2857_s1 + $0x204] ss:$8 sps:$4 sm:$0xff]  }
  0x2f   :  { %1175 = vmatpush2.bf16.msra.mxu0 %v1938_v46  ;;  %v2022_v46 = vld [vmem:[%s2857_s1 + $0x304] ss:$8 sps:$4 sm:$0xff]  }
  0x30   :  { %1256 = vmatpush2.bf16.msra.mxu1 %v1939_v47  ;;  %1176 = vmatprep.subr.bf16.mxu0 %v1940_v48  ;;  %v1681_v47 = vcombine.high %v55_v44, %v55_v44  ;;  %v56_v48 = vld [vmem:[%s2858_s0 + $0x128] sm:$0xff] }
  0x31   :  { %1257 = vmatprep.subr.bf16.mxu1 %v1942_v50  ;;  %v2020_v50 = vld [vmem:[%s2857_s1 + $0x300] ss:$8 sps:$4 sm:$0xff]   ;;  %v1683_v51 = vcombine.high %v56_v48, %v56_v48 }
  0x33   :  { %1177 = vmatpush2.bf16.msra.mxu0 %v1944_v52  ;;  %v2026_v52 = vld [vmem:[%s2857_s1 + $0x2f4] ss:$8 sps:$4 sm:$0xff]  }
  0x34   :  { %1258 = vmatpush2.bf16.msra.mxu1 %v1945_v53  ;;  %1178 = vmatprep.subr.bf16.mxu0 %v1946_v54  ;;  %v2029_v53 = vld [vmem:[%s2857_s1 + $0x3f4] ss:$8 sps:$4 sm:$0xff]   ;;  %v1680_v54 = vcombine.low %v55_v44, %v55_v44  ;;  %v2121_v44 = vld [vmem:[%s2858_s0 + $0xec] ss:$36 sps:$4 sm:$0xff]  }
  0x35   :  { %1259 = vmatprep.subr.bf16.mxu1 %v1948_v55  ;;  %v1682_v55 = vcombine.low %v56_v48, %v56_v48  ;;  %v2132_v48 = vld [vmem:[%s2857_s1 + $0x414] ss:$8 sps:$4 sm:$0xff]  }
  0x37   :  { %1179 = vmatpush2.bf16.msra.mxu0 %v1950_v56  ;;  %v2024_v56 = vld [vmem:[%s2857_s1 + $0x2f0] ss:$8 sps:$4 sm:$0xff]  }
  0x38   :  { %1260 = vmatpush2.bf16.msra.mxu1 %v1951_v57  ;;  %1180 = vmatprep.subr.bf16.mxu0 %v1952_v58  ;;  %v2027_v57 = vld [vmem:[%s2857_s1 + $0x3f0] ss:$8 sps:$4 sm:$0xff]   ;;  %v2037_v58 = vld [vmem:[%s2857_s1 + $0x2e4] ss:$8 sps:$4 sm:$0xff]  }
  0x39   :  { %1261 = vmatprep.subr.bf16.mxu1 %v1954_v59  ;;  %v2040_v59 = vld [vmem:[%s2857_s1 + $0x3e4] ss:$8 sps:$4 sm:$0xff]  }
  0x3b   :  { %1181 = vmatpush2.bf16.msra.mxu0 %v1956_v60  ;;  %v2090_v60 = vld [vmem:[%s2858_s0 + $0x14] ss:$36 sps:$4 sm:$0xff]  }
  0x3c   :  { %1262 = vmatpush2.bf16.msra.mxu1 %v1957_v61  ;;  %1182 = vmatprep.subr.bf16.mxu0 %v1958_v62  ;;  %v2093_v61 = vld [vmem:[%s2858_s0 + $0x1c] ss:$36 sps:$4 sm:$0xff]  }
  0x3d   :  { %1263 = vmatprep.subr.bf16.mxu1 %v1960_v63  ;;  %v2035_v62 = vld [vmem:[%s2857_s1 + $0x2e0] ss:$8 sps:$4 sm:$0xff]  }
  0x3e   :  { %v2038_v63 = vld [vmem:[%s2857_s1 + $0x3e0] ss:$8 sps:$4 sm:$0xff]  }
  0x3f   :  { %1183 = vmatpush2.bf16.msra.mxu0 %v1962_v0  ;;  %v2044_v0 = vld [vmem:[%s2857_s1 + $0x2d4] ss:$8 sps:$4 sm:$0xff]  }
  0x40   :  { %1264 = vmatpush2.bf16.msra.mxu1 %v1963_v1  ;;  %1314 = vmatprep.subr.bf16.mxu0 %v1972_v2  ;;  %v2047_v1 = vld [vmem:[%s2857_s1 + $0x3d4] ss:$8 sps:$4 sm:$0xff]   ;;  %v2042_v2 = vld [vmem:[%s2857_s1 + $0x2d0] ss:$8 sps:$4 sm:$0xff]  }
  0x41   :  { %1395 = vmatprep.subr.bf16.mxu1 %v1975_v4  ;;  %v2055_v4 = vld [vmem:[%s2857_s1 + $0x2c4] ss:$8 sps:$4 sm:$0xff]  }
  0x42   :  { %1185 = vmatmul.mubr.bf16.vlgmr.msra.gmra.mxu0 %v1964_v3  ;;  %v2045_v3 = vld [vmem:[%s2857_s1 + $0x3d0] ss:$8 sps:$4 sm:$0xff]  }
  0x43   :  { %1266 = vmatmul.mubr.bf16.vlgmr.msra.gmra.mxu1 %v1967_v5  ;;  %1315 = vmatpush1.bf16.msra.mxu0 %v1970_v6  ;;  %v2058_v5 = vld [vmem:[%s2857_s1 + $0x3c4] ss:$8 sps:$4 sm:$0xff]   ;;  %v2053_v6 = vld [vmem:[%s2857_s1 + $0x2c0] ss:$8 sps:$4 sm:$0xff]  }
  0x44   :  { %1396 = vmatpush1.bf16.msra.mxu1 %v1973_v7  ;;  %1316 = vmatprep.subr.bf16.mxu0 %v1978_v8  ;;  %v2056_v7 = vld [vmem:[%s2857_s1 + $0x3c0] ss:$8 sps:$4 sm:$0xff]   ;;  %v2062_v8 = vld [vmem:[%s2857_s1 + $0x2b4] ss:$8 sps:$4 sm:$0xff]  }
  0x45   :  { %1397 = vmatprep.subr.bf16.mxu1 %v1981_v9  ;;  %1194 = vmatprep.mubr.bf16.mxu0 %v2012_v10  ;;  %v2065_v9 = vld [vmem:[%s2857_s1 + $0x3b4] ss:$8 sps:$4 sm:$0xff]   ;;  %v2060_v10 = vld [vmem:[%s2857_s1 + $0x2b0] ss:$8 sps:$4 sm:$0xff]  }
  0x46   :  { %1275 = vmatprep.mubr.bf16.mxu1 %v2015_v11  ;;  %v2063_v11 = vld [vmem:[%s2857_s1 + $0x3b0] ss:$8 sps:$4 sm:$0xff]  }
  0x47   :  { %1317 = vmatpush1.bf16.msra.mxu0 %v1976_v12  ;;  %v2070_v12 = vld [vmem:[%s2857_s1 + $0x2a4] ss:$8 sps:$4 sm:$0xff]  }
  0x48   :  { %1398 = vmatpush1.bf16.msra.mxu1 %v1979_v13  ;;  %1318 = vmatprep.subr.bf16.mxu0 %v1984_v14  ;;  %v2073_v13 = vld [vmem:[%s2857_s1 + $0x3a4] ss:$8 sps:$4 sm:$0xff]   ;;  %v2068_v14 = vld [vmem:[%s2857_s1 + $0x2a0] ss:$8 sps:$4 sm:$0xff]  }
  0x49   :  { %1399 = vmatprep.subr.bf16.mxu1 %v1987_v15  ;;  %v2071_v15 = vld [vmem:[%s2857_s1 + $0x3a0] ss:$8 sps:$4 sm:$0xff]  }
  0x4a   :  { %1195 = vmatmul.mubr.bf16.gmra.mxu0 %v2014_v19  ;;  %v2079_v19 = vld [vmem:[%s2857_s1 + $0x390] ss:$8 sps:$4 sm:$0xff]  }
  0x4b   :  { %1276 = vmatmul.mubr.bf16.gmra.mxu1 %v2023_v20  ;;  %1319 = vmatpush1.bf16.msra.mxu0 %v1982_v16  ;;  %v2078_v16 = vld [vmem:[%s2857_s1 + $0x294] ss:$8 sps:$4 sm:$0xff]   ;;  %v2084_v20 = vld [vmem:[%s2857_s1 + $0x284] ss:$8 sps:$4 sm:$0xff]  }
  0x4c   :  { %1400 = vmatpush1.bf16.msra.mxu1 %v1985_v17  ;;  %1320 = vmatprep.subr.bf16.mxu0 %v1990_v18  ;;  %v2081_v17 = vld [vmem:[%s2857_s1 + $0x394] ss:$8 sps:$4 sm:$0xff]   ;;  %v2076_v18 = vld [vmem:[%s2857_s1 + $0x290] ss:$8 sps:$4 sm:$0xff]  }
  0x4d   :  { %1401 = vmatprep.subr.bf16.mxu1 %v1993_v21  ;;  %1204 = vmatprep.mubr.bf16.mxu0 %v2030_v22  ;;  %v2087_v21 = vld [vmem:[%s2857_s1 + $0x384] ss:$8 sps:$4 sm:$0xff]   ;;  %v2082_v22 = vld [vmem:[%s2857_s1 + $0x280] ss:$8 sps:$4 sm:$0xff]  }
  0x4e   :  { %1285 = vmatprep.mubr.bf16.mxu1 %v2033_v23  ;;  %v2085_v23 = vld [vmem:[%s2857_s1 + $0x380] ss:$8 sps:$4 sm:$0xff]  }
  0x4f   :  { %1321 = vmatpush1.bf16.msra.mxu0 %v1988_v24  ;;  %v2096_v24 = vld [vmem:[%s2857_s1 + $0x474] ss:$8 sps:$4 sm:$0xff]  }
  0x50   :  { %1402 = vmatpush1.bf16.msra.mxu1 %v1991_v25  ;;  %1322 = vmatprep.subr.bf16.mxu0 %v1996_v26  ;;  %v2088_v25 = vld [vmem:[%s2858_s0 + $0x10] ss:$36 sps:$4 sm:$0xff]   ;;  %v2091_v26 = vld [vmem:[%s2858_s0 + $0x18] ss:$36 sps:$4 sm:$0xff]  }
  0x51   :  { %1403 = vmatprep.subr.bf16.mxu1 %v1999_v27  ;;  %v2094_v27 = vld [vmem:[%s2857_s1 + $0x470] ss:$8 sps:$4 sm:$0xff]  }
  0x52   :  { %1205 = vmatmul.mubr.bf16.gmra.mxu0 %v2032_v31  ;;  %v2097_v31 = vld [vmem:[%s2857_s1 + $0x460] ss:$8 sps:$4 sm:$0xff]  }
  0x53   :  { %1286 = vmatmul.mubr.bf16.gmra.mxu1 %v2041_v32  ;;  %1323 = vmatpush1.bf16.msra.mxu0 %v1994_v28  ;;  %v2100_v28 = vld [vmem:[%s2858_s0 + $0x5c] ss:$36 sps:$4 sm:$0xff]  }
  0x54   :  { %1404 = vmatpush1.bf16.msra.mxu1 %v1997_v29  ;;  %1324 = vmatprep.subr.bf16.mxu0 %v2002_v30  ;;  %v2099_v29 = vld [vmem:[%s2857_s1 + $0x464] ss:$8 sps:$4 sm:$0xff]   ;;  %v2108_v32 = vld [vmem:[%s2857_s1 + $0x454] ss:$8 sps:$4 sm:$0xff]  }
  0x55   :  { %1405 = vmatprep.subr.bf16.mxu1 %v2005_v33  ;;  %1214 = vmatprep.mubr.bf16.mxu0 %v2048_v34  ;;  %v2102_v30 = vld [vmem:[%s2858_s0 + $0x64] ss:$36 sps:$4 sm:$0xff]   ;;  %v2104_v33 = vld [vmem:[%s2858_s0 + $0x58] ss:$36 sps:$4 sm:$0xff]  }
  0x56   :  { %1295 = vmatprep.mubr.bf16.mxu1 %v2051_v35  ;;  %v2105_v34 = vld [vmem:[%s2858_s0 + $0x60] ss:$36 sps:$4 sm:$0xff]   ;;  %v2106_v35 = vld [vmem:[%s2857_s1 + $0x450] ss:$8 sps:$4 sm:$0xff]  }
  0x57   :  { %1325 = vmatpush1.bf16.msra.mxu0 %v2000_v36  ;;  %v2109_v36 = vld [vmem:[%s2858_s0 + $0xa4] ss:$36 sps:$4 sm:$0xff]  }
  0x58   :  { %1406 = vmatpush1.bf16.msra.mxu1 %v2003_v37  ;;  %1326 = vmatprep.subr.bf16.mxu0 %v2008_v38  ;;  %v2111_v37 = vld [vmem:[%s2858_s0 + $0xac] ss:$36 sps:$4 sm:$0xff]  }
  0x59   :  { %1407 = vmatprep.subr.bf16.mxu1 %v2011_v39  ;;  %v2115_v38 = vld [vmem:[%s2857_s1 + $0x444] ss:$8 sps:$4 sm:$0xff]   ;;  %v2113_v39 = vld [vmem:[%s2857_s1 + $0x440] ss:$8 sps:$4 sm:$0xff]  }
  0x5a   :  { %1215 = vmatmul.mubr.bf16.gmra.mxu0 %v2050_v42  ;;  %v2117_v42 = vld [vmem:[%s2858_s0 + $0xa8] ss:$36 sps:$4 sm:$0xff]  }
  0x5b   :  { %1296 = vmatmul.mubr.bf16.gmra.mxu1 %v2059_v43  ;;  %1327 = vmatpush1.bf16.msra.mxu0 %v2006_v40  ;;  %v2120_v40 = vld [vmem:[%s2857_s1 + $0x434] ss:$8 sps:$4 sm:$0xff]   ;;  %v2118_v43 = vld [vmem:[%s2857_s1 + $0x430] ss:$8 sps:$4 sm:$0xff]  }
  0x5c   :  { %1408 = vmatpush1.bf16.msra.mxu1 %v2009_v41  ;;  %1328 = vmatprep.subr.bf16.mxu0 %v2019_v45  ;;  %v2116_v41 = vld [vmem:[%s2858_s0 + $0xa0] ss:$36 sps:$4 sm:$0xff]   ;;  %v2123_v45 = vld [vmem:[%s2858_s0 + $0xf4] ss:$36 sps:$4 sm:$0xff]  }
  0x5d   :  { %1409 = vmatprep.subr.bf16.mxu1 %v2022_v46  ;;  %1224 = vmatprep.mubr.bf16.mxu0 %v1681_v47  ;;  %v2129_v46 = vld [vmem:[%s2857_s1 + $0x424] ss:$8 sps:$4 sm:$0xff]   ;;  %v2127_v47 = vld [vmem:[%s2857_s1 + $0x420] ss:$8 sps:$4 sm:$0xff]  }
  0x5e   :  { %1305 = vmatprep.mubr.bf16.mxu1 %v1683_v51  ;;  %v2125_v51 = vld [vmem:[%s2858_s0 + $0xe8] ss:$36 sps:$4 sm:$0xff]  }
  0x5f   :  { %1329 = vmatpush1.bf16.msra.mxu0 %v2017_v49  ;;  %v57_v49 = vld [vmem:[%s2858_s0 + $0x130] sm:$0xff] }
  0x60   :  { %1410 = vmatpush1.bf16.msra.mxu1 %v2020_v50  ;;  %1330 = vmatprep.subr.bf16.mxu0 %v2026_v52  ;;  %v58_v50 = vld [vmem:[%s2858_s0 + $0x138] sm:$0xff]  ;;  %v2126_v52 = vld [vmem:[%s2858_s0 + $0xf0] ss:$36 sps:$4 sm:$0xff]  }
  0x61   :  { %1411 = vmatprep.subr.bf16.mxu1 %v2029_v53  ;;  %v1685_v53 = vcombine.high %v57_v49, %v57_v49 }
  0x62   :  { %1225 = vmatmul.mubr.bf16.gmra.mxu0 %v1680_v54  ;;  %v2130_v54 = vld [vmem:[%s2857_s1 + $0x410] ss:$8 sps:$4 sm:$0xff]  }
  0x63   :  { %1306 = vmatmul.mubr.bf16.gmra.mxu1 %v1682_v55  ;;  %1331 = vmatpush2.bf16.msra.mxu0 %v2024_v56  ;;  %v1687_v55 = vcombine.high %v58_v50, %v58_v50  ;;  %v2139_v56 = vld [vmem:[%s2857_s1 + $0x404] ss:$8 sps:$4 sm:$0xff]  }
  0x64   :  { %1412 = vmatpush2.bf16.msra.mxu1 %v2027_v57  ;;  %1332 = vmatprep.subr.bf16.mxu0 %v2037_v58  ;;  %v2137_v57 = vld [vmem:[%s2857_s1 + $0x400] ss:$8 sps:$4 sm:$0xff]   ;;  %v1684_v58 = vcombine.low %v57_v49, %v57_v49 }
  0x65   :  { %1413 = vmatprep.subr.bf16.mxu1 %v2040_v59  ;;  %1346 = vmatprep.mubr.bf16.mxu0 %v2090_v60  ;;  %v1686_v59 = vcombine.low %v58_v50, %v58_v50  ;;  %v2145_v60 = vmov 0  }
  0x66   :  { %1427 = vmatprep.mubr.bf16.mxu1 %v2093_v61  ;;  %v2140_v61 = vld [vmem:[%s2858_s0 + $0x20] ss:$36 sps:$4 sm:$0xff]  }
  0x67   :  { %1333 = vmatpush2.bf16.msra.mxu0 %v2035_v62  ;;  %v2141_v62 = vld [vmem:[%s2858_s0 + $0xf8] ss:$36 sps:$4 sm:$0xff]  }
  0x68   :  { %1414 = vmatpush2.bf16.msra.mxu1 %v2038_v63  ;;  %1334 = vmatprep.subr.bf16.mxu0 %v2044_v0  ;;  %v2142_v63 = vld [vmem:[%s2858_s0 + $0x68] ss:$36 sps:$4 sm:$0xff]   ;;  %v2143_v0 = vld [vmem:[%s2858_s0 + $0x140] ss:$0 sps:$4 sm:$0xff]  }
  0x69   :  { %1415 = vmatprep.subr.bf16.mxu1 %v2047_v1  ;;  %v2144_v1 = vld [vmem:[%s2858_s0 + $0xb0] ss:$36 sps:$4 sm:$0xff]  }
  0x6b   :  { %1335 = vmatpush2.bf16.msra.mxu0 %v2042_v2  ;;  %v206_v2 = vlaneseq }
  0x6c   :  { %1416 = vmatpush2.bf16.msra.mxu1 %v2045_v3  ;;  %1336 = vmatprep.subr.bf16.mxu0 %v2055_v4 }
  0x6d   :  { %1417 = vmatprep.subr.bf16.mxu1 %v2058_v5  ;;  %v207_v3 = vshrl.u32 %v206_v2, 7  ;;  %v204_v5 = vld [vmem:[%s2859_s2] sm:$0x3] }
  0x6f   :  { %1337 = vmatpush2.bf16.msra.mxu0 %v2053_v6  ;;  %v208_v4 = vsub.s32 0, %v207_v3  ;;  %v212_v6 = vsub.s32 1, %v207_v3 }
  0x70   :  { %1418 = vmatpush2.bf16.msra.mxu1 %v2056_v7  ;;  %1338 = vmatprep.subr.bf16.mxu0 %v2062_v8 }
  0x71   :  { %1419 = vmatprep.subr.bf16.mxu1 %v2065_v9  ;;  %v2724_v7 = vrot.slane %v204_v5, %v208_v4  ;;  %v2726_v8 = vrot.slane %v204_v5, %v212_v6 }
  0x73   :  { %1339 = vmatpush2.bf16.msra.mxu0 %v2060_v10 }
  0x74   :  { %1420 = vmatpush2.bf16.msra.mxu1 %v2063_v11  ;;  %1340 = vmatprep.subr.bf16.mxu0 %v2070_v12 }
  0x75   :  { %1421 = vmatprep.subr.bf16.mxu1 %v2073_v13 }
  0x77   :  { %1341 = vmatpush2.bf16.msra.mxu0 %v2068_v14 }
  0x78   :  { %1422 = vmatpush2.bf16.msra.mxu1 %v2071_v15  ;;  %1342 = vmatprep.subr.bf16.mxu0 %v2078_v16 }
  0x79   :  { %1423 = vmatprep.subr.bf16.mxu1 %v2081_v17 }
  0x7b   :  { %1343 = vmatpush2.bf16.msra.mxu0 %v2076_v18 }
  0x7c   :  { %1424 = vmatpush2.bf16.msra.mxu1 %v2079_v19  ;;  %1344 = vmatprep.subr.bf16.mxu0 %v2084_v20 }
  0x7d   :  { %1425 = vmatprep.subr.bf16.mxu1 %v2087_v21 }
  0x7f   :  { %1345 = vmatpush2.bf16.msra.mxu0 %v2082_v22 }
  0x80   :  { %1426 = vmatpush2.bf16.msra.mxu1 %v2085_v23  ;;  %1476 = vmatprep.subr.bf16.mxu0 %v2096_v24 }
  0x81   :  { %1851 = vmatprep.subr.bf16.mxu1 %v2096_v24 }
  0x82   :  { %1347 = vmatmul.mubr.bf16.vlgmr.msra.gmra.mxu0 %v2088_v25 }
  0x83   :  { %1428 = vmatmul.mubr.bf16.vlgmr.msra.gmra.mxu1 %v2091_v26  ;;  %1477 = vmatpush1.bf16.msra.mxu0 %v2094_v27 }
  0x84   :  { %1356 = vmatprep.mubr.bf16.mxu0 %v2100_v28  ;;  %1478 = vmatprep.subr.bf16.mxu0 %v2099_v29 }
  0x85   :  { %1437 = vmatprep.mubr.bf16.mxu1 %v2102_v30  ;;  %1859 = vmatpush1.bf16.msra.mxu1 %v2094_v27 }
  0x86   :  { %1852 = vmatprep.subr.bf16.mxu1 %v2099_v29 }
  0x87   :  { %1479 = vmatpush1.bf16.msra.mxu0 %v2097_v31 }
  0x88   :  { %1480 = vmatprep.subr.bf16.mxu0 %v2108_v32 }
  0x89   :  { %1860 = vmatpush1.bf16.msra.mxu1 %v2097_v31 }
  0x8a   :  { %1357 = vmatmul.mubr.bf16.gmra.mxu0 %v2104_v33  ;;  %1853 = vmatprep.subr.bf16.mxu1 %v2108_v32 }
  0x8b   :  { %1438 = vmatmul.mubr.bf16.gmra.mxu1 %v2105_v34  ;;  %1481 = vmatpush1.bf16.msra.mxu0 %v2106_v35 }
  0x8c   :  { %1366 = vmatprep.mubr.bf16.mxu0 %v2109_v36  ;;  %1447 = vmatprep.mubr.bf16.mxu1 %v2111_v37 }
  0x8d   :  { %1482 = vmatprep.subr.bf16.mxu0 %v2115_v38  ;;  %1861 = vmatpush1.bf16.msra.mxu1 %v2106_v35 }
  0x8e   :  { %1854 = vmatprep.subr.bf16.mxu1 %v2115_v38 }
  0x8f   :  { %1483 = vmatpush1.bf16.msra.mxu0 %v2113_v39 }
  0x90   :  { %1484 = vmatprep.subr.bf16.mxu0 %v2120_v40 }
  0x91   :  { %1862 = vmatpush1.bf16.msra.mxu1 %v2113_v39 }
  0x92   :  { %1367 = vmatmul.mubr.bf16.gmra.mxu0 %v2116_v41  ;;  %1855 = vmatprep.subr.bf16.mxu1 %v2120_v40 }
  0x93   :  { %1448 = vmatmul.mubr.bf16.gmra.mxu1 %v2117_v42  ;;  %1485 = vmatpush1.bf16.msra.mxu0 %v2118_v43 }
  0x94   :  { %1376 = vmatprep.mubr.bf16.mxu0 %v2121_v44  ;;  %1457 = vmatprep.mubr.bf16.mxu1 %v2123_v45 }
  0x95   :  { %1486 = vmatprep.subr.bf16.mxu0 %v2129_v46  ;;  %1863 = vmatpush1.bf16.msra.mxu1 %v2118_v43 }
  0x96   :  { %1856 = vmatprep.subr.bf16.mxu1 %v2129_v46 }
  0x97   :  { %1487 = vmatpush1.bf16.msra.mxu0 %v2127_v47 }
  0x98   :  { %1488 = vmatprep.subr.bf16.mxu0 %v2132_v48 }
  0x99   :  { %1864 = vmatpush1.bf16.msra.mxu1 %v2127_v47 }
  0x9a   :  { %1377 = vmatmul.mubr.bf16.gmra.mxu0 %v2125_v51  ;;  %1857 = vmatprep.subr.bf16.mxu1 %v2132_v48 }
  0x9b   :  { %1458 = vmatmul.mubr.bf16.gmra.mxu1 %v2126_v52  ;;  %1386 = vmatprep.mubr.bf16.mxu0 %v1685_v53 }
  0x9c   :  { %1467 = vmatprep.mubr.bf16.mxu1 %v1687_v55  ;;  %1489 = vmatpush1.bf16.msra.mxu0 %v2130_v54 }
  0x9d   :  { %1490 = vmatprep.subr.bf16.mxu0 %v2139_v56  ;;  %1865 = vmatpush1.bf16.msra.mxu1 %v2130_v54 }
  0x9e   :  { %1858 = vmatprep.subr.bf16.mxu1 %v2139_v56 }
  0xa0   :  { %1491 = vmatpush1.bf16.msra.mxu0 %v2137_v57 }
  0xa1   :  { %1866 = vmatpush1.bf16.msra.mxu1 %v2137_v57 }
  0xa2   :  { %1387 = vmatmul.mubr.bf16.gmra.mxu0 %v1684_v58 }
  0xa3   :  { %1468 = vmatmul.mubr.bf16.gmra.mxu1 %v1686_v59  ;;  %1508 = vmatprep.mubr.bf16.mxu0 %v2145_v60 }
  0xa4   :  { %1538 = vmatprep.mubr.bf16.mxu1 %v2145_v60 }
  0xaa   :  { %1509 = vmatmul.mubr.bf16.vlgmr.msra.gmra.mxu0 %v2140_v61 }
  0xab   :  { %1539 = vmatmul.mubr.bf16.vlgmr.msra.gmra.mxu1 %v2141_v62  ;;  %1518 = vmatprep.mubr.bf16.mxu0 %v2145_v60 }
  0xac   :  { %1548 = vmatprep.mubr.bf16.mxu1 %v2145_v60 }
  0xb2   :  { %1519 = vmatmul.mubr.bf16.gmra.mxu0 %v2142_v63 }
  0xb3   :  { %1549 = vmatmul.mubr.bf16.gmra.mxu1 %v2143_v0  ;;  %1528 = vmatprep.mubr.bf16.mxu0 %v2145_v60 }
  0xba   :  { %1529 = vmatmul.mubr.bf16.gmra.mxu0 %v2144_v1 }
 0x102   :  { %v1186_v9 = vpop.f32.mrf.mxu0 }
 0x103   :  { %v1267_v10 = vpop.f32.mrf.mxu1  ;;  %v1187_v11 = vadd.f32 %v1186_v9, %v2724_v7 }
 0x104   :  { %v1188_v12 = vpop.f32.mrf.mxu0 }
 0x105   :  { %v1269_v13 = vpop.f32.mrf.mxu1  ;;  %v1189_v14 = vadd.f32 %v1188_v12, %v2726_v8  ;;  %v2730_v15 = vadd.f32 %v1267_v10, %v1187_v11 }
 0x106   :  { %v1190_v16 = vpop.f32.mrf.mxu0 }
 0x107   :  { %v1271_v17 = vpop.f32.mrf.mxu1  ;;  %v1191_v18 = vadd.f32 %v1190_v16, %v2724_v7  ;;  %v2733_v19 = vadd.f32 %v1269_v13, %v1189_v14 }
 0x108   :  { %v1192_v20 = vpop.f32.mrf.mxu0 }
 0x109   :  { %v1273_v21 = vpop.f32.mrf.mxu1  ;;  %v1193_v22 = vadd.f32 %v1192_v20, %v2726_v8  ;;  %v2736_v23 = vadd.f32 %v1271_v17, %v1191_v18 }
 0x10a   :  { %v1196_v24 = vpop.f32.mrf.mxu0 }
 0x10b   :  { %v1277_v25 = vpop.f32.mrf.mxu1  ;;  %v2738_v26 = vadd.f32 %v1273_v21, %v1193_v22  ;;  %v1197_v27 = vadd.f32 %v1196_v24, %v2724_v7 }
 0x10c   :  { %v1198_v28 = vpop.f32.mrf.mxu0 }
 0x10d   :  { %v1279_v29 = vpop.f32.mrf.mxu1  ;;  %v1199_v30 = vadd.f32 %v1198_v28, %v2726_v8  ;;  %v2742_v31 = vadd.f32 %v1277_v25, %v1197_v27 }
 0x10e   :  { %v1200_v32 = vpop.f32.mrf.mxu0 }
 0x10f   :  { %v1281_v33 = vpop.f32.mrf.mxu1  ;;  %v1201_v34 = vadd.f32 %v1200_v32, %v2724_v7  ;;  %v2745_v35 = vadd.f32 %v1279_v29, %v1199_v30 }
 0x110   :  { %v1202_v36 = vpop.f32.mrf.mxu0 }
 0x111   :  { %v1283_v37 = vpop.f32.mrf.mxu1  ;;  %v1203_v38 = vadd.f32 %v1202_v36, %v2726_v8  ;;  %v2748_v39 = vadd.f32 %v1281_v33, %v1201_v34 }
 0x112   :  { %v1206_v40 = vpop.f32.mrf.mxu0 }
 0x113   :  { %v1287_v41 = vpop.f32.mrf.mxu1  ;;  %v1207_v42 = vadd.f32 %v1206_v40, %v2724_v7  ;;  %v2751_v43 = vadd.f32 %v1283_v37, %v1203_v38 }
 0x114   :  { %v1208_v44 = vpop.f32.mrf.mxu0 }
 0x115   :  { %v1289_v45 = vpop.f32.mrf.mxu1  ;;  %v1209_v46 = vadd.f32 %v1208_v44, %v2726_v8  ;;  %v2754_v47 = vadd.f32 %v1287_v41, %v1207_v42 }
 0x116   :  { %v1210_v48 = vpop.f32.mrf.mxu0 }
 0x117   :  { %v1291_v49 = vpop.f32.mrf.mxu1  ;;  %v1211_v50 = vadd.f32 %v1210_v48, %v2724_v7  ;;  %v2757_v51 = vadd.f32 %v1289_v45, %v1209_v46 }
 0x118   :  { %v1212_v52 = vpop.f32.mrf.mxu0 }
 0x119   :  { %v1293_v53 = vpop.f32.mrf.mxu1  ;;  %v1213_v54 = vadd.f32 %v1212_v52, %v2726_v8  ;;  %v2760_v55 = vadd.f32 %v1291_v49, %v1211_v50 }
 0x11a   :  { %v1216_v56 = vpop.f32.mrf.mxu0 }
 0x11b   :  { %v1297_v57 = vpop.f32.mrf.mxu1  ;;  %v1217_v58 = vadd.f32 %v1216_v56, %v2724_v7  ;;  %v2763_v59 = vadd.f32 %v1293_v53, %v1213_v54 }
 0x11c   :  { %v1218_v60 = vpop.f32.mrf.mxu0 }
 0x11d   :  { %2861 = vst [vmem:[#allocation2_spill] sm:$0xff] %v2763_v59  ;;  %v1299_v61 = vpop.f32.mrf.mxu1  ;;  %v1219_v62 = vadd.f32 %v1218_v60, %v2726_v8  ;;  %v1298_v63 = vadd.f32 %v1297_v57, %v1217_v58 }
 0x11e   :  { %v1220_v0 = vpop.f32.mrf.mxu0 }
 0x11f   :  { %v1301_v1 = vpop.f32.mrf.mxu1  ;;  %v1221_v2 = vadd.f32 %v1220_v0, %v2724_v7  ;;  %v1300_v3 = vadd.f32 %v1299_v61, %v1219_v62 }
 0x120   :  { %v1222_v4 = vpop.f32.mrf.mxu0 }
 0x121   :  { %v1303_v5 = vpop.f32.mrf.mxu1  ;;  %v1223_v6 = vadd.f32 %v1222_v4, %v2726_v8  ;;  %v2768_v9 = vadd.f32 %v1301_v1, %v1221_v2 }
 0x122   :  { %v1226_v10 = vpop.f32.mrf.mxu0 }
 0x123   :  { %v1307_v11 = vpop.f32.mrf.mxu1  ;;  %v1227_v12 = vadd.f32 %v1226_v10, %v2724_v7  ;;  %v2771_v13 = vadd.f32 %v1303_v5, %v1223_v6 }
 0x124   :  { %v1228_v14 = vpop.f32.mrf.mxu0 }
 0x125   :  { %v1309_v16 = vpop.f32.mrf.mxu1  ;;  %v1229_v17 = vadd.f32 %v1228_v14, %v2726_v8  ;;  %v2774_v18 = vadd.f32 %v1307_v11, %v1227_v12 }
 0x126   :  { %v1230_v20 = vpop.f32.mrf.mxu0 }
 0x127   :  { %v1311_v21 = vpop.f32.mrf.mxu1  ;;  %v2776_v22 = vadd.f32 %v1309_v16, %v1229_v17 }
 0x128   :  { %v1231_v24 = vpop.f32.mrf.mxu0 }
 0x129   :  { %v1312_v25 = vpop.f32.mrf.mxu1 }
 0x142   :  { %v1348_v27 = vpop.f32.mrf.mxu0 }
 0x143   :  { %v1429_v28 = vpop.f32.mrf.mxu1  ;;  %v1349_v10 = vadd.f32 %v1348_v27, %v2730_v15 }
 0x144   :  { %v1350_v29 = vpop.f32.mrf.mxu0 }
 0x145   :  { %v1431_v30 = vpop.f32.mrf.mxu1  ;;  %v1351_v16 = vadd.f32 %v1350_v29, %v2733_v19  ;;  %v1430_v25 = vadd.f32 %v1429_v28, %v1349_v10 }
 0x146   :  { %v1352_v32 = vpop.f32.mrf.mxu0 }
 0x147   :  { %v1433_v7 = vpop.f32.mrf.mxu1  ;;  %v1353_v20 = vadd.f32 %v1352_v32, %v2736_v23 }
 0x148   :  { %v1354_v33 = vpop.f32.mrf.mxu0 }
 0x149   :  { %v1435_v34 = vpop.f32.mrf.mxu1  ;;  %v1434_v19 = vadd.f32 %v1433_v7, %v1353_v20 }
 0x14a   :  { %v1358_v36 = vpop.f32.mrf.mxu0 }
 0x14b   :  { %v1439_v37 = vpop.f32.mrf.mxu1 }
 0x14c   :  { %v1360_v38 = vpop.f32.mrf.mxu0 }
 0x14d   :  { %v2778_v8 = vpop.f32.mrf.mxu1 }
 0x14e   :  { %v1362_v40 = vpop.f32.mrf.mxu0 }
 0x14f   :  { %v2780_v41 = vpop.f32.mrf.mxu1 }
 0x150   :  { %v2782_v42 = vpop.f32.mrf.mxu0 }
 0x151   :  { %v2784_v44 = vpop.f32.mrf.mxu1 }
 0x152   :  { %v2786_v45 = vpop.f32.mrf.mxu0 }
 0x153   :  { %v2788_v46 = vpop.f32.mrf.mxu1 }
 0x154   :  { %v2790_v48 = vpop.f32.mrf.mxu0 }
 0x155   :  { %v2792_v49 = vpop.f32.mrf.mxu1 }
 0x156   :  { %2862 = vst [vmem:[#allocation3_spill] sm:$0xff] %v2792_v49  ;;  %v2794_v50 = vpop.f32.mrf.mxu0 }
 0x157   :  { %v2796_v52 = vpop.f32.mrf.mxu1 }
 0x158   :  { %2863 = vst [vmem:[#allocation4_spill] sm:$0xff] %v2796_v52  ;;  %v2798_v53 = vpop.f32.mrf.mxu0 }
 0x159   :  { %2864 = vst [vmem:[#allocation5_spill] sm:$0xff] %v2798_v53  ;;  %v2800_v54 = vpop.f32.mrf.mxu1  ;;  %v1359_v53 = vadd.f32 %v1358_v36, %v2742_v31  ;;  %v1361_v31 = vadd.f32 %v1360_v38, %v2745_v35 }
 0x15a   :  { %2865 = vst [vmem:[#allocation6_spill] sm:$0xff] %v2800_v54  ;;  %v1378_v56 = vpop.f32.mrf.mxu0  ;;  %v1355_v54 = vadd.f32 %v1354_v33, %v2738_v26 }
 0x15b   :  { %v1459_v57 = vpop.f32.mrf.mxu1  ;;  %v1379_v11 = vadd.f32 %v1378_v56, %v1298_v63  ;;  %v1432_v63 = vadd.f32 %v1431_v30, %v1351_v16 }
 0x15c   :  { %v1380_v58 = vpop.f32.mrf.mxu0  ;;  %v1436_v32 = vadd.f32 %v1435_v34, %v1355_v54 }
 0x15d   :  { %v1461_v60 = vpop.f32.mrf.mxu1  ;;  %v1381_v17 = vadd.f32 %v1380_v58, %v1300_v3  ;;  %v1460_v52 = vadd.f32 %v1459_v57, %v1379_v11  ;;  %v1440_v57 = vadd.f32 %v1439_v37, %v1359_v53  ;;  %v1365_v37 = vadd.f32 %v2782_v42, %v2751_v43 }
 0x15e   :  { %v1382_v61 = vpop.f32.mrf.mxu0 }
 0x15f   :  { %v1463_v62 = vpop.f32.mrf.mxu1  ;;  %v1383_v59 = vadd.f32 %v1382_v61, %v2768_v9  ;;  %v1462_v27 = vadd.f32 %v1461_v60, %v1381_v17  ;;  %v1371_v17 = vadd.f32 %v2790_v48, %v2757_v51 }
 0x160   :  { %v1384_v0 = vpop.f32.mrf.mxu0 }
 0x161   :  { %v1465_v1 = vpop.f32.mrf.mxu1  ;;  %v1385_v3 = vadd.f32 %v1384_v0, %v2771_v13  ;;  %v1464_v9 = vadd.f32 %v1463_v62, %v1383_v59  ;;  %v1363_v13 = vadd.f32 %v1362_v40, %v2748_v39  ;;  %v1369_v39 = vadd.f32 %v2786_v45, %v2754_v47 }
 0x162   :  { %v1388_v2 = vpop.f32.mrf.mxu0  ;;  %v1446_v47 = vadd.f32 %v2784_v44, %v1365_v37  ;;  %v1373_v44 = vadd.f32 %v2794_v50, %v2760_v55 }
 0x163   :  { %v1469_v4 = vpop.f32.mrf.mxu1  ;;  %v1389_v28 = vadd.f32 %v1388_v2, %v2774_v18  ;;  %v1466_v61 = vadd.f32 %v1465_v1, %v1385_v3  ;;  %v1444_v16 = vadd.f32 %v2780_v41, %v1363_v13 }
 0x164   :  { %v1390_v5 = vpop.f32.mrf.mxu0 }
 0x165   :  { %v1471_v6 = vpop.f32.mrf.mxu1  ;;  %v1391_v36 = vadd.f32 %v1390_v5, %v2776_v22  ;;  %v1470_v35 = vadd.f32 %v1469_v4, %v1389_v28  ;;  %v1442_v22 = vadd.f32 %v2778_v8, %v1361_v31 }
 0x166   :  { %v1392_v12 = vpop.f32.mrf.mxu0 }
 0x167   :  { %v1473_v14 = vpop.f32.mrf.mxu1  ;;  %v1472_v40 = vadd.f32 %v1471_v6, %v1391_v36 }
 0x168   :  { %v1393_v21 = vpop.f32.mrf.mxu0 }
 0x169   :  { %v1474_v24 = vpop.f32.mrf.mxu1 }
 0x16a   :  { %v1510_v49 = vpop.f32.mrf.mxu0 }
 0x16b   :  { %v1540_v15 = vpop.f32.mrf.mxu1  ;;  %v1511_v56 = vadd.f32 %v1510_v49, %v1430_v25 }
 0x16c   :  { %v1541_v12 = vadd.f32 %v1540_v15, %v1460_v52  ;;  %v1512_v23 = vpop.f32.mrf.mxu0 }
 0x16d   :  { %v1542_v29 = vpop.f32.mrf.mxu1  ;;  %v1513_v26 = vadd.f32 %v1512_v23, %v1432_v63  ;;  %v1557_v49 = vmax.f32 %v1511_v56, 0.0 }
 0x16e   :  { %v1543_v33 = vadd.f32 %v1542_v29, %v1462_v27  ;;  %v1514_v30 = vpop.f32.mrf.mxu0  ;;  %v1569_v52 = vmax.f32 %v1541_v12, 0.0  ;;  %v2866_v29 = vld [vmem:[#allocation3_spill] sm:$0xff] }
 0x16f   :  { %v1544_v58 = vpop.f32.mrf.mxu1  ;;  %v1558_v7 = vmax.f32 %v1513_v26, 0.0  ;;  %v1515_v34 = vadd.f32 %v1514_v30, %v1434_v19  ;;  %v1450_v19 = vadd.f32 %v2788_v46, %v1369_v39  ;;  %v2867_v46 = vld [vmem:[#allocation2_spill] sm:$0xff]  ;;  %v2868_v26 = vld [vmem:[#allocation5_spill] sm:$0xff] }
 0x170   :  { %v1570_v60 = vmax.f32 %v1543_v33, 0.0  ;;  %v1545_v54 = vadd.f32 %v1544_v58, %v1464_v9  ;;  %v1516_v18 = vpop.f32.mrf.mxu0  ;;  %v1375_v33 = vadd.f32 %v2868_v26, %v2867_v46  ;;  %v2869_v9 = vld [vmem:[#allocation4_spill] sm:$0xff] }
 0x171   :  { %v1546_v0 = vpop.f32.mrf.mxu1  ;;  %v1842_v59 = vpack.c.bf16 %v1558_v7, %v1557_v49  ;;  %v1517_v53 = vadd.f32 %v1516_v18, %v1436_v32  ;;  %v1559_v1 = vmax.f32 %v1515_v34, 0.0  ;;  %v1452_v32 = vadd.f32 %v2866_v29, %v1371_v17 }
 0x172   :  { %v1848_v38 = vpack.c.bf16 %v1570_v60, %v1569_v52  ;;  %v1547_v62 = vadd.f32 %v1546_v0, %v1466_v61  ;;  %v1520_v2 = vpop.f32.mrf.mxu0  ;;  %v1571_v8 = vmax.f32 %v1545_v54, 0.0  ;;  %v1454_v36 = vadd.f32 %v2869_v9, %v1373_v44  ;;  %v2870_v52 = vld [vmem:[#allocation6_spill] sm:$0xff] }
 0x173   :  { %v1550_v5 = vpop.f32.mrf.mxu1  ;;  %1631 = vst [vmem:[%s2860_s3] sm:$0xff] %v1842_v59  ;;  %v1521_v43 = vadd.f32 %v1520_v2, %v1440_v57  ;;  %v1560_v4 = vmax.f32 %v1517_v53, 0.0  ;;  %v1456_v7 = vadd.f32 %v2870_v52, %v1375_v33 }
 0x174   :  { %1637 = vst [vmem:[%s2860_s3 + $0x30] sm:$0xff] %v1848_v38  ;;  %v1551_v42 = vadd.f32 %v1550_v5, %v1470_v35  ;;  %v1572_v10 = vmax.f32 %v1547_v62, 0.0  ;;  %v1522_v11 = vpop.f32.mrf.mxu0 }
 0x175   :  { %v1552_v14 = vpop.f32.mrf.mxu1  ;;  %v1523_v45 = vadd.f32 %v1522_v11, %v1442_v22  ;;  %v1843_v20 = vpack.c.bf16 %v1560_v4, %v1559_v1  ;;  %v1561_v24 = vmax.f32 %v1521_v43, 0.0 }
 0x176   :  { %v1553_v6 = vadd.f32 %v1552_v14, %v1472_v40  ;;  %v1849_v21 = vpack.c.bf16 %v1572_v10, %v1571_v8  ;;  %v1524_v25 = vpop.f32.mrf.mxu0  ;;  %v1573_v63 = vmax.f32 %v1551_v42, 0.0 }
 0x177   :  { %v1554_v15 = vpop.f32.mrf.mxu1  ;;  %v1562_v27 = vmax.f32 %v1523_v45, 0.0  ;;  %v1525_v12 = vadd.f32 %v1524_v25, %v1444_v16  ;;  %1632 = vst [vmem:[%s2860_s3 + $0x8] sm:$0xff] %v1843_v20 }
 0x178   :  { %v1574_v56 = vmax.f32 %v1553_v6, 0.0  ;;  %1638 = vst [vmem:[%s2860_s3 + $0x38] sm:$0xff] %v1849_v21  ;;  %v1526_v51 = vpop.f32.mrf.mxu0 }
 0x179   :  { %v1555_v41 = vpop.f32.mrf.mxu1  ;;  %v1844_v48 = vpack.c.bf16 %v1562_v27, %v1561_v24  ;;  %v1527_v23 = vadd.f32 %v1526_v51, %v1446_v47  ;;  %v1563_v57 = vmax.f32 %v1525_v12, 0.0 }
 0x17a   :  { %v1850_v3 = vpack.c.bf16 %v1574_v56, %v1573_v63  ;;  %v1530_v28 = vpop.f32.mrf.mxu0 }
 0x17b   :  { %1633 = vst [vmem:[%s2860_s3 + $0x10] sm:$0xff] %v1844_v48  ;;  %v1564_v31 = vmax.f32 %v1527_v23, 0.0  ;;  %v1531_v55 = vadd.f32 %v1530_v28, %v1450_v19 }
 0x17c   :  { %1639 = vst [vmem:[%s2860_s3 + $0x40] sm:$0xff] %v1850_v3  ;;  %v1532_v50 = vpop.f32.mrf.mxu0 }
 0x17d   :  { %v1845_v30 = vpack.c.bf16 %v1564_v31, %v1563_v57  ;;  %v1533_v58 = vadd.f32 %v1532_v50, %v1452_v32  ;;  %v1565_v60 = vmax.f32 %v1531_v55, 0.0 }
 0x17e   :  { %v1534_v49 = vpop.f32.mrf.mxu0 }
 0x17f   :  { %1634 = vst [vmem:[%s2860_s3 + $0x18] sm:$0xff] %v1845_v30  ;;  %v1566_v13 = vmax.f32 %v1533_v58, 0.0  ;;  %v1535_v61 = vadd.f32 %v1534_v49, %v1454_v36 }
 0x180   :  { %v1536_v34 = vpop.f32.mrf.mxu0 }
 0x181   :  { %v1846_v54 = vpack.c.bf16 %v1566_v13, %v1565_v60  ;;  %v1537_v18 = vadd.f32 %v1536_v34, %v1456_v7  ;;  %v1567_v0 = vmax.f32 %v1535_v61, 0.0 }
 0x183   :  { %1635 = vst [vmem:[%s2860_s3 + $0x20] sm:$0xff] %v1846_v54  ;;  %v1568_v37 = vmax.f32 %v1537_v18, 0.0 }
 0x185   :  { %v1847_v35 = vpack.c.bf16 %v1568_v37, %v1567_v0 }
 0x187   :  { %1636 = vst [vmem:[%s2860_s3 + $0x28] sm:$0xff] %v1847_v35 }

// kernel: _lambda_.10
= control target key start
LH: loop header
LB: loop body
LE: loop exit
PB: predicated region body
PF: predicated region fallthrough
CT: control target
= control target key end

     0   :  { %s5381_s1 = inlined_call_operand.vmem [shape: bf16[2304,256], index: 1, kind: input, shape index: {}]   ;;  %s5382_s0 = inlined_call_operand.vmem [shape: bf16[72,2304], index: 0, kind: input, shape index: {}]   ;;  %s5383_s2 = inlined_call_operand.vmem [shape: f32[1,256], index: 2, kind: input, shape index: {}]   ;;  %s5384_s3 = inlined_call_operand.vmem [shape: f32[72,256], index: 3, kind: output, shape index: {}]  }
   0x1   :  { %v3419_v0 = vld [vmem:[%s5381_s1 + $0x74] ss:$8 sps:$4 sm:$0xff]   ;;  %v3423_v2 = vld [vmem:[%s5381_s1 + $0x70] ss:$8 sps:$4 sm:$0xff]   ;;  %v3425_v4 = vld [vmem:[%s5381_s1 + $0x64] ss:$8 sps:$4 sm:$0xff]  }
   0x2   :  { %v3421_v1 = vld [vmem:[%s5381_s1 + $0x174] ss:$8 sps:$4 sm:$0xff]   ;;  %2258 = vmatprep.subr.bf16.mxu0 %v3419_v0  ;;  %v3424_v3 = vld [vmem:[%s5381_s1 + $0x170] ss:$8 sps:$4 sm:$0xff]   ;;  %v3427_v5 = vld [vmem:[%s5381_s1 + $0x164] ss:$8 sps:$4 sm:$0xff]  }
   0x3   :  { %2339 = vmatprep.subr.bf16.mxu1 %v3421_v1  ;;  %2259 = vmatpush1.bf16.msra.mxu0 %v3423_v2  ;;  %v3429_v6 = vld [vmem:[%s5381_s1 + $0x60] ss:$8 sps:$4 sm:$0xff]   ;;  %v3431_v8 = vld [vmem:[%s5381_s1 + $0x54] ss:$8 sps:$4 sm:$0xff]   ;;  %v3435_v10 = vld [vmem:[%s5381_s1 + $0x50] ss:$8 sps:$4 sm:$0xff]  }
   0x4   :  { %2340 = vmatpush1.bf16.msra.mxu1 %v3424_v3  ;;  %2260 = vmatprep.subr.bf16.mxu0 %v3425_v4  ;;  %v3430_v7 = vld [vmem:[%s5381_s1 + $0x160] ss:$8 sps:$4 sm:$0xff]   ;;  %v3433_v9 = vld [vmem:[%s5381_s1 + $0x154] ss:$8 sps:$4 sm:$0xff]   ;;  %v3436_v11 = vld [vmem:[%s5381_s1 + $0x150] ss:$8 sps:$4 sm:$0xff]  }
   0x5   :  { %2341 = vmatprep.subr.bf16.mxu1 %v3427_v5  ;;  %v3437_v12 = vld [vmem:[%s5381_s1 + $0x44] ss:$8 sps:$4 sm:$0xff]   ;;  %v3441_v14 = vld [vmem:[%s5381_s1 + $0x40] ss:$8 sps:$4 sm:$0xff]   ;;  %v3443_v16 = vld [vmem:[%s5381_s1 + $0x34] ss:$8 sps:$4 sm:$0xff]  }
   0x6   :  { %v3439_v13 = vld [vmem:[%s5381_s1 + $0x144] ss:$8 sps:$4 sm:$0xff]   ;;  %v3442_v15 = vld [vmem:[%s5381_s1 + $0x140] ss:$8 sps:$4 sm:$0xff]   ;;  %v3445_v17 = vld [vmem:[%s5381_s1 + $0x134] ss:$8 sps:$4 sm:$0xff]  }
   0x7   :  { %2261 = vmatpush1.bf16.msra.mxu0 %v3429_v6  ;;  %v3447_v18 = vld [vmem:[%s5381_s1 + $0x30] ss:$8 sps:$4 sm:$0xff]   ;;  %v3449_v20 = vld [vmem:[%s5381_s1 + $0x24] ss:$8 sps:$4 sm:$0xff]   ;;  %v3453_v22 = vld [vmem:[%s5381_s1 + $0x20] ss:$8 sps:$4 sm:$0xff]  }
   0x8   :  { %2342 = vmatpush1.bf16.msra.mxu1 %v3430_v7  ;;  %2262 = vmatprep.subr.bf16.mxu0 %v3431_v8  ;;  %v3448_v19 = vld [vmem:[%s5381_s1 + $0x130] ss:$8 sps:$4 sm:$0xff]   ;;  %v3451_v21 = vld [vmem:[%s5381_s1 + $0x124] ss:$8 sps:$4 sm:$0xff]   ;;  %v3454_v23 = vld [vmem:[%s5381_s1 + $0x120] ss:$8 sps:$4 sm:$0xff]  }
   0x9   :  { %2343 = vmatprep.subr.bf16.mxu1 %v3433_v9  ;;  %v3455_v24 = vld [vmem:[%s5381_s1 + $0x14] ss:$8 sps:$4 sm:$0xff]   ;;  %v3459_v26 = vld [vmem:[%s5381_s1 + $0x10] ss:$8 sps:$4 sm:$0xff]   ;;  %v3461_v28 = vld [vmem:[%s5381_s1 + $0x4] ss:$8 sps:$4 sm:$0xff]  }
   0xa   :  { %v3457_v25 = vld [vmem:[%s5381_s1 + $0x114] ss:$8 sps:$4 sm:$0xff]   ;;  %v3460_v27 = vld [vmem:[%s5381_s1 + $0x110] ss:$8 sps:$4 sm:$0xff]   ;;  %v3463_v29 = vld [vmem:[%s5381_s1 + $0x104] ss:$8 sps:$4 sm:$0xff]  }
   0xb   :  { %2263 = vmatpush1.bf16.msra.mxu0 %v3435_v10  ;;  %v3465_v30 = vld [vmem:[%s5381_s1] ss:$8 sps:$4 sm:$0xff]   ;;  %v3467_v32 = vld [vmem:[%s5381_s1 + $0xf4] ss:$8 sps:$4 sm:$0xff]   ;;  %v3471_v34 = vld [vmem:[%s5381_s1 + $0xf0] ss:$8 sps:$4 sm:$0xff]  }
   0xc   :  { %2344 = vmatpush1.bf16.msra.mxu1 %v3436_v11  ;;  %2264 = vmatprep.subr.bf16.mxu0 %v3437_v12  ;;  %v3466_v31 = vld [vmem:[%s5381_s1 + $0x100] ss:$8 sps:$4 sm:$0xff]   ;;  %v3469_v33 = vld [vmem:[%s5381_s1 + $0x1f4] ss:$8 sps:$4 sm:$0xff]   ;;  %v3472_v35 = vld [vmem:[%s5381_s1 + $0x1f0] ss:$8 sps:$4 sm:$0xff]  }
   0xd   :  { %2345 = vmatprep.subr.bf16.mxu1 %v3439_v13  ;;  %v3473_v36 = vld [vmem:[%s5381_s1 + $0xe4] ss:$8 sps:$4 sm:$0xff]   ;;  %v3477_v38 = vld [vmem:[%s5381_s1 + $0xe0] ss:$8 sps:$4 sm:$0xff]   ;;  %v3479_v40 = vld [vmem:[%s5381_s1 + $0xd4] ss:$8 sps:$4 sm:$0xff]  }
   0xe   :  { %v3475_v37 = vld [vmem:[%s5381_s1 + $0x1e4] ss:$8 sps:$4 sm:$0xff]   ;;  %v3478_v39 = vld [vmem:[%s5381_s1 + $0x1e0] ss:$8 sps:$4 sm:$0xff]   ;;  %v3481_v41 = vld [vmem:[%s5381_s1 + $0x1d4] ss:$8 sps:$4 sm:$0xff]  }
   0xf   :  { %2265 = vmatpush1.bf16.msra.mxu0 %v3441_v14  ;;  %v3483_v42 = vld [vmem:[%s5381_s1 + $0xd0] ss:$8 sps:$4 sm:$0xff]   ;;  %v3485_v44 = vld [vmem:[%s5381_s1 + $0xc4] ss:$8 sps:$4 sm:$0xff]   ;;  %v3489_v46 = vld [vmem:[%s5381_s1 + $0xc0] ss:$8 sps:$4 sm:$0xff]  }
  0x10   :  { %2346 = vmatpush1.bf16.msra.mxu1 %v3442_v15  ;;  %2266 = vmatprep.subr.bf16.mxu0 %v3443_v16  ;;  %v3484_v43 = vld [vmem:[%s5381_s1 + $0x1d0] ss:$8 sps:$4 sm:$0xff]   ;;  %v3487_v45 = vld [vmem:[%s5381_s1 + $0x1c4] ss:$8 sps:$4 sm:$0xff]   ;;  %v3490_v47 = vld [vmem:[%s5381_s1 + $0x1c0] ss:$8 sps:$4 sm:$0xff]  }
  0x11   :  { %2347 = vmatprep.subr.bf16.mxu1 %v3445_v17  ;;  %v3491_v48 = vld [vmem:[%s5381_s1 + $0xb4] ss:$8 sps:$4 sm:$0xff]   ;;  %v3517_v49 = vld [vmem:[%s5382_s0 + $0x4] ss:$72 sps:$4 sm:$0xff]   ;;  %v3495_v52 = vld [vmem:[%s5381_s1 + $0xb0] ss:$8 sps:$4 sm:$0xff]  }
  0x12   :  { %v3493_v50 = vld [vmem:[%s5381_s1 + $0x1b4] ss:$8 sps:$4 sm:$0xff]   ;;  %2290 = vmatprep.mubr.bf16.mxu0 %v3517_v49  ;;  %v3496_v53 = vld [vmem:[%s5381_s1 + $0x1b0] ss:$8 sps:$4 sm:$0xff]   ;;  %v3497_v54 = vld [vmem:[%s5381_s1 + $0xa4] ss:$8 sps:$4 sm:$0xff]  }
  0x13   :  { %2267 = vmatpush1.bf16.msra.mxu0 %v3447_v18  ;;  %v3520_v51 = vld [vmem:[%s5382_s0 + $0xc] ss:$72 sps:$4 sm:$0xff]   ;;  %v3501_v56 = vld [vmem:[%s5381_s1 + $0xa0] ss:$8 sps:$4 sm:$0xff]   ;;  %v3507_v60 = vld [vmem:[%s5381_s1 + $0x90] ss:$8 sps:$4 sm:$0xff]  }
  0x14   :  { %2348 = vmatpush1.bf16.msra.mxu1 %v3448_v19  ;;  %2268 = vmatprep.subr.bf16.mxu0 %v3449_v20  ;;  %v3499_v55 = vld [vmem:[%s5381_s1 + $0x1a4] ss:$8 sps:$4 sm:$0xff]   ;;  %v3502_v57 = vld [vmem:[%s5381_s1 + $0x1a0] ss:$8 sps:$4 sm:$0xff]   ;;  %v3503_v58 = vld [vmem:[%s5381_s1 + $0x94] ss:$8 sps:$4 sm:$0xff]  }
  0x15   :  { %2349 = vmatprep.subr.bf16.mxu1 %v3451_v21  ;;  %2371 = vmatprep.mubr.bf16.mxu1 %v3520_v51  ;;  %v3505_v59 = vld [vmem:[%s5381_s1 + $0x194] ss:$8 sps:$4 sm:$0xff]   ;;  %v3508_v61 = vld [vmem:[%s5381_s1 + $0x190] ss:$8 sps:$4 sm:$0xff]   ;;  %v3509_v62 = vld [vmem:[%s5381_s1 + $0x84] ss:$8 sps:$4 sm:$0xff]  }
  0x16   :  { %v3511_v63 = vld [vmem:[%s5381_s1 + $0x184] ss:$8 sps:$4 sm:$0xff]   ;;  %v3513_v0 = vld [vmem:[%s5381_s1 + $0x80] ss:$8 sps:$4 sm:$0xff]   ;;  %v3523_v2 = vld [vmem:[%s5381_s1 + $0x274] ss:$8 sps:$4 sm:$0xff]  }
  0x17   :  { %2269 = vmatpush1.bf16.msra.mxu0 %v3453_v22  ;;  %v3514_v1 = vld [vmem:[%s5381_s1 + $0x180] ss:$8 sps:$4 sm:$0xff]   ;;  %v3526_v4 = vld [vmem:[%s5381_s1 + $0x374] ss:$8 sps:$4 sm:$0xff]   ;;  %v3521_v6 = vld [vmem:[%s5381_s1 + $0x270] ss:$8 sps:$4 sm:$0xff]  }
  0x18   :  { %2350 = vmatpush1.bf16.msra.mxu1 %v3454_v23  ;;  %2270 = vmatprep.subr.bf16.mxu0 %v3455_v24  ;;  %v3515_v3 = vld [vmem:[%s5382_s0] ss:$72 sps:$4 sm:$0xff]   ;;  %v3524_v7 = vld [vmem:[%s5381_s1 + $0x370] ss:$8 sps:$4 sm:$0xff]   ;;  %v3529_v8 = vld [vmem:[%s5381_s1 + $0x264] ss:$8 sps:$4 sm:$0xff]  }
  0x19   :  { %2351 = vmatprep.subr.bf16.mxu1 %v3457_v25  ;;  %v3518_v5 = vld [vmem:[%s5382_s0 + $0x8] ss:$72 sps:$4 sm:$0xff]   ;;  %v3532_v9 = vld [vmem:[%s5381_s1 + $0x364] ss:$8 sps:$4 sm:$0xff]   ;;  %v3563_v10 = vld [vmem:[%s5382_s0 + $0x94] ss:$72 sps:$4 sm:$0xff]  }
  0x1a   :  { %v3566_v11 = vld [vmem:[%s5382_s0 + $0x9c] ss:$72 sps:$4 sm:$0xff]   ;;  %v3527_v12 = vld [vmem:[%s5381_s1 + $0x260] ss:$8 sps:$4 sm:$0xff]   ;;  %v3533_v16 = vld [vmem:[%s5381_s1 + $0x250] ss:$8 sps:$4 sm:$0xff]  }
  0x1b   :  { %2271 = vmatpush1.bf16.msra.mxu0 %v3459_v26  ;;  %v3530_v13 = vld [vmem:[%s5381_s1 + $0x360] ss:$8 sps:$4 sm:$0xff]   ;;  %v3535_v14 = vld [vmem:[%s5381_s1 + $0x254] ss:$8 sps:$4 sm:$0xff]   ;;  %v3536_v17 = vld [vmem:[%s5381_s1 + $0x350] ss:$8 sps:$4 sm:$0xff]  }
  0x1c   :  { %2352 = vmatpush1.bf16.msra.mxu1 %v3460_v27  ;;  %2272 = vmatprep.subr.bf16.mxu0 %v3461_v28  ;;  %v3538_v15 = vld [vmem:[%s5381_s1 + $0x354] ss:$8 sps:$4 sm:$0xff]   ;;  %v3541_v18 = vld [vmem:[%s5381_s1 + $0x244] ss:$8 sps:$4 sm:$0xff]   ;;  %v3565_v19 = vld [vmem:[%s5382_s0 + $0x90] ss:$72 sps:$4 sm:$0xff]  }
  0x1d   :  { %2353 = vmatprep.subr.bf16.mxu1 %v3463_v29  ;;  %v3574_v20 = vld [vmem:[%s5382_s0 + $0x98] ss:$72 sps:$4 sm:$0xff]   ;;  %v3544_v21 = vld [vmem:[%s5381_s1 + $0x344] ss:$8 sps:$4 sm:$0xff]   ;;  %v3547_v26 = vld [vmem:[%s5381_s1 + $0x234] ss:$8 sps:$4 sm:$0xff]  }
  0x1e   :  { %v3581_v22 = vld [vmem:[%s5382_s0 + $0x124] ss:$72 sps:$4 sm:$0xff]   ;;  %v3539_v24 = vld [vmem:[%s5381_s1 + $0x240] ss:$8 sps:$4 sm:$0xff]   ;;  %v3550_v27 = vld [vmem:[%s5381_s1 + $0x334] ss:$8 sps:$4 sm:$0xff]  }
  0x1f   :  { %2273 = vmatpush1.bf16.msra.mxu0 %v3465_v30  ;;  %v3584_v23 = vld [vmem:[%s5382_s0 + $0x12c] ss:$72 sps:$4 sm:$0xff]   ;;  %v3542_v25 = vld [vmem:[%s5381_s1 + $0x340] ss:$8 sps:$4 sm:$0xff]   ;;  %v3545_v28 = vld [vmem:[%s5381_s1 + $0x230] ss:$8 sps:$4 sm:$0xff]  }
  0x20   :  { %2354 = vmatpush1.bf16.msra.mxu1 %v3466_v31  ;;  %2274 = vmatprep.subr.bf16.mxu0 %v3467_v32  ;;  %v3548_v29 = vld [vmem:[%s5381_s1 + $0x330] ss:$8 sps:$4 sm:$0xff]   ;;  %v3553_v30 = vld [vmem:[%s5381_s1 + $0x224] ss:$8 sps:$4 sm:$0xff]   ;;  %v3583_v31 = vld [vmem:[%s5382_s0 + $0x120] ss:$72 sps:$4 sm:$0xff]  }
  0x21   :  { %2355 = vmatprep.subr.bf16.mxu1 %v3469_v33  ;;  %v3592_v32 = vld [vmem:[%s5382_s0 + $0x128] ss:$72 sps:$4 sm:$0xff]   ;;  %v3556_v33 = vld [vmem:[%s5381_s1 + $0x324] ss:$8 sps:$4 sm:$0xff]  }
  0x22   :  { %v3568_v49 = vld [vmem:[%s5381_s1 + $0x200] ss:$8 sps:$4 sm:$0xff]  }
  0x23   :  { %2275 = vmatpush2.bf16.msra.mxu0 %v3471_v34  ;;  %v3599_v34 = vld [vmem:[%s5382_s0 + $0x1b4] ss:$72 sps:$4 sm:$0xff]  }
  0x24   :  { %2356 = vmatpush2.bf16.msra.mxu1 %v3472_v35  ;;  %2276 = vmatprep.subr.bf16.mxu0 %v3473_v36  ;;  %v3602_v35 = vld [vmem:[%s5382_s0 + $0x1bc] ss:$72 sps:$4 sm:$0xff]   ;;  %v3551_v36 = vld [vmem:[%s5381_s1 + $0x220] ss:$8 sps:$4 sm:$0xff]  }
  0x25   :  { %2357 = vmatprep.subr.bf16.mxu1 %v3475_v37  ;;  %v3554_v37 = vld [vmem:[%s5381_s1 + $0x320] ss:$8 sps:$4 sm:$0xff]  }
  0x27   :  { %2277 = vmatpush2.bf16.msra.mxu0 %v3477_v38  ;;  %v3559_v38 = vld [vmem:[%s5381_s1 + $0x214] ss:$8 sps:$4 sm:$0xff]  }
  0x28   :  { %2358 = vmatpush2.bf16.msra.mxu1 %v3478_v39  ;;  %2278 = vmatprep.subr.bf16.mxu0 %v3479_v40  ;;  %v3562_v39 = vld [vmem:[%s5381_s1 + $0x314] ss:$8 sps:$4 sm:$0xff]   ;;  %v3557_v40 = vld [vmem:[%s5381_s1 + $0x210] ss:$8 sps:$4 sm:$0xff]  }
  0x29   :  { %2359 = vmatprep.subr.bf16.mxu1 %v3481_v41  ;;  %v3560_v41 = vld [vmem:[%s5381_s1 + $0x310] ss:$8 sps:$4 sm:$0xff]  }
  0x2b   :  { %2279 = vmatpush2.bf16.msra.mxu0 %v3483_v42  ;;  %v3601_v42 = vld [vmem:[%s5382_s0 + $0x1b0] ss:$72 sps:$4 sm:$0xff]  }
  0x2c   :  { %2360 = vmatpush2.bf16.msra.mxu1 %v3484_v43  ;;  %2280 = vmatprep.subr.bf16.mxu0 %v3485_v44  ;;  %v3610_v43 = vld [vmem:[%s5382_s0 + $0x1b8] ss:$72 sps:$4 sm:$0xff]  }
  0x2d   :  { %2361 = vmatprep.subr.bf16.mxu1 %v3487_v45  ;;  %v86_v44 = vld [vmem:[%s5382_s0 + $0x240] sm:$0xff] }
  0x2e   :  { %v3570_v45 = vld [vmem:[%s5381_s1 + $0x204] ss:$8 sps:$4 sm:$0xff]  }
  0x2f   :  { %2281 = vmatpush2.bf16.msra.mxu0 %v3489_v46  ;;  %v3573_v46 = vld [vmem:[%s5381_s1 + $0x304] ss:$8 sps:$4 sm:$0xff]  }
  0x30   :  { %2362 = vmatpush2.bf16.msra.mxu1 %v3490_v47  ;;  %2282 = vmatprep.subr.bf16.mxu0 %v3491_v48  ;;  %v3082_v47 = vcombine.high %v86_v44, %v86_v44  ;;  %v87_v48 = vld [vmem:[%s5382_s0 + $0x248] sm:$0xff] }
  0x31   :  { %2363 = vmatprep.subr.bf16.mxu1 %v3493_v50  ;;  %v3571_v50 = vld [vmem:[%s5381_s1 + $0x300] ss:$8 sps:$4 sm:$0xff]   ;;  %v3084_v51 = vcombine.high %v87_v48, %v87_v48 }
  0x33   :  { %2283 = vmatpush2.bf16.msra.mxu0 %v3495_v52  ;;  %v3577_v52 = vld [vmem:[%s5381_s1 + $0x2f4] ss:$8 sps:$4 sm:$0xff]  }
  0x34   :  { %2364 = vmatpush2.bf16.msra.mxu1 %v3496_v53  ;;  %2284 = vmatprep.subr.bf16.mxu0 %v3497_v54  ;;  %v3580_v53 = vld [vmem:[%s5381_s1 + $0x3f4] ss:$8 sps:$4 sm:$0xff]   ;;  %v3081_v54 = vcombine.low %v86_v44, %v86_v44 }
  0x35   :  { %2365 = vmatprep.subr.bf16.mxu1 %v3499_v55  ;;  %v3083_v55 = vcombine.low %v87_v48, %v87_v48  ;;  %v3675_v44 = vld [vmem:[%s5382_s0 + $0x134] ss:$72 sps:$4 sm:$0xff]  }
  0x36   :  { %v3680_v48 = vld [vmem:[%s5381_s1 + $0x434] ss:$8 sps:$4 sm:$0xff]  }
  0x37   :  { %2285 = vmatpush2.bf16.msra.mxu0 %v3501_v56  ;;  %v3575_v56 = vld [vmem:[%s5381_s1 + $0x2f0] ss:$8 sps:$4 sm:$0xff]  }
  0x38   :  { %2366 = vmatpush2.bf16.msra.mxu1 %v3502_v57  ;;  %2286 = vmatprep.subr.bf16.mxu0 %v3503_v58  ;;  %v3578_v57 = vld [vmem:[%s5381_s1 + $0x3f0] ss:$8 sps:$4 sm:$0xff]   ;;  %v3588_v58 = vld [vmem:[%s5381_s1 + $0x2e4] ss:$8 sps:$4 sm:$0xff]  }
  0x39   :  { %2367 = vmatprep.subr.bf16.mxu1 %v3505_v59  ;;  %v3591_v59 = vld [vmem:[%s5381_s1 + $0x3e4] ss:$8 sps:$4 sm:$0xff]  }
  0x3b   :  { %2287 = vmatpush2.bf16.msra.mxu0 %v3507_v60  ;;  %v3641_v60 = vld [vmem:[%s5382_s0 + $0x14] ss:$72 sps:$4 sm:$0xff]  }
  0x3c   :  { %2368 = vmatpush2.bf16.msra.mxu1 %v3508_v61  ;;  %2288 = vmatprep.subr.bf16.mxu0 %v3509_v62  ;;  %v3644_v61 = vld [vmem:[%s5382_s0 + $0x1c] ss:$72 sps:$4 sm:$0xff]   ;;  %v3586_v62 = vld [vmem:[%s5381_s1 + $0x2e0] ss:$8 sps:$4 sm:$0xff]  }
  0x3d   :  { %2369 = vmatprep.subr.bf16.mxu1 %v3511_v63  ;;  %v3589_v63 = vld [vmem:[%s5381_s1 + $0x3e0] ss:$8 sps:$4 sm:$0xff]  }
  0x3f   :  { %2289 = vmatpush2.bf16.msra.mxu0 %v3513_v0  ;;  %v3595_v0 = vld [vmem:[%s5381_s1 + $0x2d4] ss:$8 sps:$4 sm:$0xff]  }
  0x40   :  { %2370 = vmatpush2.bf16.msra.mxu1 %v3514_v1  ;;  %2420 = vmatprep.subr.bf16.mxu0 %v3523_v2  ;;  %v3598_v1 = vld [vmem:[%s5381_s1 + $0x3d4] ss:$8 sps:$4 sm:$0xff]   ;;  %v3593_v2 = vld [vmem:[%s5381_s1 + $0x2d0] ss:$8 sps:$4 sm:$0xff]  }
  0x41   :  { %2501 = vmatprep.subr.bf16.mxu1 %v3526_v4  ;;  %v3606_v4 = vld [vmem:[%s5381_s1 + $0x2c4] ss:$8 sps:$4 sm:$0xff]  }
  0x42   :  { %2291 = vmatmul.mubr.bf16.vlgmr.msra.gmra.mxu0 %v3515_v3  ;;  %v3596_v3 = vld [vmem:[%s5381_s1 + $0x3d0] ss:$8 sps:$4 sm:$0xff]  }
  0x43   :  { %2372 = vmatmul.mubr.bf16.vlgmr.msra.gmra.mxu1 %v3518_v5  ;;  %2421 = vmatpush1.bf16.msra.mxu0 %v3521_v6  ;;  %v3609_v5 = vld [vmem:[%s5381_s1 + $0x3c4] ss:$8 sps:$4 sm:$0xff]   ;;  %v3604_v6 = vld [vmem:[%s5381_s1 + $0x2c0] ss:$8 sps:$4 sm:$0xff]  }
  0x44   :  { %2502 = vmatpush1.bf16.msra.mxu1 %v3524_v7  ;;  %2422 = vmatprep.subr.bf16.mxu0 %v3529_v8  ;;  %v3607_v7 = vld [vmem:[%s5381_s1 + $0x3c0] ss:$8 sps:$4 sm:$0xff]   ;;  %v3613_v8 = vld [vmem:[%s5381_s1 + $0x2b4] ss:$8 sps:$4 sm:$0xff]  }
  0x45   :  { %2503 = vmatprep.subr.bf16.mxu1 %v3532_v9  ;;  %2300 = vmatprep.mubr.bf16.mxu0 %v3563_v10  ;;  %v3616_v9 = vld [vmem:[%s5381_s1 + $0x3b4] ss:$8 sps:$4 sm:$0xff]   ;;  %v3611_v10 = vld [vmem:[%s5381_s1 + $0x2b0] ss:$8 sps:$4 sm:$0xff]  }
  0x46   :  { %2381 = vmatprep.mubr.bf16.mxu1 %v3566_v11  ;;  %v3614_v11 = vld [vmem:[%s5381_s1 + $0x3b0] ss:$8 sps:$4 sm:$0xff]  }
  0x47   :  { %2423 = vmatpush1.bf16.msra.mxu0 %v3527_v12  ;;  %v3621_v12 = vld [vmem:[%s5381_s1 + $0x2a4] ss:$8 sps:$4 sm:$0xff]  }
  0x48   :  { %2504 = vmatpush1.bf16.msra.mxu1 %v3530_v13  ;;  %2424 = vmatprep.subr.bf16.mxu0 %v3535_v14  ;;  %v3624_v13 = vld [vmem:[%s5381_s1 + $0x3a4] ss:$8 sps:$4 sm:$0xff]   ;;  %v3619_v14 = vld [vmem:[%s5381_s1 + $0x2a0] ss:$8 sps:$4 sm:$0xff]  }
  0x49   :  { %2505 = vmatprep.subr.bf16.mxu1 %v3538_v15  ;;  %v3622_v15 = vld [vmem:[%s5381_s1 + $0x3a0] ss:$8 sps:$4 sm:$0xff]  }
  0x4a   :  { %2301 = vmatmul.mubr.bf16.gmra.mxu0 %v3565_v19  ;;  %v3629_v19 = vld [vmem:[%s5381_s1 + $0x390] ss:$8 sps:$4 sm:$0xff]  }
  0x4b   :  { %2382 = vmatmul.mubr.bf16.gmra.mxu1 %v3574_v20  ;;  %2425 = vmatpush1.bf16.msra.mxu0 %v3533_v16  ;;  %v3628_v16 = vld [vmem:[%s5381_s1 + $0x294] ss:$8 sps:$4 sm:$0xff]   ;;  %v3635_v20 = vld [vmem:[%s5381_s1 + $0x284] ss:$8 sps:$4 sm:$0xff]  }
  0x4c   :  { %2506 = vmatpush1.bf16.msra.mxu1 %v3536_v17  ;;  %2426 = vmatprep.subr.bf16.mxu0 %v3541_v18  ;;  %v3631_v17 = vld [vmem:[%s5381_s1 + $0x394] ss:$8 sps:$4 sm:$0xff]   ;;  %v3626_v18 = vld [vmem:[%s5381_s1 + $0x290] ss:$8 sps:$4 sm:$0xff]  }
  0x4d   :  { %2507 = vmatprep.subr.bf16.mxu1 %v3544_v21  ;;  %2310 = vmatprep.mubr.bf16.mxu0 %v3581_v22  ;;  %v3638_v21 = vld [vmem:[%s5381_s1 + $0x384] ss:$8 sps:$4 sm:$0xff]   ;;  %v3633_v22 = vld [vmem:[%s5381_s1 + $0x280] ss:$8 sps:$4 sm:$0xff]  }
  0x4e   :  { %2391 = vmatprep.mubr.bf16.mxu1 %v3584_v23  ;;  %v3636_v23 = vld [vmem:[%s5381_s1 + $0x380] ss:$8 sps:$4 sm:$0xff]  }
  0x4f   :  { %2427 = vmatpush1.bf16.msra.mxu0 %v3539_v24  ;;  %v3639_v24 = vld [vmem:[%s5382_s0 + $0x10] ss:$72 sps:$4 sm:$0xff]  }
  0x50   :  { %2508 = vmatpush1.bf16.msra.mxu1 %v3542_v25  ;;  %2428 = vmatprep.subr.bf16.mxu0 %v3547_v26  ;;  %v3647_v25 = vld [vmem:[%s5381_s1 + $0x474] ss:$8 sps:$4 sm:$0xff]  }
  0x51   :  { %2509 = vmatprep.subr.bf16.mxu1 %v3550_v27  ;;  %v3650_v26 = vld [vmem:[%s5381_s1 + $0x574] ss:$8 sps:$4 sm:$0xff]   ;;  %v3642_v27 = vld [vmem:[%s5382_s0 + $0x18] ss:$72 sps:$4 sm:$0xff]  }
  0x52   :  { %2311 = vmatmul.mubr.bf16.gmra.mxu0 %v3583_v31  ;;  %v3656_v31 = vld [vmem:[%s5381_s1 + $0x564] ss:$8 sps:$4 sm:$0xff]  }
  0x53   :  { %2392 = vmatmul.mubr.bf16.gmra.mxu1 %v3592_v32  ;;  %2429 = vmatpush1.bf16.msra.mxu0 %v3545_v28  ;;  %v3645_v28 = vld [vmem:[%s5381_s1 + $0x470] ss:$8 sps:$4 sm:$0xff]   ;;  %v3657_v32 = vld [vmem:[%s5382_s0 + $0xa4] ss:$72 sps:$4 sm:$0xff]  }
  0x54   :  { %2510 = vmatpush1.bf16.msra.mxu1 %v3548_v29  ;;  %2430 = vmatprep.subr.bf16.mxu0 %v3553_v30  ;;  %v3648_v29 = vld [vmem:[%s5381_s1 + $0x570] ss:$8 sps:$4 sm:$0xff]   ;;  %v3653_v30 = vld [vmem:[%s5381_s1 + $0x464] ss:$8 sps:$4 sm:$0xff]  }
  0x55   :  { %2511 = vmatprep.subr.bf16.mxu1 %v3556_v33  ;;  %2320 = vmatprep.mubr.bf16.mxu0 %v3599_v34  ;;  %v3666_v33 = vld [vmem:[%s5382_s0 + $0xac] ss:$72 sps:$4 sm:$0xff]   ;;  %v3651_v34 = vld [vmem:[%s5381_s1 + $0x460] ss:$8 sps:$4 sm:$0xff]  }
  0x56   :  { %2401 = vmatprep.mubr.bf16.mxu1 %v3602_v35  ;;  %v3654_v35 = vld [vmem:[%s5381_s1 + $0x560] ss:$8 sps:$4 sm:$0xff]  }
  0x57   :  { %2431 = vmatpush1.bf16.msra.mxu0 %v3551_v36  ;;  %v3662_v36 = vld [vmem:[%s5381_s1 + $0x454] ss:$8 sps:$4 sm:$0xff]  }
  0x58   :  { %2512 = vmatpush1.bf16.msra.mxu1 %v3554_v37  ;;  %2432 = vmatprep.subr.bf16.mxu0 %v3559_v38  ;;  %v3665_v37 = vld [vmem:[%s5381_s1 + $0x554] ss:$8 sps:$4 sm:$0xff]   ;;  %v3659_v38 = vld [vmem:[%s5382_s0 + $0xa0] ss:$72 sps:$4 sm:$0xff]  }
  0x59   :  { %2513 = vmatprep.subr.bf16.mxu1 %v3562_v39  ;;  %v3660_v39 = vld [vmem:[%s5381_s1 + $0x450] ss:$8 sps:$4 sm:$0xff]  }
  0x5a   :  { %2321 = vmatmul.mubr.bf16.gmra.mxu0 %v3601_v42  ;;  %v3671_v42 = vld [vmem:[%s5381_s1 + $0x444] ss:$8 sps:$4 sm:$0xff]  }
  0x5b   :  { %2402 = vmatmul.mubr.bf16.gmra.mxu1 %v3610_v43  ;;  %2433 = vmatpush1.bf16.msra.mxu0 %v3557_v40  ;;  %v3663_v40 = vld [vmem:[%s5381_s1 + $0x550] ss:$8 sps:$4 sm:$0xff]   ;;  %v3674_v43 = vld [vmem:[%s5381_s1 + $0x544] ss:$8 sps:$4 sm:$0xff]  }
  0x5c   :  { %2514 = vmatpush1.bf16.msra.mxu1 %v3560_v41  ;;  %2434 = vmatprep.subr.bf16.mxu0 %v3570_v45  ;;  %v3668_v41 = vld [vmem:[%s5382_s0 + $0xa8] ss:$72 sps:$4 sm:$0xff]   ;;  %v3684_v45 = vld [vmem:[%s5382_s0 + $0x13c] ss:$72 sps:$4 sm:$0xff]  }
  0x5d   :  { %2515 = vmatprep.subr.bf16.mxu1 %v3573_v46  ;;  %2330 = vmatprep.mubr.bf16.mxu0 %v3082_v47  ;;  %v3669_v46 = vld [vmem:[%s5381_s1 + $0x440] ss:$8 sps:$4 sm:$0xff]  }
  0x5e   :  { %2411 = vmatprep.mubr.bf16.mxu1 %v3084_v51  ;;  %v3672_v47 = vld [vmem:[%s5381_s1 + $0x540] ss:$8 sps:$4 sm:$0xff]   ;;  %v3678_v51 = vld [vmem:[%s5381_s1 + $0x430] ss:$8 sps:$4 sm:$0xff]  }
  0x5f   :  { %2435 = vmatpush1.bf16.msra.mxu0 %v3568_v49  ;;  %v3683_v49 = vld [vmem:[%s5381_s1 + $0x534] ss:$8 sps:$4 sm:$0xff]  }
  0x60   :  { %2516 = vmatpush1.bf16.msra.mxu1 %v3571_v50  ;;  %2436 = vmatprep.subr.bf16.mxu0 %v3577_v52  ;;  %v3677_v50 = vld [vmem:[%s5382_s0 + $0x130] ss:$72 sps:$4 sm:$0xff]  }
  0x61   :  { %2517 = vmatprep.subr.bf16.mxu1 %v3580_v53  ;;  %v3681_v52 = vld [vmem:[%s5381_s1 + $0x530] ss:$8 sps:$4 sm:$0xff]  }
  0x62   :  { %2331 = vmatmul.mubr.bf16.gmra.mxu0 %v3081_v54  ;;  %v3686_v53 = vld [vmem:[%s5382_s0 + $0x138] ss:$72 sps:$4 sm:$0xff]   ;;  %v3689_v54 = vld [vmem:[%s5381_s1 + $0x424] ss:$8 sps:$4 sm:$0xff]  }
  0x63   :  { %2412 = vmatmul.mubr.bf16.gmra.mxu1 %v3083_v55  ;;  %2437 = vmatpush2.bf16.msra.mxu0 %v3575_v56  ;;  %v3692_v55 = vld [vmem:[%s5381_s1 + $0x524] ss:$8 sps:$4 sm:$0xff]  }
  0x64   :  { %2518 = vmatpush2.bf16.msra.mxu1 %v3578_v57  ;;  %2438 = vmatprep.subr.bf16.mxu0 %v3588_v58  ;;  %v3693_v56 = vld [vmem:[%s5382_s0 + $0x1c4] ss:$72 sps:$4 sm:$0xff]   ;;  %v3687_v58 = vld [vmem:[%s5381_s1 + $0x420] ss:$8 sps:$4 sm:$0xff]  }
  0x65   :  { %2519 = vmatprep.subr.bf16.mxu1 %v3591_v59  ;;  %2452 = vmatprep.mubr.bf16.mxu0 %v3641_v60  ;;  %v3702_v57 = vld [vmem:[%s5382_s0 + $0x1cc] ss:$72 sps:$4 sm:$0xff]   ;;  %v3690_v59 = vld [vmem:[%s5381_s1 + $0x520] ss:$8 sps:$4 sm:$0xff]  }
  0x66   :  { %2533 = vmatprep.mubr.bf16.mxu1 %v3644_v61  ;;  %v3698_v60 = vld [vmem:[%s5381_s1 + $0x414] ss:$8 sps:$4 sm:$0xff]   ;;  %v3695_v61 = vld [vmem:[%s5382_s0 + $0x1c0] ss:$72 sps:$4 sm:$0xff]  }
  0x67   :  { %2439 = vmatpush2.bf16.msra.mxu0 %v3586_v62  ;;  %v3701_v62 = vld [vmem:[%s5381_s1 + $0x514] ss:$8 sps:$4 sm:$0xff]  }
  0x68   :  { %2520 = vmatpush2.bf16.msra.mxu1 %v3589_v63  ;;  %2440 = vmatprep.subr.bf16.mxu0 %v3595_v0  ;;  %v3696_v63 = vld [vmem:[%s5381_s1 + $0x410] ss:$8 sps:$4 sm:$0xff]  }
  0x69   :  { %2521 = vmatprep.subr.bf16.mxu1 %v3598_v1  ;;  %v3699_v0 = vld [vmem:[%s5381_s1 + $0x510] ss:$8 sps:$4 sm:$0xff]  }
  0x6a   :  { %v3704_v1 = vld [vmem:[%s5382_s0 + $0x1c8] ss:$72 sps:$4 sm:$0xff]  }
  0x6b   :  { %2441 = vmatpush2.bf16.msra.mxu0 %v3593_v2  ;;  %v88_v2 = vld [vmem:[%s5382_s0 + $0x250] sm:$0xff] }
  0x6c   :  { %2522 = vmatpush2.bf16.msra.mxu1 %v3596_v3  ;;  %2442 = vmatprep.subr.bf16.mxu0 %v3606_v4  ;;  %v89_v3 = vld [vmem:[%s5382_s0 + $0x258] sm:$0xff]  ;;  %v3707_v4 = vld [vmem:[%s5381_s1 + $0x404] ss:$8 sps:$4 sm:$0xff]  }
  0x6d   :  { %2523 = vmatprep.subr.bf16.mxu1 %v3609_v5  ;;  %v3710_v5 = vld [vmem:[%s5381_s1 + $0x504] ss:$8 sps:$4 sm:$0xff]  }
  0x6f   :  { %2443 = vmatpush2.bf16.msra.mxu0 %v3604_v6  ;;  %v3086_v6 = vcombine.high %v88_v2, %v88_v2 }
  0x70   :  { %2524 = vmatpush2.bf16.msra.mxu1 %v3607_v7  ;;  %2444 = vmatprep.subr.bf16.mxu0 %v3613_v8  ;;  %v3088_v7 = vcombine.high %v89_v3, %v89_v3  ;;  %v3705_v8 = vld [vmem:[%s5381_s1 + $0x400] ss:$8 sps:$4 sm:$0xff]  }
  0x71   :  { %2525 = vmatprep.subr.bf16.mxu1 %v3616_v9  ;;  %v3708_v9 = vld [vmem:[%s5381_s1 + $0x500] ss:$8 sps:$4 sm:$0xff]  }
  0x73   :  { %2445 = vmatpush2.bf16.msra.mxu0 %v3611_v10  ;;  %v3715_v10 = vld [vmem:[%s5381_s1 + $0x4f4] ss:$8 sps:$4 sm:$0xff]  }
  0x74   :  { %2526 = vmatpush2.bf16.msra.mxu1 %v3614_v11  ;;  %2446 = vmatprep.subr.bf16.mxu0 %v3621_v12  ;;  %v3718_v11 = vld [vmem:[%s5381_s1 + $0x5f4] ss:$8 sps:$4 sm:$0xff]   ;;  %v3085_v12 = vcombine.low %v88_v2, %v88_v2  ;;  %v3799_v2 = vld [vmem:[%s5382_s0 + $0x144] ss:$72 sps:$4 sm:$0xff]  }
  0x75   :  { %2527 = vmatprep.subr.bf16.mxu1 %v3624_v13  ;;  %v3713_v13 = vld [vmem:[%s5381_s1 + $0x4f0] ss:$8 sps:$4 sm:$0xff]  }
  0x77   :  { %2447 = vmatpush2.bf16.msra.mxu0 %v3619_v14  ;;  %v3716_v14 = vld [vmem:[%s5381_s1 + $0x5f0] ss:$8 sps:$4 sm:$0xff]  }
  0x78   :  { %2528 = vmatpush2.bf16.msra.mxu1 %v3622_v15  ;;  %2448 = vmatprep.subr.bf16.mxu0 %v3628_v16  ;;  %v3087_v15 = vcombine.low %v89_v3, %v89_v3  ;;  %v3723_v16 = vld [vmem:[%s5381_s1 + $0x4e4] ss:$8 sps:$4 sm:$0xff]  }
  0x79   :  { %2529 = vmatprep.subr.bf16.mxu1 %v3631_v17  ;;  %v3726_v17 = vld [vmem:[%s5381_s1 + $0x5e4] ss:$8 sps:$4 sm:$0xff]  }
  0x7a   :  { %v3808_v3 = vld [vmem:[%s5382_s0 + $0x14c] ss:$72 sps:$4 sm:$0xff]  }
  0x7b   :  { %2449 = vmatpush2.bf16.msra.mxu0 %v3626_v18  ;;  %v3765_v18 = vld [vmem:[%s5382_s0 + $0x24] ss:$72 sps:$4 sm:$0xff]  }
  0x7c   :  { %2530 = vmatpush2.bf16.msra.mxu1 %v3629_v19  ;;  %2450 = vmatprep.subr.bf16.mxu0 %v3635_v20  ;;  %v3768_v19 = vld [vmem:[%s5382_s0 + $0x2c] ss:$72 sps:$4 sm:$0xff]   ;;  %v3721_v20 = vld [vmem:[%s5381_s1 + $0x4e0] ss:$8 sps:$4 sm:$0xff]  }
  0x7d   :  { %2531 = vmatprep.subr.bf16.mxu1 %v3638_v21  ;;  %v3724_v21 = vld [vmem:[%s5381_s1 + $0x5e0] ss:$8 sps:$4 sm:$0xff]  }
  0x7f   :  { %2451 = vmatpush2.bf16.msra.mxu0 %v3633_v22  ;;  %v3729_v22 = vld [vmem:[%s5381_s1 + $0x4d4] ss:$8 sps:$4 sm:$0xff]  }
  0x80   :  { %2532 = vmatpush2.bf16.msra.mxu1 %v3636_v23  ;;  %2582 = vmatprep.subr.bf16.mxu0 %v3647_v25  ;;  %v3732_v23 = vld [vmem:[%s5381_s1 + $0x5d4] ss:$8 sps:$4 sm:$0xff]   ;;  %v3730_v25 = vld [vmem:[%s5381_s1 + $0x5d0] ss:$8 sps:$4 sm:$0xff]  }
  0x81   :  { %2663 = vmatprep.subr.bf16.mxu1 %v3650_v26  ;;  %v3735_v26 = vld [vmem:[%s5381_s1 + $0x4c4] ss:$8 sps:$4 sm:$0xff]  }
  0x82   :  { %2453 = vmatmul.mubr.bf16.vlgmr.msra.gmra.mxu0 %v3639_v24  ;;  %v3727_v24 = vld [vmem:[%s5381_s1 + $0x4d0] ss:$8 sps:$4 sm:$0xff]  }
  0x83   :  { %2534 = vmatmul.mubr.bf16.vlgmr.msra.gmra.mxu1 %v3642_v27  ;;  %2583 = vmatpush1.bf16.msra.mxu0 %v3645_v28  ;;  %v3738_v27 = vld [vmem:[%s5381_s1 + $0x5c4] ss:$8 sps:$4 sm:$0xff]   ;;  %v3733_v28 = vld [vmem:[%s5381_s1 + $0x4c0] ss:$8 sps:$4 sm:$0xff]  }
  0x84   :  { %2664 = vmatpush1.bf16.msra.mxu1 %v3648_v29  ;;  %2584 = vmatprep.subr.bf16.mxu0 %v3653_v30  ;;  %v3736_v29 = vld [vmem:[%s5381_s1 + $0x5c0] ss:$8 sps:$4 sm:$0xff]   ;;  %v3741_v30 = vld [vmem:[%s5381_s1 + $0x4b4] ss:$8 sps:$4 sm:$0xff]  }
  0x85   :  { %2665 = vmatprep.subr.bf16.mxu1 %v3656_v31  ;;  %2462 = vmatprep.mubr.bf16.mxu0 %v3657_v32  ;;  %v3744_v31 = vld [vmem:[%s5381_s1 + $0x5b4] ss:$8 sps:$4 sm:$0xff]   ;;  %v3739_v32 = vld [vmem:[%s5381_s1 + $0x4b0] ss:$8 sps:$4 sm:$0xff]  }
  0x86   :  { %2543 = vmatprep.mubr.bf16.mxu1 %v3666_v33  ;;  %v3742_v33 = vld [vmem:[%s5381_s1 + $0x5b0] ss:$8 sps:$4 sm:$0xff]  }
  0x87   :  { %2585 = vmatpush1.bf16.msra.mxu0 %v3651_v34  ;;  %v3747_v34 = vld [vmem:[%s5381_s1 + $0x4a4] ss:$8 sps:$4 sm:$0xff]  }
  0x88   :  { %2666 = vmatpush1.bf16.msra.mxu1 %v3654_v35  ;;  %2586 = vmatprep.subr.bf16.mxu0 %v3662_v36  ;;  %v3750_v35 = vld [vmem:[%s5381_s1 + $0x5a4] ss:$8 sps:$4 sm:$0xff]   ;;  %v3745_v36 = vld [vmem:[%s5381_s1 + $0x4a0] ss:$8 sps:$4 sm:$0xff]  }
  0x89   :  { %2667 = vmatprep.subr.bf16.mxu1 %v3665_v37  ;;  %v3748_v37 = vld [vmem:[%s5381_s1 + $0x5a0] ss:$8 sps:$4 sm:$0xff]  }
  0x8a   :  { %2463 = vmatmul.mubr.bf16.gmra.mxu0 %v3659_v38  ;;  %v3753_v38 = vld [vmem:[%s5381_s1 + $0x494] ss:$8 sps:$4 sm:$0xff]  }
  0x8b   :  { %2544 = vmatmul.mubr.bf16.gmra.mxu1 %v3668_v41  ;;  %2587 = vmatpush1.bf16.msra.mxu0 %v3660_v39  ;;  %v3756_v39 = vld [vmem:[%s5381_s1 + $0x594] ss:$8 sps:$4 sm:$0xff]   ;;  %v3754_v41 = vld [vmem:[%s5381_s1 + $0x590] ss:$8 sps:$4 sm:$0xff]  }
  0x8c   :  { %2668 = vmatpush1.bf16.msra.mxu1 %v3663_v40  ;;  %2588 = vmatprep.subr.bf16.mxu0 %v3671_v42  ;;  %v3751_v40 = vld [vmem:[%s5381_s1 + $0x490] ss:$8 sps:$4 sm:$0xff]   ;;  %v3759_v42 = vld [vmem:[%s5381_s1 + $0x484] ss:$8 sps:$4 sm:$0xff]  }
  0x8d   :  { %2669 = vmatprep.subr.bf16.mxu1 %v3674_v43  ;;  %2472 = vmatprep.mubr.bf16.mxu0 %v3675_v44  ;;  %v3762_v43 = vld [vmem:[%s5381_s1 + $0x584] ss:$8 sps:$4 sm:$0xff]   ;;  %v3757_v44 = vld [vmem:[%s5381_s1 + $0x480] ss:$8 sps:$4 sm:$0xff]  }
  0x8e   :  { %2553 = vmatprep.mubr.bf16.mxu1 %v3684_v45  ;;  %v3760_v45 = vld [vmem:[%s5381_s1 + $0x580] ss:$8 sps:$4 sm:$0xff]  }
  0x8f   :  { %2589 = vmatpush1.bf16.msra.mxu0 %v3669_v46  ;;  %v3763_v46 = vld [vmem:[%s5382_s0 + $0x20] ss:$72 sps:$4 sm:$0xff]  }
  0x90   :  { %2670 = vmatpush1.bf16.msra.mxu1 %v3672_v47  ;;  %2590 = vmatprep.subr.bf16.mxu0 %v3680_v48  ;;  %v3771_v47 = vld [vmem:[%s5381_s1 + $0x674] ss:$8 sps:$4 sm:$0xff]  }
  0x91   :  { %2671 = vmatprep.subr.bf16.mxu1 %v3683_v49  ;;  %v3774_v48 = vld [vmem:[%s5381_s1 + $0x774] ss:$8 sps:$4 sm:$0xff]   ;;  %v3766_v49 = vld [vmem:[%s5382_s0 + $0x28] ss:$72 sps:$4 sm:$0xff]  }
  0x92   :  { %2473 = vmatmul.mubr.bf16.gmra.mxu0 %v3677_v50  ;;  %v3769_v50 = vld [vmem:[%s5381_s1 + $0x670] ss:$8 sps:$4 sm:$0xff]  }
  0x93   :  { %2554 = vmatmul.mubr.bf16.gmra.mxu1 %v3686_v53  ;;  %2591 = vmatpush1.bf16.msra.mxu0 %v3678_v51  ;;  %v3772_v51 = vld [vmem:[%s5381_s1 + $0x770] ss:$8 sps:$4 sm:$0xff]   ;;  %v3780_v53 = vld [vmem:[%s5381_s1 + $0x764] ss:$8 sps:$4 sm:$0xff]  }
  0x94   :  { %2672 = vmatpush1.bf16.msra.mxu1 %v3681_v52  ;;  %2592 = vmatprep.subr.bf16.mxu0 %v3689_v54  ;;  %v3777_v52 = vld [vmem:[%s5381_s1 + $0x664] ss:$8 sps:$4 sm:$0xff]   ;;  %v3781_v54 = vld [vmem:[%s5382_s0 + $0xb4] ss:$72 sps:$4 sm:$0xff]  }
  0x95   :  { %2673 = vmatprep.subr.bf16.mxu1 %v3692_v55  ;;  %2482 = vmatprep.mubr.bf16.mxu0 %v3693_v56  ;;  %v3790_v55 = vld [vmem:[%s5382_s0 + $0xbc] ss:$72 sps:$4 sm:$0xff]   ;;  %v3775_v56 = vld [vmem:[%s5381_s1 + $0x660] ss:$8 sps:$4 sm:$0xff]  }
  0x96   :  { %2563 = vmatprep.mubr.bf16.mxu1 %v3702_v57  ;;  %v3778_v57 = vld [vmem:[%s5381_s1 + $0x760] ss:$8 sps:$4 sm:$0xff]  }
  0x97   :  { %2593 = vmatpush1.bf16.msra.mxu0 %v3687_v58  ;;  %v3783_v58 = vld [vmem:[%s5382_s0 + $0xb0] ss:$72 sps:$4 sm:$0xff]  }
  0x98   :  { %2674 = vmatpush1.bf16.msra.mxu1 %v3690_v59  ;;  %2594 = vmatprep.subr.bf16.mxu0 %v3698_v60  ;;  %v3786_v59 = vld [vmem:[%s5381_s1 + $0x654] ss:$8 sps:$4 sm:$0xff]  }
  0x99   :  { %2675 = vmatprep.subr.bf16.mxu1 %v3701_v62  ;;  %v3789_v60 = vld [vmem:[%s5381_s1 + $0x754] ss:$8 sps:$4 sm:$0xff]   ;;  %v3792_v62 = vld [vmem:[%s5382_s0 + $0xb8] ss:$72 sps:$4 sm:$0xff]  }
  0x9a   :  { %2483 = vmatmul.mubr.bf16.gmra.mxu0 %v3695_v61  ;;  %v3784_v61 = vld [vmem:[%s5381_s1 + $0x650] ss:$8 sps:$4 sm:$0xff]  }
  0x9b   :  { %2564 = vmatmul.mubr.bf16.gmra.mxu1 %v3704_v1  ;;  %2595 = vmatpush1.bf16.msra.mxu0 %v3696_v63  ;;  %v3787_v63 = vld [vmem:[%s5381_s1 + $0x750] ss:$8 sps:$4 sm:$0xff]   ;;  %v3798_v1 = vld [vmem:[%s5381_s1 + $0x744] ss:$8 sps:$4 sm:$0xff]  }
  0x9c   :  { %2676 = vmatpush1.bf16.msra.mxu1 %v3699_v0  ;;  %2596 = vmatprep.subr.bf16.mxu0 %v3707_v4  ;;  %v3795_v0 = vld [vmem:[%s5381_s1 + $0x644] ss:$8 sps:$4 sm:$0xff]   ;;  %v3793_v4 = vld [vmem:[%s5381_s1 + $0x640] ss:$8 sps:$4 sm:$0xff]  }
  0x9d   :  { %2677 = vmatprep.subr.bf16.mxu1 %v3710_v5  ;;  %2492 = vmatprep.mubr.bf16.mxu0 %v3086_v6  ;;  %v3796_v5 = vld [vmem:[%s5381_s1 + $0x740] ss:$8 sps:$4 sm:$0xff]  }
  0x9e   :  { %2573 = vmatprep.mubr.bf16.mxu1 %v3088_v7  ;;  %v3801_v6 = vld [vmem:[%s5382_s0 + $0x140] ss:$72 sps:$4 sm:$0xff]   ;;  %v3804_v7 = vld [vmem:[%s5381_s1 + $0x634] ss:$8 sps:$4 sm:$0xff]  }
  0x9f   :  { %2597 = vmatpush1.bf16.msra.mxu0 %v3705_v8  ;;  %v3807_v8 = vld [vmem:[%s5381_s1 + $0x734] ss:$8 sps:$4 sm:$0xff]  }
  0xa0   :  { %2678 = vmatpush1.bf16.msra.mxu1 %v3708_v9  ;;  %2598 = vmatprep.subr.bf16.mxu0 %v3715_v10  ;;  %v3802_v9 = vld [vmem:[%s5381_s1 + $0x630] ss:$8 sps:$4 sm:$0xff]  }
  0xa1   :  { %2679 = vmatprep.subr.bf16.mxu1 %v3718_v11  ;;  %v3805_v10 = vld [vmem:[%s5381_s1 + $0x730] ss:$8 sps:$4 sm:$0xff]  }
  0xa2   :  { %2493 = vmatmul.mubr.bf16.gmra.mxu0 %v3085_v12  ;;  %v3810_v11 = vld [vmem:[%s5382_s0 + $0x148] ss:$72 sps:$4 sm:$0xff]   ;;  %v3813_v12 = vld [vmem:[%s5381_s1 + $0x624] ss:$8 sps:$4 sm:$0xff]  }
  0xa3   :  { %2574 = vmatmul.mubr.bf16.gmra.mxu1 %v3087_v15  ;;  %2599 = vmatpush2.bf16.msra.mxu0 %v3713_v13  ;;  %v3816_v13 = vld [vmem:[%s5381_s1 + $0x724] ss:$8 sps:$4 sm:$0xff]  }
  0xa4   :  { %2680 = vmatpush2.bf16.msra.mxu1 %v3716_v14  ;;  %2600 = vmatprep.subr.bf16.mxu0 %v3723_v16  ;;  %v3817_v14 = vld [vmem:[%s5382_s0 + $0x1d4] ss:$72 sps:$4 sm:$0xff]   ;;  %v3811_v16 = vld [vmem:[%s5381_s1 + $0x620] ss:$8 sps:$4 sm:$0xff]  }
  0xa5   :  { %2681 = vmatprep.subr.bf16.mxu1 %v3726_v17  ;;  %2614 = vmatprep.mubr.bf16.mxu0 %v3765_v18  ;;  %v3826_v15 = vld [vmem:[%s5382_s0 + $0x1dc] ss:$72 sps:$4 sm:$0xff]   ;;  %v3814_v17 = vld [vmem:[%s5381_s1 + $0x720] ss:$8 sps:$4 sm:$0xff]  }
  0xa6   :  { %2695 = vmatprep.mubr.bf16.mxu1 %v3768_v19  ;;  %v3822_v18 = vld [vmem:[%s5381_s1 + $0x614] ss:$8 sps:$4 sm:$0xff]   ;;  %v3819_v19 = vld [vmem:[%s5382_s0 + $0x1d0] ss:$72 sps:$4 sm:$0xff]  }
  0xa7   :  { %2601 = vmatpush2.bf16.msra.mxu0 %v3721_v20  ;;  %v3825_v20 = vld [vmem:[%s5381_s1 + $0x714] ss:$8 sps:$4 sm:$0xff]  }
  0xa8   :  { %2682 = vmatpush2.bf16.msra.mxu1 %v3724_v21  ;;  %2602 = vmatprep.subr.bf16.mxu0 %v3729_v22  ;;  %v3820_v21 = vld [vmem:[%s5381_s1 + $0x610] ss:$8 sps:$4 sm:$0xff]  }
  0xa9   :  { %2683 = vmatprep.subr.bf16.mxu1 %v3732_v23  ;;  %v3828_v22 = vld [vmem:[%s5382_s0 + $0x1d8] ss:$72 sps:$4 sm:$0xff]  }
  0xaa   :  { %v90_v23 = vld [vmem:[%s5382_s0 + $0x260] sm:$0xff] }
  0xab   :  { %2603 = vmatpush2.bf16.msra.mxu0 %v3727_v24  ;;  %v91_v24 = vld [vmem:[%s5382_s0 + $0x268] sm:$0xff] }
  0xac   :  { %2684 = vmatpush2.bf16.msra.mxu1 %v3730_v25  ;;  %2604 = vmatprep.subr.bf16.mxu0 %v3735_v26  ;;  %v3823_v25 = vld [vmem:[%s5381_s1 + $0x710] ss:$8 sps:$4 sm:$0xff]   ;;  %v3831_v26 = vld [vmem:[%s5381_s1 + $0x604] ss:$8 sps:$4 sm:$0xff]  }
  0xad   :  { %2685 = vmatprep.subr.bf16.mxu1 %v3738_v27  ;;  %v3834_v27 = vld [vmem:[%s5381_s1 + $0x704] ss:$8 sps:$4 sm:$0xff]  }
  0xaf   :  { %2605 = vmatpush2.bf16.msra.mxu0 %v3733_v28  ;;  %v3090_v28 = vcombine.high %v90_v23, %v90_v23 }
  0xb0   :  { %2686 = vmatpush2.bf16.msra.mxu1 %v3736_v29  ;;  %2606 = vmatprep.subr.bf16.mxu0 %v3741_v30  ;;  %v3092_v29 = vcombine.high %v91_v24, %v91_v24  ;;  %v3829_v30 = vld [vmem:[%s5381_s1 + $0x600] ss:$8 sps:$4 sm:$0xff]  }
  0xb1   :  { %2687 = vmatprep.subr.bf16.mxu1 %v3744_v31  ;;  %v3832_v31 = vld [vmem:[%s5381_s1 + $0x700] ss:$8 sps:$4 sm:$0xff]  }
  0xb3   :  { %2607 = vmatpush2.bf16.msra.mxu0 %v3739_v32  ;;  %v3839_v32 = vld [vmem:[%s5381_s1 + $0x6f4] ss:$8 sps:$4 sm:$0xff]  }
  0xb4   :  { %2688 = vmatpush2.bf16.msra.mxu1 %v3742_v33  ;;  %2608 = vmatprep.subr.bf16.mxu0 %v3747_v34  ;;  %v3842_v33 = vld [vmem:[%s5381_s1 + $0x7f4] ss:$8 sps:$4 sm:$0xff]   ;;  %v3089_v34 = vcombine.low %v90_v23, %v90_v23 }
  0xb5   :  { %2689 = vmatprep.subr.bf16.mxu1 %v3750_v35  ;;  %v3837_v35 = vld [vmem:[%s5381_s1 + $0x6f0] ss:$8 sps:$4 sm:$0xff]  }
  0xb7   :  { %2609 = vmatpush2.bf16.msra.mxu0 %v3745_v36  ;;  %v3091_v36 = vcombine.low %v91_v24, %v91_v24  ;;  %v3904_v24 = vld [vmem:[%s5381_s1 + $0x854] ss:$8 sps:$4 sm:$0xff]  }
  0xb8   :  { %2690 = vmatpush2.bf16.msra.mxu1 %v3748_v37  ;;  %2610 = vmatprep.subr.bf16.mxu0 %v3753_v38  ;;  %v3840_v37 = vld [vmem:[%s5381_s1 + $0x7f0] ss:$8 sps:$4 sm:$0xff]   ;;  %v3847_v38 = vld [vmem:[%s5381_s1 + $0x6e4] ss:$8 sps:$4 sm:$0xff]  }
  0xb9   :  { %2691 = vmatprep.subr.bf16.mxu1 %v3756_v39  ;;  %v3850_v39 = vld [vmem:[%s5381_s1 + $0x7e4] ss:$8 sps:$4 sm:$0xff]  }
  0xbb   :  { %2611 = vmatpush2.bf16.msra.mxu0 %v3751_v40  ;;  %v3889_v40 = vld [vmem:[%s5382_s0 + $0x34] ss:$72 sps:$4 sm:$0xff]  }
  0xbc   :  { %2692 = vmatpush2.bf16.msra.mxu1 %v3754_v41  ;;  %2612 = vmatprep.subr.bf16.mxu0 %v3759_v42  ;;  %v3892_v41 = vld [vmem:[%s5382_s0 + $0x3c] ss:$72 sps:$4 sm:$0xff]   ;;  %v3845_v42 = vld [vmem:[%s5381_s1 + $0x6e0] ss:$8 sps:$4 sm:$0xff]  }
  0xbd   :  { %2693 = vmatprep.subr.bf16.mxu1 %v3762_v43  ;;  %v3848_v43 = vld [vmem:[%s5381_s1 + $0x7e0] ss:$8 sps:$4 sm:$0xff]  }
  0xbf   :  { %2613 = vmatpush2.bf16.msra.mxu0 %v3757_v44  ;;  %v3853_v44 = vld [vmem:[%s5381_s1 + $0x6d4] ss:$8 sps:$4 sm:$0xff]  }
  0xc0   :  { %2694 = vmatpush2.bf16.msra.mxu1 %v3760_v45  ;;  %2744 = vmatprep.subr.bf16.mxu0 %v3771_v47  ;;  %v3856_v45 = vld [vmem:[%s5381_s1 + $0x7d4] ss:$8 sps:$4 sm:$0xff]   ;;  %v3854_v47 = vld [vmem:[%s5381_s1 + $0x7d0] ss:$8 sps:$4 sm:$0xff]  }
  0xc1   :  { %2825 = vmatprep.subr.bf16.mxu1 %v3774_v48  ;;  %v3859_v48 = vld [vmem:[%s5381_s1 + $0x6c4] ss:$8 sps:$4 sm:$0xff]  }
  0xc2   :  { %2615 = vmatmul.mubr.bf16.vlgmr.msra.gmra.mxu0 %v3763_v46  ;;  %v3851_v46 = vld [vmem:[%s5381_s1 + $0x6d0] ss:$8 sps:$4 sm:$0xff]  }
  0xc3   :  { %2696 = vmatmul.mubr.bf16.vlgmr.msra.gmra.mxu1 %v3766_v49  ;;  %2745 = vmatpush1.bf16.msra.mxu0 %v3769_v50  ;;  %v3862_v49 = vld [vmem:[%s5381_s1 + $0x7c4] ss:$8 sps:$4 sm:$0xff]   ;;  %v3857_v50 = vld [vmem:[%s5381_s1 + $0x6c0] ss:$8 sps:$4 sm:$0xff]  }
  0xc4   :  { %2826 = vmatpush1.bf16.msra.mxu1 %v3772_v51  ;;  %2746 = vmatprep.subr.bf16.mxu0 %v3777_v52  ;;  %v3860_v51 = vld [vmem:[%s5381_s1 + $0x7c0] ss:$8 sps:$4 sm:$0xff]   ;;  %v3865_v52 = vld [vmem:[%s5381_s1 + $0x6b4] ss:$8 sps:$4 sm:$0xff]  }
  0xc5   :  { %2827 = vmatprep.subr.bf16.mxu1 %v3780_v53  ;;  %2624 = vmatprep.mubr.bf16.mxu0 %v3781_v54  ;;  %v3868_v53 = vld [vmem:[%s5381_s1 + $0x7b4] ss:$8 sps:$4 sm:$0xff]   ;;  %v3863_v54 = vld [vmem:[%s5381_s1 + $0x6b0] ss:$8 sps:$4 sm:$0xff]  }
  0xc6   :  { %2705 = vmatprep.mubr.bf16.mxu1 %v3790_v55  ;;  %v3866_v55 = vld [vmem:[%s5381_s1 + $0x7b0] ss:$8 sps:$4 sm:$0xff]  }
  0xc7   :  { %2747 = vmatpush1.bf16.msra.mxu0 %v3775_v56  ;;  %v3871_v56 = vld [vmem:[%s5381_s1 + $0x6a4] ss:$8 sps:$4 sm:$0xff]  }
  0xc8   :  { %2828 = vmatpush1.bf16.msra.mxu1 %v3778_v57  ;;  %2748 = vmatprep.subr.bf16.mxu0 %v3786_v59  ;;  %v3874_v57 = vld [vmem:[%s5381_s1 + $0x7a4] ss:$8 sps:$4 sm:$0xff]   ;;  %v3872_v59 = vld [vmem:[%s5381_s1 + $0x7a0] ss:$8 sps:$4 sm:$0xff]  }
  0xc9   :  { %2829 = vmatprep.subr.bf16.mxu1 %v3789_v60  ;;  %v385_v60 = vlaneseq }
  0xca   :  { %2625 = vmatmul.mubr.bf16.gmra.mxu0 %v3783_v58  ;;  %v3869_v58 = vld [vmem:[%s5381_s1 + $0x6a0] ss:$8 sps:$4 sm:$0xff]  }
  0xcb   :  { %2706 = vmatmul.mubr.bf16.gmra.mxu1 %v3792_v62  ;;  %2749 = vmatpush1.bf16.msra.mxu0 %v3784_v61  ;;  %v3877_v61 = vld [vmem:[%s5381_s1 + $0x694] ss:$8 sps:$4 sm:$0xff]  }
  0xcc   :  { %2830 = vmatpush1.bf16.msra.mxu1 %v3787_v63  ;;  %2750 = vmatprep.subr.bf16.mxu0 %v3795_v0  ;;  %v3880_v62 = vld [vmem:[%s5381_s1 + $0x794] ss:$8 sps:$4 sm:$0xff]   ;;  %v3875_v63 = vld [vmem:[%s5381_s1 + $0x690] ss:$8 sps:$4 sm:$0xff]  }
  0xcd   :  { %2831 = vmatprep.subr.bf16.mxu1 %v3798_v1  ;;  %2634 = vmatprep.mubr.bf16.mxu0 %v3799_v2  ;;  %v3878_v0 = vld [vmem:[%s5381_s1 + $0x790] ss:$8 sps:$4 sm:$0xff]   ;;  %v386_v1 = vshrl.u32 %v385_v60, 7  ;;  %v3883_v2 = vld [vmem:[%s5381_s1 + $0x684] ss:$8 sps:$4 sm:$0xff]  }
  0xce   :  { %2715 = vmatprep.mubr.bf16.mxu1 %v3808_v3  ;;  %v3886_v3 = vld [vmem:[%s5381_s1 + $0x784] ss:$8 sps:$4 sm:$0xff]  }
  0xcf   :  { %2751 = vmatpush1.bf16.msra.mxu0 %v3793_v4  ;;  %v3881_v4 = vld [vmem:[%s5381_s1 + $0x680] ss:$8 sps:$4 sm:$0xff]  }
  0xd0   :  { %2832 = vmatpush1.bf16.msra.mxu1 %v3796_v5  ;;  %2752 = vmatprep.subr.bf16.mxu0 %v3804_v7  ;;  %v3884_v5 = vld [vmem:[%s5381_s1 + $0x780] ss:$8 sps:$4 sm:$0xff]  }
  0xd1   :  { %2833 = vmatprep.subr.bf16.mxu1 %v3807_v8  ;;  %v383_v7 = vld [vmem:[%s5383_s2] sm:$0x3]  ;;  %v3895_v8 = vld [vmem:[%s5381_s1 + $0x874] ss:$8 sps:$4 sm:$0xff]  }
  0xd2   :  { %2635 = vmatmul.mubr.bf16.gmra.mxu0 %v3801_v6  ;;  %v387_v6 = vsub.s32 0, %v386_v1 }
  0xd3   :  { %2716 = vmatmul.mubr.bf16.gmra.mxu1 %v3810_v11  ;;  %2753 = vmatpush1.bf16.msra.mxu0 %v3802_v9  ;;  %v391_v9 = vsub.s32 1, %v386_v1  ;;  %v3890_v11 = vld [vmem:[%s5382_s0 + $0x38] ss:$72 sps:$4 sm:$0xff]  }
  0xd4   :  { %2834 = vmatpush1.bf16.msra.mxu1 %v3805_v10  ;;  %2754 = vmatprep.subr.bf16.mxu0 %v3813_v12  ;;  %v3887_v10 = vld [vmem:[%s5382_s0 + $0x30] ss:$72 sps:$4 sm:$0xff]   ;;  %v4945_v12 = vrot.slane %v383_v7, %v387_v6  ;;  %v3928_v6 = vld [vmem:[%s5381_s1 + $0x814] ss:$8 sps:$4 sm:$0xff]  }
  0xd5   :  { %2835 = vmatprep.subr.bf16.mxu1 %v3816_v13  ;;  %2644 = vmatprep.mubr.bf16.mxu0 %v3817_v14  ;;  %v3893_v13 = vld [vmem:[%s5381_s1 + $0x870] ss:$8 sps:$4 sm:$0xff]   ;;  %v3898_v14 = vld [vmem:[%s5381_s1 + $0x864] ss:$8 sps:$4 sm:$0xff]  }
  0xd6   :  { %2725 = vmatprep.mubr.bf16.mxu1 %v3826_v15  ;;  %v4953_v15 = vrot.slane %v383_v7, %v391_v9  ;;  %v3925_v9 = vld [vmem:[%s5382_s0 + $0x1e0] ss:$72 sps:$4 sm:$0xff]  }
  0xd7   :  { %2755 = vmatpush1.bf16.msra.mxu0 %v3811_v16  ;;  %v3899_v16 = vld [vmem:[%s5382_s0 + $0xc4] ss:$72 sps:$4 sm:$0xff]  }
  0xd8   :  { %2836 = vmatpush1.bf16.msra.mxu1 %v3814_v17  ;;  %2756 = vmatprep.subr.bf16.mxu0 %v3822_v18  ;;  %v3905_v17 = vld [vmem:[%s5382_s0 + $0xcc] ss:$72 sps:$4 sm:$0xff]  }
  0xd9   :  { %2837 = vmatprep.subr.bf16.mxu1 %v3825_v20 }
  0xda   :  { %2645 = vmatmul.mubr.bf16.gmra.mxu0 %v3819_v19 }
  0xdb   :  { %2726 = vmatmul.mubr.bf16.gmra.mxu1 %v3828_v22  ;;  %2757 = vmatpush1.bf16.msra.mxu0 %v3820_v21  ;;  %v3896_v21 = vld [vmem:[%s5381_s1 + $0x860] ss:$8 sps:$4 sm:$0xff]  }
  0xdc   :  { %2838 = vmatpush1.bf16.msra.mxu1 %v3823_v25  ;;  %2758 = vmatprep.subr.bf16.mxu0 %v3831_v26 }
  0xdd   :  { %2839 = vmatprep.subr.bf16.mxu1 %v3834_v27  ;;  %2654 = vmatprep.mubr.bf16.mxu0 %v3090_v28 }
  0xde   :  { %2735 = vmatprep.mubr.bf16.mxu1 %v3092_v29  ;;  %v3901_v29 = vld [vmem:[%s5382_s0 + $0xc0] ss:$72 sps:$4 sm:$0xff]  }
  0xdf   :  { %2759 = vmatpush1.bf16.msra.mxu0 %v3829_v30  ;;  %v3907_v30 = vld [vmem:[%s5382_s0 + $0xc8] ss:$72 sps:$4 sm:$0xff]  }
  0xe0   :  { %2840 = vmatpush1.bf16.msra.mxu1 %v3832_v31  ;;  %2760 = vmatprep.subr.bf16.mxu0 %v3839_v32 }
  0xe1   :  { %2841 = vmatprep.subr.bf16.mxu1 %v3842_v33  ;;  %v3902_v33 = vld [vmem:[%s5381_s1 + $0x850] ss:$8 sps:$4 sm:$0xff]  }
  0xe2   :  { %2655 = vmatmul.mubr.bf16.gmra.mxu0 %v3089_v34 }
  0xe3   :  { %2736 = vmatmul.mubr.bf16.gmra.mxu1 %v3091_v36  ;;  %2761 = vmatpush2.bf16.msra.mxu0 %v3837_v35  ;;  %v3910_v36 = vld [vmem:[%s5381_s1 + $0x844] ss:$8 sps:$4 sm:$0xff]  }
  0xe4   :  { %2842 = vmatpush2.bf16.msra.mxu1 %v3840_v37  ;;  %2762 = vmatprep.subr.bf16.mxu0 %v3847_v38 }
  0xe5   :  { %2843 = vmatprep.subr.bf16.mxu1 %v3850_v39  ;;  %2776 = vmatprep.mubr.bf16.mxu0 %v3889_v40  ;;  %v3911_v39 = vld [vmem:[%s5382_s0 + $0x154] ss:$72 sps:$4 sm:$0xff]  }
  0xe6   :  { %2857 = vmatprep.mubr.bf16.mxu1 %v3892_v41  ;;  %v3917_v40 = vld [vmem:[%s5382_s0 + $0x15c] ss:$72 sps:$4 sm:$0xff]  }
  0xe7   :  { %2763 = vmatpush2.bf16.msra.mxu0 %v3845_v42 }
  0xe8   :  { %2844 = vmatpush2.bf16.msra.mxu1 %v3848_v43  ;;  %2764 = vmatprep.subr.bf16.mxu0 %v3853_v44  ;;  %v3908_v44 = vld [vmem:[%s5381_s1 + $0x840] ss:$8 sps:$4 sm:$0xff]  }
  0xe9   :  { %2845 = vmatprep.subr.bf16.mxu1 %v3856_v45 }
  0xeb   :  { %2765 = vmatpush2.bf16.msra.mxu0 %v3851_v46  ;;  %v3916_v46 = vld [vmem:[%s5381_s1 + $0x834] ss:$8 sps:$4 sm:$0xff]  }
  0xec   :  { %2846 = vmatpush2.bf16.msra.mxu1 %v3854_v47  ;;  %2766 = vmatprep.subr.bf16.mxu0 %v3859_v48 }
  0xed   :  { %2847 = vmatprep.subr.bf16.mxu1 %v3862_v49 }
  0xef   :  { %2767 = vmatpush2.bf16.msra.mxu0 %v3857_v50 }
  0xf0   :  { %2848 = vmatpush2.bf16.msra.mxu1 %v3860_v51  ;;  %2768 = vmatprep.subr.bf16.mxu0 %v3865_v52  ;;  %v3913_v51 = vld [vmem:[%s5382_s0 + $0x150] ss:$72 sps:$4 sm:$0xff]  }
  0xf1   :  { %2849 = vmatprep.subr.bf16.mxu1 %v3868_v53  ;;  %v3919_v52 = vld [vmem:[%s5382_s0 + $0x158] ss:$72 sps:$4 sm:$0xff]  }
  0xf3   :  { %2769 = vmatpush2.bf16.msra.mxu0 %v3863_v54 }
  0xf4   :  { %2850 = vmatpush2.bf16.msra.mxu1 %v3866_v55  ;;  %2770 = vmatprep.subr.bf16.mxu0 %v3871_v56  ;;  %v3914_v55 = vld [vmem:[%s5381_s1 + $0x830] ss:$8 sps:$4 sm:$0xff]  }
  0xf5   :  { %2851 = vmatprep.subr.bf16.mxu1 %v3874_v57 }
  0xf7   :  { %2771 = vmatpush2.bf16.msra.mxu0 %v3869_v58  ;;  %v3922_v58 = vld [vmem:[%s5381_s1 + $0x824] ss:$8 sps:$4 sm:$0xff]  }
  0xf8   :  { %2852 = vmatpush2.bf16.msra.mxu1 %v3872_v59  ;;  %2772 = vmatprep.subr.bf16.mxu0 %v3877_v61  ;;  %v3923_v61 = vld [vmem:[%s5382_s0 + $0x1e4] ss:$72 sps:$4 sm:$0xff]  }
  0xf9   :  { %2853 = vmatprep.subr.bf16.mxu1 %v3880_v62  ;;  %v3929_v62 = vld [vmem:[%s5382_s0 + $0x1ec] ss:$72 sps:$4 sm:$0xff]  }
  0xfb   :  { %2773 = vmatpush2.bf16.msra.mxu0 %v3875_v63 }
  0xfc   :  { %2854 = vmatpush2.bf16.msra.mxu1 %v3878_v0  ;;  %2774 = vmatprep.subr.bf16.mxu0 %v3883_v2 }
  0xfd   :  { %2855 = vmatprep.subr.bf16.mxu1 %v3886_v3  ;;  %v3920_v3 = vld [vmem:[%s5381_s1 + $0x820] ss:$8 sps:$4 sm:$0xff]  }
  0xff   :  { %2775 = vmatpush2.bf16.msra.mxu0 %v3881_v4 }
 0x100   :  { %2856 = vmatpush2.bf16.msra.mxu1 %v3884_v5  ;;  %2906 = vmatprep.subr.bf16.mxu0 %v3895_v8 }
 0x101   :  { %3387 = vmatprep.subr.bf16.mxu1 %v3895_v8 }
 0x102   :  { %v2292_v18 = vpop.f32.mrf.mxu0  ;;  %2777 = vmatmul.mubr.bf16.vlgmr.msra.gmra.mxu0 %v3887_v10 }
 0x103   :  { %2858 = vmatmul.mubr.bf16.vlgmr.msra.gmra.mxu1 %v3890_v11  ;;  %v2373_v19 = vpop.f32.mrf.mxu1  ;;  %v2293_v20 = vadd.f32 %v2292_v18, %v4945_v12  ;;  %2907 = vmatpush1.bf16.msra.mxu0 %v3893_v13 }
 0x104   :  { %3403 = vmatpush1.bf16.msra.mxu1 %v3893_v13  ;;  %v2294_v22 = vpop.f32.mrf.mxu0  ;;  %2908 = vmatprep.subr.bf16.mxu0 %v3898_v14  ;;  %v3931_v13 = vld [vmem:[%s5382_s0 + $0x1e8] ss:$72 sps:$4 sm:$0xff]  }
 0x105   :  { %v2375_v23 = vpop.f32.mrf.mxu1  ;;  %3388 = vmatprep.subr.bf16.mxu1 %v3898_v14  ;;  %v2295_v25 = vadd.f32 %v2294_v22, %v4953_v15  ;;  %v4969_v26 = vadd.f32 %v2373_v19, %v2293_v20  ;;  %2786 = vmatprep.mubr.bf16.mxu0 %v3899_v16  ;;  %v92_v14 = vld [vmem:[%s5382_s0 + $0x270] sm:$0xff]  ;;  %v93_v16 = vld [vmem:[%s5382_s0 + $0x278] sm:$0xff]  ;;  %v3934_v22 = vld [vmem:[%s5381_s1 + $0x804] ss:$8 sps:$4 sm:$0xff]  }
 0x106   :  { %2867 = vmatprep.mubr.bf16.mxu1 %v3905_v17  ;;  %v2296_v27 = vpop.f32.mrf.mxu0  ;;  %v3926_v19 = vld [vmem:[%s5381_s1 + $0x810] ss:$8 sps:$4 sm:$0xff]  }
 0x107   :  { %v2377_v28 = vpop.f32.mrf.mxu1  ;;  %v2297_v31 = vadd.f32 %v2296_v27, %v4945_v12  ;;  %v4978_v32 = vadd.f32 %v2375_v23, %v2295_v25  ;;  %2909 = vmatpush1.bf16.msra.mxu0 %v3896_v21  ;;  %v3094_v25 = vcombine.high %v92_v14, %v92_v14  ;;  %v3096_v27 = vcombine.high %v93_v16, %v93_v16 }
 0x108   :  { %3404 = vmatpush1.bf16.msra.mxu1 %v3896_v21  ;;  %v2298_v34 = vpop.f32.mrf.mxu0  ;;  %2910 = vmatprep.subr.bf16.mxu0 %v3904_v24 }
 0x109   :  { %v2379_v35 = vpop.f32.mrf.mxu1  ;;  %3389 = vmatprep.subr.bf16.mxu1 %v3904_v24  ;;  %v2299_v37 = vadd.f32 %v2298_v34, %v4953_v15  ;;  %v4987_v38 = vadd.f32 %v2377_v28, %v2297_v31 }
 0x10a   :  { %2787 = vmatmul.mubr.bf16.gmra.mxu0 %v3901_v29  ;;  %v2302_v41 = vpop.f32.mrf.mxu0 }
 0x10b   :  { %2868 = vmatmul.mubr.bf16.gmra.mxu1 %v3907_v30  ;;  %v2383_v42 = vpop.f32.mrf.mxu1  ;;  %v4995_v43 = vadd.f32 %v2379_v35, %v2299_v37  ;;  %2911 = vmatpush1.bf16.msra.mxu0 %v3902_v33  ;;  %v2303_v45 = vadd.f32 %v2302_v41, %v4945_v12 }
 0x10c   :  { %3405 = vmatpush1.bf16.msra.mxu1 %v3902_v33  ;;  %2912 = vmatprep.subr.bf16.mxu0 %v3910_v36  ;;  %v2304_v47 = vpop.f32.mrf.mxu0  ;;  %v3932_v33 = vld [vmem:[%s5381_s1 + $0x800] ss:$8 sps:$4 sm:$0xff]  }
 0x10d   :  { %3390 = vmatprep.subr.bf16.mxu1 %v3910_v36  ;;  %v2385_v48 = vpop.f32.mrf.mxu1  ;;  %2796 = vmatprep.mubr.bf16.mxu0 %v3911_v39  ;;  %v2305_v49 = vadd.f32 %v2304_v47, %v4953_v15  ;;  %v5005_v50 = vadd.f32 %v2383_v42, %v2303_v45  ;;  %v3939_v36 = vld [vmem:[%s5381_s1 + $0x8f4] ss:$8 sps:$4 sm:$0xff]   ;;  %v3093_v42 = vcombine.low %v92_v14, %v92_v14  ;;  %v3937_v47 = vld [vmem:[%s5381_s1 + $0x8f0] ss:$8 sps:$4 sm:$0xff]   ;;  %v3948_v14 = vld [vmem:[%s5381_s1 + $0x8c0] ss:$8 sps:$4 sm:$0xff]  }
 0x10e   :  { %2877 = vmatprep.mubr.bf16.mxu1 %v3917_v40  ;;  %v2306_v53 = vpop.f32.mrf.mxu0 }
 0x10f   :  { %v2387_v54 = vpop.f32.mrf.mxu1  ;;  %2913 = vmatpush1.bf16.msra.mxu0 %v3908_v44  ;;  %v2307_v56 = vadd.f32 %v2306_v53, %v4945_v12  ;;  %v5017_v57 = vadd.f32 %v2385_v48, %v2305_v49 }
 0x110   :  { %3406 = vmatpush1.bf16.msra.mxu1 %v3908_v44  ;;  %2914 = vmatprep.subr.bf16.mxu0 %v3916_v46  ;;  %v2308_v59 = vpop.f32.mrf.mxu0  ;;  %v3095_v44 = vcombine.low %v93_v16, %v93_v16  ;;  %v3953_v16 = vld [vmem:[%s5381_s1 + $0x8b4] ss:$8 sps:$4 sm:$0xff]  }
 0x111   :  { %3391 = vmatprep.subr.bf16.mxu1 %v3916_v46  ;;  %v2389_v60 = vpop.f32.mrf.mxu1  ;;  %v2309_v63 = vadd.f32 %v2308_v59, %v4953_v15  ;;  %v5029_v0 = vadd.f32 %v2387_v54, %v2307_v56  ;;  %v3965_v56 = vld [vmem:[%s5382_s0 + $0x44] ss:$72 sps:$4 sm:$0xff]  }
 0x112   :  { %2797 = vmatmul.mubr.bf16.gmra.mxu0 %v3913_v51  ;;  %v2312_v1 = vpop.f32.mrf.mxu0  ;;  %v3944_v51 = vld [vmem:[%s5381_s1 + $0x8e4] ss:$8 sps:$4 sm:$0xff]  }
 0x113   :  { %2878 = vmatmul.mubr.bf16.gmra.mxu1 %v3919_v52  ;;  %v2393_v2 = vpop.f32.mrf.mxu1  ;;  %2915 = vmatpush1.bf16.msra.mxu0 %v3914_v55  ;;  %v2313_v4 = vadd.f32 %v2312_v1, %v4945_v12  ;;  %v5035_v5 = vadd.f32 %v2389_v60, %v2309_v63  ;;  %v3947_v1 = vld [vmem:[%s5381_s1 + $0x8d4] ss:$8 sps:$4 sm:$0xff]  }
 0x114   :  { %3407 = vmatpush1.bf16.msra.mxu1 %v3914_v55  ;;  %2916 = vmatprep.subr.bf16.mxu0 %v3922_v58  ;;  %v2314_v7 = vpop.f32.mrf.mxu0 }
 0x115   :  { %3392 = vmatprep.subr.bf16.mxu1 %v3922_v58  ;;  %v2395_v8 = vpop.f32.mrf.mxu1  ;;  %2806 = vmatprep.mubr.bf16.mxu0 %v3923_v61  ;;  %v2315_v10 = vadd.f32 %v2314_v7, %v4953_v15  ;;  %v5044_v11 = vadd.f32 %v2393_v2, %v2313_v4  ;;  %v3968_v58 = vld [vmem:[%s5382_s0 + $0x1f4] ss:$72 sps:$4 sm:$0xff]   ;;  %v3942_v61 = vld [vmem:[%s5381_s1 + $0x8e0] ss:$8 sps:$4 sm:$0xff]  }
 0x116   :  { %2887 = vmatprep.mubr.bf16.mxu1 %v3929_v62  ;;  %v2316_v17 = vpop.f32.mrf.mxu0 }
 0x117   :  { %v2397_v18 = vpop.f32.mrf.mxu1  ;;  %2917 = vmatpush1.bf16.msra.mxu0 %v3920_v3  ;;  %v2317_v20 = vadd.f32 %v2316_v17, %v4945_v12  ;;  %v5059_v21 = vadd.f32 %v2395_v8, %v2315_v10  ;;  %v3951_v17 = vld [vmem:[%s5381_s1 + $0x8b0] ss:$8 sps:$4 sm:$0xff]  }
 0x118   :  { %3408 = vmatpush1.bf16.msra.mxu1 %v3920_v3  ;;  %2918 = vmatprep.subr.bf16.mxu0 %v3928_v6  ;;  %v2318_v23 = vpop.f32.mrf.mxu0 }
 0x119   :  { %3393 = vmatprep.subr.bf16.mxu1 %v3928_v6  ;;  %v2399_v24 = vpop.f32.mrf.mxu1  ;;  %v2319_v28 = vadd.f32 %v2318_v23, %v4953_v15  ;;  %v5065_v29 = vadd.f32 %v2397_v18, %v2317_v20  ;;  %v3956_v18 = vld [vmem:[%s5381_s1 + $0x8a4] ss:$8 sps:$4 sm:$0xff]   ;;  %v3959_v20 = vld [vmem:[%s5381_s1 + $0x894] ss:$8 sps:$4 sm:$0xff]  }
 0x11a   :  { %2807 = vmatmul.mubr.bf16.gmra.mxu0 %v3925_v9  ;;  %v2322_v30 = vpop.f32.mrf.mxu0  ;;  %v3962_v23 = vld [vmem:[%s5381_s1 + $0x884] ss:$8 sps:$4 sm:$0xff]  }
 0x11b   :  { %2888 = vmatmul.mubr.bf16.gmra.mxu1 %v3931_v13  ;;  %v2403_v31 = vpop.f32.mrf.mxu1  ;;  %2919 = vmatpush1.bf16.msra.mxu0 %v3926_v19  ;;  %v2323_v34 = vadd.f32 %v2322_v30, %v4945_v12  ;;  %v5071_v35 = vadd.f32 %v2399_v24, %v2319_v28  ;;  %v3960_v24 = vld [vmem:[%s5381_s1 + $0x880] ss:$8 sps:$4 sm:$0xff]   ;;  %v3966_v28 = vld [vmem:[%s5382_s0 + $0x1f0] ss:$72 sps:$4 sm:$0xff]   ;;  %v3969_v30 = vld [vmem:[%s5382_s0 + $0xd4] ss:$72 sps:$4 sm:$0xff]  }
 0x11c   :  { %3409 = vmatpush1.bf16.msra.mxu1 %v3926_v19  ;;  %2920 = vmatprep.subr.bf16.mxu0 %v3934_v22  ;;  %v2324_v37 = vpop.f32.mrf.mxu0  ;;  %v3954_v19 = vld [vmem:[%s5381_s1 + $0x8a0] ss:$8 sps:$4 sm:$0xff]  }
 0x11d   :  { %3394 = vmatprep.subr.bf16.mxu1 %v3934_v22  ;;  %v2405_v39 = vpop.f32.mrf.mxu1  ;;  %2816 = vmatprep.mubr.bf16.mxu0 %v3094_v25  ;;  %v2325_v40 = vadd.f32 %v2324_v37, %v4953_v15  ;;  %v5077_v41 = vadd.f32 %v2403_v31, %v2323_v34  ;;  %v3957_v22 = vld [vmem:[%s5381_s1 + $0x890] ss:$8 sps:$4 sm:$0xff]   ;;  %v94_v25 = vld [vmem:[%s5382_s0 + $0x280] sm:$0xff] }
 0x11e   :  { %2897 = vmatprep.mubr.bf16.mxu1 %v3096_v27  ;;  %v2326_v45 = vpop.f32.mrf.mxu0  ;;  %v3963_v27 = vld [vmem:[%s5382_s0 + $0x40] ss:$72 sps:$4 sm:$0xff]   ;;  %v3098_v31 = vcombine.high %v94_v25, %v94_v25 }
 0x11f   :  { %v2407_v46 = vpop.f32.mrf.mxu1  ;;  %2921 = vmatpush1.bf16.msra.mxu0 %v3932_v33  ;;  %v2327_v48 = vadd.f32 %v2326_v45, %v4945_v12  ;;  %v5083_v49 = vadd.f32 %v2405_v39, %v2325_v40 }
 0x120   :  { %3410 = vmatpush1.bf16.msra.mxu1 %v3932_v33  ;;  %2922 = vmatprep.subr.bf16.mxu0 %v3939_v36  ;;  %v2328_v52 = vpop.f32.mrf.mxu0 }
 0x121   :  { %3395 = vmatprep.subr.bf16.mxu1 %v3939_v36  ;;  %v2409_v53 = vpop.f32.mrf.mxu1  ;;  %v2329_v54 = vadd.f32 %v2328_v52, %v4953_v15  ;;  %v5089_v55 = vadd.f32 %v2407_v46, %v2327_v48  ;;  %v3972_v46 = vld [vmem:[%s5382_s0 + $0xd0] ss:$72 sps:$4 sm:$0xff]  }
 0x122   :  { %2817 = vmatmul.mubr.bf16.gmra.mxu0 %v3093_v42  ;;  %v2332_v59 = vpop.f32.mrf.mxu0 }
 0x123   :  { %2898 = vmatmul.mubr.bf16.gmra.mxu1 %v3095_v44  ;;  %v2413_v60 = vpop.f32.mrf.mxu1  ;;  %2923 = vmatpush2.bf16.msra.mxu0 %v3937_v47  ;;  %v2333_v62 = vadd.f32 %v2332_v59, %v4945_v12  ;;  %v5101_v63 = vadd.f32 %v2409_v53, %v2329_v54  ;;  %v3945_v12 = vld [vmem:[%s5381_s1 + $0x8d0] ss:$8 sps:$4 sm:$0xff]  }
 0x124   :  { %3411 = vmatpush2.bf16.msra.mxu1 %v3937_v47  ;;  %2924 = vmatprep.subr.bf16.mxu0 %v3944_v51  ;;  %v2334_v2 = vpop.f32.mrf.mxu0  ;;  %v3097_v47 = vcombine.low %v94_v25, %v94_v25 }
 0x125   :  { %3396 = vmatprep.subr.bf16.mxu1 %v3944_v51  ;;  %v2415_v3 = vpop.f32.mrf.mxu1  ;;  %v2335_v4 = vadd.f32 %v2334_v2, %v4953_v15  ;;  %v5107_v6 = vadd.f32 %v2413_v60, %v2333_v62  ;;  %2938 = vmatprep.mubr.bf16.mxu0 %v3965_v56  ;;  %v3950_v15 = vld [vmem:[%s5381_s1 + $0x8c4] ss:$8 sps:$4 sm:$0xff]  }
 0x126   :  { %2968 = vmatprep.mubr.bf16.mxu1 %v3968_v58  ;;  %v2336_v7 = vpop.f32.mrf.mxu0 }
 0x127   :  { %v2417_v8 = vpop.f32.mrf.mxu1  ;;  %2925 = vmatpush2.bf16.msra.mxu0 %v3942_v61  ;;  %v5112_v9 = vadd.f32 %v2415_v3, %v2335_v4 }
 0x128   :  { %3412 = vmatpush2.bf16.msra.mxu1 %v3942_v61  ;;  %2926 = vmatprep.subr.bf16.mxu0 %v3947_v1  ;;  %v2337_v10 = vpop.f32.mrf.mxu0 }
 0x129   :  { %3397 = vmatprep.subr.bf16.mxu1 %v3947_v1  ;;  %v2418_v13 = vpop.f32.mrf.mxu1 }
 0x12b   :  { %2927 = vmatpush2.bf16.msra.mxu0 %v3945_v12 }
 0x12c   :  { %3413 = vmatpush2.bf16.msra.mxu1 %v3945_v12  ;;  %2928 = vmatprep.subr.bf16.mxu0 %v3950_v15 }
 0x12d   :  { %3398 = vmatprep.subr.bf16.mxu1 %v3950_v15 }
 0x12f   :  { %2929 = vmatpush2.bf16.msra.mxu0 %v3948_v14 }
 0x130   :  { %3414 = vmatpush2.bf16.msra.mxu1 %v3948_v14  ;;  %2930 = vmatprep.subr.bf16.mxu0 %v3953_v16 }
 0x131   :  { %3399 = vmatprep.subr.bf16.mxu1 %v3953_v16 }
 0x133   :  { %2931 = vmatpush2.bf16.msra.mxu0 %v3951_v17 }
 0x134   :  { %3415 = vmatpush2.bf16.msra.mxu1 %v3951_v17  ;;  %2932 = vmatprep.subr.bf16.mxu0 %v3956_v18 }
 0x135   :  { %3400 = vmatprep.subr.bf16.mxu1 %v3956_v18 }
 0x137   :  { %2933 = vmatpush2.bf16.msra.mxu0 %v3954_v19 }
 0x138   :  { %3416 = vmatpush2.bf16.msra.mxu1 %v3954_v19  ;;  %2934 = vmatprep.subr.bf16.mxu0 %v3959_v20 }
 0x139   :  { %3401 = vmatprep.subr.bf16.mxu1 %v3959_v20 }
 0x13b   :  { %2935 = vmatpush2.bf16.msra.mxu0 %v3957_v22 }
 0x13c   :  { %3417 = vmatpush2.bf16.msra.mxu1 %v3957_v22  ;;  %2936 = vmatprep.subr.bf16.mxu0 %v3962_v23 }
 0x13d   :  { %3402 = vmatprep.subr.bf16.mxu1 %v3962_v23 }
 0x13f   :  { %2937 = vmatpush2.bf16.msra.mxu0 %v3960_v24 }
 0x140   :  { %3418 = vmatpush2.bf16.msra.mxu1 %v3960_v24 }
 0x142   :  { %v2454_v33 = vpop.f32.mrf.mxu0  ;;  %2939 = vmatmul.mubr.bf16.vlgmr.msra.gmra.mxu0 %v3963_v27 }
 0x143   :  { %2969 = vmatmul.mubr.bf16.vlgmr.msra.gmra.mxu1 %v3966_v28  ;;  %v2535_v34 = vpop.f32.mrf.mxu1  ;;  %v2455_v36 = vadd.f32 %v2454_v33, %v4969_v26  ;;  %2948 = vmatprep.mubr.bf16.mxu0 %v3969_v30  ;;  %v3974_v26 = vld [vmem:[%s5382_s0 + $0x164] ss:$72 sps:$4 sm:$0xff]  }
 0x144   :  { %2978 = vmatprep.mubr.bf16.mxu1 %v3098_v31  ;;  %v2456_v37 = vpop.f32.mrf.mxu0 }
 0x145   :  { %v2537_v39 = vpop.f32.mrf.mxu1  ;;  %v2457_v40 = vadd.f32 %v2456_v37, %v4978_v32  ;;  %v5158_v42 = vadd.f32 %v2535_v34, %v2455_v36 }
 0x146   :  { %v2458_v44 = vpop.f32.mrf.mxu0 }
 0x147   :  { %v2539_v45 = vpop.f32.mrf.mxu1  ;;  %v2459_v48 = vadd.f32 %v2458_v44, %v4987_v38  ;;  %v5164_v51 = vadd.f32 %v2537_v39, %v2457_v40 }
 0x148   :  { %v2460_v52 = vpop.f32.mrf.mxu0 }
 0x149   :  { %v2541_v53 = vpop.f32.mrf.mxu1  ;;  %v2461_v32 = vadd.f32 %v2460_v52, %v4995_v43  ;;  %v5170_v54 = vadd.f32 %v2539_v45, %v2459_v48  ;;  %v3976_v43 = vld [vmem:[%s5382_s0 + $0x160] ss:$72 sps:$4 sm:$0xff]  }
 0x14a   :  { %v2464_v56 = vpop.f32.mrf.mxu0  ;;  %2949 = vmatmul.mubr.bf16.gmra.mxu0 %v3972_v46 }
 0x14b   :  { %2979 = vmatmul.mubr.bf16.gmra.mxu1 %v3097_v47  ;;  %v2545_v58 = vpop.f32.mrf.mxu1  ;;  %v2465_v59 = vadd.f32 %v2464_v56, %v5005_v50  ;;  %v5173_v60 = vadd.f32 %v2541_v53, %v2461_v32  ;;  %2958 = vmatprep.mubr.bf16.mxu0 %v3974_v26 }
 0x14c   :  { %v2466_v38 = vpop.f32.mrf.mxu0 }
 0x14d   :  { %v2547_v61 = vpop.f32.mrf.mxu1  ;;  %v2467_v62 = vadd.f32 %v2466_v38, %v5017_v57  ;;  %v5176_v1 = vadd.f32 %v2545_v58, %v2465_v59 }
 0x14e   :  { %v2468_v2 = vpop.f32.mrf.mxu0 }
 0x14f   :  { %v2549_v3 = vpop.f32.mrf.mxu1  ;;  %v2469_v4 = vadd.f32 %v2468_v2, %v5029_v0  ;;  %v5182_v7 = vadd.f32 %v2547_v61, %v2467_v62 }
 0x150   :  { %v2470_v50 = vpop.f32.mrf.mxu0 }
 0x151   :  { %v2551_v8 = vpop.f32.mrf.mxu1  ;;  %v2471_v12 = vadd.f32 %v2470_v50, %v5035_v5  ;;  %v5185_v15 = vadd.f32 %v2549_v3, %v2469_v4 }
 0x152   :  { %v2474_v10 = vpop.f32.mrf.mxu0  ;;  %2959 = vmatmul.mubr.bf16.gmra.mxu0 %v3976_v43 }
 0x153   :  { %v2555_v57 = vpop.f32.mrf.mxu1  ;;  %v2475_v13 = vadd.f32 %v2474_v10, %v5044_v11  ;;  %v5188_v14 = vadd.f32 %v2551_v8, %v2471_v12 }
 0x154   :  { %v2476_v16 = vpop.f32.mrf.mxu0 }
 0x155   :  { %v2557_v17 = vpop.f32.mrf.mxu1  ;;  %v2477_v18 = vadd.f32 %v2476_v16, %v5059_v21  ;;  %v5191_v0 = vadd.f32 %v2555_v57, %v2475_v13 }
 0x156   :  { %v2478_v19 = vpop.f32.mrf.mxu0 }
 0x157   :  { %v2559_v20 = vpop.f32.mrf.mxu1  ;;  %v2479_v22 = vadd.f32 %v2478_v19, %v5065_v29  ;;  %v5194_v5 = vadd.f32 %v2557_v17, %v2477_v18 }
 0x158   :  { %v2480_v23 = vpop.f32.mrf.mxu0 }
 0x159   :  { %v2561_v24 = vpop.f32.mrf.mxu1  ;;  %v2481_v25 = vadd.f32 %v2480_v23, %v5071_v35  ;;  %v5197_v27 = vadd.f32 %v2559_v20, %v2479_v22 }
 0x15a   :  { %v2484_v11 = vpop.f32.mrf.mxu0 }
 0x15b   :  { %v2565_v28 = vpop.f32.mrf.mxu1  ;;  %v2485_v30 = vadd.f32 %v2484_v11, %v5077_v41  ;;  %v5200_v31 = vadd.f32 %v2561_v24, %v2481_v25 }
 0x15c   :  { %v2486_v21 = vpop.f32.mrf.mxu0 }
 0x15d   :  { %v2567_v33 = vpop.f32.mrf.mxu1  ;;  %v2487_v34 = vadd.f32 %v2486_v21, %v5083_v49  ;;  %v5203_v36 = vadd.f32 %v2565_v28, %v2485_v30 }
 0x15e   :  { %v2488_v29 = vpop.f32.mrf.mxu0 }
 0x15f   :  { %v2569_v37 = vpop.f32.mrf.mxu1  ;;  %v2489_v39 = vadd.f32 %v2488_v29, %v5089_v55  ;;  %v5206_v40 = vadd.f32 %v2567_v33, %v2487_v34 }
 0x160   :  { %v2490_v35 = vpop.f32.mrf.mxu0 }
 0x161   :  { %v2571_v44 = vpop.f32.mrf.mxu1  ;;  %v2491_v45 = vadd.f32 %v2490_v35, %v5101_v63  ;;  %v5209_v46 = vadd.f32 %v2569_v37, %v2489_v39 }
 0x162   :  { %v2494_v41 = vpop.f32.mrf.mxu0 }
 0x163   :  { %v2575_v47 = vpop.f32.mrf.mxu1  ;;  %v2495_v48 = vadd.f32 %v2494_v41, %v5107_v6  ;;  %v5212_v26 = vadd.f32 %v2571_v44, %v2491_v45 }
 0x164   :  { %v2496_v49 = vpop.f32.mrf.mxu0 }
 0x165   :  { %v2577_v52 = vpop.f32.mrf.mxu1  ;;  %v2497_v53 = vadd.f32 %v2496_v49, %v5112_v9  ;;  %v5215_v32 = vadd.f32 %v2575_v47, %v2495_v48 }
 0x166   :  { %v2498_v55 = vpop.f32.mrf.mxu0 }
 0x167   :  { %v2579_v56 = vpop.f32.mrf.mxu1  ;;  %v5217_v58 = vadd.f32 %v2577_v52, %v2497_v53 }
 0x168   :  { %v2499_v59 = vpop.f32.mrf.mxu0 }
 0x169   :  { %v2580_v63 = vpop.f32.mrf.mxu1 }
 0x182   :  { %v2616_v38 = vpop.f32.mrf.mxu0 }
 0x183   :  { %v2697_v61 = vpop.f32.mrf.mxu1  ;;  %v2617_v62 = vadd.f32 %v2616_v38, %v5158_v42 }
 0x184   :  { %v2618_v2 = vpop.f32.mrf.mxu0 }
 0x185   :  { %v2699_v6 = vpop.f32.mrf.mxu1  ;;  %v2619_v3 = vadd.f32 %v2618_v2, %v5164_v51  ;;  %v5221_v43 = vadd.f32 %v2697_v61, %v2617_v62 }
 0x186   :  { %v2620_v4 = vpop.f32.mrf.mxu0 }
 0x187   :  { %v2701_v9 = vpop.f32.mrf.mxu1  ;;  %v2621_v50 = vadd.f32 %v2620_v4, %v5170_v54  ;;  %v5224_v8 = vadd.f32 %v2699_v6, %v2619_v3 }
 0x188   :  { %v2622_v12 = vpop.f32.mrf.mxu0 }
 0x189   :  { %v2703_v10 = vpop.f32.mrf.mxu1  ;;  %v2623_v57 = vadd.f32 %v2622_v12, %v5173_v60  ;;  %v5227_v13 = vadd.f32 %v2701_v9, %v2621_v50 }
 0x18a   :  { %v2626_v16 = vpop.f32.mrf.mxu0 }
 0x18b   :  { %v2707_v42 = vpop.f32.mrf.mxu1  ;;  %v2627_v17 = vadd.f32 %v2626_v16, %v5176_v1  ;;  %v5230_v18 = vadd.f32 %v2703_v10, %v2623_v57 }
 0x18c   :  { %v2628_v51 = vpop.f32.mrf.mxu0 }
 0x18d   :  { %v2709_v19 = vpop.f32.mrf.mxu1  ;;  %v2629_v20 = vadd.f32 %v2628_v51, %v5182_v7  ;;  %v5233_v22 = vadd.f32 %v2707_v42, %v2627_v17 }
 0x18e   :  { %v2630_v54 = vpop.f32.mrf.mxu0 }
 0x18f   :  { %v2711_v23 = vpop.f32.mrf.mxu1  ;;  %v2631_v24 = vadd.f32 %v2630_v54, %v5185_v15  ;;  %v5236_v25 = vadd.f32 %v2709_v19, %v2629_v20 }
 0x190   :  { %v2632_v60 = vpop.f32.mrf.mxu0 }
 0x191   :  { %v2713_v11 = vpop.f32.mrf.mxu1  ;;  %v2633_v28 = vadd.f32 %v2632_v60, %v5188_v14  ;;  %v5239_v30 = vadd.f32 %v2711_v23, %v2631_v24 }
 0x192   :  { %v2636_v1 = vpop.f32.mrf.mxu0 }
 0x193   :  { %v2717_v21 = vpop.f32.mrf.mxu1  ;;  %v2637_v33 = vadd.f32 %v2636_v1, %v5191_v0  ;;  %v5242_v34 = vadd.f32 %v2713_v11, %v2633_v28 }
 0x194   :  { %v2638_v7 = vpop.f32.mrf.mxu0 }
 0x195   :  { %v2719_v29 = vpop.f32.mrf.mxu1  ;;  %v2639_v37 = vadd.f32 %v2638_v7, %v5194_v5  ;;  %v5245_v39 = vadd.f32 %v2717_v21, %v2637_v33 }
 0x196   :  { %v2640_v15 = vpop.f32.mrf.mxu0 }
 0x197   :  { %v2721_v35 = vpop.f32.mrf.mxu1  ;;  %v2641_v44 = vadd.f32 %v2640_v15, %v5197_v27  ;;  %v5248_v45 = vadd.f32 %v2719_v29, %v2639_v37 }
 0x198   :  { %v2642_v14 = vpop.f32.mrf.mxu0 }
 0x199   :  { %v2723_v41 = vpop.f32.mrf.mxu1  ;;  %v2643_v47 = vadd.f32 %v2642_v14, %v5200_v31  ;;  %v5251_v48 = vadd.f32 %v2721_v35, %v2641_v44 }
 0x19a   :  { %v2646_v0 = vpop.f32.mrf.mxu0 }
 0x19b   :  { %v2727_v49 = vpop.f32.mrf.mxu1  ;;  %v2647_v52 = vadd.f32 %v2646_v0, %v5203_v36  ;;  %v5254_v53 = vadd.f32 %v2723_v41, %v2643_v47 }
 0x19c   :  { %v2648_v5 = vpop.f32.mrf.mxu0 }
 0x19d   :  { %5385 = vst [vmem:[#allocation2_spill] sm:$0xff] %v5254_v53  ;;  %v2729_v55 = vpop.f32.mrf.mxu1  ;;  %v2649_v56 = vadd.f32 %v2648_v5, %v5206_v40  ;;  %v5257_v59 = vadd.f32 %v2727_v49, %v2647_v52 }
 0x19e   :  { %v2650_v27 = vpop.f32.mrf.mxu0 }
 0x19f   :  { %v2731_v63 = vpop.f32.mrf.mxu1  ;;  %v2651_v38 = vadd.f32 %v2650_v27, %v5209_v46  ;;  %v2730_v61 = vadd.f32 %v2729_v55, %v2649_v56 }
 0x1a0   :  { %v2652_v31 = vpop.f32.mrf.mxu0 }
 0x1a1   :  { %v2733_v62 = vpop.f32.mrf.mxu1  ;;  %v2653_v2 = vadd.f32 %v2652_v31, %v5212_v26  ;;  %v2732_v6 = vadd.f32 %v2731_v63, %v2651_v38 }
 0x1a2   :  { %v2656_v3 = vpop.f32.mrf.mxu0 }
 0x1a3   :  { %v2737_v36 = vpop.f32.mrf.mxu1  ;;  %v2657_v4 = vadd.f32 %v2656_v3, %v5215_v32  ;;  %v5262_v9 = vadd.f32 %v2733_v62, %v2653_v2 }
 0x1a4   :  { %v2658_v50 = vpop.f32.mrf.mxu0 }
 0x1a5   :  { %v2739_v40 = vpop.f32.mrf.mxu1  ;;  %v2659_v12 = vadd.f32 %v2658_v50, %v5217_v58  ;;  %v5265_v10 = vadd.f32 %v2737_v36, %v2657_v4 }
 0x1a6   :  { %v2660_v57 = vpop.f32.mrf.mxu0 }
 0x1a7   :  { %v2741_v46 = vpop.f32.mrf.mxu1  ;;  %v5267_v16 = vadd.f32 %v2739_v40, %v2659_v12 }
 0x1a8   :  { %v2661_v42 = vpop.f32.mrf.mxu0 }
 0x1a9   :  { %v2742_v17 = vpop.f32.mrf.mxu1 }
 0x1c2   :  { %v2778_v26 = vpop.f32.mrf.mxu0 }
 0x1c3   :  { %v2859_v51 = vpop.f32.mrf.mxu1  ;;  %v2779_v40 = vadd.f32 %v2778_v26, %v5221_v43 }
 0x1c4   :  { %v2780_v19 = vpop.f32.mrf.mxu0 }
 0x1c5   :  { %v2861_v20 = vpop.f32.mrf.mxu1  ;;  %v2781_v57 = vadd.f32 %v2780_v19, %v5224_v8  ;;  %v2860_v17 = vadd.f32 %v2859_v51, %v2779_v40 }
 0x1c6   :  { %v2782_v54 = vpop.f32.mrf.mxu0 }
 0x1c7   :  { %v2863_v32 = vpop.f32.mrf.mxu1  ;;  %v2783_v42 = vadd.f32 %v2782_v54, %v5227_v13 }
 0x1c8   :  { %v2784_v23 = vpop.f32.mrf.mxu0 }
 0x1c9   :  { %v2865_v24 = vpop.f32.mrf.mxu1  ;;  %v2785_v53 = vadd.f32 %v2784_v23, %v5230_v18  ;;  %v2864_v26 = vadd.f32 %v2863_v32, %v2783_v42 }
 0x1ca   :  { %v2788_v60 = vpop.f32.mrf.mxu0 }
 0x1cb   :  { %v5269_v11 = vpop.f32.mrf.mxu1 }
 0x1cc   :  { %v2790_v58 = vpop.f32.mrf.mxu0 }
 0x1cd   :  { %v5271_v28 = vpop.f32.mrf.mxu1  ;;  %v2791_v51 = vadd.f32 %v2790_v58, %v5236_v25 }
 0x1ce   :  { %v5273_v1 = vpop.f32.mrf.mxu0 }
 0x1cf   :  { %v5275_v21 = vpop.f32.mrf.mxu1  ;;  %v2793_v25 = vadd.f32 %v5273_v1, %v5239_v30 }
 0x1d0   :  { %v5277_v33 = vpop.f32.mrf.mxu0 }
 0x1d1   :  { %v5279_v7 = vpop.f32.mrf.mxu1 }
 0x1d2   :  { %v5281_v29 = vpop.f32.mrf.mxu0 }
 0x1d3   :  { %v5283_v37 = vpop.f32.mrf.mxu1 }
 0x1d4   :  { %v5285_v15 = vpop.f32.mrf.mxu0 }
 0x1d5   :  { %v5287_v35 = vpop.f32.mrf.mxu1 }
 0x1d6   :  { %5386 = vst [vmem:[#allocation3_spill] sm:$0xff] %v5287_v35  ;;  %v5289_v44 = vpop.f32.mrf.mxu0 }
 0x1d7   :  { %v5291_v14 = vpop.f32.mrf.mxu1 }
 0x1d8   :  { %5387 = vst [vmem:[#allocation4_spill] sm:$0xff] %v5291_v14  ;;  %v5293_v41 = vpop.f32.mrf.mxu0 }
 0x1d9   :  { %5388 = vst [vmem:[#allocation5_spill] sm:$0xff] %v5293_v41  ;;  %v5295_v47 = vpop.f32.mrf.mxu1  ;;  %v2862_v41 = vadd.f32 %v2861_v20, %v2781_v57 }
 0x1da   :  { %5389 = vst [vmem:[#allocation6_spill] sm:$0xff] %v5295_v47  ;;  %v2808_v0 = vpop.f32.mrf.mxu0 }
 0x1db   :  { %v2889_v49 = vpop.f32.mrf.mxu1  ;;  %v2809_v12 = vadd.f32 %v2808_v0, %v5257_v59  ;;  %v2789_v59 = vadd.f32 %v2788_v60, %v5233_v22 }
 0x1dc   :  { %v2810_v52 = vpop.f32.mrf.mxu0 }
 0x1dd   :  { %v2891_v5 = vpop.f32.mrf.mxu1  ;;  %v2811_v46 = vadd.f32 %v2810_v52, %v2730_v61  ;;  %v2890_v47 = vadd.f32 %v2889_v49, %v2809_v12  ;;  %v2870_v60 = vadd.f32 %v5269_v11, %v2789_v59 }
 0x1de   :  { %v2812_v55 = vpop.f32.mrf.mxu0 }
 0x1df   :  { %v2893_v56 = vpop.f32.mrf.mxu1  ;;  %v2813_v14 = vadd.f32 %v2812_v55, %v2732_v6 }
 0x1e0   :  { %v2814_v27 = vpop.f32.mrf.mxu0  ;;  %v5392_v40 = vld [vmem:[#allocation5_spill] sm:$0xff] }
 0x1e1   :  { %v2895_v63 = vpop.f32.mrf.mxu1  ;;  %v2894_v19 = vadd.f32 %v2893_v56, %v2813_v14  ;;  %v2872_v14 = vadd.f32 %v5271_v28, %v2791_v51  ;;  %v2874_v28 = vadd.f32 %v5275_v21, %v2793_v25  ;;  %v2801_v21 = vadd.f32 %v5285_v15, %v5248_v45  ;;  %v5390_v15 = vld [vmem:[#allocation3_spill] sm:$0xff] }
 0x1e2   :  { %v2818_v38 = vpop.f32.mrf.mxu0 }
 0x1e3   :  { %v2899_v31 = vpop.f32.mrf.mxu1  ;;  %v2819_v13 = vadd.f32 %v2818_v38, %v5265_v10 }
 0x1e4   :  { %v2820_v62 = vpop.f32.mrf.mxu0 }
 0x1e5   :  { %v2901_v2 = vpop.f32.mrf.mxu1  ;;  %v2821_v32 = vadd.f32 %v2820_v62, %v5267_v16  ;;  %v2900_v58 = vadd.f32 %v2899_v31, %v2819_v13  ;;  %v2803_v31 = vadd.f32 %v5289_v44, %v5251_v48  ;;  %v2882_v62 = vadd.f32 %v5390_v15, %v2801_v21 }
 0x1e6   :  { %v2822_v3 = vpop.f32.mrf.mxu0 }
 0x1e7   :  { %v2903_v36 = vpop.f32.mrf.mxu1  ;;  %v2902_v0 = vadd.f32 %v2901_v2, %v2821_v32  ;;  %v5391_v2 = vld [vmem:[#allocation2_spill] sm:$0xff] }
 0x1e8   :  { %v2823_v4 = vpop.f32.mrf.mxu0  ;;  %v2892_v36 = vadd.f32 %v2891_v5, %v2811_v46  ;;  %v2799_v5 = vadd.f32 %v5281_v29, %v5245_v39  ;;  %v2805_v12 = vadd.f32 %v5392_v40, %v5391_v2  ;;  %v5393_v46 = vld [vmem:[#allocation4_spill] sm:$0xff] }
 0x1e9   :  { %v2904_v50 = vpop.f32.mrf.mxu1  ;;  %v2815_v4 = vadd.f32 %v2814_v27, %v5262_v9  ;;  %v2866_v9 = vadd.f32 %v2865_v24, %v2785_v53  ;;  %v2884_v42 = vadd.f32 %v5393_v46, %v2803_v31 }
 0x1ea   :  { %v2880_v38 = vadd.f32 %v5283_v37, %v2799_v5 }
 0x1eb   :  { %v2896_v54 = vadd.f32 %v2895_v63, %v2815_v4 }
 0x202   :  { %v2940_v35 = vpop.f32.mrf.mxu0 }
 0x203   :  { %v2970_v3 = vpop.f32.mrf.mxu1  ;;  %v2941_v50 = vadd.f32 %v2940_v35, %v2860_v17  ;;  %v5394_v17 = vld [vmem:[#allocation6_spill] sm:$0xff] }
 0x204   :  { %v2971_v43 = vadd.f32 %v2970_v3, %v2890_v47  ;;  %v2942_v8 = vpop.f32.mrf.mxu0  ;;  %v2795_v47 = vadd.f32 %v5277_v33, %v5242_v34  ;;  %v2886_v3 = vadd.f32 %v5394_v17, %v2805_v12 }
 0x205   :  { %v2972_v61 = vpop.f32.mrf.mxu1  ;;  %2987 = vst [vmem:[%s5384_s3] sm:$0xff] %v2941_v50  ;;  %v2943_v18 = vadd.f32 %v2942_v8, %v2862_v41 }
 0x206   :  { %2999 = vst [vmem:[%s5384_s3 + $0x60] sm:$0xff] %v2971_v43  ;;  %v2973_v6 = vadd.f32 %v2972_v61, %v2892_v36  ;;  %v2944_v20 = vpop.f32.mrf.mxu0  ;;  %v2876_v27 = vadd.f32 %v5279_v7, %v2795_v47 }
 0x207   :  { %v2974_v22 = vpop.f32.mrf.mxu1  ;;  %2988 = vst [vmem:[%s5384_s3 + $0x8] sm:$0xff] %v2943_v18  ;;  %v2945_v10 = vadd.f32 %v2944_v20, %v2864_v26 }
 0x208   :  { %3000 = vst [vmem:[%s5384_s3 + $0x68] sm:$0xff] %v2973_v6  ;;  %v2975_v23 = vadd.f32 %v2974_v22, %v2894_v19  ;;  %v2946_v53 = vpop.f32.mrf.mxu0 }
 0x209   :  { %v2976_v24 = vpop.f32.mrf.mxu1  ;;  %2989 = vst [vmem:[%s5384_s3 + $0x10] sm:$0xff] %v2945_v10  ;;  %v2947_v16 = vadd.f32 %v2946_v53, %v2866_v9 }
 0x20a   :  { %3001 = vst [vmem:[%s5384_s3 + $0x70] sm:$0xff] %v2975_v23  ;;  %v2977_v35 = vadd.f32 %v2976_v24, %v2896_v54  ;;  %v2950_v41 = vpop.f32.mrf.mxu0 }
 0x20b   :  { %v2980_v11 = vpop.f32.mrf.mxu1  ;;  %2990 = vst [vmem:[%s5384_s3 + $0x18] sm:$0xff] %v2947_v16  ;;  %v2951_v30 = vadd.f32 %v2950_v41, %v2870_v60 }
 0x20c   :  { %3002 = vst [vmem:[%s5384_s3 + $0x78] sm:$0xff] %v2977_v35  ;;  %v2981_v1 = vadd.f32 %v2980_v11, %v2900_v58  ;;  %v2952_v49 = vpop.f32.mrf.mxu0 }
 0x20d   :  { %v2982_v52 = vpop.f32.mrf.mxu1  ;;  %2991 = vst [vmem:[%s5384_s3 + $0x20] sm:$0xff] %v2951_v30  ;;  %v2953_v34 = vadd.f32 %v2952_v49, %v2872_v14 }
 0x20e   :  { %3003 = vst [vmem:[%s5384_s3 + $0x80] sm:$0xff] %v2981_v1  ;;  %v2983_v33 = vadd.f32 %v2982_v52, %v2902_v0  ;;  %v2954_v55 = vpop.f32.mrf.mxu0 }
 0x20f   :  { %v2984_v56 = vpop.f32.mrf.mxu1  ;;  %2992 = vst [vmem:[%s5384_s3 + $0x28] sm:$0xff] %v2953_v34  ;;  %v2955_v39 = vadd.f32 %v2954_v55, %v2874_v28 }
 0x210   :  { %3004 = vst [vmem:[%s5384_s3 + $0x88] sm:$0xff] %v2983_v33  ;;  %v2956_v29 = vpop.f32.mrf.mxu0 }
 0x211   :  { %v2985_v63 = vpop.f32.mrf.mxu1  ;;  %2993 = vst [vmem:[%s5384_s3 + $0x30] sm:$0xff] %v2955_v39  ;;  %v2957_v45 = vadd.f32 %v2956_v29, %v2876_v27 }
 0x212   :  { %v2960_v7 = vpop.f32.mrf.mxu0 }
 0x213   :  { %2994 = vst [vmem:[%s5384_s3 + $0x38] sm:$0xff] %v2957_v45  ;;  %v2961_v57 = vadd.f32 %v2960_v7, %v2880_v38 }
 0x214   :  { %v2962_v37 = vpop.f32.mrf.mxu0 }
 0x215   :  { %2995 = vst [vmem:[%s5384_s3 + $0x40] sm:$0xff] %v2961_v57  ;;  %v2963_v48 = vadd.f32 %v2962_v37, %v2882_v62 }
 0x216   :  { %v2964_v44 = vpop.f32.mrf.mxu0 }
 0x217   :  { %2996 = vst [vmem:[%s5384_s3 + $0x48] sm:$0xff] %v2963_v48  ;;  %v2965_v36 = vadd.f32 %v2964_v44, %v2884_v42 }
 0x218   :  { %v2966_v4 = vpop.f32.mrf.mxu0 }
 0x219   :  { %2997 = vst [vmem:[%s5384_s3 + $0x50] sm:$0xff] %v2965_v36  ;;  %v2967_v50 = vadd.f32 %v2966_v4, %v2886_v3 }
 0x21b   :  { %2998 = vst [vmem:[%s5384_s3 + $0x58] sm:$0xff] %v2967_v50 }

// kernel: _lambda_.9
= control target key start
LH: loop header
LB: loop body
LE: loop exit
PB: predicated region body
PF: predicated region fallthrough
CT: control target
= control target key end

     0   :  { %s5437_s1 = inlined_call_operand.vmem [shape: bf16[2304,256], index: 1, kind: input, shape index: {}]   ;;  %s5438_s0 = inlined_call_operand.vmem [shape: bf16[72,2304], index: 0, kind: input, shape index: {}]   ;;  %s5439_s2 = inlined_call_operand.vmem [shape: f32[1,256], index: 2, kind: input, shape index: {}]   ;;  %s5440_s3 = inlined_call_operand.vmem [shape: bf16[72,256], index: 3, kind: output, shape index: {}]  }
   0x1   :  { %v3502_v0 = vld [vmem:[%s5437_s1 + $0x74] ss:$8 sps:$4 sm:$0xff]   ;;  %v3506_v2 = vld [vmem:[%s5437_s1 + $0x70] ss:$8 sps:$4 sm:$0xff]   ;;  %v3508_v4 = vld [vmem:[%s5437_s1 + $0x64] ss:$8 sps:$4 sm:$0xff]  }
   0x2   :  { %v3504_v1 = vld [vmem:[%s5437_s1 + $0x174] ss:$8 sps:$4 sm:$0xff]   ;;  %2258 = vmatprep.subr.bf16.mxu0 %v3502_v0  ;;  %v3507_v3 = vld [vmem:[%s5437_s1 + $0x170] ss:$8 sps:$4 sm:$0xff]   ;;  %v3510_v5 = vld [vmem:[%s5437_s1 + $0x164] ss:$8 sps:$4 sm:$0xff]  }
   0x3   :  { %2339 = vmatprep.subr.bf16.mxu1 %v3504_v1  ;;  %2259 = vmatpush1.bf16.msra.mxu0 %v3506_v2  ;;  %v3512_v6 = vld [vmem:[%s5437_s1 + $0x60] ss:$8 sps:$4 sm:$0xff]   ;;  %v3514_v8 = vld [vmem:[%s5437_s1 + $0x54] ss:$8 sps:$4 sm:$0xff]   ;;  %v3518_v10 = vld [vmem:[%s5437_s1 + $0x50] ss:$8 sps:$4 sm:$0xff]  }
   0x4   :  { %2340 = vmatpush1.bf16.msra.mxu1 %v3507_v3  ;;  %2260 = vmatprep.subr.bf16.mxu0 %v3508_v4  ;;  %v3513_v7 = vld [vmem:[%s5437_s1 + $0x160] ss:$8 sps:$4 sm:$0xff]   ;;  %v3516_v9 = vld [vmem:[%s5437_s1 + $0x154] ss:$8 sps:$4 sm:$0xff]   ;;  %v3519_v11 = vld [vmem:[%s5437_s1 + $0x150] ss:$8 sps:$4 sm:$0xff]  }
   0x5   :  { %2341 = vmatprep.subr.bf16.mxu1 %v3510_v5  ;;  %v3520_v12 = vld [vmem:[%s5437_s1 + $0x44] ss:$8 sps:$4 sm:$0xff]   ;;  %v3524_v14 = vld [vmem:[%s5437_s1 + $0x40] ss:$8 sps:$4 sm:$0xff]   ;;  %v3526_v16 = vld [vmem:[%s5437_s1 + $0x34] ss:$8 sps:$4 sm:$0xff]  }
   0x6   :  { %v3522_v13 = vld [vmem:[%s5437_s1 + $0x144] ss:$8 sps:$4 sm:$0xff]   ;;  %v3525_v15 = vld [vmem:[%s5437_s1 + $0x140] ss:$8 sps:$4 sm:$0xff]   ;;  %v3528_v17 = vld [vmem:[%s5437_s1 + $0x134] ss:$8 sps:$4 sm:$0xff]  }
   0x7   :  { %2261 = vmatpush1.bf16.msra.mxu0 %v3512_v6  ;;  %v3530_v18 = vld [vmem:[%s5437_s1 + $0x30] ss:$8 sps:$4 sm:$0xff]   ;;  %v3532_v20 = vld [vmem:[%s5437_s1 + $0x24] ss:$8 sps:$4 sm:$0xff]   ;;  %v3536_v22 = vld [vmem:[%s5437_s1 + $0x20] ss:$8 sps:$4 sm:$0xff]  }
   0x8   :  { %2342 = vmatpush1.bf16.msra.mxu1 %v3513_v7  ;;  %2262 = vmatprep.subr.bf16.mxu0 %v3514_v8  ;;  %v3531_v19 = vld [vmem:[%s5437_s1 + $0x130] ss:$8 sps:$4 sm:$0xff]   ;;  %v3534_v21 = vld [vmem:[%s5437_s1 + $0x124] ss:$8 sps:$4 sm:$0xff]   ;;  %v3537_v23 = vld [vmem:[%s5437_s1 + $0x120] ss:$8 sps:$4 sm:$0xff]  }
   0x9   :  { %2343 = vmatprep.subr.bf16.mxu1 %v3516_v9  ;;  %v3538_v24 = vld [vmem:[%s5437_s1 + $0x14] ss:$8 sps:$4 sm:$0xff]   ;;  %v3542_v26 = vld [vmem:[%s5437_s1 + $0x10] ss:$8 sps:$4 sm:$0xff]   ;;  %v3544_v28 = vld [vmem:[%s5437_s1 + $0x4] ss:$8 sps:$4 sm:$0xff]  }
   0xa   :  { %v3540_v25 = vld [vmem:[%s5437_s1 + $0x114] ss:$8 sps:$4 sm:$0xff]   ;;  %v3543_v27 = vld [vmem:[%s5437_s1 + $0x110] ss:$8 sps:$4 sm:$0xff]   ;;  %v3546_v29 = vld [vmem:[%s5437_s1 + $0x104] ss:$8 sps:$4 sm:$0xff]  }
   0xb   :  { %2263 = vmatpush1.bf16.msra.mxu0 %v3518_v10  ;;  %v3548_v30 = vld [vmem:[%s5437_s1] ss:$8 sps:$4 sm:$0xff]   ;;  %v3550_v32 = vld [vmem:[%s5437_s1 + $0xf4] ss:$8 sps:$4 sm:$0xff]   ;;  %v3554_v34 = vld [vmem:[%s5437_s1 + $0xf0] ss:$8 sps:$4 sm:$0xff]  }
   0xc   :  { %2344 = vmatpush1.bf16.msra.mxu1 %v3519_v11  ;;  %2264 = vmatprep.subr.bf16.mxu0 %v3520_v12  ;;  %v3549_v31 = vld [vmem:[%s5437_s1 + $0x100] ss:$8 sps:$4 sm:$0xff]   ;;  %v3552_v33 = vld [vmem:[%s5437_s1 + $0x1f4] ss:$8 sps:$4 sm:$0xff]   ;;  %v3555_v35 = vld [vmem:[%s5437_s1 + $0x1f0] ss:$8 sps:$4 sm:$0xff]  }
   0xd   :  { %2345 = vmatprep.subr.bf16.mxu1 %v3522_v13  ;;  %v3556_v36 = vld [vmem:[%s5437_s1 + $0xe4] ss:$8 sps:$4 sm:$0xff]   ;;  %v3560_v38 = vld [vmem:[%s5437_s1 + $0xe0] ss:$8 sps:$4 sm:$0xff]   ;;  %v3562_v40 = vld [vmem:[%s5437_s1 + $0xd4] ss:$8 sps:$4 sm:$0xff]  }
   0xe   :  { %v3558_v37 = vld [vmem:[%s5437_s1 + $0x1e4] ss:$8 sps:$4 sm:$0xff]   ;;  %v3561_v39 = vld [vmem:[%s5437_s1 + $0x1e0] ss:$8 sps:$4 sm:$0xff]   ;;  %v3564_v41 = vld [vmem:[%s5437_s1 + $0x1d4] ss:$8 sps:$4 sm:$0xff]  }
   0xf   :  { %2265 = vmatpush1.bf16.msra.mxu0 %v3524_v14  ;;  %v3566_v42 = vld [vmem:[%s5437_s1 + $0xd0] ss:$8 sps:$4 sm:$0xff]   ;;  %v3568_v44 = vld [vmem:[%s5437_s1 + $0xc4] ss:$8 sps:$4 sm:$0xff]   ;;  %v3572_v46 = vld [vmem:[%s5437_s1 + $0xc0] ss:$8 sps:$4 sm:$0xff]  }
  0x10   :  { %2346 = vmatpush1.bf16.msra.mxu1 %v3525_v15  ;;  %2266 = vmatprep.subr.bf16.mxu0 %v3526_v16  ;;  %v3567_v43 = vld [vmem:[%s5437_s1 + $0x1d0] ss:$8 sps:$4 sm:$0xff]   ;;  %v3570_v45 = vld [vmem:[%s5437_s1 + $0x1c4] ss:$8 sps:$4 sm:$0xff]   ;;  %v3573_v47 = vld [vmem:[%s5437_s1 + $0x1c0] ss:$8 sps:$4 sm:$0xff]  }
  0x11   :  { %2347 = vmatprep.subr.bf16.mxu1 %v3528_v17  ;;  %v3574_v48 = vld [vmem:[%s5437_s1 + $0xb4] ss:$8 sps:$4 sm:$0xff]   ;;  %v3600_v49 = vld [vmem:[%s5438_s0 + $0x4] ss:$72 sps:$4 sm:$0xff]   ;;  %v3578_v52 = vld [vmem:[%s5437_s1 + $0xb0] ss:$8 sps:$4 sm:$0xff]  }
  0x12   :  { %v3576_v50 = vld [vmem:[%s5437_s1 + $0x1b4] ss:$8 sps:$4 sm:$0xff]   ;;  %2290 = vmatprep.mubr.bf16.mxu0 %v3600_v49  ;;  %v3579_v53 = vld [vmem:[%s5437_s1 + $0x1b0] ss:$8 sps:$4 sm:$0xff]   ;;  %v3580_v54 = vld [vmem:[%s5437_s1 + $0xa4] ss:$8 sps:$4 sm:$0xff]  }
  0x13   :  { %2267 = vmatpush1.bf16.msra.mxu0 %v3530_v18  ;;  %v3603_v51 = vld [vmem:[%s5438_s0 + $0xc] ss:$72 sps:$4 sm:$0xff]   ;;  %v3584_v56 = vld [vmem:[%s5437_s1 + $0xa0] ss:$8 sps:$4 sm:$0xff]   ;;  %v3590_v60 = vld [vmem:[%s5437_s1 + $0x90] ss:$8 sps:$4 sm:$0xff]  }
  0x14   :  { %2348 = vmatpush1.bf16.msra.mxu1 %v3531_v19  ;;  %2268 = vmatprep.subr.bf16.mxu0 %v3532_v20  ;;  %v3582_v55 = vld [vmem:[%s5437_s1 + $0x1a4] ss:$8 sps:$4 sm:$0xff]   ;;  %v3585_v57 = vld [vmem:[%s5437_s1 + $0x1a0] ss:$8 sps:$4 sm:$0xff]   ;;  %v3586_v58 = vld [vmem:[%s5437_s1 + $0x94] ss:$8 sps:$4 sm:$0xff]  }
  0x15   :  { %2349 = vmatprep.subr.bf16.mxu1 %v3534_v21  ;;  %2371 = vmatprep.mubr.bf16.mxu1 %v3603_v51  ;;  %v3588_v59 = vld [vmem:[%s5437_s1 + $0x194] ss:$8 sps:$4 sm:$0xff]   ;;  %v3591_v61 = vld [vmem:[%s5437_s1 + $0x190] ss:$8 sps:$4 sm:$0xff]   ;;  %v3592_v62 = vld [vmem:[%s5437_s1 + $0x84] ss:$8 sps:$4 sm:$0xff]  }
  0x16   :  { %v3594_v63 = vld [vmem:[%s5437_s1 + $0x184] ss:$8 sps:$4 sm:$0xff]   ;;  %v3596_v0 = vld [vmem:[%s5437_s1 + $0x80] ss:$8 sps:$4 sm:$0xff]   ;;  %v3606_v2 = vld [vmem:[%s5437_s1 + $0x274] ss:$8 sps:$4 sm:$0xff]  }
  0x17   :  { %2269 = vmatpush1.bf16.msra.mxu0 %v3536_v22  ;;  %v3597_v1 = vld [vmem:[%s5437_s1 + $0x180] ss:$8 sps:$4 sm:$0xff]   ;;  %v3609_v4 = vld [vmem:[%s5437_s1 + $0x374] ss:$8 sps:$4 sm:$0xff]   ;;  %v3604_v6 = vld [vmem:[%s5437_s1 + $0x270] ss:$8 sps:$4 sm:$0xff]  }
  0x18   :  { %2350 = vmatpush1.bf16.msra.mxu1 %v3537_v23  ;;  %2270 = vmatprep.subr.bf16.mxu0 %v3538_v24  ;;  %v3598_v3 = vld [vmem:[%s5438_s0] ss:$72 sps:$4 sm:$0xff]   ;;  %v3607_v7 = vld [vmem:[%s5437_s1 + $0x370] ss:$8 sps:$4 sm:$0xff]   ;;  %v3612_v8 = vld [vmem:[%s5437_s1 + $0x264] ss:$8 sps:$4 sm:$0xff]  }
  0x19   :  { %2351 = vmatprep.subr.bf16.mxu1 %v3540_v25  ;;  %v3601_v5 = vld [vmem:[%s5438_s0 + $0x8] ss:$72 sps:$4 sm:$0xff]   ;;  %v3615_v9 = vld [vmem:[%s5437_s1 + $0x364] ss:$8 sps:$4 sm:$0xff]   ;;  %v3646_v10 = vld [vmem:[%s5438_s0 + $0x94] ss:$72 sps:$4 sm:$0xff]  }
  0x1a   :  { %v3649_v11 = vld [vmem:[%s5438_s0 + $0x9c] ss:$72 sps:$4 sm:$0xff]   ;;  %v3610_v12 = vld [vmem:[%s5437_s1 + $0x260] ss:$8 sps:$4 sm:$0xff]   ;;  %v3616_v16 = vld [vmem:[%s5437_s1 + $0x250] ss:$8 sps:$4 sm:$0xff]  }
  0x1b   :  { %2271 = vmatpush1.bf16.msra.mxu0 %v3542_v26  ;;  %v3613_v13 = vld [vmem:[%s5437_s1 + $0x360] ss:$8 sps:$4 sm:$0xff]   ;;  %v3618_v14 = vld [vmem:[%s5437_s1 + $0x254] ss:$8 sps:$4 sm:$0xff]   ;;  %v3619_v17 = vld [vmem:[%s5437_s1 + $0x350] ss:$8 sps:$4 sm:$0xff]  }
  0x1c   :  { %2352 = vmatpush1.bf16.msra.mxu1 %v3543_v27  ;;  %2272 = vmatprep.subr.bf16.mxu0 %v3544_v28  ;;  %v3621_v15 = vld [vmem:[%s5437_s1 + $0x354] ss:$8 sps:$4 sm:$0xff]   ;;  %v3624_v18 = vld [vmem:[%s5437_s1 + $0x244] ss:$8 sps:$4 sm:$0xff]   ;;  %v3648_v19 = vld [vmem:[%s5438_s0 + $0x90] ss:$72 sps:$4 sm:$0xff]  }
  0x1d   :  { %2353 = vmatprep.subr.bf16.mxu1 %v3546_v29  ;;  %v3657_v20 = vld [vmem:[%s5438_s0 + $0x98] ss:$72 sps:$4 sm:$0xff]   ;;  %v3627_v21 = vld [vmem:[%s5437_s1 + $0x344] ss:$8 sps:$4 sm:$0xff]   ;;  %v3630_v26 = vld [vmem:[%s5437_s1 + $0x234] ss:$8 sps:$4 sm:$0xff]  }
  0x1e   :  { %v3664_v22 = vld [vmem:[%s5438_s0 + $0x124] ss:$72 sps:$4 sm:$0xff]   ;;  %v3622_v24 = vld [vmem:[%s5437_s1 + $0x240] ss:$8 sps:$4 sm:$0xff]   ;;  %v3633_v27 = vld [vmem:[%s5437_s1 + $0x334] ss:$8 sps:$4 sm:$0xff]  }
  0x1f   :  { %2273 = vmatpush1.bf16.msra.mxu0 %v3548_v30  ;;  %v3667_v23 = vld [vmem:[%s5438_s0 + $0x12c] ss:$72 sps:$4 sm:$0xff]   ;;  %v3625_v25 = vld [vmem:[%s5437_s1 + $0x340] ss:$8 sps:$4 sm:$0xff]   ;;  %v3628_v28 = vld [vmem:[%s5437_s1 + $0x230] ss:$8 sps:$4 sm:$0xff]  }
  0x20   :  { %2354 = vmatpush1.bf16.msra.mxu1 %v3549_v31  ;;  %2274 = vmatprep.subr.bf16.mxu0 %v3550_v32  ;;  %v3631_v29 = vld [vmem:[%s5437_s1 + $0x330] ss:$8 sps:$4 sm:$0xff]   ;;  %v3636_v30 = vld [vmem:[%s5437_s1 + $0x224] ss:$8 sps:$4 sm:$0xff]   ;;  %v3666_v31 = vld [vmem:[%s5438_s0 + $0x120] ss:$72 sps:$4 sm:$0xff]  }
  0x21   :  { %2355 = vmatprep.subr.bf16.mxu1 %v3552_v33  ;;  %v3675_v32 = vld [vmem:[%s5438_s0 + $0x128] ss:$72 sps:$4 sm:$0xff]   ;;  %v3639_v33 = vld [vmem:[%s5437_s1 + $0x324] ss:$8 sps:$4 sm:$0xff]  }
  0x22   :  { %v3651_v49 = vld [vmem:[%s5437_s1 + $0x200] ss:$8 sps:$4 sm:$0xff]  }
  0x23   :  { %2275 = vmatpush2.bf16.msra.mxu0 %v3554_v34  ;;  %v3682_v34 = vld [vmem:[%s5438_s0 + $0x1b4] ss:$72 sps:$4 sm:$0xff]  }
  0x24   :  { %2356 = vmatpush2.bf16.msra.mxu1 %v3555_v35  ;;  %2276 = vmatprep.subr.bf16.mxu0 %v3556_v36  ;;  %v3685_v35 = vld [vmem:[%s5438_s0 + $0x1bc] ss:$72 sps:$4 sm:$0xff]   ;;  %v3634_v36 = vld [vmem:[%s5437_s1 + $0x220] ss:$8 sps:$4 sm:$0xff]  }
  0x25   :  { %2357 = vmatprep.subr.bf16.mxu1 %v3558_v37  ;;  %v3637_v37 = vld [vmem:[%s5437_s1 + $0x320] ss:$8 sps:$4 sm:$0xff]  }
  0x27   :  { %2277 = vmatpush2.bf16.msra.mxu0 %v3560_v38  ;;  %v3642_v38 = vld [vmem:[%s5437_s1 + $0x214] ss:$8 sps:$4 sm:$0xff]  }
  0x28   :  { %2358 = vmatpush2.bf16.msra.mxu1 %v3561_v39  ;;  %2278 = vmatprep.subr.bf16.mxu0 %v3562_v40  ;;  %v3645_v39 = vld [vmem:[%s5437_s1 + $0x314] ss:$8 sps:$4 sm:$0xff]   ;;  %v3640_v40 = vld [vmem:[%s5437_s1 + $0x210] ss:$8 sps:$4 sm:$0xff]  }
  0x29   :  { %2359 = vmatprep.subr.bf16.mxu1 %v3564_v41  ;;  %v3643_v41 = vld [vmem:[%s5437_s1 + $0x310] ss:$8 sps:$4 sm:$0xff]  }
  0x2b   :  { %2279 = vmatpush2.bf16.msra.mxu0 %v3566_v42  ;;  %v3684_v42 = vld [vmem:[%s5438_s0 + $0x1b0] ss:$72 sps:$4 sm:$0xff]  }
  0x2c   :  { %2360 = vmatpush2.bf16.msra.mxu1 %v3567_v43  ;;  %2280 = vmatprep.subr.bf16.mxu0 %v3568_v44  ;;  %v3693_v43 = vld [vmem:[%s5438_s0 + $0x1b8] ss:$72 sps:$4 sm:$0xff]  }
  0x2d   :  { %2361 = vmatprep.subr.bf16.mxu1 %v3570_v45  ;;  %v86_v44 = vld [vmem:[%s5438_s0 + $0x240] sm:$0xff] }
  0x2e   :  { %v3653_v45 = vld [vmem:[%s5437_s1 + $0x204] ss:$8 sps:$4 sm:$0xff]  }
  0x2f   :  { %2281 = vmatpush2.bf16.msra.mxu0 %v3572_v46  ;;  %v3656_v46 = vld [vmem:[%s5437_s1 + $0x304] ss:$8 sps:$4 sm:$0xff]  }
  0x30   :  { %2362 = vmatpush2.bf16.msra.mxu1 %v3573_v47  ;;  %2282 = vmatprep.subr.bf16.mxu0 %v3574_v48  ;;  %v3147_v47 = vcombine.high %v86_v44, %v86_v44  ;;  %v87_v48 = vld [vmem:[%s5438_s0 + $0x248] sm:$0xff] }
  0x31   :  { %2363 = vmatprep.subr.bf16.mxu1 %v3576_v50  ;;  %v3654_v50 = vld [vmem:[%s5437_s1 + $0x300] ss:$8 sps:$4 sm:$0xff]   ;;  %v3149_v51 = vcombine.high %v87_v48, %v87_v48 }
  0x33   :  { %2283 = vmatpush2.bf16.msra.mxu0 %v3578_v52  ;;  %v3660_v52 = vld [vmem:[%s5437_s1 + $0x2f4] ss:$8 sps:$4 sm:$0xff]  }
  0x34   :  { %2364 = vmatpush2.bf16.msra.mxu1 %v3579_v53  ;;  %2284 = vmatprep.subr.bf16.mxu0 %v3580_v54  ;;  %v3663_v53 = vld [vmem:[%s5437_s1 + $0x3f4] ss:$8 sps:$4 sm:$0xff]   ;;  %v3146_v54 = vcombine.low %v86_v44, %v86_v44 }
  0x35   :  { %2365 = vmatprep.subr.bf16.mxu1 %v3582_v55  ;;  %v3148_v55 = vcombine.low %v87_v48, %v87_v48  ;;  %v3758_v44 = vld [vmem:[%s5438_s0 + $0x134] ss:$72 sps:$4 sm:$0xff]  }
  0x36   :  { %v3763_v48 = vld [vmem:[%s5437_s1 + $0x434] ss:$8 sps:$4 sm:$0xff]  }
  0x37   :  { %2285 = vmatpush2.bf16.msra.mxu0 %v3584_v56  ;;  %v3658_v56 = vld [vmem:[%s5437_s1 + $0x2f0] ss:$8 sps:$4 sm:$0xff]  }
  0x38   :  { %2366 = vmatpush2.bf16.msra.mxu1 %v3585_v57  ;;  %2286 = vmatprep.subr.bf16.mxu0 %v3586_v58  ;;  %v3661_v57 = vld [vmem:[%s5437_s1 + $0x3f0] ss:$8 sps:$4 sm:$0xff]   ;;  %v3671_v58 = vld [vmem:[%s5437_s1 + $0x2e4] ss:$8 sps:$4 sm:$0xff]  }
  0x39   :  { %2367 = vmatprep.subr.bf16.mxu1 %v3588_v59  ;;  %v3674_v59 = vld [vmem:[%s5437_s1 + $0x3e4] ss:$8 sps:$4 sm:$0xff]  }
  0x3b   :  { %2287 = vmatpush2.bf16.msra.mxu0 %v3590_v60  ;;  %v3724_v60 = vld [vmem:[%s5438_s0 + $0x14] ss:$72 sps:$4 sm:$0xff]  }
  0x3c   :  { %2368 = vmatpush2.bf16.msra.mxu1 %v3591_v61  ;;  %2288 = vmatprep.subr.bf16.mxu0 %v3592_v62  ;;  %v3727_v61 = vld [vmem:[%s5438_s0 + $0x1c] ss:$72 sps:$4 sm:$0xff]   ;;  %v3669_v62 = vld [vmem:[%s5437_s1 + $0x2e0] ss:$8 sps:$4 sm:$0xff]  }
  0x3d   :  { %2369 = vmatprep.subr.bf16.mxu1 %v3594_v63  ;;  %v3672_v63 = vld [vmem:[%s5437_s1 + $0x3e0] ss:$8 sps:$4 sm:$0xff]  }
  0x3f   :  { %2289 = vmatpush2.bf16.msra.mxu0 %v3596_v0  ;;  %v3678_v0 = vld [vmem:[%s5437_s1 + $0x2d4] ss:$8 sps:$4 sm:$0xff]  }
  0x40   :  { %2370 = vmatpush2.bf16.msra.mxu1 %v3597_v1  ;;  %2420 = vmatprep.subr.bf16.mxu0 %v3606_v2  ;;  %v3681_v1 = vld [vmem:[%s5437_s1 + $0x3d4] ss:$8 sps:$4 sm:$0xff]   ;;  %v3676_v2 = vld [vmem:[%s5437_s1 + $0x2d0] ss:$8 sps:$4 sm:$0xff]  }
  0x41   :  { %2501 = vmatprep.subr.bf16.mxu1 %v3609_v4  ;;  %v3689_v4 = vld [vmem:[%s5437_s1 + $0x2c4] ss:$8 sps:$4 sm:$0xff]  }
  0x42   :  { %2291 = vmatmul.mubr.bf16.vlgmr.msra.gmra.mxu0 %v3598_v3  ;;  %v3679_v3 = vld [vmem:[%s5437_s1 + $0x3d0] ss:$8 sps:$4 sm:$0xff]  }
  0x43   :  { %2372 = vmatmul.mubr.bf16.vlgmr.msra.gmra.mxu1 %v3601_v5  ;;  %2421 = vmatpush1.bf16.msra.mxu0 %v3604_v6  ;;  %v3692_v5 = vld [vmem:[%s5437_s1 + $0x3c4] ss:$8 sps:$4 sm:$0xff]   ;;  %v3687_v6 = vld [vmem:[%s5437_s1 + $0x2c0] ss:$8 sps:$4 sm:$0xff]  }
  0x44   :  { %2502 = vmatpush1.bf16.msra.mxu1 %v3607_v7  ;;  %2422 = vmatprep.subr.bf16.mxu0 %v3612_v8  ;;  %v3690_v7 = vld [vmem:[%s5437_s1 + $0x3c0] ss:$8 sps:$4 sm:$0xff]   ;;  %v3696_v8 = vld [vmem:[%s5437_s1 + $0x2b4] ss:$8 sps:$4 sm:$0xff]  }
  0x45   :  { %2503 = vmatprep.subr.bf16.mxu1 %v3615_v9  ;;  %2300 = vmatprep.mubr.bf16.mxu0 %v3646_v10  ;;  %v3699_v9 = vld [vmem:[%s5437_s1 + $0x3b4] ss:$8 sps:$4 sm:$0xff]   ;;  %v3694_v10 = vld [vmem:[%s5437_s1 + $0x2b0] ss:$8 sps:$4 sm:$0xff]  }
  0x46   :  { %2381 = vmatprep.mubr.bf16.mxu1 %v3649_v11  ;;  %v3697_v11 = vld [vmem:[%s5437_s1 + $0x3b0] ss:$8 sps:$4 sm:$0xff]  }
  0x47   :  { %2423 = vmatpush1.bf16.msra.mxu0 %v3610_v12  ;;  %v3704_v12 = vld [vmem:[%s5437_s1 + $0x2a4] ss:$8 sps:$4 sm:$0xff]  }
  0x48   :  { %2504 = vmatpush1.bf16.msra.mxu1 %v3613_v13  ;;  %2424 = vmatprep.subr.bf16.mxu0 %v3618_v14  ;;  %v3707_v13 = vld [vmem:[%s5437_s1 + $0x3a4] ss:$8 sps:$4 sm:$0xff]   ;;  %v3702_v14 = vld [vmem:[%s5437_s1 + $0x2a0] ss:$8 sps:$4 sm:$0xff]  }
  0x49   :  { %2505 = vmatprep.subr.bf16.mxu1 %v3621_v15  ;;  %v3705_v15 = vld [vmem:[%s5437_s1 + $0x3a0] ss:$8 sps:$4 sm:$0xff]  }
  0x4a   :  { %2301 = vmatmul.mubr.bf16.gmra.mxu0 %v3648_v19  ;;  %v3712_v19 = vld [vmem:[%s5437_s1 + $0x390] ss:$8 sps:$4 sm:$0xff]  }
  0x4b   :  { %2382 = vmatmul.mubr.bf16.gmra.mxu1 %v3657_v20  ;;  %2425 = vmatpush1.bf16.msra.mxu0 %v3616_v16  ;;  %v3711_v16 = vld [vmem:[%s5437_s1 + $0x294] ss:$8 sps:$4 sm:$0xff]   ;;  %v3718_v20 = vld [vmem:[%s5437_s1 + $0x284] ss:$8 sps:$4 sm:$0xff]  }
  0x4c   :  { %2506 = vmatpush1.bf16.msra.mxu1 %v3619_v17  ;;  %2426 = vmatprep.subr.bf16.mxu0 %v3624_v18  ;;  %v3714_v17 = vld [vmem:[%s5437_s1 + $0x394] ss:$8 sps:$4 sm:$0xff]   ;;  %v3709_v18 = vld [vmem:[%s5437_s1 + $0x290] ss:$8 sps:$4 sm:$0xff]  }
  0x4d   :  { %2507 = vmatprep.subr.bf16.mxu1 %v3627_v21  ;;  %2310 = vmatprep.mubr.bf16.mxu0 %v3664_v22  ;;  %v3721_v21 = vld [vmem:[%s5437_s1 + $0x384] ss:$8 sps:$4 sm:$0xff]   ;;  %v3716_v22 = vld [vmem:[%s5437_s1 + $0x280] ss:$8 sps:$4 sm:$0xff]  }
  0x4e   :  { %2391 = vmatprep.mubr.bf16.mxu1 %v3667_v23  ;;  %v3719_v23 = vld [vmem:[%s5437_s1 + $0x380] ss:$8 sps:$4 sm:$0xff]  }
  0x4f   :  { %2427 = vmatpush1.bf16.msra.mxu0 %v3622_v24  ;;  %v3722_v24 = vld [vmem:[%s5438_s0 + $0x10] ss:$72 sps:$4 sm:$0xff]  }
  0x50   :  { %2508 = vmatpush1.bf16.msra.mxu1 %v3625_v25  ;;  %2428 = vmatprep.subr.bf16.mxu0 %v3630_v26  ;;  %v3730_v25 = vld [vmem:[%s5437_s1 + $0x474] ss:$8 sps:$4 sm:$0xff]  }
  0x51   :  { %2509 = vmatprep.subr.bf16.mxu1 %v3633_v27  ;;  %v3733_v26 = vld [vmem:[%s5437_s1 + $0x574] ss:$8 sps:$4 sm:$0xff]   ;;  %v3725_v27 = vld [vmem:[%s5438_s0 + $0x18] ss:$72 sps:$4 sm:$0xff]  }
  0x52   :  { %2311 = vmatmul.mubr.bf16.gmra.mxu0 %v3666_v31  ;;  %v3739_v31 = vld [vmem:[%s5437_s1 + $0x564] ss:$8 sps:$4 sm:$0xff]  }
  0x53   :  { %2392 = vmatmul.mubr.bf16.gmra.mxu1 %v3675_v32  ;;  %2429 = vmatpush1.bf16.msra.mxu0 %v3628_v28  ;;  %v3728_v28 = vld [vmem:[%s5437_s1 + $0x470] ss:$8 sps:$4 sm:$0xff]   ;;  %v3740_v32 = vld [vmem:[%s5438_s0 + $0xa4] ss:$72 sps:$4 sm:$0xff]  }
  0x54   :  { %2510 = vmatpush1.bf16.msra.mxu1 %v3631_v29  ;;  %2430 = vmatprep.subr.bf16.mxu0 %v3636_v30  ;;  %v3731_v29 = vld [vmem:[%s5437_s1 + $0x570] ss:$8 sps:$4 sm:$0xff]   ;;  %v3736_v30 = vld [vmem:[%s5437_s1 + $0x464] ss:$8 sps:$4 sm:$0xff]  }
  0x55   :  { %2511 = vmatprep.subr.bf16.mxu1 %v3639_v33  ;;  %2320 = vmatprep.mubr.bf16.mxu0 %v3682_v34  ;;  %v3749_v33 = vld [vmem:[%s5438_s0 + $0xac] ss:$72 sps:$4 sm:$0xff]   ;;  %v3734_v34 = vld [vmem:[%s5437_s1 + $0x460] ss:$8 sps:$4 sm:$0xff]  }
  0x56   :  { %2401 = vmatprep.mubr.bf16.mxu1 %v3685_v35  ;;  %v3737_v35 = vld [vmem:[%s5437_s1 + $0x560] ss:$8 sps:$4 sm:$0xff]  }
  0x57   :  { %2431 = vmatpush1.bf16.msra.mxu0 %v3634_v36  ;;  %v3745_v36 = vld [vmem:[%s5437_s1 + $0x454] ss:$8 sps:$4 sm:$0xff]  }
  0x58   :  { %2512 = vmatpush1.bf16.msra.mxu1 %v3637_v37  ;;  %2432 = vmatprep.subr.bf16.mxu0 %v3642_v38  ;;  %v3748_v37 = vld [vmem:[%s5437_s1 + $0x554] ss:$8 sps:$4 sm:$0xff]   ;;  %v3742_v38 = vld [vmem:[%s5438_s0 + $0xa0] ss:$72 sps:$4 sm:$0xff]  }
  0x59   :  { %2513 = vmatprep.subr.bf16.mxu1 %v3645_v39  ;;  %v3743_v39 = vld [vmem:[%s5437_s1 + $0x450] ss:$8 sps:$4 sm:$0xff]  }
  0x5a   :  { %2321 = vmatmul.mubr.bf16.gmra.mxu0 %v3684_v42  ;;  %v3754_v42 = vld [vmem:[%s5437_s1 + $0x444] ss:$8 sps:$4 sm:$0xff]  }
  0x5b   :  { %2402 = vmatmul.mubr.bf16.gmra.mxu1 %v3693_v43  ;;  %2433 = vmatpush1.bf16.msra.mxu0 %v3640_v40  ;;  %v3746_v40 = vld [vmem:[%s5437_s1 + $0x550] ss:$8 sps:$4 sm:$0xff]   ;;  %v3757_v43 = vld [vmem:[%s5437_s1 + $0x544] ss:$8 sps:$4 sm:$0xff]  }
  0x5c   :  { %2514 = vmatpush1.bf16.msra.mxu1 %v3643_v41  ;;  %2434 = vmatprep.subr.bf16.mxu0 %v3653_v45  ;;  %v3751_v41 = vld [vmem:[%s5438_s0 + $0xa8] ss:$72 sps:$4 sm:$0xff]   ;;  %v3767_v45 = vld [vmem:[%s5438_s0 + $0x13c] ss:$72 sps:$4 sm:$0xff]  }
  0x5d   :  { %2515 = vmatprep.subr.bf16.mxu1 %v3656_v46  ;;  %2330 = vmatprep.mubr.bf16.mxu0 %v3147_v47  ;;  %v3752_v46 = vld [vmem:[%s5437_s1 + $0x440] ss:$8 sps:$4 sm:$0xff]  }
  0x5e   :  { %2411 = vmatprep.mubr.bf16.mxu1 %v3149_v51  ;;  %v3755_v47 = vld [vmem:[%s5437_s1 + $0x540] ss:$8 sps:$4 sm:$0xff]   ;;  %v3761_v51 = vld [vmem:[%s5437_s1 + $0x430] ss:$8 sps:$4 sm:$0xff]  }
  0x5f   :  { %2435 = vmatpush1.bf16.msra.mxu0 %v3651_v49  ;;  %v3766_v49 = vld [vmem:[%s5437_s1 + $0x534] ss:$8 sps:$4 sm:$0xff]  }
  0x60   :  { %2516 = vmatpush1.bf16.msra.mxu1 %v3654_v50  ;;  %2436 = vmatprep.subr.bf16.mxu0 %v3660_v52  ;;  %v3760_v50 = vld [vmem:[%s5438_s0 + $0x130] ss:$72 sps:$4 sm:$0xff]  }
  0x61   :  { %2517 = vmatprep.subr.bf16.mxu1 %v3663_v53  ;;  %v3764_v52 = vld [vmem:[%s5437_s1 + $0x530] ss:$8 sps:$4 sm:$0xff]  }
  0x62   :  { %2331 = vmatmul.mubr.bf16.gmra.mxu0 %v3146_v54  ;;  %v3769_v53 = vld [vmem:[%s5438_s0 + $0x138] ss:$72 sps:$4 sm:$0xff]   ;;  %v3772_v54 = vld [vmem:[%s5437_s1 + $0x424] ss:$8 sps:$4 sm:$0xff]  }
  0x63   :  { %2412 = vmatmul.mubr.bf16.gmra.mxu1 %v3148_v55  ;;  %2437 = vmatpush2.bf16.msra.mxu0 %v3658_v56  ;;  %v3775_v55 = vld [vmem:[%s5437_s1 + $0x524] ss:$8 sps:$4 sm:$0xff]  }
  0x64   :  { %2518 = vmatpush2.bf16.msra.mxu1 %v3661_v57  ;;  %2438 = vmatprep.subr.bf16.mxu0 %v3671_v58  ;;  %v3776_v56 = vld [vmem:[%s5438_s0 + $0x1c4] ss:$72 sps:$4 sm:$0xff]   ;;  %v3770_v58 = vld [vmem:[%s5437_s1 + $0x420] ss:$8 sps:$4 sm:$0xff]  }
  0x65   :  { %2519 = vmatprep.subr.bf16.mxu1 %v3674_v59  ;;  %2452 = vmatprep.mubr.bf16.mxu0 %v3724_v60  ;;  %v3785_v57 = vld [vmem:[%s5438_s0 + $0x1cc] ss:$72 sps:$4 sm:$0xff]   ;;  %v3773_v59 = vld [vmem:[%s5437_s1 + $0x520] ss:$8 sps:$4 sm:$0xff]  }
  0x66   :  { %2533 = vmatprep.mubr.bf16.mxu1 %v3727_v61  ;;  %v3781_v60 = vld [vmem:[%s5437_s1 + $0x414] ss:$8 sps:$4 sm:$0xff]   ;;  %v3778_v61 = vld [vmem:[%s5438_s0 + $0x1c0] ss:$72 sps:$4 sm:$0xff]  }
  0x67   :  { %2439 = vmatpush2.bf16.msra.mxu0 %v3669_v62  ;;  %v3784_v62 = vld [vmem:[%s5437_s1 + $0x514] ss:$8 sps:$4 sm:$0xff]  }
  0x68   :  { %2520 = vmatpush2.bf16.msra.mxu1 %v3672_v63  ;;  %2440 = vmatprep.subr.bf16.mxu0 %v3678_v0  ;;  %v3779_v63 = vld [vmem:[%s5437_s1 + $0x410] ss:$8 sps:$4 sm:$0xff]  }
  0x69   :  { %2521 = vmatprep.subr.bf16.mxu1 %v3681_v1  ;;  %v3782_v0 = vld [vmem:[%s5437_s1 + $0x510] ss:$8 sps:$4 sm:$0xff]  }
  0x6a   :  { %v3787_v1 = vld [vmem:[%s5438_s0 + $0x1c8] ss:$72 sps:$4 sm:$0xff]  }
  0x6b   :  { %2441 = vmatpush2.bf16.msra.mxu0 %v3676_v2  ;;  %v88_v2 = vld [vmem:[%s5438_s0 + $0x250] sm:$0xff] }
  0x6c   :  { %2522 = vmatpush2.bf16.msra.mxu1 %v3679_v3  ;;  %2442 = vmatprep.subr.bf16.mxu0 %v3689_v4  ;;  %v89_v3 = vld [vmem:[%s5438_s0 + $0x258] sm:$0xff]  ;;  %v3790_v4 = vld [vmem:[%s5437_s1 + $0x404] ss:$8 sps:$4 sm:$0xff]  }
  0x6d   :  { %2523 = vmatprep.subr.bf16.mxu1 %v3692_v5  ;;  %v3793_v5 = vld [vmem:[%s5437_s1 + $0x504] ss:$8 sps:$4 sm:$0xff]  }
  0x6f   :  { %2443 = vmatpush2.bf16.msra.mxu0 %v3687_v6  ;;  %v3151_v6 = vcombine.high %v88_v2, %v88_v2 }
  0x70   :  { %2524 = vmatpush2.bf16.msra.mxu1 %v3690_v7  ;;  %2444 = vmatprep.subr.bf16.mxu0 %v3696_v8  ;;  %v3153_v7 = vcombine.high %v89_v3, %v89_v3  ;;  %v3788_v8 = vld [vmem:[%s5437_s1 + $0x400] ss:$8 sps:$4 sm:$0xff]  }
  0x71   :  { %2525 = vmatprep.subr.bf16.mxu1 %v3699_v9  ;;  %v3791_v9 = vld [vmem:[%s5437_s1 + $0x500] ss:$8 sps:$4 sm:$0xff]  }
  0x73   :  { %2445 = vmatpush2.bf16.msra.mxu0 %v3694_v10  ;;  %v3798_v10 = vld [vmem:[%s5437_s1 + $0x4f4] ss:$8 sps:$4 sm:$0xff]  }
  0x74   :  { %2526 = vmatpush2.bf16.msra.mxu1 %v3697_v11  ;;  %2446 = vmatprep.subr.bf16.mxu0 %v3704_v12  ;;  %v3801_v11 = vld [vmem:[%s5437_s1 + $0x5f4] ss:$8 sps:$4 sm:$0xff]   ;;  %v3150_v12 = vcombine.low %v88_v2, %v88_v2  ;;  %v3882_v2 = vld [vmem:[%s5438_s0 + $0x144] ss:$72 sps:$4 sm:$0xff]  }
  0x75   :  { %2527 = vmatprep.subr.bf16.mxu1 %v3707_v13  ;;  %v3796_v13 = vld [vmem:[%s5437_s1 + $0x4f0] ss:$8 sps:$4 sm:$0xff]  }
  0x77   :  { %2447 = vmatpush2.bf16.msra.mxu0 %v3702_v14  ;;  %v3799_v14 = vld [vmem:[%s5437_s1 + $0x5f0] ss:$8 sps:$4 sm:$0xff]  }
  0x78   :  { %2528 = vmatpush2.bf16.msra.mxu1 %v3705_v15  ;;  %2448 = vmatprep.subr.bf16.mxu0 %v3711_v16  ;;  %v3152_v15 = vcombine.low %v89_v3, %v89_v3  ;;  %v3806_v16 = vld [vmem:[%s5437_s1 + $0x4e4] ss:$8 sps:$4 sm:$0xff]  }
  0x79   :  { %2529 = vmatprep.subr.bf16.mxu1 %v3714_v17  ;;  %v3809_v17 = vld [vmem:[%s5437_s1 + $0x5e4] ss:$8 sps:$4 sm:$0xff]  }
  0x7a   :  { %v3891_v3 = vld [vmem:[%s5438_s0 + $0x14c] ss:$72 sps:$4 sm:$0xff]  }
  0x7b   :  { %2449 = vmatpush2.bf16.msra.mxu0 %v3709_v18  ;;  %v3848_v18 = vld [vmem:[%s5438_s0 + $0x24] ss:$72 sps:$4 sm:$0xff]  }
  0x7c   :  { %2530 = vmatpush2.bf16.msra.mxu1 %v3712_v19  ;;  %2450 = vmatprep.subr.bf16.mxu0 %v3718_v20  ;;  %v3851_v19 = vld [vmem:[%s5438_s0 + $0x2c] ss:$72 sps:$4 sm:$0xff]   ;;  %v3804_v20 = vld [vmem:[%s5437_s1 + $0x4e0] ss:$8 sps:$4 sm:$0xff]  }
  0x7d   :  { %2531 = vmatprep.subr.bf16.mxu1 %v3721_v21  ;;  %v3807_v21 = vld [vmem:[%s5437_s1 + $0x5e0] ss:$8 sps:$4 sm:$0xff]  }
  0x7f   :  { %2451 = vmatpush2.bf16.msra.mxu0 %v3716_v22  ;;  %v3812_v22 = vld [vmem:[%s5437_s1 + $0x4d4] ss:$8 sps:$4 sm:$0xff]  }
  0x80   :  { %2532 = vmatpush2.bf16.msra.mxu1 %v3719_v23  ;;  %2582 = vmatprep.subr.bf16.mxu0 %v3730_v25  ;;  %v3815_v23 = vld [vmem:[%s5437_s1 + $0x5d4] ss:$8 sps:$4 sm:$0xff]   ;;  %v3813_v25 = vld [vmem:[%s5437_s1 + $0x5d0] ss:$8 sps:$4 sm:$0xff]  }
  0x81   :  { %2663 = vmatprep.subr.bf16.mxu1 %v3733_v26  ;;  %v3818_v26 = vld [vmem:[%s5437_s1 + $0x4c4] ss:$8 sps:$4 sm:$0xff]  }
  0x82   :  { %2453 = vmatmul.mubr.bf16.vlgmr.msra.gmra.mxu0 %v3722_v24  ;;  %v3810_v24 = vld [vmem:[%s5437_s1 + $0x4d0] ss:$8 sps:$4 sm:$0xff]  }
  0x83   :  { %2534 = vmatmul.mubr.bf16.vlgmr.msra.gmra.mxu1 %v3725_v27  ;;  %2583 = vmatpush1.bf16.msra.mxu0 %v3728_v28  ;;  %v3821_v27 = vld [vmem:[%s5437_s1 + $0x5c4] ss:$8 sps:$4 sm:$0xff]   ;;  %v3816_v28 = vld [vmem:[%s5437_s1 + $0x4c0] ss:$8 sps:$4 sm:$0xff]  }
  0x84   :  { %2664 = vmatpush1.bf16.msra.mxu1 %v3731_v29  ;;  %2584 = vmatprep.subr.bf16.mxu0 %v3736_v30  ;;  %v3819_v29 = vld [vmem:[%s5437_s1 + $0x5c0] ss:$8 sps:$4 sm:$0xff]   ;;  %v3824_v30 = vld [vmem:[%s5437_s1 + $0x4b4] ss:$8 sps:$4 sm:$0xff]  }
  0x85   :  { %2665 = vmatprep.subr.bf16.mxu1 %v3739_v31  ;;  %2462 = vmatprep.mubr.bf16.mxu0 %v3740_v32  ;;  %v3827_v31 = vld [vmem:[%s5437_s1 + $0x5b4] ss:$8 sps:$4 sm:$0xff]   ;;  %v3822_v32 = vld [vmem:[%s5437_s1 + $0x4b0] ss:$8 sps:$4 sm:$0xff]  }
  0x86   :  { %2543 = vmatprep.mubr.bf16.mxu1 %v3749_v33  ;;  %v3825_v33 = vld [vmem:[%s5437_s1 + $0x5b0] ss:$8 sps:$4 sm:$0xff]  }
  0x87   :  { %2585 = vmatpush1.bf16.msra.mxu0 %v3734_v34  ;;  %v3830_v34 = vld [vmem:[%s5437_s1 + $0x4a4] ss:$8 sps:$4 sm:$0xff]  }
  0x88   :  { %2666 = vmatpush1.bf16.msra.mxu1 %v3737_v35  ;;  %2586 = vmatprep.subr.bf16.mxu0 %v3745_v36  ;;  %v3833_v35 = vld [vmem:[%s5437_s1 + $0x5a4] ss:$8 sps:$4 sm:$0xff]   ;;  %v3828_v36 = vld [vmem:[%s5437_s1 + $0x4a0] ss:$8 sps:$4 sm:$0xff]  }
  0x89   :  { %2667 = vmatprep.subr.bf16.mxu1 %v3748_v37  ;;  %v3831_v37 = vld [vmem:[%s5437_s1 + $0x5a0] ss:$8 sps:$4 sm:$0xff]  }
  0x8a   :  { %2463 = vmatmul.mubr.bf16.gmra.mxu0 %v3742_v38  ;;  %v3836_v38 = vld [vmem:[%s5437_s1 + $0x494] ss:$8 sps:$4 sm:$0xff]  }
  0x8b   :  { %2544 = vmatmul.mubr.bf16.gmra.mxu1 %v3751_v41  ;;  %2587 = vmatpush1.bf16.msra.mxu0 %v3743_v39  ;;  %v3839_v39 = vld [vmem:[%s5437_s1 + $0x594] ss:$8 sps:$4 sm:$0xff]   ;;  %v3837_v41 = vld [vmem:[%s5437_s1 + $0x590] ss:$8 sps:$4 sm:$0xff]  }
  0x8c   :  { %2668 = vmatpush1.bf16.msra.mxu1 %v3746_v40  ;;  %2588 = vmatprep.subr.bf16.mxu0 %v3754_v42  ;;  %v3834_v40 = vld [vmem:[%s5437_s1 + $0x490] ss:$8 sps:$4 sm:$0xff]   ;;  %v3842_v42 = vld [vmem:[%s5437_s1 + $0x484] ss:$8 sps:$4 sm:$0xff]  }
  0x8d   :  { %2669 = vmatprep.subr.bf16.mxu1 %v3757_v43  ;;  %2472 = vmatprep.mubr.bf16.mxu0 %v3758_v44  ;;  %v3845_v43 = vld [vmem:[%s5437_s1 + $0x584] ss:$8 sps:$4 sm:$0xff]   ;;  %v3840_v44 = vld [vmem:[%s5437_s1 + $0x480] ss:$8 sps:$4 sm:$0xff]  }
  0x8e   :  { %2553 = vmatprep.mubr.bf16.mxu1 %v3767_v45  ;;  %v3843_v45 = vld [vmem:[%s5437_s1 + $0x580] ss:$8 sps:$4 sm:$0xff]  }
  0x8f   :  { %2589 = vmatpush1.bf16.msra.mxu0 %v3752_v46  ;;  %v3846_v46 = vld [vmem:[%s5438_s0 + $0x20] ss:$72 sps:$4 sm:$0xff]  }
  0x90   :  { %2670 = vmatpush1.bf16.msra.mxu1 %v3755_v47  ;;  %2590 = vmatprep.subr.bf16.mxu0 %v3763_v48  ;;  %v3854_v47 = vld [vmem:[%s5437_s1 + $0x674] ss:$8 sps:$4 sm:$0xff]  }
  0x91   :  { %2671 = vmatprep.subr.bf16.mxu1 %v3766_v49  ;;  %v3857_v48 = vld [vmem:[%s5437_s1 + $0x774] ss:$8 sps:$4 sm:$0xff]   ;;  %v3849_v49 = vld [vmem:[%s5438_s0 + $0x28] ss:$72 sps:$4 sm:$0xff]  }
  0x92   :  { %2473 = vmatmul.mubr.bf16.gmra.mxu0 %v3760_v50  ;;  %v3852_v50 = vld [vmem:[%s5437_s1 + $0x670] ss:$8 sps:$4 sm:$0xff]  }
  0x93   :  { %2554 = vmatmul.mubr.bf16.gmra.mxu1 %v3769_v53  ;;  %2591 = vmatpush1.bf16.msra.mxu0 %v3761_v51  ;;  %v3855_v51 = vld [vmem:[%s5437_s1 + $0x770] ss:$8 sps:$4 sm:$0xff]   ;;  %v3863_v53 = vld [vmem:[%s5437_s1 + $0x764] ss:$8 sps:$4 sm:$0xff]  }
  0x94   :  { %2672 = vmatpush1.bf16.msra.mxu1 %v3764_v52  ;;  %2592 = vmatprep.subr.bf16.mxu0 %v3772_v54  ;;  %v3860_v52 = vld [vmem:[%s5437_s1 + $0x664] ss:$8 sps:$4 sm:$0xff]   ;;  %v3864_v54 = vld [vmem:[%s5438_s0 + $0xb4] ss:$72 sps:$4 sm:$0xff]  }
  0x95   :  { %2673 = vmatprep.subr.bf16.mxu1 %v3775_v55  ;;  %2482 = vmatprep.mubr.bf16.mxu0 %v3776_v56  ;;  %v3873_v55 = vld [vmem:[%s5438_s0 + $0xbc] ss:$72 sps:$4 sm:$0xff]   ;;  %v3858_v56 = vld [vmem:[%s5437_s1 + $0x660] ss:$8 sps:$4 sm:$0xff]  }
  0x96   :  { %2563 = vmatprep.mubr.bf16.mxu1 %v3785_v57  ;;  %v3861_v57 = vld [vmem:[%s5437_s1 + $0x760] ss:$8 sps:$4 sm:$0xff]  }
  0x97   :  { %2593 = vmatpush1.bf16.msra.mxu0 %v3770_v58  ;;  %v3866_v58 = vld [vmem:[%s5438_s0 + $0xb0] ss:$72 sps:$4 sm:$0xff]  }
  0x98   :  { %2674 = vmatpush1.bf16.msra.mxu1 %v3773_v59  ;;  %2594 = vmatprep.subr.bf16.mxu0 %v3781_v60  ;;  %v3869_v59 = vld [vmem:[%s5437_s1 + $0x654] ss:$8 sps:$4 sm:$0xff]  }
  0x99   :  { %2675 = vmatprep.subr.bf16.mxu1 %v3784_v62  ;;  %v3872_v60 = vld [vmem:[%s5437_s1 + $0x754] ss:$8 sps:$4 sm:$0xff]   ;;  %v3875_v62 = vld [vmem:[%s5438_s0 + $0xb8] ss:$72 sps:$4 sm:$0xff]  }
  0x9a   :  { %2483 = vmatmul.mubr.bf16.gmra.mxu0 %v3778_v61  ;;  %v3867_v61 = vld [vmem:[%s5437_s1 + $0x650] ss:$8 sps:$4 sm:$0xff]  }
  0x9b   :  { %2564 = vmatmul.mubr.bf16.gmra.mxu1 %v3787_v1  ;;  %2595 = vmatpush1.bf16.msra.mxu0 %v3779_v63  ;;  %v3870_v63 = vld [vmem:[%s5437_s1 + $0x750] ss:$8 sps:$4 sm:$0xff]   ;;  %v3881_v1 = vld [vmem:[%s5437_s1 + $0x744] ss:$8 sps:$4 sm:$0xff]  }
  0x9c   :  { %2676 = vmatpush1.bf16.msra.mxu1 %v3782_v0  ;;  %2596 = vmatprep.subr.bf16.mxu0 %v3790_v4  ;;  %v3878_v0 = vld [vmem:[%s5437_s1 + $0x644] ss:$8 sps:$4 sm:$0xff]   ;;  %v3876_v4 = vld [vmem:[%s5437_s1 + $0x640] ss:$8 sps:$4 sm:$0xff]  }
  0x9d   :  { %2677 = vmatprep.subr.bf16.mxu1 %v3793_v5  ;;  %2492 = vmatprep.mubr.bf16.mxu0 %v3151_v6  ;;  %v3879_v5 = vld [vmem:[%s5437_s1 + $0x740] ss:$8 sps:$4 sm:$0xff]  }
  0x9e   :  { %2573 = vmatprep.mubr.bf16.mxu1 %v3153_v7  ;;  %v3884_v6 = vld [vmem:[%s5438_s0 + $0x140] ss:$72 sps:$4 sm:$0xff]   ;;  %v3887_v7 = vld [vmem:[%s5437_s1 + $0x634] ss:$8 sps:$4 sm:$0xff]  }
  0x9f   :  { %2597 = vmatpush1.bf16.msra.mxu0 %v3788_v8  ;;  %v3890_v8 = vld [vmem:[%s5437_s1 + $0x734] ss:$8 sps:$4 sm:$0xff]  }
  0xa0   :  { %2678 = vmatpush1.bf16.msra.mxu1 %v3791_v9  ;;  %2598 = vmatprep.subr.bf16.mxu0 %v3798_v10  ;;  %v3885_v9 = vld [vmem:[%s5437_s1 + $0x630] ss:$8 sps:$4 sm:$0xff]  }
  0xa1   :  { %2679 = vmatprep.subr.bf16.mxu1 %v3801_v11  ;;  %v3888_v10 = vld [vmem:[%s5437_s1 + $0x730] ss:$8 sps:$4 sm:$0xff]  }
  0xa2   :  { %2493 = vmatmul.mubr.bf16.gmra.mxu0 %v3150_v12  ;;  %v3893_v11 = vld [vmem:[%s5438_s0 + $0x148] ss:$72 sps:$4 sm:$0xff]   ;;  %v3896_v12 = vld [vmem:[%s5437_s1 + $0x624] ss:$8 sps:$4 sm:$0xff]  }
  0xa3   :  { %2574 = vmatmul.mubr.bf16.gmra.mxu1 %v3152_v15  ;;  %2599 = vmatpush2.bf16.msra.mxu0 %v3796_v13  ;;  %v3899_v13 = vld [vmem:[%s5437_s1 + $0x724] ss:$8 sps:$4 sm:$0xff]  }
  0xa4   :  { %2680 = vmatpush2.bf16.msra.mxu1 %v3799_v14  ;;  %2600 = vmatprep.subr.bf16.mxu0 %v3806_v16  ;;  %v3900_v14 = vld [vmem:[%s5438_s0 + $0x1d4] ss:$72 sps:$4 sm:$0xff]   ;;  %v3894_v16 = vld [vmem:[%s5437_s1 + $0x620] ss:$8 sps:$4 sm:$0xff]  }
  0xa5   :  { %2681 = vmatprep.subr.bf16.mxu1 %v3809_v17  ;;  %2614 = vmatprep.mubr.bf16.mxu0 %v3848_v18  ;;  %v3909_v15 = vld [vmem:[%s5438_s0 + $0x1dc] ss:$72 sps:$4 sm:$0xff]   ;;  %v3897_v17 = vld [vmem:[%s5437_s1 + $0x720] ss:$8 sps:$4 sm:$0xff]  }
  0xa6   :  { %2695 = vmatprep.mubr.bf16.mxu1 %v3851_v19  ;;  %v3905_v18 = vld [vmem:[%s5437_s1 + $0x614] ss:$8 sps:$4 sm:$0xff]   ;;  %v3902_v19 = vld [vmem:[%s5438_s0 + $0x1d0] ss:$72 sps:$4 sm:$0xff]  }
  0xa7   :  { %2601 = vmatpush2.bf16.msra.mxu0 %v3804_v20  ;;  %v3908_v20 = vld [vmem:[%s5437_s1 + $0x714] ss:$8 sps:$4 sm:$0xff]  }
  0xa8   :  { %2682 = vmatpush2.bf16.msra.mxu1 %v3807_v21  ;;  %2602 = vmatprep.subr.bf16.mxu0 %v3812_v22  ;;  %v3903_v21 = vld [vmem:[%s5437_s1 + $0x610] ss:$8 sps:$4 sm:$0xff]  }
  0xa9   :  { %2683 = vmatprep.subr.bf16.mxu1 %v3815_v23  ;;  %v3911_v22 = vld [vmem:[%s5438_s0 + $0x1d8] ss:$72 sps:$4 sm:$0xff]  }
  0xaa   :  { %v90_v23 = vld [vmem:[%s5438_s0 + $0x260] sm:$0xff] }
  0xab   :  { %2603 = vmatpush2.bf16.msra.mxu0 %v3810_v24  ;;  %v91_v24 = vld [vmem:[%s5438_s0 + $0x268] sm:$0xff] }
  0xac   :  { %2684 = vmatpush2.bf16.msra.mxu1 %v3813_v25  ;;  %2604 = vmatprep.subr.bf16.mxu0 %v3818_v26  ;;  %v3906_v25 = vld [vmem:[%s5437_s1 + $0x710] ss:$8 sps:$4 sm:$0xff]   ;;  %v3914_v26 = vld [vmem:[%s5437_s1 + $0x604] ss:$8 sps:$4 sm:$0xff]  }
  0xad   :  { %2685 = vmatprep.subr.bf16.mxu1 %v3821_v27  ;;  %v3917_v27 = vld [vmem:[%s5437_s1 + $0x704] ss:$8 sps:$4 sm:$0xff]  }
  0xaf   :  { %2605 = vmatpush2.bf16.msra.mxu0 %v3816_v28  ;;  %v3155_v28 = vcombine.high %v90_v23, %v90_v23 }
  0xb0   :  { %2686 = vmatpush2.bf16.msra.mxu1 %v3819_v29  ;;  %2606 = vmatprep.subr.bf16.mxu0 %v3824_v30  ;;  %v3157_v29 = vcombine.high %v91_v24, %v91_v24  ;;  %v3912_v30 = vld [vmem:[%s5437_s1 + $0x600] ss:$8 sps:$4 sm:$0xff]  }
  0xb1   :  { %2687 = vmatprep.subr.bf16.mxu1 %v3827_v31  ;;  %v3915_v31 = vld [vmem:[%s5437_s1 + $0x700] ss:$8 sps:$4 sm:$0xff]  }
  0xb3   :  { %2607 = vmatpush2.bf16.msra.mxu0 %v3822_v32  ;;  %v3922_v32 = vld [vmem:[%s5437_s1 + $0x6f4] ss:$8 sps:$4 sm:$0xff]  }
  0xb4   :  { %2688 = vmatpush2.bf16.msra.mxu1 %v3825_v33  ;;  %2608 = vmatprep.subr.bf16.mxu0 %v3830_v34  ;;  %v3925_v33 = vld [vmem:[%s5437_s1 + $0x7f4] ss:$8 sps:$4 sm:$0xff]   ;;  %v3154_v34 = vcombine.low %v90_v23, %v90_v23 }
  0xb5   :  { %2689 = vmatprep.subr.bf16.mxu1 %v3833_v35  ;;  %v3920_v35 = vld [vmem:[%s5437_s1 + $0x6f0] ss:$8 sps:$4 sm:$0xff]  }
  0xb7   :  { %2609 = vmatpush2.bf16.msra.mxu0 %v3828_v36  ;;  %v3156_v36 = vcombine.low %v91_v24, %v91_v24  ;;  %v3987_v24 = vld [vmem:[%s5437_s1 + $0x854] ss:$8 sps:$4 sm:$0xff]  }
  0xb8   :  { %2690 = vmatpush2.bf16.msra.mxu1 %v3831_v37  ;;  %2610 = vmatprep.subr.bf16.mxu0 %v3836_v38  ;;  %v3923_v37 = vld [vmem:[%s5437_s1 + $0x7f0] ss:$8 sps:$4 sm:$0xff]   ;;  %v3930_v38 = vld [vmem:[%s5437_s1 + $0x6e4] ss:$8 sps:$4 sm:$0xff]  }
  0xb9   :  { %2691 = vmatprep.subr.bf16.mxu1 %v3839_v39  ;;  %v3933_v39 = vld [vmem:[%s5437_s1 + $0x7e4] ss:$8 sps:$4 sm:$0xff]  }
  0xbb   :  { %2611 = vmatpush2.bf16.msra.mxu0 %v3834_v40  ;;  %v3972_v40 = vld [vmem:[%s5438_s0 + $0x34] ss:$72 sps:$4 sm:$0xff]  }
  0xbc   :  { %2692 = vmatpush2.bf16.msra.mxu1 %v3837_v41  ;;  %2612 = vmatprep.subr.bf16.mxu0 %v3842_v42  ;;  %v3975_v41 = vld [vmem:[%s5438_s0 + $0x3c] ss:$72 sps:$4 sm:$0xff]   ;;  %v3928_v42 = vld [vmem:[%s5437_s1 + $0x6e0] ss:$8 sps:$4 sm:$0xff]  }
  0xbd   :  { %2693 = vmatprep.subr.bf16.mxu1 %v3845_v43  ;;  %v3931_v43 = vld [vmem:[%s5437_s1 + $0x7e0] ss:$8 sps:$4 sm:$0xff]  }
  0xbf   :  { %2613 = vmatpush2.bf16.msra.mxu0 %v3840_v44  ;;  %v3936_v44 = vld [vmem:[%s5437_s1 + $0x6d4] ss:$8 sps:$4 sm:$0xff]  }
  0xc0   :  { %2694 = vmatpush2.bf16.msra.mxu1 %v3843_v45  ;;  %2744 = vmatprep.subr.bf16.mxu0 %v3854_v47  ;;  %v3939_v45 = vld [vmem:[%s5437_s1 + $0x7d4] ss:$8 sps:$4 sm:$0xff]   ;;  %v3937_v47 = vld [vmem:[%s5437_s1 + $0x7d0] ss:$8 sps:$4 sm:$0xff]  }
  0xc1   :  { %2825 = vmatprep.subr.bf16.mxu1 %v3857_v48  ;;  %v3942_v48 = vld [vmem:[%s5437_s1 + $0x6c4] ss:$8 sps:$4 sm:$0xff]  }
  0xc2   :  { %2615 = vmatmul.mubr.bf16.vlgmr.msra.gmra.mxu0 %v3846_v46  ;;  %v3934_v46 = vld [vmem:[%s5437_s1 + $0x6d0] ss:$8 sps:$4 sm:$0xff]  }
  0xc3   :  { %2696 = vmatmul.mubr.bf16.vlgmr.msra.gmra.mxu1 %v3849_v49  ;;  %2745 = vmatpush1.bf16.msra.mxu0 %v3852_v50  ;;  %v3945_v49 = vld [vmem:[%s5437_s1 + $0x7c4] ss:$8 sps:$4 sm:$0xff]   ;;  %v3940_v50 = vld [vmem:[%s5437_s1 + $0x6c0] ss:$8 sps:$4 sm:$0xff]  }
  0xc4   :  { %2826 = vmatpush1.bf16.msra.mxu1 %v3855_v51  ;;  %2746 = vmatprep.subr.bf16.mxu0 %v3860_v52  ;;  %v3943_v51 = vld [vmem:[%s5437_s1 + $0x7c0] ss:$8 sps:$4 sm:$0xff]   ;;  %v3948_v52 = vld [vmem:[%s5437_s1 + $0x6b4] ss:$8 sps:$4 sm:$0xff]  }
  0xc5   :  { %2827 = vmatprep.subr.bf16.mxu1 %v3863_v53  ;;  %2624 = vmatprep.mubr.bf16.mxu0 %v3864_v54  ;;  %v3951_v53 = vld [vmem:[%s5437_s1 + $0x7b4] ss:$8 sps:$4 sm:$0xff]   ;;  %v3946_v54 = vld [vmem:[%s5437_s1 + $0x6b0] ss:$8 sps:$4 sm:$0xff]  }
  0xc6   :  { %2705 = vmatprep.mubr.bf16.mxu1 %v3873_v55  ;;  %v3949_v55 = vld [vmem:[%s5437_s1 + $0x7b0] ss:$8 sps:$4 sm:$0xff]  }
  0xc7   :  { %2747 = vmatpush1.bf16.msra.mxu0 %v3858_v56  ;;  %v3954_v56 = vld [vmem:[%s5437_s1 + $0x6a4] ss:$8 sps:$4 sm:$0xff]  }
  0xc8   :  { %2828 = vmatpush1.bf16.msra.mxu1 %v3861_v57  ;;  %2748 = vmatprep.subr.bf16.mxu0 %v3869_v59  ;;  %v3957_v57 = vld [vmem:[%s5437_s1 + $0x7a4] ss:$8 sps:$4 sm:$0xff]   ;;  %v3955_v59 = vld [vmem:[%s5437_s1 + $0x7a0] ss:$8 sps:$4 sm:$0xff]  }
  0xc9   :  { %2829 = vmatprep.subr.bf16.mxu1 %v3872_v60  ;;  %v385_v60 = vlaneseq }
  0xca   :  { %2625 = vmatmul.mubr.bf16.gmra.mxu0 %v3866_v58  ;;  %v3952_v58 = vld [vmem:[%s5437_s1 + $0x6a0] ss:$8 sps:$4 sm:$0xff]  }
  0xcb   :  { %2706 = vmatmul.mubr.bf16.gmra.mxu1 %v3875_v62  ;;  %2749 = vmatpush1.bf16.msra.mxu0 %v3867_v61  ;;  %v3960_v61 = vld [vmem:[%s5437_s1 + $0x694] ss:$8 sps:$4 sm:$0xff]  }
  0xcc   :  { %2830 = vmatpush1.bf16.msra.mxu1 %v3870_v63  ;;  %2750 = vmatprep.subr.bf16.mxu0 %v3878_v0  ;;  %v3963_v62 = vld [vmem:[%s5437_s1 + $0x794] ss:$8 sps:$4 sm:$0xff]   ;;  %v3958_v63 = vld [vmem:[%s5437_s1 + $0x690] ss:$8 sps:$4 sm:$0xff]  }
  0xcd   :  { %2831 = vmatprep.subr.bf16.mxu1 %v3881_v1  ;;  %2634 = vmatprep.mubr.bf16.mxu0 %v3882_v2  ;;  %v3961_v0 = vld [vmem:[%s5437_s1 + $0x790] ss:$8 sps:$4 sm:$0xff]   ;;  %v386_v1 = vshrl.u32 %v385_v60, 7  ;;  %v3966_v2 = vld [vmem:[%s5437_s1 + $0x684] ss:$8 sps:$4 sm:$0xff]  }
  0xce   :  { %2715 = vmatprep.mubr.bf16.mxu1 %v3891_v3  ;;  %v3969_v3 = vld [vmem:[%s5437_s1 + $0x784] ss:$8 sps:$4 sm:$0xff]  }
  0xcf   :  { %2751 = vmatpush1.bf16.msra.mxu0 %v3876_v4  ;;  %v3964_v4 = vld [vmem:[%s5437_s1 + $0x680] ss:$8 sps:$4 sm:$0xff]  }
  0xd0   :  { %2832 = vmatpush1.bf16.msra.mxu1 %v3879_v5  ;;  %2752 = vmatprep.subr.bf16.mxu0 %v3887_v7  ;;  %v3967_v5 = vld [vmem:[%s5437_s1 + $0x780] ss:$8 sps:$4 sm:$0xff]  }
  0xd1   :  { %2833 = vmatprep.subr.bf16.mxu1 %v3890_v8  ;;  %v383_v7 = vld [vmem:[%s5439_s2] sm:$0x3]  ;;  %v3978_v8 = vld [vmem:[%s5437_s1 + $0x874] ss:$8 sps:$4 sm:$0xff]  }
  0xd2   :  { %2635 = vmatmul.mubr.bf16.gmra.mxu0 %v3884_v6  ;;  %v387_v6 = vsub.s32 0, %v386_v1 }
  0xd3   :  { %2716 = vmatmul.mubr.bf16.gmra.mxu1 %v3893_v11  ;;  %2753 = vmatpush1.bf16.msra.mxu0 %v3885_v9  ;;  %v391_v9 = vsub.s32 1, %v386_v1  ;;  %v3973_v11 = vld [vmem:[%s5438_s0 + $0x38] ss:$72 sps:$4 sm:$0xff]  }
  0xd4   :  { %2834 = vmatpush1.bf16.msra.mxu1 %v3888_v10  ;;  %2754 = vmatprep.subr.bf16.mxu0 %v3896_v12  ;;  %v3970_v10 = vld [vmem:[%s5438_s0 + $0x30] ss:$72 sps:$4 sm:$0xff]   ;;  %v5028_v12 = vrot.slane %v383_v7, %v387_v6  ;;  %v4011_v6 = vld [vmem:[%s5437_s1 + $0x814] ss:$8 sps:$4 sm:$0xff]  }
  0xd5   :  { %2835 = vmatprep.subr.bf16.mxu1 %v3899_v13  ;;  %2644 = vmatprep.mubr.bf16.mxu0 %v3900_v14  ;;  %v3976_v13 = vld [vmem:[%s5437_s1 + $0x870] ss:$8 sps:$4 sm:$0xff]   ;;  %v3981_v14 = vld [vmem:[%s5437_s1 + $0x864] ss:$8 sps:$4 sm:$0xff]  }
  0xd6   :  { %2725 = vmatprep.mubr.bf16.mxu1 %v3909_v15  ;;  %v5036_v15 = vrot.slane %v383_v7, %v391_v9  ;;  %v4008_v9 = vld [vmem:[%s5438_s0 + $0x1e0] ss:$72 sps:$4 sm:$0xff]  }
  0xd7   :  { %2755 = vmatpush1.bf16.msra.mxu0 %v3894_v16  ;;  %v3982_v16 = vld [vmem:[%s5438_s0 + $0xc4] ss:$72 sps:$4 sm:$0xff]  }
  0xd8   :  { %2836 = vmatpush1.bf16.msra.mxu1 %v3897_v17  ;;  %2756 = vmatprep.subr.bf16.mxu0 %v3905_v18  ;;  %v3988_v17 = vld [vmem:[%s5438_s0 + $0xcc] ss:$72 sps:$4 sm:$0xff]  }
  0xd9   :  { %2837 = vmatprep.subr.bf16.mxu1 %v3908_v20 }
  0xda   :  { %2645 = vmatmul.mubr.bf16.gmra.mxu0 %v3902_v19 }
  0xdb   :  { %2726 = vmatmul.mubr.bf16.gmra.mxu1 %v3911_v22  ;;  %2757 = vmatpush1.bf16.msra.mxu0 %v3903_v21  ;;  %v3979_v21 = vld [vmem:[%s5437_s1 + $0x860] ss:$8 sps:$4 sm:$0xff]  }
  0xdc   :  { %2838 = vmatpush1.bf16.msra.mxu1 %v3906_v25  ;;  %2758 = vmatprep.subr.bf16.mxu0 %v3914_v26 }
  0xdd   :  { %2839 = vmatprep.subr.bf16.mxu1 %v3917_v27  ;;  %2654 = vmatprep.mubr.bf16.mxu0 %v3155_v28 }
  0xde   :  { %2735 = vmatprep.mubr.bf16.mxu1 %v3157_v29  ;;  %v3984_v29 = vld [vmem:[%s5438_s0 + $0xc0] ss:$72 sps:$4 sm:$0xff]  }
  0xdf   :  { %2759 = vmatpush1.bf16.msra.mxu0 %v3912_v30  ;;  %v3990_v30 = vld [vmem:[%s5438_s0 + $0xc8] ss:$72 sps:$4 sm:$0xff]  }
  0xe0   :  { %2840 = vmatpush1.bf16.msra.mxu1 %v3915_v31  ;;  %2760 = vmatprep.subr.bf16.mxu0 %v3922_v32 }
  0xe1   :  { %2841 = vmatprep.subr.bf16.mxu1 %v3925_v33  ;;  %v3985_v33 = vld [vmem:[%s5437_s1 + $0x850] ss:$8 sps:$4 sm:$0xff]  }
  0xe2   :  { %2655 = vmatmul.mubr.bf16.gmra.mxu0 %v3154_v34 }
  0xe3   :  { %2736 = vmatmul.mubr.bf16.gmra.mxu1 %v3156_v36  ;;  %2761 = vmatpush2.bf16.msra.mxu0 %v3920_v35  ;;  %v3993_v36 = vld [vmem:[%s5437_s1 + $0x844] ss:$8 sps:$4 sm:$0xff]  }
  0xe4   :  { %2842 = vmatpush2.bf16.msra.mxu1 %v3923_v37  ;;  %2762 = vmatprep.subr.bf16.mxu0 %v3930_v38 }
  0xe5   :  { %2843 = vmatprep.subr.bf16.mxu1 %v3933_v39  ;;  %2776 = vmatprep.mubr.bf16.mxu0 %v3972_v40  ;;  %v3994_v39 = vld [vmem:[%s5438_s0 + $0x154] ss:$72 sps:$4 sm:$0xff]  }
  0xe6   :  { %2857 = vmatprep.mubr.bf16.mxu1 %v3975_v41  ;;  %v4000_v40 = vld [vmem:[%s5438_s0 + $0x15c] ss:$72 sps:$4 sm:$0xff]  }
  0xe7   :  { %2763 = vmatpush2.bf16.msra.mxu0 %v3928_v42 }
  0xe8   :  { %2844 = vmatpush2.bf16.msra.mxu1 %v3931_v43  ;;  %2764 = vmatprep.subr.bf16.mxu0 %v3936_v44  ;;  %v3991_v44 = vld [vmem:[%s5437_s1 + $0x840] ss:$8 sps:$4 sm:$0xff]  }
  0xe9   :  { %2845 = vmatprep.subr.bf16.mxu1 %v3939_v45 }
  0xeb   :  { %2765 = vmatpush2.bf16.msra.mxu0 %v3934_v46  ;;  %v3999_v46 = vld [vmem:[%s5437_s1 + $0x834] ss:$8 sps:$4 sm:$0xff]  }
  0xec   :  { %2846 = vmatpush2.bf16.msra.mxu1 %v3937_v47  ;;  %2766 = vmatprep.subr.bf16.mxu0 %v3942_v48 }
  0xed   :  { %2847 = vmatprep.subr.bf16.mxu1 %v3945_v49 }
  0xef   :  { %2767 = vmatpush2.bf16.msra.mxu0 %v3940_v50 }
  0xf0   :  { %2848 = vmatpush2.bf16.msra.mxu1 %v3943_v51  ;;  %2768 = vmatprep.subr.bf16.mxu0 %v3948_v52  ;;  %v3996_v51 = vld [vmem:[%s5438_s0 + $0x150] ss:$72 sps:$4 sm:$0xff]  }
  0xf1   :  { %2849 = vmatprep.subr.bf16.mxu1 %v3951_v53  ;;  %v4002_v52 = vld [vmem:[%s5438_s0 + $0x158] ss:$72 sps:$4 sm:$0xff]  }
  0xf3   :  { %2769 = vmatpush2.bf16.msra.mxu0 %v3946_v54 }
  0xf4   :  { %2850 = vmatpush2.bf16.msra.mxu1 %v3949_v55  ;;  %2770 = vmatprep.subr.bf16.mxu0 %v3954_v56  ;;  %v3997_v55 = vld [vmem:[%s5437_s1 + $0x830] ss:$8 sps:$4 sm:$0xff]  }
  0xf5   :  { %2851 = vmatprep.subr.bf16.mxu1 %v3957_v57 }
  0xf7   :  { %2771 = vmatpush2.bf16.msra.mxu0 %v3952_v58  ;;  %v4005_v58 = vld [vmem:[%s5437_s1 + $0x824] ss:$8 sps:$4 sm:$0xff]  }
  0xf8   :  { %2852 = vmatpush2.bf16.msra.mxu1 %v3955_v59  ;;  %2772 = vmatprep.subr.bf16.mxu0 %v3960_v61  ;;  %v4006_v61 = vld [vmem:[%s5438_s0 + $0x1e4] ss:$72 sps:$4 sm:$0xff]  }
  0xf9   :  { %2853 = vmatprep.subr.bf16.mxu1 %v3963_v62  ;;  %v4012_v62 = vld [vmem:[%s5438_s0 + $0x1ec] ss:$72 sps:$4 sm:$0xff]  }
  0xfb   :  { %2773 = vmatpush2.bf16.msra.mxu0 %v3958_v63 }
  0xfc   :  { %2854 = vmatpush2.bf16.msra.mxu1 %v3961_v0  ;;  %2774 = vmatprep.subr.bf16.mxu0 %v3966_v2 }
  0xfd   :  { %2855 = vmatprep.subr.bf16.mxu1 %v3969_v3  ;;  %v4003_v3 = vld [vmem:[%s5437_s1 + $0x820] ss:$8 sps:$4 sm:$0xff]  }
  0xff   :  { %2775 = vmatpush2.bf16.msra.mxu0 %v3964_v4 }
 0x100   :  { %2856 = vmatpush2.bf16.msra.mxu1 %v3967_v5  ;;  %2906 = vmatprep.subr.bf16.mxu0 %v3978_v8 }
 0x101   :  { %3470 = vmatprep.subr.bf16.mxu1 %v3978_v8 }
 0x102   :  { %v2292_v18 = vpop.f32.mrf.mxu0  ;;  %2777 = vmatmul.mubr.bf16.vlgmr.msra.gmra.mxu0 %v3970_v10 }
 0x103   :  { %2858 = vmatmul.mubr.bf16.vlgmr.msra.gmra.mxu1 %v3973_v11  ;;  %v2373_v19 = vpop.f32.mrf.mxu1  ;;  %v2293_v20 = vadd.f32 %v2292_v18, %v5028_v12  ;;  %2907 = vmatpush1.bf16.msra.mxu0 %v3976_v13 }
 0x104   :  { %3486 = vmatpush1.bf16.msra.mxu1 %v3976_v13  ;;  %v2294_v22 = vpop.f32.mrf.mxu0  ;;  %2908 = vmatprep.subr.bf16.mxu0 %v3981_v14  ;;  %v4014_v13 = vld [vmem:[%s5438_s0 + $0x1e8] ss:$72 sps:$4 sm:$0xff]  }
 0x105   :  { %v2375_v23 = vpop.f32.mrf.mxu1  ;;  %3471 = vmatprep.subr.bf16.mxu1 %v3981_v14  ;;  %v2295_v25 = vadd.f32 %v2294_v22, %v5036_v15  ;;  %v5052_v26 = vadd.f32 %v2373_v19, %v2293_v20  ;;  %2786 = vmatprep.mubr.bf16.mxu0 %v3982_v16  ;;  %v92_v14 = vld [vmem:[%s5438_s0 + $0x270] sm:$0xff]  ;;  %v93_v16 = vld [vmem:[%s5438_s0 + $0x278] sm:$0xff]  ;;  %v4017_v22 = vld [vmem:[%s5437_s1 + $0x804] ss:$8 sps:$4 sm:$0xff]  }
 0x106   :  { %2867 = vmatprep.mubr.bf16.mxu1 %v3988_v17  ;;  %v2296_v27 = vpop.f32.mrf.mxu0  ;;  %v4009_v19 = vld [vmem:[%s5437_s1 + $0x810] ss:$8 sps:$4 sm:$0xff]  }
 0x107   :  { %v2377_v28 = vpop.f32.mrf.mxu1  ;;  %v2297_v31 = vadd.f32 %v2296_v27, %v5028_v12  ;;  %v5061_v32 = vadd.f32 %v2375_v23, %v2295_v25  ;;  %2909 = vmatpush1.bf16.msra.mxu0 %v3979_v21  ;;  %v3159_v25 = vcombine.high %v92_v14, %v92_v14  ;;  %v3161_v27 = vcombine.high %v93_v16, %v93_v16 }
 0x108   :  { %3487 = vmatpush1.bf16.msra.mxu1 %v3979_v21  ;;  %v2298_v34 = vpop.f32.mrf.mxu0  ;;  %2910 = vmatprep.subr.bf16.mxu0 %v3987_v24 }
 0x109   :  { %v2379_v35 = vpop.f32.mrf.mxu1  ;;  %3472 = vmatprep.subr.bf16.mxu1 %v3987_v24  ;;  %v2299_v37 = vadd.f32 %v2298_v34, %v5036_v15  ;;  %v5070_v38 = vadd.f32 %v2377_v28, %v2297_v31 }
 0x10a   :  { %2787 = vmatmul.mubr.bf16.gmra.mxu0 %v3984_v29  ;;  %v2302_v41 = vpop.f32.mrf.mxu0 }
 0x10b   :  { %2868 = vmatmul.mubr.bf16.gmra.mxu1 %v3990_v30  ;;  %v2383_v42 = vpop.f32.mrf.mxu1  ;;  %v5078_v43 = vadd.f32 %v2379_v35, %v2299_v37  ;;  %2911 = vmatpush1.bf16.msra.mxu0 %v3985_v33  ;;  %v2303_v45 = vadd.f32 %v2302_v41, %v5028_v12 }
 0x10c   :  { %3488 = vmatpush1.bf16.msra.mxu1 %v3985_v33  ;;  %2912 = vmatprep.subr.bf16.mxu0 %v3993_v36  ;;  %v2304_v47 = vpop.f32.mrf.mxu0  ;;  %v4015_v33 = vld [vmem:[%s5437_s1 + $0x800] ss:$8 sps:$4 sm:$0xff]  }
 0x10d   :  { %3473 = vmatprep.subr.bf16.mxu1 %v3993_v36  ;;  %v2385_v48 = vpop.f32.mrf.mxu1  ;;  %2796 = vmatprep.mubr.bf16.mxu0 %v3994_v39  ;;  %v2305_v49 = vadd.f32 %v2304_v47, %v5036_v15  ;;  %v5088_v50 = vadd.f32 %v2383_v42, %v2303_v45  ;;  %v4022_v36 = vld [vmem:[%s5437_s1 + $0x8f4] ss:$8 sps:$4 sm:$0xff]   ;;  %v3158_v42 = vcombine.low %v92_v14, %v92_v14  ;;  %v4020_v47 = vld [vmem:[%s5437_s1 + $0x8f0] ss:$8 sps:$4 sm:$0xff]   ;;  %v4031_v14 = vld [vmem:[%s5437_s1 + $0x8c0] ss:$8 sps:$4 sm:$0xff]  }
 0x10e   :  { %2877 = vmatprep.mubr.bf16.mxu1 %v4000_v40  ;;  %v2306_v53 = vpop.f32.mrf.mxu0 }
 0x10f   :  { %v2387_v54 = vpop.f32.mrf.mxu1  ;;  %2913 = vmatpush1.bf16.msra.mxu0 %v3991_v44  ;;  %v2307_v56 = vadd.f32 %v2306_v53, %v5028_v12  ;;  %v5100_v57 = vadd.f32 %v2385_v48, %v2305_v49 }
 0x110   :  { %3489 = vmatpush1.bf16.msra.mxu1 %v3991_v44  ;;  %2914 = vmatprep.subr.bf16.mxu0 %v3999_v46  ;;  %v2308_v59 = vpop.f32.mrf.mxu0  ;;  %v3160_v44 = vcombine.low %v93_v16, %v93_v16  ;;  %v4036_v16 = vld [vmem:[%s5437_s1 + $0x8b4] ss:$8 sps:$4 sm:$0xff]  }
 0x111   :  { %3474 = vmatprep.subr.bf16.mxu1 %v3999_v46  ;;  %v2389_v60 = vpop.f32.mrf.mxu1  ;;  %v2309_v63 = vadd.f32 %v2308_v59, %v5036_v15  ;;  %v5112_v0 = vadd.f32 %v2387_v54, %v2307_v56  ;;  %v4048_v56 = vld [vmem:[%s5438_s0 + $0x44] ss:$72 sps:$4 sm:$0xff]  }
 0x112   :  { %2797 = vmatmul.mubr.bf16.gmra.mxu0 %v3996_v51  ;;  %v2312_v1 = vpop.f32.mrf.mxu0  ;;  %v4027_v51 = vld [vmem:[%s5437_s1 + $0x8e4] ss:$8 sps:$4 sm:$0xff]  }
 0x113   :  { %2878 = vmatmul.mubr.bf16.gmra.mxu1 %v4002_v52  ;;  %v2393_v2 = vpop.f32.mrf.mxu1  ;;  %2915 = vmatpush1.bf16.msra.mxu0 %v3997_v55  ;;  %v2313_v4 = vadd.f32 %v2312_v1, %v5028_v12  ;;  %v5118_v5 = vadd.f32 %v2389_v60, %v2309_v63  ;;  %v4030_v1 = vld [vmem:[%s5437_s1 + $0x8d4] ss:$8 sps:$4 sm:$0xff]  }
 0x114   :  { %3490 = vmatpush1.bf16.msra.mxu1 %v3997_v55  ;;  %2916 = vmatprep.subr.bf16.mxu0 %v4005_v58  ;;  %v2314_v7 = vpop.f32.mrf.mxu0 }
 0x115   :  { %3475 = vmatprep.subr.bf16.mxu1 %v4005_v58  ;;  %v2395_v8 = vpop.f32.mrf.mxu1  ;;  %2806 = vmatprep.mubr.bf16.mxu0 %v4006_v61  ;;  %v2315_v10 = vadd.f32 %v2314_v7, %v5036_v15  ;;  %v5127_v11 = vadd.f32 %v2393_v2, %v2313_v4  ;;  %v4051_v58 = vld [vmem:[%s5438_s0 + $0x1f4] ss:$72 sps:$4 sm:$0xff]   ;;  %v4025_v61 = vld [vmem:[%s5437_s1 + $0x8e0] ss:$8 sps:$4 sm:$0xff]  }
 0x116   :  { %2887 = vmatprep.mubr.bf16.mxu1 %v4012_v62  ;;  %v2316_v17 = vpop.f32.mrf.mxu0 }
 0x117   :  { %v2397_v18 = vpop.f32.mrf.mxu1  ;;  %2917 = vmatpush1.bf16.msra.mxu0 %v4003_v3  ;;  %v2317_v20 = vadd.f32 %v2316_v17, %v5028_v12  ;;  %v5142_v21 = vadd.f32 %v2395_v8, %v2315_v10  ;;  %v4034_v17 = vld [vmem:[%s5437_s1 + $0x8b0] ss:$8 sps:$4 sm:$0xff]  }
 0x118   :  { %3491 = vmatpush1.bf16.msra.mxu1 %v4003_v3  ;;  %2918 = vmatprep.subr.bf16.mxu0 %v4011_v6  ;;  %v2318_v23 = vpop.f32.mrf.mxu0 }
 0x119   :  { %3476 = vmatprep.subr.bf16.mxu1 %v4011_v6  ;;  %v2399_v24 = vpop.f32.mrf.mxu1  ;;  %v2319_v28 = vadd.f32 %v2318_v23, %v5036_v15  ;;  %v5148_v29 = vadd.f32 %v2397_v18, %v2317_v20  ;;  %v4039_v18 = vld [vmem:[%s5437_s1 + $0x8a4] ss:$8 sps:$4 sm:$0xff]   ;;  %v4042_v20 = vld [vmem:[%s5437_s1 + $0x894] ss:$8 sps:$4 sm:$0xff]  }
 0x11a   :  { %2807 = vmatmul.mubr.bf16.gmra.mxu0 %v4008_v9  ;;  %v2322_v30 = vpop.f32.mrf.mxu0  ;;  %v4045_v23 = vld [vmem:[%s5437_s1 + $0x884] ss:$8 sps:$4 sm:$0xff]  }
 0x11b   :  { %2888 = vmatmul.mubr.bf16.gmra.mxu1 %v4014_v13  ;;  %v2403_v31 = vpop.f32.mrf.mxu1  ;;  %2919 = vmatpush1.bf16.msra.mxu0 %v4009_v19  ;;  %v2323_v34 = vadd.f32 %v2322_v30, %v5028_v12  ;;  %v5154_v35 = vadd.f32 %v2399_v24, %v2319_v28  ;;  %v4043_v24 = vld [vmem:[%s5437_s1 + $0x880] ss:$8 sps:$4 sm:$0xff]   ;;  %v4049_v28 = vld [vmem:[%s5438_s0 + $0x1f0] ss:$72 sps:$4 sm:$0xff]   ;;  %v4052_v30 = vld [vmem:[%s5438_s0 + $0xd4] ss:$72 sps:$4 sm:$0xff]  }
 0x11c   :  { %3492 = vmatpush1.bf16.msra.mxu1 %v4009_v19  ;;  %2920 = vmatprep.subr.bf16.mxu0 %v4017_v22  ;;  %v2324_v37 = vpop.f32.mrf.mxu0  ;;  %v4037_v19 = vld [vmem:[%s5437_s1 + $0x8a0] ss:$8 sps:$4 sm:$0xff]  }
 0x11d   :  { %3477 = vmatprep.subr.bf16.mxu1 %v4017_v22  ;;  %v2405_v39 = vpop.f32.mrf.mxu1  ;;  %2816 = vmatprep.mubr.bf16.mxu0 %v3159_v25  ;;  %v2325_v40 = vadd.f32 %v2324_v37, %v5036_v15  ;;  %v5160_v41 = vadd.f32 %v2403_v31, %v2323_v34  ;;  %v4040_v22 = vld [vmem:[%s5437_s1 + $0x890] ss:$8 sps:$4 sm:$0xff]   ;;  %v94_v25 = vld [vmem:[%s5438_s0 + $0x280] sm:$0xff] }
 0x11e   :  { %2897 = vmatprep.mubr.bf16.mxu1 %v3161_v27  ;;  %v2326_v45 = vpop.f32.mrf.mxu0  ;;  %v4046_v27 = vld [vmem:[%s5438_s0 + $0x40] ss:$72 sps:$4 sm:$0xff]   ;;  %v3163_v31 = vcombine.high %v94_v25, %v94_v25 }
 0x11f   :  { %v2407_v46 = vpop.f32.mrf.mxu1  ;;  %2921 = vmatpush1.bf16.msra.mxu0 %v4015_v33  ;;  %v2327_v48 = vadd.f32 %v2326_v45, %v5028_v12  ;;  %v5166_v49 = vadd.f32 %v2405_v39, %v2325_v40 }
 0x120   :  { %3493 = vmatpush1.bf16.msra.mxu1 %v4015_v33  ;;  %2922 = vmatprep.subr.bf16.mxu0 %v4022_v36  ;;  %v2328_v52 = vpop.f32.mrf.mxu0 }
 0x121   :  { %3478 = vmatprep.subr.bf16.mxu1 %v4022_v36  ;;  %v2409_v53 = vpop.f32.mrf.mxu1  ;;  %v2329_v54 = vadd.f32 %v2328_v52, %v5036_v15  ;;  %v5172_v55 = vadd.f32 %v2407_v46, %v2327_v48  ;;  %v4055_v46 = vld [vmem:[%s5438_s0 + $0xd0] ss:$72 sps:$4 sm:$0xff]  }
 0x122   :  { %2817 = vmatmul.mubr.bf16.gmra.mxu0 %v3158_v42  ;;  %v2332_v59 = vpop.f32.mrf.mxu0 }
 0x123   :  { %2898 = vmatmul.mubr.bf16.gmra.mxu1 %v3160_v44  ;;  %v2413_v60 = vpop.f32.mrf.mxu1  ;;  %2923 = vmatpush2.bf16.msra.mxu0 %v4020_v47  ;;  %v2333_v62 = vadd.f32 %v2332_v59, %v5028_v12  ;;  %v5184_v63 = vadd.f32 %v2409_v53, %v2329_v54  ;;  %v4028_v12 = vld [vmem:[%s5437_s1 + $0x8d0] ss:$8 sps:$4 sm:$0xff]  }
 0x124   :  { %3494 = vmatpush2.bf16.msra.mxu1 %v4020_v47  ;;  %2924 = vmatprep.subr.bf16.mxu0 %v4027_v51  ;;  %v2334_v2 = vpop.f32.mrf.mxu0  ;;  %v3162_v47 = vcombine.low %v94_v25, %v94_v25 }
 0x125   :  { %3479 = vmatprep.subr.bf16.mxu1 %v4027_v51  ;;  %v2415_v3 = vpop.f32.mrf.mxu1  ;;  %v2335_v4 = vadd.f32 %v2334_v2, %v5036_v15  ;;  %v5190_v6 = vadd.f32 %v2413_v60, %v2333_v62  ;;  %2938 = vmatprep.mubr.bf16.mxu0 %v4048_v56  ;;  %v4033_v15 = vld [vmem:[%s5437_s1 + $0x8c4] ss:$8 sps:$4 sm:$0xff]  }
 0x126   :  { %2968 = vmatprep.mubr.bf16.mxu1 %v4051_v58  ;;  %v2336_v7 = vpop.f32.mrf.mxu0 }
 0x127   :  { %v2417_v8 = vpop.f32.mrf.mxu1  ;;  %2925 = vmatpush2.bf16.msra.mxu0 %v4025_v61  ;;  %v5195_v9 = vadd.f32 %v2415_v3, %v2335_v4 }
 0x128   :  { %3495 = vmatpush2.bf16.msra.mxu1 %v4025_v61  ;;  %2926 = vmatprep.subr.bf16.mxu0 %v4030_v1  ;;  %v2337_v10 = vpop.f32.mrf.mxu0 }
 0x129   :  { %3480 = vmatprep.subr.bf16.mxu1 %v4030_v1  ;;  %v2418_v13 = vpop.f32.mrf.mxu1 }
 0x12b   :  { %2927 = vmatpush2.bf16.msra.mxu0 %v4028_v12 }
 0x12c   :  { %3496 = vmatpush2.bf16.msra.mxu1 %v4028_v12  ;;  %2928 = vmatprep.subr.bf16.mxu0 %v4033_v15 }
 0x12d   :  { %3481 = vmatprep.subr.bf16.mxu1 %v4033_v15 }
 0x12f   :  { %2929 = vmatpush2.bf16.msra.mxu0 %v4031_v14 }
 0x130   :  { %3497 = vmatpush2.bf16.msra.mxu1 %v4031_v14  ;;  %2930 = vmatprep.subr.bf16.mxu0 %v4036_v16 }
 0x131   :  { %3482 = vmatprep.subr.bf16.mxu1 %v4036_v16 }
 0x133   :  { %2931 = vmatpush2.bf16.msra.mxu0 %v4034_v17 }
 0x134   :  { %3498 = vmatpush2.bf16.msra.mxu1 %v4034_v17  ;;  %2932 = vmatprep.subr.bf16.mxu0 %v4039_v18 }
 0x135   :  { %3483 = vmatprep.subr.bf16.mxu1 %v4039_v18 }
 0x137   :  { %2933 = vmatpush2.bf16.msra.mxu0 %v4037_v19 }
 0x138   :  { %3499 = vmatpush2.bf16.msra.mxu1 %v4037_v19  ;;  %2934 = vmatprep.subr.bf16.mxu0 %v4042_v20 }
 0x139   :  { %3484 = vmatprep.subr.bf16.mxu1 %v4042_v20 }
 0x13b   :  { %2935 = vmatpush2.bf16.msra.mxu0 %v4040_v22 }
 0x13c   :  { %3500 = vmatpush2.bf16.msra.mxu1 %v4040_v22  ;;  %2936 = vmatprep.subr.bf16.mxu0 %v4045_v23 }
 0x13d   :  { %3485 = vmatprep.subr.bf16.mxu1 %v4045_v23 }
 0x13f   :  { %2937 = vmatpush2.bf16.msra.mxu0 %v4043_v24 }
 0x140   :  { %3501 = vmatpush2.bf16.msra.mxu1 %v4043_v24 }
 0x142   :  { %v2454_v33 = vpop.f32.mrf.mxu0  ;;  %2939 = vmatmul.mubr.bf16.vlgmr.msra.gmra.mxu0 %v4046_v27 }
 0x143   :  { %2969 = vmatmul.mubr.bf16.vlgmr.msra.gmra.mxu1 %v4049_v28  ;;  %v2535_v34 = vpop.f32.mrf.mxu1  ;;  %v2455_v36 = vadd.f32 %v2454_v33, %v5052_v26  ;;  %2948 = vmatprep.mubr.bf16.mxu0 %v4052_v30  ;;  %v4057_v26 = vld [vmem:[%s5438_s0 + $0x164] ss:$72 sps:$4 sm:$0xff]  }
 0x144   :  { %2978 = vmatprep.mubr.bf16.mxu1 %v3163_v31  ;;  %v2456_v37 = vpop.f32.mrf.mxu0 }
 0x145   :  { %v2537_v39 = vpop.f32.mrf.mxu1  ;;  %v2457_v40 = vadd.f32 %v2456_v37, %v5061_v32  ;;  %v5241_v42 = vadd.f32 %v2535_v34, %v2455_v36 }
 0x146   :  { %v2458_v44 = vpop.f32.mrf.mxu0 }
 0x147   :  { %v2539_v45 = vpop.f32.mrf.mxu1  ;;  %v2459_v48 = vadd.f32 %v2458_v44, %v5070_v38  ;;  %v5247_v51 = vadd.f32 %v2537_v39, %v2457_v40 }
 0x148   :  { %v2460_v52 = vpop.f32.mrf.mxu0 }
 0x149   :  { %v2541_v53 = vpop.f32.mrf.mxu1  ;;  %v2461_v32 = vadd.f32 %v2460_v52, %v5078_v43  ;;  %v5253_v54 = vadd.f32 %v2539_v45, %v2459_v48  ;;  %v4059_v43 = vld [vmem:[%s5438_s0 + $0x160] ss:$72 sps:$4 sm:$0xff]  }
 0x14a   :  { %v2464_v56 = vpop.f32.mrf.mxu0  ;;  %2949 = vmatmul.mubr.bf16.gmra.mxu0 %v4055_v46 }
 0x14b   :  { %2979 = vmatmul.mubr.bf16.gmra.mxu1 %v3162_v47  ;;  %v2545_v58 = vpop.f32.mrf.mxu1  ;;  %v2465_v59 = vadd.f32 %v2464_v56, %v5088_v50  ;;  %v5256_v60 = vadd.f32 %v2541_v53, %v2461_v32  ;;  %2958 = vmatprep.mubr.bf16.mxu0 %v4057_v26 }
 0x14c   :  { %v2466_v38 = vpop.f32.mrf.mxu0 }
 0x14d   :  { %v2547_v61 = vpop.f32.mrf.mxu1  ;;  %v2467_v62 = vadd.f32 %v2466_v38, %v5100_v57  ;;  %v5259_v1 = vadd.f32 %v2545_v58, %v2465_v59 }
 0x14e   :  { %v2468_v2 = vpop.f32.mrf.mxu0 }
 0x14f   :  { %v2549_v3 = vpop.f32.mrf.mxu1  ;;  %v2469_v4 = vadd.f32 %v2468_v2, %v5112_v0  ;;  %v5265_v7 = vadd.f32 %v2547_v61, %v2467_v62 }
 0x150   :  { %v2470_v50 = vpop.f32.mrf.mxu0 }
 0x151   :  { %v2551_v8 = vpop.f32.mrf.mxu1  ;;  %v2471_v12 = vadd.f32 %v2470_v50, %v5118_v5  ;;  %v5268_v15 = vadd.f32 %v2549_v3, %v2469_v4 }
 0x152   :  { %v2474_v10 = vpop.f32.mrf.mxu0  ;;  %2959 = vmatmul.mubr.bf16.gmra.mxu0 %v4059_v43 }
 0x153   :  { %v2555_v57 = vpop.f32.mrf.mxu1  ;;  %v2475_v13 = vadd.f32 %v2474_v10, %v5127_v11  ;;  %v5271_v14 = vadd.f32 %v2551_v8, %v2471_v12 }
 0x154   :  { %v2476_v16 = vpop.f32.mrf.mxu0 }
 0x155   :  { %v2557_v17 = vpop.f32.mrf.mxu1  ;;  %v2477_v18 = vadd.f32 %v2476_v16, %v5142_v21  ;;  %v5274_v0 = vadd.f32 %v2555_v57, %v2475_v13 }
 0x156   :  { %v2478_v19 = vpop.f32.mrf.mxu0 }
 0x157   :  { %v2559_v20 = vpop.f32.mrf.mxu1  ;;  %v2479_v22 = vadd.f32 %v2478_v19, %v5148_v29  ;;  %v5277_v5 = vadd.f32 %v2557_v17, %v2477_v18 }
 0x158   :  { %v2480_v23 = vpop.f32.mrf.mxu0 }
 0x159   :  { %v2561_v24 = vpop.f32.mrf.mxu1  ;;  %v2481_v25 = vadd.f32 %v2480_v23, %v5154_v35  ;;  %v5280_v27 = vadd.f32 %v2559_v20, %v2479_v22 }
 0x15a   :  { %v2484_v11 = vpop.f32.mrf.mxu0 }
 0x15b   :  { %v2565_v28 = vpop.f32.mrf.mxu1  ;;  %v2485_v30 = vadd.f32 %v2484_v11, %v5160_v41  ;;  %v5283_v31 = vadd.f32 %v2561_v24, %v2481_v25 }
 0x15c   :  { %v2486_v21 = vpop.f32.mrf.mxu0 }
 0x15d   :  { %v2567_v33 = vpop.f32.mrf.mxu1  ;;  %v2487_v34 = vadd.f32 %v2486_v21, %v5166_v49  ;;  %v5286_v36 = vadd.f32 %v2565_v28, %v2485_v30 }
 0x15e   :  { %v2488_v29 = vpop.f32.mrf.mxu0 }
 0x15f   :  { %v2569_v37 = vpop.f32.mrf.mxu1  ;;  %v2489_v39 = vadd.f32 %v2488_v29, %v5172_v55  ;;  %v5289_v40 = vadd.f32 %v2567_v33, %v2487_v34 }
 0x160   :  { %v2490_v35 = vpop.f32.mrf.mxu0 }
 0x161   :  { %v2571_v44 = vpop.f32.mrf.mxu1  ;;  %v2491_v45 = vadd.f32 %v2490_v35, %v5184_v63  ;;  %v5292_v46 = vadd.f32 %v2569_v37, %v2489_v39 }
 0x162   :  { %v2494_v41 = vpop.f32.mrf.mxu0 }
 0x163   :  { %v2575_v47 = vpop.f32.mrf.mxu1  ;;  %v2495_v48 = vadd.f32 %v2494_v41, %v5190_v6  ;;  %v5295_v26 = vadd.f32 %v2571_v44, %v2491_v45 }
 0x164   :  { %v2496_v49 = vpop.f32.mrf.mxu0 }
 0x165   :  { %v2577_v52 = vpop.f32.mrf.mxu1  ;;  %v2497_v53 = vadd.f32 %v2496_v49, %v5195_v9  ;;  %v5298_v32 = vadd.f32 %v2575_v47, %v2495_v48 }
 0x166   :  { %v2498_v55 = vpop.f32.mrf.mxu0 }
 0x167   :  { %v2579_v56 = vpop.f32.mrf.mxu1  ;;  %v5300_v58 = vadd.f32 %v2577_v52, %v2497_v53 }
 0x168   :  { %v2499_v59 = vpop.f32.mrf.mxu0 }
 0x169   :  { %v2580_v63 = vpop.f32.mrf.mxu1 }
 0x182   :  { %v2616_v38 = vpop.f32.mrf.mxu0 }
 0x183   :  { %v2697_v61 = vpop.f32.mrf.mxu1  ;;  %v2617_v62 = vadd.f32 %v2616_v38, %v5241_v42 }
 0x184   :  { %v2618_v2 = vpop.f32.mrf.mxu0 }
 0x185   :  { %v2699_v6 = vpop.f32.mrf.mxu1  ;;  %v2619_v3 = vadd.f32 %v2618_v2, %v5247_v51  ;;  %v5304_v43 = vadd.f32 %v2697_v61, %v2617_v62 }
 0x186   :  { %v2620_v4 = vpop.f32.mrf.mxu0 }
 0x187   :  { %v2701_v9 = vpop.f32.mrf.mxu1  ;;  %v2621_v50 = vadd.f32 %v2620_v4, %v5253_v54  ;;  %v5307_v8 = vadd.f32 %v2699_v6, %v2619_v3 }
 0x188   :  { %v2622_v12 = vpop.f32.mrf.mxu0 }
 0x189   :  { %v2703_v10 = vpop.f32.mrf.mxu1  ;;  %v2623_v57 = vadd.f32 %v2622_v12, %v5256_v60  ;;  %v5310_v13 = vadd.f32 %v2701_v9, %v2621_v50 }
 0x18a   :  { %v2626_v16 = vpop.f32.mrf.mxu0 }
 0x18b   :  { %v2707_v42 = vpop.f32.mrf.mxu1  ;;  %v2627_v17 = vadd.f32 %v2626_v16, %v5259_v1  ;;  %v5313_v18 = vadd.f32 %v2703_v10, %v2623_v57 }
 0x18c   :  { %v2628_v51 = vpop.f32.mrf.mxu0 }
 0x18d   :  { %v2709_v19 = vpop.f32.mrf.mxu1  ;;  %v2629_v20 = vadd.f32 %v2628_v51, %v5265_v7  ;;  %v5316_v22 = vadd.f32 %v2707_v42, %v2627_v17 }
 0x18e   :  { %v2630_v54 = vpop.f32.mrf.mxu0 }
 0x18f   :  { %v2711_v23 = vpop.f32.mrf.mxu1  ;;  %v2631_v24 = vadd.f32 %v2630_v54, %v5268_v15  ;;  %v5319_v25 = vadd.f32 %v2709_v19, %v2629_v20 }
 0x190   :  { %v2632_v60 = vpop.f32.mrf.mxu0 }
 0x191   :  { %v2713_v11 = vpop.f32.mrf.mxu1  ;;  %v2633_v28 = vadd.f32 %v2632_v60, %v5271_v14  ;;  %v5322_v30 = vadd.f32 %v2711_v23, %v2631_v24 }
 0x192   :  { %v2636_v1 = vpop.f32.mrf.mxu0 }
 0x193   :  { %v2717_v21 = vpop.f32.mrf.mxu1  ;;  %v2637_v33 = vadd.f32 %v2636_v1, %v5274_v0  ;;  %v5325_v34 = vadd.f32 %v2713_v11, %v2633_v28 }
 0x194   :  { %v2638_v7 = vpop.f32.mrf.mxu0 }
 0x195   :  { %v2719_v29 = vpop.f32.mrf.mxu1  ;;  %v2639_v37 = vadd.f32 %v2638_v7, %v5277_v5  ;;  %v5328_v39 = vadd.f32 %v2717_v21, %v2637_v33 }
 0x196   :  { %v2640_v15 = vpop.f32.mrf.mxu0 }
 0x197   :  { %v2721_v35 = vpop.f32.mrf.mxu1  ;;  %v2641_v44 = vadd.f32 %v2640_v15, %v5280_v27  ;;  %v5331_v45 = vadd.f32 %v2719_v29, %v2639_v37 }
 0x198   :  { %v2642_v14 = vpop.f32.mrf.mxu0 }
 0x199   :  { %v2723_v41 = vpop.f32.mrf.mxu1  ;;  %v2643_v47 = vadd.f32 %v2642_v14, %v5283_v31  ;;  %v2722_v48 = vadd.f32 %v2721_v35, %v2641_v44 }
 0x19a   :  { %v2646_v0 = vpop.f32.mrf.mxu0 }
 0x19b   :  { %v2727_v49 = vpop.f32.mrf.mxu1  ;;  %v2647_v52 = vadd.f32 %v2646_v0, %v5286_v36  ;;  %v5335_v53 = vadd.f32 %v2723_v41, %v2643_v47 }
 0x19c   :  { %v2648_v5 = vpop.f32.mrf.mxu0 }
 0x19d   :  { %v2729_v55 = vpop.f32.mrf.mxu1  ;;  %v2649_v56 = vadd.f32 %v2648_v5, %v5289_v40  ;;  %v5338_v59 = vadd.f32 %v2727_v49, %v2647_v52 }
 0x19e   :  { %v2650_v27 = vpop.f32.mrf.mxu0 }
 0x19f   :  { %v2731_v63 = vpop.f32.mrf.mxu1  ;;  %v2651_v38 = vadd.f32 %v2650_v27, %v5292_v46  ;;  %v5341_v61 = vadd.f32 %v2729_v55, %v2649_v56 }
 0x1a0   :  { %v2652_v31 = vpop.f32.mrf.mxu0 }
 0x1a1   :  { %v2733_v62 = vpop.f32.mrf.mxu1  ;;  %v2653_v2 = vadd.f32 %v2652_v31, %v5295_v26  ;;  %v5344_v6 = vadd.f32 %v2731_v63, %v2651_v38 }
 0x1a2   :  { %v2656_v36 = vpop.f32.mrf.mxu0 }
 0x1a3   :  { %v2737_v3 = vpop.f32.mrf.mxu1  ;;  %v2657_v4 = vadd.f32 %v2656_v36, %v5298_v32  ;;  %v5347_v9 = vadd.f32 %v2733_v62, %v2653_v2 }
 0x1a4   :  { %v2658_v40 = vpop.f32.mrf.mxu0 }
 0x1a5   :  { %v2739_v50 = vpop.f32.mrf.mxu1  ;;  %v2659_v12 = vadd.f32 %v2658_v40, %v5300_v58  ;;  %v5350_v10 = vadd.f32 %v2737_v3, %v2657_v4 }
 0x1a6   :  { %v2660_v46 = vpop.f32.mrf.mxu0 }
 0x1a7   :  { %v2741_v57 = vpop.f32.mrf.mxu1  ;;  %v5352_v16 = vadd.f32 %v2739_v50, %v2659_v12 }
 0x1a8   :  { %v2661_v42 = vpop.f32.mrf.mxu0 }
 0x1a9   :  { %v2742_v26 = vpop.f32.mrf.mxu1 }
 0x1c2   :  { %v2778_v17 = vpop.f32.mrf.mxu0 }
 0x1c3   :  { %v2859_v51 = vpop.f32.mrf.mxu1  ;;  %v2779_v19 = vadd.f32 %v2778_v17, %v5304_v43 }
 0x1c4   :  { %v2780_v20 = vpop.f32.mrf.mxu0 }
 0x1c5   :  { %v2861_v32 = vpop.f32.mrf.mxu1  ;;  %v2860_v54 = vadd.f32 %v2859_v51, %v2779_v19  ;;  %v2781_v51 = vadd.f32 %v2780_v20, %v5307_v8 }
 0x1c6   :  { %v2782_v23 = vpop.f32.mrf.mxu0 }
 0x1c7   :  { %v2863_v24 = vpop.f32.mrf.mxu1  ;;  %v2783_v60 = vadd.f32 %v2782_v23, %v5310_v13 }
 0x1c8   :  { %v2784_v58 = vpop.f32.mrf.mxu0 }
 0x1c9   :  { %v5356_v11 = vpop.f32.mrf.mxu1  ;;  %v5358_v28 = vadd.f32 %v2863_v24, %v2783_v60 }
 0x1ca   :  { %v2788_v1 = vpop.f32.mrf.mxu0 }
 0x1cb   :  { %v2869_v21 = vpop.f32.mrf.mxu1  ;;  %v2789_v33 = vadd.f32 %v2788_v1, %v5316_v22 }
 0x1cc   :  { %v2790_v7 = vpop.f32.mrf.mxu0 }
 0x1cd   :  { %v5361_v29 = vpop.f32.mrf.mxu1  ;;  %v5363_v43 = vadd.f32 %v2869_v21, %v2789_v33  ;;  %v2862_v21 = vadd.f32 %v2861_v32, %v2781_v51 }
 0x1ce   :  { %v2792_v37 = vpop.f32.mrf.mxu0 }
 0x1cf   :  { %v2873_v15 = vpop.f32.mrf.mxu1  ;;  %v2793_v35 = vadd.f32 %v2792_v37, %v5322_v30 }
 0x1d0   :  { %v5366_v44 = vpop.f32.mrf.mxu0 }
 0x1d1   :  { %v5368_v13 = vpop.f32.mrf.mxu1  ;;  %v5370_v14 = vadd.f32 %v2873_v15, %v2793_v35  ;;  %v2785_v35 = vadd.f32 %v2784_v58, %v5313_v18 }
 0x1d2   :  { %v2798_v41 = vpop.f32.mrf.mxu0 }
 0x1d3   :  { %v2879_v47 = vpop.f32.mrf.mxu1  ;;  %v2799_v0 = vadd.f32 %v2798_v41, %v5328_v39  ;;  %v2866_v18 = vadd.f32 %v5356_v11, %v2785_v35 }
 0x1d4   :  { %v5373_v22 = vpop.f32.mrf.mxu0 }
 0x1d5   :  { %v5375_v49 = vpop.f32.mrf.mxu1  ;;  %v5377_v52 = vadd.f32 %v2879_v47, %v2799_v0  ;;  %v2801_v51 = vadd.f32 %v5373_v22, %v5331_v45 }
 0x1d6   :  { %v2802_v5 = vpop.f32.mrf.mxu0 }
 0x1d7   :  { %v2883_v55 = vpop.f32.mrf.mxu1  ;;  %v2803_v56 = vadd.f32 %v2802_v5, %v2722_v48 }
 0x1d8   :  { %v5379_v30 = vpop.f32.mrf.mxu0 }
 0x1d9   :  { %v5381_v27 = vpop.f32.mrf.mxu1  ;;  %v5383_v63 = vadd.f32 %v2883_v55, %v2803_v56 }
 0x1da   :  { %v2808_v38 = vpop.f32.mrf.mxu0 }
 0x1db   :  { %v2889_v31 = vpop.f32.mrf.mxu1  ;;  %v2809_v17 = vadd.f32 %v2808_v38, %v5338_v59 }
 0x1dc   :  { %v2810_v62 = vpop.f32.mrf.mxu0 }
 0x1dd   :  { %v2891_v2 = vpop.f32.mrf.mxu1  ;;  %v2811_v19 = vadd.f32 %v2810_v62, %v5341_v61  ;;  %v2890_v23 = vadd.f32 %v2889_v31, %v2809_v17  ;;  %v2791_v61 = vadd.f32 %v2790_v7, %v5319_v25  ;;  %v2795_v25 = vadd.f32 %v5366_v44, %v5325_v34 }
 0x1de   :  { %v2812_v39 = vpop.f32.mrf.mxu0 }
 0x1df   :  { %v2893_v36 = vpop.f32.mrf.mxu1  ;;  %v2813_v24 = vadd.f32 %v2812_v39, %v5344_v6  ;;  %v2892_v33 = vadd.f32 %v2891_v2, %v2811_v19 }
 0x1e0   :  { %v2814_v3 = vpop.f32.mrf.mxu0 }
 0x1e1   :  { %v2895_v4 = vpop.f32.mrf.mxu1  ;;  %v2815_v41 = vadd.f32 %v2814_v3, %v5347_v9  ;;  %v2894_v5 = vadd.f32 %v2893_v36, %v2813_v24 }
 0x1e2   :  { %v2818_v40 = vpop.f32.mrf.mxu0 }
 0x1e3   :  { %v2899_v50 = vpop.f32.mrf.mxu1  ;;  %v2819_v59 = vadd.f32 %v2818_v40, %v5350_v10  ;;  %v2896_v9 = vadd.f32 %v2895_v4, %v2815_v41  ;;  %v2882_v41 = vadd.f32 %v5375_v49, %v2801_v51 }
 0x1e4   :  { %v2820_v12 = vpop.f32.mrf.mxu0 }
 0x1e5   :  { %v2901_v46 = vpop.f32.mrf.mxu1  ;;  %v2821_v6 = vadd.f32 %v2820_v12, %v5352_v16  ;;  %v2900_v7 = vadd.f32 %v2899_v50, %v2819_v59 }
 0x1e6   :  { %v2822_v57 = vpop.f32.mrf.mxu0 }
 0x1e7   :  { %v2903_v48 = vpop.f32.mrf.mxu1  ;;  %v2872_v57 = vadd.f32 %v5361_v29, %v2791_v61  ;;  %v2876_v29 = vadd.f32 %v5368_v13, %v2795_v25 }
 0x1e8   :  { %v2823_v42 = vpop.f32.mrf.mxu0  ;;  %v2902_v48 = vadd.f32 %v2901_v46, %v2821_v6 }
 0x1e9   :  { %v2904_v26 = vpop.f32.mrf.mxu1 }
 0x202   :  { %v2940_v60 = vpop.f32.mrf.mxu0 }
 0x203   :  { %v2970_v1 = vpop.f32.mrf.mxu1  ;;  %v2941_v37 = vadd.f32 %v2940_v60, %v2860_v54 }
 0x204   :  { %v2971_v15 = vadd.f32 %v2970_v1, %v2890_v23  ;;  %v2942_v47 = vpop.f32.mrf.mxu0 }
 0x205   :  { %v2972_v0 = vpop.f32.mrf.mxu1  ;;  %v2943_v8 = vadd.f32 %v2942_v47, %v2862_v21  ;;  %v2987_v56 = vmax.f32 %v2941_v37, 0.0 }
 0x206   :  { %v2973_v20 = vadd.f32 %v2972_v0, %v2892_v33  ;;  %v2944_v55 = vpop.f32.mrf.mxu0  ;;  %v2999_v54 = vmax.f32 %v2971_v15, 0.0  ;;  %v2805_v0 = vadd.f32 %v5379_v30, %v5335_v53 }
 0x207   :  { %v2974_v32 = vpop.f32.mrf.mxu1  ;;  %v2988_v38 = vmax.f32 %v2943_v8, 0.0  ;;  %v2945_v58 = vadd.f32 %v2944_v55, %v5358_v28 }
 0x208   :  { %v3000_v31 = vmax.f32 %v2973_v20, 0.0  ;;  %v2975_v62 = vadd.f32 %v2974_v32, %v2894_v5  ;;  %v2946_v10 = vpop.f32.mrf.mxu0  ;;  %v2886_v6 = vadd.f32 %v5381_v27, %v2805_v0 }
 0x209   :  { %v2976_v2 = vpop.f32.mrf.mxu1  ;;  %v3461_v39 = vpack.c.bf16 %v2988_v38, %v2987_v56  ;;  %v2947_v36 = vadd.f32 %v2946_v10, %v2866_v18  ;;  %v2989_v28 = vmax.f32 %v2945_v58, 0.0 }
 0x20a   :  { %v3467_v16 = vpack.c.bf16 %v3000_v31, %v2999_v54  ;;  %v2977_v3 = vadd.f32 %v2976_v2, %v2896_v9  ;;  %v2950_v40 = vpop.f32.mrf.mxu0  ;;  %v3001_v44 = vmax.f32 %v2975_v62, 0.0 }
 0x20b   :  { %v2980_v12 = vpop.f32.mrf.mxu1  ;;  %3061 = vst [vmem:[%s5440_s3] sm:$0xff] %v3461_v39  ;;  %v2951_v34 = vadd.f32 %v2950_v40, %v5363_v43  ;;  %v2990_v4 = vmax.f32 %v2947_v36, 0.0 }
 0x20c   :  { %3067 = vst [vmem:[%s5440_s3 + $0x30] sm:$0xff] %v3467_v16  ;;  %v2981_v11 = vadd.f32 %v2980_v12, %v2900_v7  ;;  %v3002_v50 = vmax.f32 %v2977_v3, 0.0  ;;  %v2952_v42 = vpop.f32.mrf.mxu0 }
 0x20d   :  { %v2982_v26 = vpop.f32.mrf.mxu1  ;;  %v2953_v46 = vadd.f32 %v2952_v42, %v2872_v57  ;;  %v3462_v19 = vpack.c.bf16 %v2990_v4, %v2989_v28  ;;  %v2991_v24 = vmax.f32 %v2951_v34, 0.0 }
 0x20e   :  { %v2983_v17 = vadd.f32 %v2982_v26, %v2902_v48  ;;  %v3468_v23 = vpack.c.bf16 %v3002_v50, %v3001_v44  ;;  %v2954_v60 = vpop.f32.mrf.mxu0  ;;  %v3003_v43 = vmax.f32 %v2981_v11, 0.0 }
 0x20f   :  { %v2984_v1 = vpop.f32.mrf.mxu1  ;;  %v2992_v21 = vmax.f32 %v2953_v46, 0.0  ;;  %v2955_v37 = vadd.f32 %v2954_v60, %v5370_v14  ;;  %3062 = vst [vmem:[%s5440_s3 + $0x8] sm:$0xff] %v3462_v19 }
 0x210   :  { %v3004_v33 = vmax.f32 %v2983_v17, 0.0  ;;  %3068 = vst [vmem:[%s5440_s3 + $0x38] sm:$0xff] %v3468_v23  ;;  %v2956_v13 = vpop.f32.mrf.mxu0 }
 0x211   :  { %v2985_v45 = vpop.f32.mrf.mxu1  ;;  %v3463_v22 = vpack.c.bf16 %v2992_v21, %v2991_v24  ;;  %v2957_v35 = vadd.f32 %v2956_v13, %v2876_v29  ;;  %v2993_v14 = vmax.f32 %v2955_v37, 0.0 }
 0x212   :  { %v3469_v15 = vpack.c.bf16 %v3004_v33, %v3003_v43  ;;  %v2960_v47 = vpop.f32.mrf.mxu0 }
 0x213   :  { %3063 = vst [vmem:[%s5440_s3 + $0x10] sm:$0xff] %v3463_v22  ;;  %v2994_v59 = vmax.f32 %v2957_v35, 0.0  ;;  %v2961_v8 = vadd.f32 %v2960_v47, %v5377_v52 }
 0x214   :  { %3069 = vst [vmem:[%s5440_s3 + $0x40] sm:$0xff] %v3469_v15  ;;  %v2962_v20 = vpop.f32.mrf.mxu0 }
 0x215   :  { %v3464_v61 = vpack.c.bf16 %v2994_v59, %v2993_v14  ;;  %v2963_v5 = vadd.f32 %v2962_v20, %v2882_v41  ;;  %v2995_v53 = vmax.f32 %v2961_v8, 0.0 }
 0x216   :  { %v2964_v49 = vpop.f32.mrf.mxu0 }
 0x217   :  { %3064 = vst [vmem:[%s5440_s3 + $0x18] sm:$0xff] %v3464_v61  ;;  %v2996_v30 = vmax.f32 %v2963_v5, 0.0  ;;  %v2965_v55 = vadd.f32 %v2964_v49, %v5383_v63 }
 0x218   :  { %v2966_v32 = vpop.f32.mrf.mxu0 }
 0x219   :  { %v3465_v56 = vpack.c.bf16 %v2996_v30, %v2995_v53  ;;  %v2967_v54 = vadd.f32 %v2966_v32, %v2886_v6  ;;  %v2997_v52 = vmax.f32 %v2965_v55, 0.0 }
 0x21b   :  { %3065 = vst [vmem:[%s5440_s3 + $0x20] sm:$0xff] %v3465_v56  ;;  %v2998_v38 = vmax.f32 %v2967_v54, 0.0 }
 0x21d   :  { %v3466_v31 = vpack.c.bf16 %v2998_v38, %v2997_v52 }
 0x21f   :  { %3066 = vst [vmem:[%s5440_s3 + $0x28] sm:$0xff] %v3466_v31 }

// kernel: _lambda_.11
= control target key start
LH: loop header
LB: loop body
LE: loop exit
PB: predicated region body
PF: predicated region fallthrough
CT: control target
= control target key end

     0   :  { %s616_s0 = inlined_call_operand.vmem [shape: f32[2,6,6,256], index: 0, kind: input, shape index: {}]   ;;  %s617_s1 = inlined_call_operand.hbm [shape: f32[2,2,2,256], index: 1, kind: output, shape index: {}]  }
   0x1   :  { %v9_v0 = vld [vmem:[%s616_s0] ss:$8 sm:$0x3]  ;;  %v269_v1 = vld [vmem:[%s616_s0 + $0x1] ss:$8 sm:$0x3] }
   0x2   :  { %v16_v2 = vmax.f32 %v9_v0, %v269_v1  ;;  %v271_v3 = vld [vmem:[%s616_s0 + $0x2] ss:$8 sm:$0x3]  ;;  %v273_v4 = vld [vmem:[%s616_s0 + $0x10] ss:$8 sm:$0x3] }
   0x3   :  { %v275_v6 = vld [vmem:[%s616_s0 + $0x11] ss:$8 sm:$0x3] }
   0x4   :  { %v22_v5 = vmax.f32 %v16_v2, %v271_v3 }
   0x5   :  { %6 = vsyncpa [#allocation3], 0  ;;  %v268_v8 = vld [vmem:[%s616_s0 + $0x60] ss:$8 sm:$0x3]  ;;  %v60_v17 = vlaneseq  ;;  %s364_s5 = smov [#allocation2]  }
   0x6   :  { %v28_v7 = vmax.f32 %v22_v5, %v273_v4  ;;  %v270_v9 = vld [vmem:[%s616_s0 + $0x61] ss:$8 sm:$0x3]  ;;  %v277_v10 = vld [vmem:[%s616_s0 + $0x12] ss:$8 sm:$0x3] }
   0x7   :  { %v17_v11 = vmax.f32 %v268_v8, %v270_v9  ;;  %v272_v12 = vld [vmem:[%s616_s0 + $0x62] ss:$8 sm:$0x3]  ;;  %v274_v14 = vld [vmem:[%s616_s0 + $0x70] ss:$8 sm:$0x3] }
   0x8   :  { %v34_v13 = vmax.f32 %v28_v7, %v275_v6  ;;  %v279_v15 = vld [vmem:[%s616_s0 + $0x20] ss:$8 sm:$0x3]  ;;  %v281_v16 = vld [vmem:[%s616_s0 + $0x21] ss:$8 sm:$0x3] }
   0x9   :  { %v23_v18 = vmax.f32 %v17_v11, %v272_v12  ;;  %v276_v20 = vld [vmem:[%s616_s0 + $0x71] ss:$8 sm:$0x3]  ;;  %v285_v21 = vld [vmem:[%s616_s0 + $0x2] ss:$8 sm:$0x3] }
   0xa   :  { %v40_v19 = vmax.f32 %v34_v13, %v277_v10  ;;  %v287_v23 = vld [vmem:[%s616_s0 + $0x3] ss:$8 sm:$0x3]  ;;  %v289_v24 = vld [vmem:[%s616_s0 + $0x4] ss:$8 sm:$0x3] }
   0xb   :  { %v29_v22 = vmax.f32 %v23_v18, %v274_v14  ;;  %v283_v26 = vld [vmem:[%s616_s0 + $0x22] ss:$8 sm:$0x3]  ;;  %v278_v27 = vld [vmem:[%s616_s0 + $0x72] ss:$8 sm:$0x3]  ;;  %v73_v28 = vmax.f32 %v285_v21, %v287_v23 }
   0xc   :  { %v46_v25 = vmax.f32 %v40_v19, %v279_v15  ;;  %vm431_vm0 = vcmp.lt.s32.totalorder %v60_v17, 256  ;;  %v291_v31 = vld [vmem:[%s616_s0 + $0x12] ss:$8 sm:$0x3]  ;;  %s218_s6 = sshll.u32 %s364_s5, 4  ;;  %s219_s6 = int_to_ptr.vmem [resolvable:$true] %s218_s6 }
   0xd   :  { %v35_v30 = vmax.f32 %v29_v22, %v276_v20  ;;  %v280_v33 = vld [vmem:[%s616_s0 + $0x80] ss:$8 sm:$0x3]  ;;  %v79_v34 = vmax.f32 %v73_v28, %v289_v24  ;;  %v293_v35 = vld [vmem:[%s616_s0 + $0x13] ss:$8 sm:$0x3]  ;;  %p347_p1 = scmp.lt.s32.totalorder %s219_s6, %s219_s6 }
   0xe   :  { %v52_v32 = vmax.f32 %v46_v25, %v281_v16  ;;  %v286_v37 = vld [vmem:[%s616_s0 + $0x62] ss:$8 sm:$0x3]  ;;  %v288_v38 = vld [vmem:[%s616_s0 + $0x63] ss:$8 sm:$0x3] }
   0xf   :  { %v41_v36 = vmax.f32 %v35_v30, %v278_v27  ;;  %v282_v40 = vld [vmem:[%s616_s0 + $0x81] ss:$8 sm:$0x3]  ;;  %v83_v41 = vmax.f32 %v79_v34, %v291_v31  ;;  %v74_v42 = vmax.f32 %v286_v37, %v288_v38  ;;  %v290_v43 = vld [vmem:[%s616_s0 + $0x64] ss:$8 sm:$0x3] }
  0x10   :  { %v58_v39 = vmax.f32 %v52_v32, %v283_v26  ;;  %v295_v45 = vld [vmem:[%s616_s0 + $0x14] ss:$8 sm:$0x3]  ;;  %v292_v46 = vld [vmem:[%s616_s0 + $0x72] ss:$8 sm:$0x3] }
  0x11   :  { %v47_v44 = vmax.f32 %v41_v36, %v280_v33  ;;  %v284_v47 = vld [vmem:[%s616_s0 + $0x82] ss:$8 sm:$0x3]  ;;  %v89_v48 = vmax.f32 %v83_v41, %v293_v35  ;;  %v80_v50 = vmax.f32 %v74_v42, %v290_v43  ;;  %v294_v52 = vld [vmem:[%s616_s0 + $0x73] ss:$8 sm:$0x3] }
  0x12   :  { %64 = vst.msk [vmem:[#allocation2] ss:$2 sm:$0x3] %vm431_vm0, %v58_v39  ;;  %v297_v49 = vld [vmem:[%s616_s0 + $0x22] ss:$8 sm:$0x3] }
  0x13   :  { %v53_v51 = vmax.f32 %v47_v44, %v282_v40  ;;  %v303_v53 = vld [vmem:[%s616_s0 + $0x20] ss:$8 sm:$0x3]  ;;  %v95_v54 = vmax.f32 %v89_v48, %v295_v45  ;;  %v84_v55 = vmax.f32 %v80_v50, %v292_v46  ;;  %v305_v56 = vld [vmem:[%s616_s0 + $0x21] ss:$8 sm:$0x3] }
  0x14   :  { %v307_v57 = vld [vmem:[%s616_s0 + $0x22] ss:$8 sm:$0x3]  ;;  %v299_v59 = vld [vmem:[%s616_s0 + $0x23] ss:$8 sm:$0x3]  ;;  %v121_v61 = vmax.f32 %v303_v53, %v305_v56 }
  0x15   :  { %v59_v58 = vmax.f32 %v53_v51, %v284_v47  ;;  %v296_v60 = vld [vmem:[%s616_s0 + $0x74] ss:$8 sm:$0x3]  ;;  %v99_v62 = vmax.f32 %v95_v54, %v297_v49  ;;  %v301_v63 = vld [vmem:[%s616_s0 + $0x24] ss:$8 sm:$0x3]  ;;  %v90_v0 = vmax.f32 %v84_v55, %v294_v52 }
  0x16   :  { %v309_v1 = vld [vmem:[%s616_s0 + $0x30] ss:$8 sm:$0x3]  ;;  %v298_v2 = vld [vmem:[%s616_s0 + $0x82] ss:$8 sm:$0x3]  ;;  %v125_v3 = vmax.f32 %v121_v61, %v307_v57 }
  0x17   :  { %66 = vst.msk [vmem:[#allocation2 + $0x8] ss:$2 sm:$0x3] %vm431_vm0, %v59_v58  ;;  %v311_v4 = vld [vmem:[%s616_s0 + $0x31] ss:$8 sm:$0x3]  ;;  %v105_v5 = vmax.f32 %v99_v62, %v299_v59  ;;  %v96_v6 = vmax.f32 %v90_v0, %v296_v60 }
  0x18   :  { %v304_v7 = vld [vmem:[%s616_s0 + $0x80] ss:$8 sm:$0x3]  ;;  %v306_v8 = vld [vmem:[%s616_s0 + $0x81] ss:$8 sm:$0x3]  ;;  %v131_v10 = vmax.f32 %v125_v3, %v309_v1 }
  0x19   :  { %v300_v9 = vld [vmem:[%s616_s0 + $0x83] ss:$8 sm:$0x3]  ;;  %v122_v11 = vmax.f32 %v304_v7, %v306_v8  ;;  %v308_v12 = vld [vmem:[%s616_s0 + $0x82] ss:$8 sm:$0x3]  ;;  %v111_v13 = vmax.f32 %v105_v5, %v301_v63  ;;  %v100_v14 = vmax.f32 %v96_v6, %v298_v2 }
  0x1a   :  { %v313_v15 = vld [vmem:[%s616_s0 + $0x32] ss:$8 sm:$0x3]  ;;  %v310_v16 = vld [vmem:[%s616_s0 + $0x90] ss:$8 sm:$0x3]  ;;  %v137_v18 = vmax.f32 %v131_v10, %v311_v4 }
  0x1b   :  { %v302_v17 = vld [vmem:[%s616_s0 + $0x84] ss:$8 sm:$0x3]  ;;  %v315_v19 = vld [vmem:[%s616_s0 + $0x40] ss:$8 sm:$0x3]  ;;  %v126_v20 = vmax.f32 %v122_v11, %v308_v12  ;;  %v106_v21 = vmax.f32 %v100_v14, %v300_v9 }
  0x1c   :  { %114 = vst.msk [vmem:[#allocation2 + $0x1] ss:$2 sm:$0x3] %vm431_vm0, %v111_v13  ;;  %v312_v22 = vld [vmem:[%s616_s0 + $0x91] ss:$8 sm:$0x3]  ;;  %v143_v24 = vmax.f32 %v137_v18, %v313_v15 }
  0x1d   :  { %v321_v23 = vld [vmem:[%s616_s0 + $0x22] ss:$8 sm:$0x3]  ;;  %v132_v25 = vmax.f32 %v126_v20, %v310_v16  ;;  %v323_v26 = vld [vmem:[%s616_s0 + $0x23] ss:$8 sm:$0x3]  ;;  %v112_v28 = vmax.f32 %v106_v21, %v302_v17 }
  0x1e   :  { %v325_v27 = vld [vmem:[%s616_s0 + $0x24] ss:$8 sm:$0x3]  ;;  %v317_v30 = vld [vmem:[%s616_s0 + $0x41] ss:$8 sm:$0x3]  ;;  %v171_v32 = vmax.f32 %v321_v23, %v323_v26  ;;  %v149_v33 = vmax.f32 %v143_v24, %v315_v19 }
  0x1f   :  { %v314_v31 = vld [vmem:[%s616_s0 + $0x92] ss:$8 sm:$0x3]  ;;  %v319_v34 = vld [vmem:[%s616_s0 + $0x42] ss:$8 sm:$0x3]  ;;  %v138_v35 = vmax.f32 %v132_v25, %v312_v22 }
  0x20   :  { %v327_v36 = vld [vmem:[%s616_s0 + $0x32] ss:$8 sm:$0x3]  ;;  %116 = vst.msk [vmem:[#allocation2 + $0x9] ss:$2 sm:$0x3] %vm431_vm0, %v112_v28  ;;  %v175_v38 = vmax.f32 %v171_v32, %v325_v27  ;;  %v155_v40 = vmax.f32 %v149_v33, %v317_v30 }
  0x21   :  { %v316_v37 = vld [vmem:[%s616_s0 + $0xa0] ss:$8 sm:$0x3]  ;;  %v329_v39 = vld [vmem:[%s616_s0 + $0x33] ss:$8 sm:$0x3]  ;;  %v144_v41 = vmax.f32 %v138_v35, %v314_v31 }
  0x22   :  { %v322_v42 = vld [vmem:[%s616_s0 + $0x82] ss:$8 sm:$0x3]  ;;  %v324_v43 = vld [vmem:[%s616_s0 + $0x83] ss:$8 sm:$0x3]  ;;  %v179_v45 = vmax.f32 %v175_v38, %v327_v36  ;;  %v161_v48 = vmax.f32 %v155_v40, %v319_v34 }
  0x23   :  { %v318_v44 = vld [vmem:[%s616_s0 + $0xa1] ss:$8 sm:$0x3]  ;;  %v172_v46 = vmax.f32 %v322_v42, %v324_v43  ;;  %v326_v47 = vld [vmem:[%s616_s0 + $0x84] ss:$8 sm:$0x3]  ;;  %v150_v49 = vmax.f32 %v144_v41, %v316_v37 }
  0x24   :  { %v331_v50 = vld [vmem:[%s616_s0 + $0x34] ss:$8 sm:$0x3]  ;;  %v328_v51 = vld [vmem:[%s616_s0 + $0x92] ss:$8 sm:$0x3]  ;;  %v185_v53 = vmax.f32 %v179_v45, %v329_v39 }
  0x25   :  { %v320_v52 = vld [vmem:[%s616_s0 + $0xa2] ss:$8 sm:$0x3]  ;;  %v176_v54 = vmax.f32 %v172_v46, %v326_v47  ;;  %164 = vst.msk [vmem:[#allocation2 + $0x4] ss:$2 sm:$0x3] %vm431_vm0, %v161_v48  ;;  %v156_v55 = vmax.f32 %v150_v49, %v318_v44 }
  0x26   :  { %v333_v56 = vld [vmem:[%s616_s0 + $0x42] ss:$8 sm:$0x3]  ;;  %v330_v57 = vld [vmem:[%s616_s0 + $0x93] ss:$8 sm:$0x3]  ;;  %v191_v58 = vmax.f32 %v185_v53, %v331_v50 }
  0x27   :  { %v180_v59 = vmax.f32 %v176_v54, %v328_v51  ;;  %v162_v60 = vmax.f32 %v156_v55, %v320_v52  ;;  %v335_v61 = vld [vmem:[%s616_s0 + $0x43] ss:$8 sm:$0x3]  ;;  %v332_v62 = vld [vmem:[%s616_s0 + $0x94] ss:$8 sm:$0x3] }
  0x28   :  { %v195_v63 = vmax.f32 %v191_v58, %v333_v56  ;;  %v337_v1 = vld [vmem:[%s616_s0 + $0x44] ss:$8 sm:$0x3]  ;;  %v334_v2 = vld [vmem:[%s616_s0 + $0xa2] ss:$8 sm:$0x3] }
  0x29   :  { %v186_v0 = vmax.f32 %v180_v59, %v330_v57  ;;  %166 = vst.msk [vmem:[#allocation2 + $0xc] ss:$2 sm:$0x3] %vm431_vm0, %v162_v60  ;;  %v336_v5 = vld [vmem:[%s616_s0 + $0xa3] ss:$8 sm:$0x3] }
  0x2a   :  { %v201_v3 = vmax.f32 %v195_v63, %v335_v61  ;;  %v338_v8 = vld [vmem:[%s616_s0 + $0xa4] ss:$8 sm:$0x3]  ;;  %s342_s7 = scalar_lea.vmem %s219_s6, 256 }
  0x2b   :  { %v192_v4 = vmax.f32 %v186_v0, %v332_v62  ;;  %p343_p0 = scmp.ne.s32.totalorder %s219_s6, %s342_s7  ;;  %p348_p2 = scmp.lt.s32.totalorder %s342_s7, %s342_s7 }
  0x2c   :  { %v207_v6 = vmax.f32 %v201_v3, %v337_v1 }
  0x2d   :  { %v196_v7 = vmax.f32 %v192_v4, %v334_v2  ;;  %p349_p3 = por %p348_p2, %p347_p1 }
  0x2e   :  { %210 = vst.msk [vmem:[#allocation2 + $0x5] ss:$2 sm:$0x3] %vm431_vm0, %v207_v6 }
  0x2f   :  { %v202_v9 = vmax.f32 %v196_v7, %v336_v5  ;;  %p350_p4 = pnand %p349_p3, %p343_p0 }
  0x31   :  { %v208_v10 = vmax.f32 %v202_v9, %v338_v8 }
  0x33   :  { %212 = vst.msk [vmem:[#allocation2 + $0xd] ss:$2 sm:$0x3] %vm431_vm0, %v208_v10 }
  0x34   :  { %353 = shalt.err (!%p350_p4)
}
  0x35   :  { %s365_s8 = smov 64   ;;  %s366_s0 = smov 4  }
  0x36   :  { %224 = dma.vmem_to_hbm [thread:$0]  %s219_s6, 256, %s617_s1, [#allocation3], %s365_s8, %s365_s8, %s366_s0  }
  0x37   :  { %362 = dma.done.wait [#allocation3], 256  }
  0x38   :  { %363 = vsyncadd [#allocation3], 4294967040 }
  0x39   :  { %228 = vsyncpa [#allocation3], 1 }

</bundles_post_ra>
